<compile_context>
chip_gen: v7x
topology: tpu7x:2x2x1
jax: 0.10.0
libtpu: 0.0.40
codegen_flags: <defaults>
</compile_context>

<pallas_src>
import numpy as np
import jax
import jax.numpy as jnp
from jax.experimental import pallas as pl
from jax.experimental.pallas import tpu as pltpu

W0 = 30.0


# ----------------------------- parameter setup -----------------------------
def init_siren_params(key, in_f, out_f, is_first):
    """Mirrors SirenLayer.init_weights + torch Conv2d default bias init.
    Weight stored as (in_f, out_f); bias as (1, out_f)."""
    kw, kb = jax.random.split(key)
    wb = (1.0 / in_f) if is_first else (np.sqrt(6.0 / in_f) / W0)
    w = jax.random.uniform(kw, (in_f, out_f), jnp.float32, minval=-wb, maxval=wb)
    bb = 1.0 / np.sqrt(in_f)  # Conv2d default bias bound (fan_in = in_f * 1 * 1)
    b = jax.random.uniform(kb, (1, out_f), jnp.float32, minval=-bb, maxval=bb)
    return w, b


def build_inf_params(key, num_layers, hidden_dim, add_layer):
    """Returns (color_params, spatial_params, output_params) lists of (w, b)."""
    keys = iter(jax.random.split(key, 64))
    color, spatial, output = [], [], []
    color.append(init_siren_params(next(keys), 3, hidden_dim, True))
    spatial.append(init_siren_params(next(keys), 2, hidden_dim, True))
    for _ in range(1, add_layer - 2):
        color.append(init_siren_params(next(keys), hidden_dim, hidden_dim, False))
        spatial.append(init_siren_params(next(keys), hidden_dim, hidden_dim, False))
    color.append(init_siren_params(next(keys), hidden_dim, hidden_dim // 2, False))
    spatial.append(init_siren_params(next(keys), hidden_dim, hidden_dim // 2, False))
    for _ in range(add_layer, num_layers - 1):
        output.append(init_siren_params(next(keys), hidden_dim, hidden_dim, False))
    output.append(init_siren_params(next(keys), hidden_dim, 3, False))  # is_last: no sin
    return color, spatial, output


# -------- fuse color/spatial + transpose + fold W0 (host side, tiny arrays) --------
def prepare_kernel_params(color_params, spatial_params, output_params,
                          weight_dtype=jnp.float32):
    """Block-diagonal fusion of the color/spatial chains, weights transposed to
    (out, in) for the channel-major layout, W0 folded into all non-last layers."""
    fused = []
    for (wc, bc), (ws, bs) in zip(color_params, spatial_params):
        wct, wst = wc.T, ws.T  # (out, in)
        oc, ic = wct.shape
        osp, isp = wst.shape
        w = jnp.zeros((oc + osp, ic + isp), jnp.float32)
        w = w.at[:oc, :ic].set(wct)
        w = w.at[oc:, ic:].set(wst)
        b = jnp.concatenate([bc.reshape(-1, 1), bs.reshape(-1, 1)], axis=0)  # (oc+osp, 1)
        fused.append(((W0 * w).astype(weight_dtype), (W0 * b).astype(jnp.float32)))

    out = []
    n = len(output_params)
    for i, (w, b) in enumerate(output_params):
        s = 1.0 if i == n - 1 else W0  # last layer: no sin, no W0
        out.append(((s * w.T).astype(weight_dtype),
                    (s * b.reshape(-1, 1)).astype(jnp.float32)))
    return fused, out


# -------------------------------- the kernel --------------------------------
def make_inf_kernel(n_fused, n_output):
    def kernel(*refs):
        h = refs[0][...]  # (5, tm): channel-major pixel tile (rgb rows 0:3, xy rows 3:5)
        idx = 1

        # fused color+spatial SIREN chain (block-diagonal weights, W0 pre-folded)
        for _ in range(n_fused):
            w = refs[idx][...]
            b = refs[idx + 1][...]
            idx += 2
            h = jnp.sin(jnp.dot(w, h.astype(w.dtype),
                                preferred_element_type=jnp.float32) + b)

        # output net (last layer: no sin)
        for i in range(n_output):
            w = refs[idx][...]
            b = refs[idx + 1][...]
            idx += 2
            h = jnp.dot(w, h.astype(w.dtype), preferred_element_type=jnp.float32) + b
            if i != n_output - 1:
                h = jnp.sin(h)

        o_ref = refs[idx]
        o_ref[...] = h.astype(o_ref.dtype)  # (3, tm) lane-dense store

    return kernel


# ----------------------------- tile-size selection -----------------------------
def _pick_tile(HW, N, tm_req):
    """Largest lane-dense pixel tile (multiple of 256 -> full MXU passes on v6e/v7x,
    128 floor), capped at 16384 so intermediates (~0.6 KB/pixel) stay well inside
    every generation's scoped VMEM, keeping >=2 grid steps for v7x megacore and
    preferring a divisor of HW so no pad traffic is generated."""
    tm_req = int(max(128, min(tm_req, 16384)))
    if HW <= tm_req:
        return HW  # one full-extent tile per image (always a legal block)
    q = 256 if tm_req >= 512 else 128
    tm = max(q, (tm_req // q) * q)
    if N == 1 and HW // tm < 2:  # keep >=2 grid steps so v7x's 2 TCs both get work
        tm = max(q, ((HW // 2) // q) * q)
    for t in range(tm, q - 1, -q):  # prefer a tile that divides HW exactly
        if HW % t == 0:
            return t
    return tm  # fall back: small pad on the tail


# -------------------------------- the wrapper --------------------------------
def inf_forward(rgb_xy, color_params, spatial_params, output_params,
                tm=8192, weight_dtype=jnp.float32):
    """rgb_xy: (N, 5, H, W) float32 (NCHW, like PyTorch). Returns (N, 3, H, W)."""
    N, C, H, W = rgb_xy.shape
    assert C == 5
    HW = H * W

    # FREE view: NCHW -> (N, 5, H*W); no host transposes, no extra HBM traffic.
    x = rgb_xy.reshape(N, C, HW)

    tm = _pick_tile(HW, N, tm)
    HW_pad = ((HW + tm - 1) // tm) * tm
    if HW_pad != HW:
        x = jnp.pad(x, ((0, 0), (0, 0), (0, HW_pad - HW)))

    fused, outp = prepare_kernel_params(color_params, spatial_params, output_params,
                                        weight_dtype=weight_dtype)
    flat_params = []
    for w, b in fused + outp:
        flat_params += [w, b]

    def full_spec(arr):
        # weights / biases are tiny: keep the whole array resident every grid step
        return pl.BlockSpec(arr.shape, lambda n, i: (0, 0))

    in_specs = [pl.BlockSpec((None, C, tm), lambda n, i: (n, 0, i))]
    in_specs += [full_spec(p) for p in flat_params]
    out_specs = pl.BlockSpec((None, 3, tm), lambda n, i: (n, 0, i))

    kernel = make_inf_kernel(len(fused), len(outp))

    out = pl.pallas_call(
        kernel,
        out_shape=jax.ShapeDtypeStruct((N, 3, HW_pad), jnp.float32),
        grid_spec=pltpu.PrefetchScalarGridSpec(
            num_scalar_prefetch=0,
            grid=(N, HW_pad // tm),
            in_specs=in_specs,
            out_specs=out_specs,
        ),
        compiler_params=pltpu.CompilerParams(
            dimension_semantics=("parallel", "parallel"),
            # big tiles need more than v5e's 16 MiB scoped default; 32 MiB is safe
            # on all of v5e/v6e (128 MiB physical) and v7x (64 MiB physical).
            vmem_limit_bytes=32 * 1024 * 1024,
        ),
    )(x, *flat_params)

    if HW_pad != HW:
        out = out[:, :, :HW]
    return out.reshape(N, 3, H, W)  # free view back to NCHW


# ---------------------------- pure-JAX reference ----------------------------
def inf_reference(rgb_xy, color_params, spatial_params, output_params):
    N, C, H, W = rgb_xy.shape
    x = jnp.transpose(rgb_xy, (0, 2, 3, 1)).reshape(N * H * W, C)

    def chain(h, params, last_has_sin):
        n = len(params)
        for i, (w, b) in enumerate(params):
            h = h @ w + b
            if i != n - 1 or last_has_sin:
                h = jnp.sin(W0 * h)
        return h

    h_c = chain(x[:, 0:3], color_params, True)
    h_s = chain(x[:, 3:5], spatial_params, True)
    h = chain(jnp.concatenate([h_c, h_s], axis=-1), output_params, False)
    return jnp.transpose(h.reshape(N, H, W, 3), (0, 3, 1, 2))


if __name__ == "__main__":
    # INF(num_layers=5, hidden_dim=32, add_layer=2)
    num_layers, hidden_dim, add_layer = 5, 32, 2
    key = jax.random.PRNGKey(0)
    pkey, xkey = jax.random.split(key)
    color_params, spatial_params, output_params = build_inf_params(
        pkey, num_layers, hidden_dim, add_layer
    )

    # small input consistent with forward: (N, 5, H, W), HW = 1024 pixels / image
    N, Hs, Ws = 2, 32, 32
    rgb_xy = jax.random.uniform(xkey, (N, 5, Hs, Ws), jnp.float32)

    ref = inf_reference(rgb_xy, color_params, spatial_params, output_params)

    # tm=256 exercises the multi-tile 2-D grid (2, 4); tm=8192 (production default)
    # collapses to one full-extent tile per image -> grid (2, 1).
    for tile in (256, 8192):
        out = inf_forward(rgb_xy, color_params, spatial_params, output_params, tm=tile)
        out = jax.block_until_ready(out)
        assert out.shape == (N, 3, Hs, Ws)
        np.testing.assert_allclose(np.asarray(out), np.asarray(ref),
                                   rtol=5e-5, atol=5e-5)

    print("KERNEL_OK")
</pallas_src>

<mosaic_0001>
module attributes {stable_mosaic.version = 11 : i64} {
  func.func @kernel(%arg0: i32, %arg1: i32, %arg2: memref<1x5x256xf32, #tpu.memory_space<vmem>>, %arg3: memref<64x5xf32, #tpu.memory_space<vmem>>, %arg4: memref<64x1xf32, #tpu.memory_space<vmem>>, %arg5: memref<32x64xf32, #tpu.memory_space<vmem>>, %arg6: memref<32x1xf32, #tpu.memory_space<vmem>>, %arg7: memref<32x32xf32, #tpu.memory_space<vmem>>, %arg8: memref<32x1xf32, #tpu.memory_space<vmem>>, %arg9: memref<32x32xf32, #tpu.memory_space<vmem>>, %arg10: memref<32x1xf32, #tpu.memory_space<vmem>>, %arg11: memref<3x32xf32, #tpu.memory_space<vmem>>, %arg12: memref<3x1xf32, #tpu.memory_space<vmem>>, %arg13: memref<1x3x256xf32, #tpu.memory_space<vmem>>) attributes {dimension_semantics = [#tpu.dimension_semantics<parallel>, #tpu.dimension_semantics<parallel>], iteration_bounds = array<i64: 2, 4>, scalar_prefetch = 0 : i64, scratch_operands = 0 : i64, tpu.core_type = #tpu.core_type<tc>, window_params = [{transform_indices = @transform_0, window_bounds = array<i64: 1, 5, 256>}, {pipeline_mode = #tpu.pipeline_mode<synchronous>, transform_indices = @transform_1, window_bounds = array<i64: 64, 5>}, {pipeline_mode = #tpu.pipeline_mode<synchronous>, transform_indices = @transform_2, window_bounds = array<i64: 64, 1>}, {pipeline_mode = #tpu.pipeline_mode<synchronous>, transform_indices = @transform_3, window_bounds = array<i64: 32, 64>}, {pipeline_mode = #tpu.pipeline_mode<synchronous>, transform_indices = @transform_4, window_bounds = array<i64: 32, 1>}, {pipeline_mode = #tpu.pipeline_mode<synchronous>, transform_indices = @transform_5, window_bounds = array<i64: 32, 32>}, {pipeline_mode = #tpu.pipeline_mode<synchronous>, transform_indices = @transform_6, window_bounds = array<i64: 32, 1>}, {pipeline_mode = #tpu.pipeline_mode<synchronous>, transform_indices = @transform_7, window_bounds = array<i64: 32, 32>}, {pipeline_mode = #tpu.pipeline_mode<synchronous>, transform_indices = @transform_8, window_bounds = array<i64: 32, 1>}, {pipeline_mode = #tpu.pipeline_mode<synchronous>, transform_indices = @transform_9, window_bounds = array<i64: 3, 32>}, {pipeline_mode = #tpu.pipeline_mode<synchronous>, transform_indices = @transform_10, window_bounds = array<i64: 3, 1>}, {transform_indices = @transform_11, window_bounds = array<i64: 1, 3, 256>}]} {
    %c0 = arith.constant 0 : index
    %c0_0 = arith.constant 0 : index
    %c0_1 = arith.constant 0 : index
    %0 = vector.load %arg2[%c0, %c0_0, %c0_1] : memref<1x5x256xf32, #tpu.memory_space<vmem>>, vector<1x5x256xf32>
    %1 = vector.shape_cast %0 : vector<1x5x256xf32> to vector<5x256xf32>
    %c0_2 = arith.constant 0 : index
    %c0_3 = arith.constant 0 : index
    %2 = vector.load %arg3[%c0_2, %c0_3] : memref<64x5xf32, #tpu.memory_space<vmem>>, vector<64x5xf32>
    %c0_4 = arith.constant 0 : index
    %c0_5 = arith.constant 0 : index
    %3 = vector.load %arg4[%c0_4, %c0_5] : memref<64x1xf32, #tpu.memory_space<vmem>>, vector<64x1xf32>
    %cst = arith.constant dense<0.000000e+00> : vector<64x256xf32>
    %4 = tpu.matmul %2, %1, %cst {dimension_numbers = #tpu.dot_dimension_numbers<[1], [0], [0], [1], [0, 0, 1, 1], [], []>} : vector<64x5xf32>, vector<5x256xf32>, vector<64x256xf32> -> vector<64x256xf32>
    %5 = vector.broadcast %3 : vector<64x1xf32> to vector<64x256xf32>
    %6 = arith.addf %4, %5 : vector<64x256xf32>
    %7 = math.sin %6 : vector<64x256xf32>
    %c0_6 = arith.constant 0 : index
    %c0_7 = arith.constant 0 : index
    %8 = vector.load %arg5[%c0_6, %c0_7] : memref<32x64xf32, #tpu.memory_space<vmem>>, vector<32x64xf32>
    %c0_8 = arith.constant 0 : index
    %c0_9 = arith.constant 0 : index
    %9 = vector.load %arg6[%c0_8, %c0_9] : memref<32x1xf32, #tpu.memory_space<vmem>>, vector<32x1xf32>
    %cst_10 = arith.constant dense<0.000000e+00> : vector<32x256xf32>
    %10 = tpu.matmul %8, %7, %cst_10 {dimension_numbers = #tpu.dot_dimension_numbers<[1], [0], [0], [1], [0, 0, 1, 1], [], []>} : vector<32x64xf32>, vector<64x256xf32>, vector<32x256xf32> -> vector<32x256xf32>
    %11 = vector.broadcast %9 : vector<32x1xf32> to vector<32x256xf32>
    %12 = arith.addf %10, %11 : vector<32x256xf32>
    %13 = math.sin %12 : vector<32x256xf32>
    %c0_11 = arith.constant 0 : index
    %c0_12 = arith.constant 0 : index
    %14 = vector.load %arg7[%c0_11, %c0_12] : memref<32x32xf32, #tpu.memory_space<vmem>>, vector<32x32xf32>
    %c0_13 = arith.constant 0 : index
    %c0_14 = arith.constant 0 : index
    %15 = vector.load %arg8[%c0_13, %c0_14] : memref<32x1xf32, #tpu.memory_space<vmem>>, vector<32x1xf32>
    %cst_15 = arith.constant dense<0.000000e+00> : vector<32x256xf32>
    %16 = tpu.matmul %14, %13, %cst_15 {dimension_numbers = #tpu.dot_dimension_numbers<[1], [0], [0], [1], [0, 0, 1, 1], [], []>} : vector<32x32xf32>, vector<32x256xf32>, vector<32x256xf32> -> vector<32x256xf32>
    %17 = vector.broadcast %15 : vector<32x1xf32> to vector<32x256xf32>
    %18 = arith.addf %16, %17 : vector<32x256xf32>
    %19 = math.sin %18 : vector<32x256xf32>
    %c0_16 = arith.constant 0 : index
    %c0_17 = arith.constant 0 : index
    %20 = vector.load %arg9[%c0_16, %c0_17] : memref<32x32xf32, #tpu.memory_space<vmem>>, vector<32x32xf32>
    %c0_18 = arith.constant 0 : index
    %c0_19 = arith.constant 0 : index
    %21 = vector.load %arg10[%c0_18, %c0_19] : memref<32x1xf32, #tpu.memory_space<vmem>>, vector<32x1xf32>
    %cst_20 = arith.constant dense<0.000000e+00> : vector<32x256xf32>
    %22 = tpu.matmul %20, %19, %cst_20 {dimension_numbers = #tpu.dot_dimension_numbers<[1], [0], [0], [1], [0, 0, 1, 1], [], []>} : vector<32x32xf32>, vector<32x256xf32>, vector<32x256xf32> -> vector<32x256xf32>
    %23 = vector.broadcast %21 : vector<32x1xf32> to vector<32x256xf32>
    %24 = arith.addf %22, %23 : vector<32x256xf32>
    %25 = math.sin %24 : vector<32x256xf32>
    %c0_21 = arith.constant 0 : index
    %c0_22 = arith.constant 0 : index
    %26 = vector.load %arg11[%c0_21, %c0_22] : memref<3x32xf32, #tpu.memory_space<vmem>>, vector<3x32xf32>
    %c0_23 = arith.constant 0 : index
    %c0_24 = arith.constant 0 : index
    %27 = vector.load %arg12[%c0_23, %c0_24] : memref<3x1xf32, #tpu.memory_space<vmem>>, vector<3x1xf32>
    %cst_25 = arith.constant dense<0.000000e+00> : vector<3x256xf32>
    %28 = tpu.matmul %26, %25, %cst_25 {dimension_numbers = #tpu.dot_dimension_numbers<[1], [0], [0], [1], [0, 0, 1, 1], [], []>} : vector<3x32xf32>, vector<32x256xf32>, vector<3x256xf32> -> vector<3x256xf32>
    %29 = vector.broadcast %27 : vector<3x1xf32> to vector<3x256xf32>
    %30 = arith.addf %28, %29 : vector<3x256xf32>
    %c0_26 = arith.constant 0 : index
    %c0_27 = arith.constant 0 : index
    %c0_28 = arith.constant 0 : index
    %31 = vector.load %arg13[%c0_26, %c0_27, %c0_28] : memref<1x3x256xf32, #tpu.memory_space<vmem>>, vector<1x3x256xf32>
    %32 = vector.shape_cast %31 : vector<1x3x256xf32> to vector<3x256xf32>
    %33 = vector.shape_cast %30 : vector<3x256xf32> to vector<1x3x256xf32>
    tpu.vector_store %arg13[%c0_26, %c0_27, %c0_28], %33 {strides = array<i32>} : memref<1x3x256xf32, #tpu.memory_space<vmem>>, vector<1x3x256xf32>,
    return
  }
  func.func @transform_0(%arg0: i32, %arg1: i32) -> (i32, i32, i32) {
    %c0_i32 = arith.constant 0 : i32
    %c0_i32_0 = arith.constant 0 : i32
    return %arg0, %c0_i32, %arg1 : i32, i32, i32
  }
  func.func @transform_1(%arg0: i32, %arg1: i32) -> (i32, i32) {
    %c0_i32 = arith.constant 0 : i32
    %c0_i32_0 = arith.constant 0 : i32
    %c0_i32_1 = arith.constant 0 : i32
    return %c0_i32, %c0_i32_0 : i32, i32
  }
  func.func @transform_2(%arg0: i32, %arg1: i32) -> (i32, i32) {
    %c0_i32 = arith.constant 0 : i32
    %c0_i32_0 = arith.constant 0 : i32
    %c0_i32_1 = arith.constant 0 : i32
    return %c0_i32, %c0_i32_0 : i32, i32
  }
  func.func @transform_3(%arg0: i32, %arg1: i32) -> (i32, i32) {
    %c0_i32 = arith.constant 0 : i32
    %c0_i32_0 = arith.constant 0 : i32
    %c0_i32_1 = arith.constant 0 : i32
    return %c0_i32, %c0_i32_0 : i32, i32
  }
  func.func @transform_4(%arg0: i32, %arg1: i32) -> (i32, i32) {
    %c0_i32 = arith.constant 0 : i32
    %c0_i32_0 = arith.constant 0 : i32
    %c0_i32_1 = arith.constant 0 : i32
    return %c0_i32, %c0_i32_0 : i32, i32
  }
  func.func @transform_5(%arg0: i32, %arg1: i32) -> (i32, i32) {
    %c0_i32 = arith.constant 0 : i32
    %c0_i32_0 = arith.constant 0 : i32
    %c0_i32_1 = arith.constant 0 : i32
    return %c0_i32, %c0_i32_0 : i32, i32
  }
  func.func @transform_6(%arg0: i32, %arg1: i32) -> (i32, i32) {
    %c0_i32 = arith.constant 0 : i32
    %c0_i32_0 = arith.constant 0 : i32
    %c0_i32_1 = arith.constant 0 : i32
    return %c0_i32, %c0_i32_0 : i32, i32
  }
  func.func @transform_7(%arg0: i32, %arg1: i32) -> (i32, i32) {
    %c0_i32 = arith.constant 0 : i32
    %c0_i32_0 = arith.constant 0 : i32
    %c0_i32_1 = arith.constant 0 : i32
    return %c0_i32, %c0_i32_0 : i32, i32
  }
  func.func @transform_8(%arg0: i32, %arg1: i32) -> (i32, i32) {
    %c0_i32 = arith.constant 0 : i32
    %c0_i32_0 = arith.constant 0 : i32
    %c0_i32_1 = arith.constant 0 : i32
    return %c0_i32, %c0_i32_0 : i32, i32
  }
  func.func @transform_9(%arg0: i32, %arg1: i32) -> (i32, i32) {
    %c0_i32 = arith.constant 0 : i32
    %c0_i32_0 = arith.constant 0 : i32
    %c0_i32_1 = arith.constant 0 : i32
    return %c0_i32, %c0_i32_0 : i32, i32
  }
  func.func @transform_10(%arg0: i32, %arg1: i32) -> (i32, i32) {
    %c0_i32 = arith.constant 0 : i32
    %c0_i32_0 = arith.constant 0 : i32
    %c0_i32_1 = arith.constant 0 : i32
    return %c0_i32, %c0_i32_0 : i32, i32
  }
  func.func @transform_11(%arg0: i32, %arg1: i32) -> (i32, i32, i32) {
    %c0_i32 = arith.constant 0 : i32
    %c0_i32_0 = arith.constant 0 : i32
    return %arg0, %c0_i32, %arg1 : i32, i32, i32
  }
}

</mosaic_0001>

<bundles_post_ra>
// kernel: tpu_custom_call.1
= control target key start
LH: loop header
LB: loop body
LE: loop exit
PB: predicated region body
PF: predicated region fallthrough
CT: control target
= control target key end

     0   :  { %s6068_s17 = smov 0   ;;  %s6070_s18 = smov 0   ;;  %s9838_s0 = inlined_call_operand.vmem [shape: f32[2,5,1024], index: 0, kind: input, shape index: {}]   ;;  %s9839_s1 = inlined_call_operand.vmem [shape: f32[64,5], index: 1, kind: input, shape index: {}]   ;;  %s9840_s2 = inlined_call_operand.vmem [shape: f32[64,1], index: 2, kind: input, shape index: {}]   ;;  %s9841_s3 = inlined_call_operand.vmem [shape: f32[32,64], index: 3, kind: input, shape index: {}]   ;;  %s9842_s4 = inlined_call_operand.vmem [shape: f32[32,1], index: 4, kind: input, shape index: {}]   ;;  %s9843_s5 = inlined_call_operand.vmem [shape: f32[32,32], index: 5, kind: input, shape index: {}]   ;;  %s9844_s6 = inlined_call_operand.vmem [shape: f32[32,1], index: 6, kind: input, shape index: {}]   ;;  %s9845_s7 = inlined_call_operand.vmem [shape: f32[32,32], index: 7, kind: input, shape index: {}]   ;;  %s9846_s8 = inlined_call_operand.vmem [shape: f32[32,1], index: 8, kind: input, shape index: {}]   ;;  %s9847_s9 = inlined_call_operand.vmem [shape: f32[3,32], index: 9, kind: input, shape index: {}]   ;;  %s9848_s10 = inlined_call_operand.vmem [shape: f32[3,1], index: 10, kind: input, shape index: {}]   ;;  %s9849_s11 = inlined_call_operand.vmem [shape: f32[2,3,1024], index: 11, kind: output, shape index: {}]  }
   0x1   :  { %s6072_s19 = smov 0   ;;  %s6074_s20 = smov 0  }
   0x2   :  { %s6076_s21 = smov 0  }
   0x3 LB: > { %s30_s22 = sadd.s32 1, %s5990_s19  ;;  %s33_s23 = sadd.s32 1, %s5994_s20  ;;  %s5998_s21 = sphi %s6076_s21, %s21_s21   ;;  %s5994_s20 = sphi %s6074_s20, %s10251_s20   ;;  %s5990_s19 = sphi %s6072_s19, %s10250_s19   ;;  %s5986_s18 = sphi %s6070_s18, %s10249_s18   ;;  %s5982_s17 = sphi %s6068_s17, %s10248_s17  }
   0x4   : > { %p31_p0 = scmp.ge.s32.totalorder %s30_s22, 4  ;;  %p5358_p1 = scmp.ge.s32.totalorder %s5998_s21, 1 }
   0x5   : > { %p358_p2 = scmp.lt.s32.totalorder %s5998_s21, 9 }
   0x6   : > { %s10253_s22 = smov (%p31_p0, %s30_s22), 0  ;;  %s10255_s23 = smov (!%p31_p0, %s33_s23), %s5994_s20 }
   0x7   : > { %p359_p3 = pnand %p5358_p1, %p358_p2  ;;  %p35_p4 = scmp.ge.s32.totalorder %s10255_s23, 2 }
   0x9   : > { %s10257_s23 = smov (%p35_p4, %s10255_s23), 0  ;;  %362 = sbr.rel (%p359_p3) target bundleno = 2192 (0x890), region = 64 }
  0x10   : > { %s5359_s24 = sshll.u32 %s5982_s17, 1  ;;  %p407_p5 = scmp.lt.s32.totalorder %s5986_s18, 1  ;;  %v9850_v0 = vmov 0.0   ;;  %v6001_v1 = vmov 0   ;;  %v436_v2 = vld [vmem:[%s9840_s2] sm:$0xff]  ;;  %v438_v3 = vld [vmem:[%s9840_s2 + $0x10] sm:$0xff] }
  0x11   : > { %p409_p6 = scmp.lt.s32.totalorder %s5359_s24, 7  ;;  %580 = vmatprep.mubr.f32.mxu0 %v9850_v0  ;;  %2398 = vmatprep.mubr.f32.mxu1 %v9850_v0  ;;  %v437_v4 = vld [vmem:[%s9840_s2 + $0x8] sm:$0xff]  ;;  %vm509_vm0 = vcmask 1044480   ;;  %v439_v5 = vld [vmem:[%s9840_s2 + $0x18] sm:$0xff]  ;;  %v428_v8 = vld [vmem:[%s9839_s1] sm:$0xff]  ;;  %vm484_vm1 = vcmask 39936  }
  0x12   : > { %s10259_s18 = smov (!%p407_p5, %s5986_s18), 1  ;;  %5798 = vset.pattern.permute.xlu0 %v6001_v1  ;;  %5799 = vset.pattern.permute.xlu1 %v6001_v1  ;;  %v440_v9 = vld [vmem:[%s9840_s2 + $0x20] sm:$0xff]  ;;  %v441_v10 = vld [vmem:[%s9840_s2 + $0x28] sm:$0xff]  ;;  %v442_v12 = vld [vmem:[%s9840_s2 + $0x30] sm:$0xff] }
  0x13   : > { %s10261_s24 = smov (!%p409_p6, %s5359_s24), 7  ;;  %s5360_s27 = sshll.u32 %s10259_s18, 3  ;;  %446 = vperm.xlu0 %5798, %v436_v2   ;;  %456 = vperm.xlu1 %5799, %v438_v3   ;;  %v429_v11 = vld [vmem:[%s9839_s1 + $0x8] sm:$0xff]  ;;  %v443_v13 = vld [vmem:[%s9840_s2 + $0x38] sm:$0xff]  ;;  %v430_v14 = vld [vmem:[%s9839_s1 + $0x10] sm:$0xff] }
  0x14   : > { %s6106_s30 = sadd.s32 %s5360_s27, %s10261_s24  ;;  %v2297_v15 = vld [vmem:[%s9842_s4] sm:$0xff]  ;;  %v2298_v16 = vld [vmem:[%s9842_s4 + $0x8] sm:$0xff]  ;;  %v431_v17 = vld [vmem:[%s9839_s1 + $0x18] sm:$0xff] }
  0x15   : > { %s5361_s14 = sshll.u32 %s6106_s30, 3  ;;  %v2299_v18 = vld [vmem:[%s9842_s4 + $0x10] sm:$0xff]  ;;  %v2300_v19 = vld [vmem:[%s9842_s4 + $0x18] sm:$0xff]  ;;  %v432_v20 = vld [vmem:[%s9839_s1 + $0x20] sm:$0xff]  ;;  %s5364_s18 = sshll.u32 %s6106_s30, 2 }
  0x16   : > { %s414_s25 = scalar_lea.vmem %s9838_s0, %s5361_s14  ;;  %v3259_v21 = vld [vmem:[%s9844_s6] sm:$0xff]  ;;  %v3260_v22 = vld [vmem:[%s9844_s6 + $0x8] sm:$0xff]  ;;  %v3261_v24 = vld [vmem:[%s9844_s6 + $0x10] sm:$0xff]  ;;  %s424_s26 = scalar_lea.vmem %s9849_s11, %s5364_s18 }
  0x17   : > { %v427_v6 = vld [vmem:[%s414_s25 + $0x8] sm:$0x1f]  ;;  %v426_v7 = vld [vmem:[%s414_s25] sm:$0x1f]  ;;  %451 = vperm.xlu0 %5798, %v437_v4   ;;  %461 = vperm.xlu1 %5799, %v439_v5   ;;  %v3262_v25 = vld [vmem:[%s9844_s6 + $0x18] sm:$0xff] }
  0x18   : > { %5365 = vmatprep.subr.msk.mxu0 %vm509_vm0, %v427_v6  ;;  %v433_v23 = vld [vmem:[%s9839_s1 + $0x28] sm:$0xff]  ;;  %v434_v26 = vld [vmem:[%s9839_s1 + $0x30] sm:$0xff]  ;;  %v4221_v27 = vld [vmem:[%s9846_s8] sm:$0xff]  ;;  %v9863_v4 = vmov 683565275  }
  0x19   : > { %5366 = vmatpush1.msk.msra.mxu0 %vm509_vm0, %v426_v7  ;;  %v4222_v28 = vld [vmem:[%s9846_s8 + $0x8] sm:$0xff]  ;;  %v435_v29 = vld [vmem:[%s9839_s1 + $0x38] sm:$0xff]  ;;  %v4223_v30 = vld [vmem:[%s9846_s8 + $0x10] sm:$0xff]  ;;  %v9865_v6 = vmov 2475754826  }
  0x1a   : > { %5367 = vmatmul.mubr.msk.f32.vlgmr.msra.gmra.mrb[0].mxu0 %vm484_vm1, %v428_v8  ;;  %v4224_v31 = vld [vmem:[%s9846_s8 + $0x18] sm:$0xff]  ;;  %v5179_v32 = vld [vmem:[%s9848_s10] sm:$0x7] }
  0x1b   : > { %586 = vmatprep.mubr.f32.mxu0 %v9850_v0  ;;  %466 = vperm.xlu0 %5798, %v440_v9  }
  0x1c   : > { %471 = vperm.xlu1 %5799, %v441_v10  }
  0x1e   : > { %5368 = vmatmul.mubr.msk.f32.gmra.mrb[2].mxu0 %vm484_vm1, %v429_v11  ;;  %v9869_v11 = vmov 2131351028  }
  0x1f   : > { %592 = vmatprep.mubr.f32.mxu0 %v9850_v0  ;;  %476 = vperm.xlu0 %5798, %v442_v12  }
  0x20   : > { %481 = vperm.xlu1 %5799, %v443_v13  }
  0x22   : > { %5369 = vmatmul.mubr.msk.f32.gmra.mrb[4].mxu0 %vm484_vm1, %v430_v14  ;;  %v9856_v14 = vmov 2102212464  }
  0x23   : > { %598 = vmatprep.mubr.f32.mxu0 %v9850_v0  ;;  %2303 = vperm.xlu0 %5798, %v2297_v15  }
  0x24   : > { %2308 = vperm.xlu1 %5799, %v2298_v16  }
  0x26   : > { %5370 = vmatmul.mubr.msk.f32.gmra.mrb[6].mxu0 %vm484_vm1, %v431_v17 }
  0x27   : > { %604 = vmatprep.mubr.f32.mxu0 %v9850_v0  ;;  %2313 = vperm.xlu0 %5798, %v2299_v18   ;;  %v9861_v18 = vmov 920167782  }
  0x28   : > { %2318 = vperm.xlu1 %5799, %v2300_v19  }
  0x2a   : > { %5371 = vmatmul.mubr.msk.f32.gmra.mrb[8].mxu0 %vm484_vm1, %v432_v20 }
  0x2b   : > { %610 = vmatprep.mubr.f32.mxu0 %v9850_v0  ;;  %3265 = vperm.xlu0 %5798, %v3259_v21   ;;  %v9859_v21 = vmov 1326507024  }
  0x2c   : > { %3270 = vperm.xlu1 %5799, %v3260_v22  }
  0x2e   : > { %5372 = vmatmul.mubr.msk.f32.gmra.mrb[10].mxu0 %vm484_vm1, %v433_v23 }
  0x2f   : > { %616 = vmatprep.mubr.f32.mxu0 %v9850_v0  ;;  %3275 = vperm.xlu0 %5798, %v3261_v24  }
  0x30   : > { %3280 = vperm.xlu1 %5799, %v3262_v25  }
  0x32   : > { %5373 = vmatmul.mubr.msk.f32.gmra.mrb[12].mxu0 %vm484_vm1, %v434_v26 }
  0x33   : > { %622 = vmatprep.mubr.f32.mxu0 %v9850_v0  ;;  %4227 = vperm.xlu0 %5798, %v4221_v27  }
  0x34   : > { %4232 = vperm.xlu1 %5799, %v4222_v28  }
  0x36   : > { %5374 = vmatmul.mubr.msk.f32.gmra.mrb[14].mxu0 %vm484_vm1, %v435_v29 }
  0x37   : > { %4237 = vperm.xlu0 %5798, %v4223_v30   ;;  %4321 = vmatprep.mubr.f32.mxu0 %v9850_v0 }
  0x38   : > { %4242 = vperm.xlu1 %5799, %v4224_v31  }
  0x3b   : > { %5182 = vperm.xlu0 %5798, %v5179_v32  }
  0x92   : > { %v447_v33 = vpop.permute.xlu0 %446 }
  0x96   : > { %v452_v40 = vpop.permute.xlu0 %451 }
  0xed   : > { %v582_v34 = vpop.f32.mrb[0].mxu0 }
  0xee   : > { %v6209_v35 = vadd.f32 %v582_v34, %v447_v33  ;;  %v584_v36 = vpop.f32.mrb[1].mxu0 }
  0xef   : > { %v6211_v37 = vadd.f32 %v584_v36, %v447_v33 }
  0xf0   : > { %v9853_v38 = vand.u32 2147483647, %v6209_v35  ;;  %v632_v39 = vand.u32 2139095040, %v6209_v35 }
  0xf1   : > { %v588_v41 = vpop.f32.mrb[2].mxu0  ;;  %v736_v45 = vand.u32 2139095040, %v6211_v37 }
  0xf2   : > { %v633_v42 = vshrl.u32 %v632_v39, 23  ;;  %v6215_v43 = vadd.f32 %v588_v41, %v452_v40  ;;  %v590_v44 = vpop.f32.mrb[3].mxu0  ;;  %v636_v47 = vand.u32 8388607, %v9853_v38 }
  0xf3   : > { %v737_v52 = vshrl.u32 %v736_v45, 23  ;;  %v6226_v55 = vadd.f32 %v590_v44, %v452_v40 }
  0xf4   : > { %9973 = vst [vmem:[#allocation2_spill] sm:$0xff] %v6215_v43  ;;  %v5375_v46 = vadd.s32 4294967169, %v633_v42  ;;  %v840_v48 = vand.u32 2139095040, %v6215_v43  ;;  %v637_v53 = vor.u32 8388608, %v636_v47  ;;  %v9852_v54 = vand.u32 2147483647, %v6215_v43 }
  0xf5   : > { %v6221_v49 = vpop.f32.mrb[4].mxu0  ;;  %9974 = vst [vmem:[#allocation3_spill] sm:$0xff] %v6226_v55  ;;  %v5379_v61 = vadd.s32 4294967169, %v737_v52  ;;  %v944_v2 = vand.u32 2139095040, %v6226_v55 }
  0xf6   : > { %v639_v50 = vadd.s32 1, %v5375_v46  ;;  %v6223_v51 = vpop.f32.mrb[5].mxu0  ;;  %v841_v57 = vshrl.u32 %v840_v48, 23  ;;  %v6232_v63 = vshll.u32 %v637_v53, 8  ;;  %v6236_v1 = vand.u32 8388607, %v9852_v54 }
  0xf7   : > { %v743_v26 = vadd.s32 1, %v5379_v61  ;;  %v945_v41 = vshrl.u32 %v944_v2, 23 }
  0xf8   : > { %vm640_vm2 = vcmp.gt.s32.totalorder %v639_v50, 0  ;;  %v5383_v8 = vadd.s32 4294967169, %v841_v57  ;;  %v6266_v57 = vpop.permute.xlu1 %456 }
  0xf9   : > { %v641_v56 = vsel %vm640_vm2, %v639_v50, 0  ;;  %v6228_v58 = vpop.f32.mrb[6].mxu0  ;;  %vm744_vm7 = vcmp.gt.s32.totalorder %v743_v26, 0  ;;  %v6270_v2 = vadd.f32 %v6221_v49, %v6266_v57 }
  0xfa   : > { %v643_v59 = vand.u32 31, %v641_v56  ;;  %v6230_v60 = vpop.f32.mrb[7].mxu0  ;;  %v642_v3 = vshrl.u32 %v641_v56, 5  ;;  %v847_v32 = vadd.s32 1, %v5383_v8  ;;  %v845_v56 = vor.u32 8388608, %v6236_v1 }
  0xfb   : > { %9975 = vst [vmem:[#allocation4_spill] sm:$0xff] %v6270_v2 }
  0xfc   : > { %v644_v62 = vsub.s32 32, %v643_v59  ;;  %v646_v5 = vshll.u32 %v9863_v4, %v643_v59  ;;  %v649_v7 = vshll.u32 %v9865_v6, %v643_v59  ;;  %v652_v13 = vshll.u32 %v9869_v11, %v643_v59 }
  0xfd   : > { %v6241_v9 = vpop.f32.mrb[8].mxu0  ;;  %v655_v17 = vshll.u32 %v9856_v14, %v643_v59  ;;  %v658_v20 = vshll.u32 %v9861_v18, %v643_v59  ;;  %vm661_vm3 = vcmp.lt.s32.totalorder %v642_v3, 1  ;;  %vm664_vm4 = vcmp.lt.s32.totalorder %v642_v3, 4 }
  0xfe   : > { %v647_v10 = vshrl.u32 %v9865_v6, %v644_v62  ;;  %v650_v12 = vshrl.u32 %v9869_v11, %v644_v62  ;;  %v653_v15 = vshrl.u32 %v9856_v14, %v644_v62  ;;  %v6247_v16 = vpop.f32.mrb[9].mxu0  ;;  %v656_v19 = vshrl.u32 %v9861_v18, %v644_v62 }
  0xff   : > { %v659_v22 = vshrl.u32 %v9859_v21, %v644_v62  ;;  %v645_v33 = vshrl.u32 %v9863_v4, %v644_v62  ;;  %vm663_vm5 = vcmp.lt.s32.totalorder %v642_v3, 3  ;;  %vm662_vm6 = vcmp.lt.s32.totalorder %v642_v3, 2 }
 0x100   : > { %v648_v23 = vor.u32 %v647_v10, %v646_v5  ;;  %v651_v24 = vor.u32 %v650_v12, %v649_v7  ;;  %v654_v25 = vor.u32 %v653_v15, %v652_v13  ;;  %v657_v27 = vor.u32 %v656_v19, %v655_v17 }
 0x101   : > { %v660_v28 = vor.u32 %v659_v22, %v658_v20  ;;  %v6254_v42 = vpop.f32.mrb[10].mxu0  ;;  %vm848_vm8 = vcmp.gt.s32.totalorder %v847_v32, 0  ;;  %v6275_v5 = vsel %vm744_vm7, %v743_v26, 0  ;;  %v5387_v7 = vadd.s32 4294967169, %v945_v41 }
 0x102   : > { %v666_v29 = vsel %vm664_vm4, %v654_v25, 2102212464  ;;  %v669_v30 = vsel %vm661_vm3, %v648_v23, %v651_v24  ;;  %v673_v31 = vsel %vm661_vm3, %v651_v24, %v654_v25  ;;  %v670_v34 = vsel %vm664_vm4, %v657_v27, 920167782 }
 0x103   : > { %v674_v36 = vsel %vm664_vm4, %v660_v28, 1326507024  ;;  %v671_v39 = vsel %vm663_vm5, %v654_v25, %v670_v34  ;;  %v665_v44 = vsel %vm661_vm3, %v645_v33, %v648_v23  ;;  %v667_v45 = vsel %vm663_vm5, %v651_v24, %v666_v29 }
 0x104   : > { %v675_v40 = vsel %vm663_vm5, %v657_v27, %v674_v36  ;;  %v672_v46 = vsel %vm662_vm6, %v669_v30, %v671_v39  ;;  %v668_v59 = vsel %vm662_vm6, %v665_v44, %v667_v45  ;;  %v849_v61 = vsel %vm848_vm8, %v847_v32, 0 }
 0x105   : > { %v676_v47 = vsel %vm662_vm6, %v673_v31, %v675_v40  ;;  %v6261_v52 = vmul.u32.u64.low %v6232_v63, %v672_v46  ;;  %v6262_v53 = vmul.u32.u64.high %v6232_v63, %v672_v46, %v6261_v52  ;;  %v851_v62 = vand.u32 31, %v849_v61 }
 0x106   : > { %v6257_v48 = vmul.u32.u64.low %v6232_v63, %v676_v47  ;;  %v6258_v50 = vmul.u32.u64.high %v6232_v63, %v676_v47, %v6257_v48  ;;  %v684_v1 = vmul.u32 %v6232_v63, %v668_v59  ;;  %v850_v8 = vshrl.u32 %v849_v61, 5 }
 0x107   : > { %v687_v3 = vadd.s32 1, %v6262_v53  ;;  %v852_v10 = vsub.s32 32, %v851_v62  ;;  %v6278_v12 = vshll.u32 %v845_v56, 8  ;;  %v854_v15 = vshll.u32 %v9863_v4, %v851_v62 }
 0x108   : > { %vm686_vm9 = vc.u32 %v6258_v50, %v6261_v52  ;;  %v857_v49 = vshll.u32 %v9865_v6, %v851_v62  ;;  %v860_v17 = vshll.u32 %v9869_v11, %v851_v62  ;;  %v863_v23 = vshll.u32 %v9856_v14, %v851_v62 }
 0x109   : > { %v688_v13 = vsel %vm686_vm9, %v687_v3, %v6262_v53  ;;  %v855_v20 = vshrl.u32 %v9865_v6, %v852_v10  ;;  %v858_v22 = vshrl.u32 %v9869_v11, %v852_v10  ;;  %v861_v63 = vshrl.u32 %v9856_v14, %v852_v10 }
 0x10a   : > { %v689_v19 = vadd.s32 %v688_v13, %v684_v1  ;;  %v864_v24 = vshrl.u32 %v9861_v18, %v852_v10  ;;  %v866_v25 = vshll.u32 %v9861_v18, %v851_v62  ;;  %v867_v26 = vshrl.u32 %v9859_v21, %v852_v10 }
 0x10b   : > { %v6292_v28 = vand.u32 31, %v6275_v5  ;;  %v856_v29 = vor.u32 %v855_v20, %v854_v15  ;;  %v859_v30 = vor.u32 %v858_v22, %v857_v49  ;;  %v862_v31 = vor.u32 %v861_v63, %v860_v17  ;;  %v6318_v15 = vpop.f32.mrb[11].mxu0 }
 0x10c   : > { %v690_v27 = vadd.s32 536870912, %v689_v19  ;;  %v865_v32 = vor.u32 %v864_v24, %v863_v23  ;;  %v868_v33 = vor.u32 %v867_v26, %v866_v25  ;;  %vm869_vm10 = vcmp.lt.s32.totalorder %v850_v8, 1 }
 0x10d   : > { %vm872_vm11 = vcmp.lt.s32.totalorder %v850_v8, 4  ;;  %v877_v36 = vsel %vm869_vm10, %v856_v29, %v859_v30  ;;  %v951_v39 = vadd.s32 1, %v5387_v7  ;;  %vm871_vm12 = vcmp.lt.s32.totalorder %v850_v8, 3 }
 0x10e   : > { %v6294_v34 = vshrl.u32 %v690_v27, 30  ;;  %v878_v40 = vsel %vm872_vm11, %v865_v32, 920167782  ;;  %v881_v41 = vsel %vm869_vm10, %v859_v30, %v862_v31  ;;  %v882_v44 = vsel %vm872_vm11, %v868_v33, 1326507024 }
 0x10f   : > { %vm870_vm13 = vcmp.lt.s32.totalorder %v850_v8, 2  ;;  %v879_v46 = vsel %vm871_vm12, %v862_v31, %v878_v40  ;;  %v883_v47 = vsel %vm871_vm12, %v865_v32, %v882_v44  ;;  %v874_v48 = vsel %vm872_vm11, %v862_v31, 2102212464 }
 0x110   : > { %9976 = vst [vmem:[#allocation5_spill] sm:$0xff] %v6294_v34  ;;  %v692_v45 = vshll.u32 %v6294_v34, 30  ;;  %v880_v53 = vsel %vm870_vm13, %v877_v36, %v879_v46  ;;  %v884_v56 = vsel %vm870_vm13, %v881_v41, %v883_v47  ;;  %v853_v61 = vshrl.u32 %v9863_v4, %v852_v10 }
 0x111   : > { %v6307_v62 = vmul.u32.u64.low %v6278_v12, %v884_v56  ;;  %v6308_v3 = vmul.u32.u64.high %v6278_v12, %v884_v56, %v6307_v62  ;;  %v6311_v7 = vsub.s32 32, %v6292_v28  ;;  %v875_v17 = vsel %vm871_vm12, %v859_v30, %v874_v48 }
 0x112   : > { %v6303_v59 = vsub.s32 %v689_v19, %v692_v45  ;;  %v6314_v1 = vmul.u32.u64.low %v6278_v12, %v880_v53  ;;  %v6315_v13 = vmul.u32.u64.high %v6278_v12, %v880_v53, %v6314_v1  ;;  %v873_v49 = vsel %vm869_vm10, %v853_v61, %v856_v29 }
 0x113   : > { %9977 = vst [vmem:[#allocation6_spill] sm:$0xff] %v6311_v7  ;;  %vm952_vm14 = vcmp.gt.s32.totalorder %v951_v39, 0  ;;  %v1048_v10 = vand.u32 2139095040, %v6270_v2  ;;  %v9855_v20 = vand.u32 2147483647, %v6270_v2  ;;  %v6329_v22 = vadd.f32 %v6223_v51, %v6266_v57 }
 0x114   : > { %v695_v19 = vsub.s32 0, %v6303_v59  ;;  %vm894_vm15 = vc.u32 %v6308_v3, %v6314_v1  ;;  %v876_v23 = vsel %vm870_vm13, %v873_v49, %v875_v17  ;;  %v895_v63 = vadd.s32 1, %v6315_v13 }
 0x115   : > { %v953_v24 = vsel %vm952_vm14, %v951_v39, 0  ;;  %v1049_v25 = vshrl.u32 %v1048_v10, 23  ;;  %v760_v26 = vshrl.u32 %v9861_v18, %v6311_v7  ;;  %v759_v27 = vshll.u32 %v9856_v14, %v6292_v28  ;;  %v6374_v10 = vpop.permute.xlu1 %461 }
 0x116   : > { %v763_v29 = vshrl.u32 %v9859_v21, %v6311_v7  ;;  %v896_v30 = vsel %vm894_vm15, %v895_v63, %v6315_v13  ;;  %v5376_v51 = vmin.u32 %v695_v19, %v6303_v59  ;;  %v892_v57 = vmul.u32 %v6278_v12, %v876_v23 }
 0x117   : > { %v5391_v31 = vadd.s32 4294967169, %v1049_v25  ;;  %v6342_v8 = vand.u32 31, %v953_v24  ;;  %v1052_v32 = vand.u32 8388607, %v9855_v20  ;;  %v6347_v33 = vshrl.u32 %v6275_v5, 5 }
 0x118   : > { %v762_v36 = vshll.u32 %v9861_v18, %v6292_v28  ;;  %v1152_v40 = vand.u32 2139095040, %v6329_v22  ;;  %v6352_v41 = vor.u32 %v760_v26, %v759_v27  ;;  %v897_v44 = vadd.s32 %v896_v30, %v892_v57 }
 0x119   : > { %9978 = vst [vmem:[#allocation7_spill] sm:$0xff] %v6342_v8  ;;  %9979 = vst [vmem:[#allocation8_spill] sm:$0xff] %v6347_v33  ;;  %v1055_v39 = vadd.s32 1, %v5391_v31  ;;  %v697_v12 = vclz %v5376_v51  ;;  %v6355_v46 = vsub.s32 32, %v6342_v8  ;;  %v1053_v47 = vor.u32 8388608, %v1052_v32 }
 0x11a   : > { %9980 = vst [vmem:[#allocation9_spill] sm:$0xff] %v6352_v41  ;;  %v764_v45 = vor.u32 %v763_v29, %v762_v36  ;;  %vm768_vm1 = vcmp.lt.s32.totalorder %v6347_v33, 4  ;;  %v9854_v48 = vand.u32 2147483647, %v6329_v22  ;;  %v1153_v53 = vshrl.u32 %v1152_v40, 23 }
 0x11b   : > { %vm1056_vm0 = vcmp.gt.s32.totalorder %v1055_v39, 0  ;;  %9981 = vst [vmem:[#allocation10_spill] sm:$0xff] %v6355_v46  ;;  %v6362_v56 = vsel %vm768_vm1, %v6352_v41, 920167782  ;;  %v898_v61 = vadd.s32 536870912, %v897_v44  ;;  %v6366_v62 = vadd.s32 %v6261_v52, %v6258_v50 }
 0x11c   : > { %v1057_v5 = vsel %vm1056_vm0, %v1055_v39, 0  ;;  %9982 = vst [vmem:[#allocation11_spill] sm:$0xff] %v6362_v56  ;;  %v6370_v13 = vsel %vm768_vm1, %v764_v45, 1326507024  ;;  %v6372_v49 = vshrl.u32 %v953_v24, 5  ;;  %v5377_v19 = vadd.s32 4294967294, %v697_v12 }
 0x11d   : > { %9983 = vst [vmem:[#allocation12_spill] sm:$0xff] %v6370_v13  ;;  %v1059_v17 = vand.u32 31, %v1057_v5  ;;  %v967_v23 = vshll.u32 %v9856_v14, %v6342_v8  ;;  %v968_v63 = vshrl.u32 %v9861_v18, %v6355_v46  ;;  %v6380_v25 = vshll.u32 %v1053_v47, 8 }
 0x11e   : > { %v5395_v52 = vadd.s32 4294967169, %v1153_v53  ;;  %v1156_v26 = vand.u32 8388607, %v9854_v48  ;;  %v6386_v24 = vadd.f32 %v6228_v58, %v6374_v10  ;;  %v6388_v27 = vshrl.u32 %v898_v61, 30 }
 0x11f   : > { %v1060_v50 = vsub.s32 32, %v1059_v17  ;;  %v1058_v29 = vshrl.u32 %v1057_v5, 5  ;;  %v1062_v30 = vshll.u32 %v9863_v4, %v1059_v17  ;;  %v1065_v31 = vshll.u32 %v9865_v6, %v1059_v17 }
 0x120   : > { %9984 = vst [vmem:[#allocation13_spill] sm:$0xff] %v6386_v24  ;;  %9985 = vst [vmem:[#allocation14_spill] sm:$0xff] %v6388_v27  ;;  %v1068_v32 = vshll.u32 %v9869_v11, %v1059_v17  ;;  %vm5378_vm2 = vcmp.lt.s32.totalorder %v5377_v19, 0  ;;  %v1071_v39 = vshll.u32 %v9856_v14, %v1059_v17  ;;  %v1074_v40 = vshll.u32 %v9861_v18, %v1059_v17 }
 0x121   : > { %v1063_v51 = vshrl.u32 %v9865_v6, %v1060_v50  ;;  %v1066_v57 = vshrl.u32 %v9869_v11, %v1060_v50  ;;  %v1069_v36 = vshrl.u32 %v9856_v14, %v1060_v50  ;;  %v1072_v58 = vshrl.u32 %v9861_v18, %v1060_v50 }
 0x122   : > { %v1075_v5 = vshrl.u32 %v9859_v21, %v1060_v50  ;;  %v900_v53 = vshll.u32 %v6388_v27, 30  ;;  %v1157_v0 = vor.u32 8388608, %v1156_v26  ;;  %v9858_v54 = vand.u32 2147483647, %v6386_v24 }
 0x123   : > { %v1064_v45 = vor.u32 %v1063_v51, %v1062_v30  ;;  %v1067_v12 = vor.u32 %v1066_v57, %v1065_v31  ;;  %v1070_v47 = vor.u32 %v1069_v36, %v1068_v32  ;;  %v1073_v61 = vor.u32 %v1072_v58, %v1071_v39  ;;  %v6409_v36 = vpop.f32.mrb[12].mxu0 }
 0x124   : > { %v700_v38 = vsel %vm5378_vm2, 0, %v5377_v19  ;;  %v1076_v48 = vor.u32 %v1075_v5, %v1074_v40  ;;  %vm1077_vm3 = vcmp.lt.s32.totalorder %v1058_v29, 1  ;;  %v1159_v20 = vadd.s32 1, %v5395_v52 }
 0x125   : > { %vm1079_vm4 = vcmp.lt.s32.totalorder %v1058_v29, 3  ;;  %vm1080_vm5 = vcmp.lt.s32.totalorder %v1058_v29, 4  ;;  %v1085_v14 = vsel %vm1077_vm3, %v1064_v45, %v1067_v12  ;;  %v1256_v17 = vand.u32 2139095040, %v6386_v24 }
 0x126   : > { %v1082_v30 = vsel %vm1080_vm5, %v1070_v47, 2102212464  ;;  %v1086_v31 = vsel %vm1080_vm5, %v1073_v61, 920167782  ;;  %v1089_v51 = vsel %vm1077_vm3, %v1067_v12, %v1070_v47  ;;  %v1090_v57 = vsel %vm1080_vm5, %v1076_v48, 1326507024 }
 0x127   : > { %v6405_v32 = vsub.s32 %v897_v44, %v900_v53  ;;  %v1061_v26 = vshrl.u32 %v9863_v4, %v1060_v50  ;;  %vm1078_vm6 = vcmp.lt.s32.totalorder %v1058_v29, 2  ;;  %v1087_v19 = vsel %vm1079_vm4, %v1070_v47, %v1086_v31 }
 0x128   : > { %v701_v52 = vsub.s32 32, %v700_v38  ;;  %v1088_v39 = vsel %vm1078_vm6, %v1085_v14, %v1087_v19  ;;  %v1091_v58 = vsel %vm1079_vm4, %v1073_v61, %v1090_v57  ;;  %vm1160_vm7 = vcmp.gt.s32.totalorder %v1159_v20, 0 }
 0x129   : > { %v705_v40 = vsub.s32 4294967266, %v700_v38  ;;  %v1081_v5 = vsel %vm1077_vm3, %v1061_v26, %v1064_v45  ;;  %v1083_v48 = vsel %vm1079_vm4, %v1067_v12, %v1082_v30  ;;  %v1092_v44 = vsel %vm1078_vm6, %v1089_v51, %v1091_v58 }
 0x12a   : > { %v6417_v50 = vmul.u32.u64.low %v6380_v25, %v1092_v44  ;;  %v6418_v53 = vmul.u32.u64.high %v6380_v25, %v1092_v44, %v6417_v50  ;;  %v6421_v47 = vmul.u32.u64.low %v6380_v25, %v1088_v39  ;;  %v6422_v31 = vmul.u32.u64.high %v6380_v25, %v1088_v39, %v6421_v47 }
 0x12b   : > { %v903_v14 = vsub.s32 0, %v6405_v32  ;;  %v6428_v61 = vshll.u32 %v9861_v18, %v6342_v8  ;;  %v1161_v45 = vsel %vm1160_vm7, %v1159_v20, 0  ;;  %v1257_v57 = vshrl.u32 %v1256_v17, 23 }
 0x12c   : > { %v6430_v12 = vor.u32 %v968_v63, %v967_v23  ;;  %v6434_v30 = vshrl.u32 %v9859_v21, %v6355_v46  ;;  %v1084_v51 = vsel %vm1078_vm6, %v1081_v5, %v1083_v48  ;;  %v1163_v26 = vand.u32 31, %v1161_v45 }
 0x12d   : > { %v702_v19 = vshll.u32 %v6303_v59, %v700_v38  ;;  %v703_v39 = vshrl.u32 %v6366_v62, %v701_v52  ;;  %v6439_v58 = vadd.s32 127, %v705_v40  ;;  %v6441_v44 = vshll.u32 %v1157_v0, 8 }
 0x12e   : > { %9986 = vst [vmem:[#allocation15_spill] sm:$0xff] %v6430_v12  ;;  %vm1102_vm8 = vc.u32 %v6418_v53, %v6421_v47  ;;  %v1103_v20 = vadd.s32 1, %v6422_v31  ;;  %v1164_v23 = vsub.s32 32, %v1163_v26  ;;  %v6448_v63 = vand.u32 8388607, %v9858_v54 }
 0x12f   : > { %v6451_v29 = vmin.u32 %v903_v14, %v6405_v32  ;;  %v1100_v38 = vmul.u32 %v6380_v25, %v1084_v51  ;;  %v1166_v59 = vshll.u32 %v9863_v4, %v1163_v26  ;;  %v5399_v62 = vadd.s32 4294967169, %v1257_v57 }
 0x130   : > { %v1104_v0 = vsel %vm1102_vm8, %v1103_v20, %v6422_v31  ;;  %v1167_v17 = vshrl.u32 %v9865_v6, %v1164_v23  ;;  %v1169_v52 = vshll.u32 %v9865_v6, %v1163_v26  ;;  %v1170_v40 = vshrl.u32 %v9869_v11, %v1164_v23 }
 0x131   : > { %v1105_v5 = vadd.s32 %v1104_v0, %v1100_v38  ;;  %v1162_v48 = vshrl.u32 %v1161_v45, 5  ;;  %v1172_v50 = vshll.u32 %v9869_v11, %v1163_v26  ;;  %v9987_v54 = vmov 2102212464  }
 0x132   : > { %v1173_v14 = vshrl.u32 %v9987_v54, %v1164_v23  ;;  %v1168_v21 = vor.u32 %v1167_v17, %v1166_v59  ;;  %v1171_v18 = vor.u32 %v1170_v40, %v1169_v52  ;;  %v1175_v25 = vshll.u32 %v9987_v54, %v1163_v26 }
 0x133   : > { %v9988_v51 = vmov 920167782   ;;  %v6463_v4 = vor.u32 %v703_v39, %v702_v19  ;;  %v707_v31 = vshll.u32 %v6439_v58, 23  ;;  %v1106_v20 = vadd.s32 536870912, %v1105_v5 }
 0x134   : > { %v1176_v57 = vshrl.u32 %v9988_v51, %v1164_v23  ;;  %v1174_v6 = vor.u32 %v1173_v14, %v1172_v50  ;;  %v905_v27 = vclz %v6451_v29  ;;  %vm976_vm9 = vcmp.lt.s32.totalorder %v6372_v49, 4  ;;  %v6473_v50 = vpop.f32.mrb[13].mxu0 }
 0x135   : > { %v1178_v38 = vshll.u32 %v9988_v51, %v1163_v26  ;;  %v9989_v0 = vmov 1326507024   ;;  %v6470_v17 = vshrl.u32 %v1106_v20, 30  ;;  %vm1181_vm10 = vcmp.lt.s32.totalorder %v1162_v48, 1 }
 0x136   : > { %v1177_v45 = vor.u32 %v1176_v57, %v1175_v25  ;;  %v1179_v59 = vshrl.u32 %v9989_v0, %v1164_v23  ;;  %vm1184_vm11 = vcmp.lt.s32.totalorder %v1162_v48, 4  ;;  %v1263_v52 = vadd.s32 1, %v5399_v62 }
 0x137   : > { %9990 = vst [vmem:[#allocation16_spill] sm:$0xff] %v6470_v17  ;;  %v9991_v19 = vmov 683565275   ;;  %v1186_v58 = vsel %vm1184_vm11, %v1174_v6, 2102212464  ;;  %v1189_v11 = vsel %vm1181_vm10, %v1168_v21, %v1171_v18  ;;  %v1108_v29 = vshll.u32 %v6470_v17, 30 }
 0x138   : > { %v1165_v39 = vshrl.u32 %v9991_v19, %v1164_v23  ;;  %v1180_v40 = vor.u32 %v1179_v59, %v1178_v38  ;;  %vm1182_vm12 = vcmp.lt.s32.totalorder %v1162_v48, 2  ;;  %vm1183_vm13 = vcmp.lt.s32.totalorder %v1162_v48, 3 }
 0x139   : > { %v1190_v14 = vsel %vm1184_vm11, %v1177_v45, 920167782  ;;  %v1193_v57 = vsel %vm1181_vm10, %v1171_v18, %v1174_v6  ;;  %v6476_v34 = vsub.s32 %v1105_v5, %v1108_v29  ;;  %v1187_v8 = vsel %vm1183_vm13, %v1171_v18, %v1186_v58 }
 0x13a   : > { %v1185_v26 = vsel %vm1181_vm10, %v1165_v39, %v1168_v21  ;;  %v1191_v25 = vsel %vm1183_vm13, %v1174_v6, %v1190_v14  ;;  %v1194_v20 = vsel %vm1184_vm11, %v1180_v40, 1326507024  ;;  %vm1264_vm14 = vcmp.gt.s32.totalorder %v1263_v52, 0 }
 0x13b   : > { %v1192_v62 = vsel %vm1182_vm12, %v1189_v11, %v1191_v25  ;;  %v1195_v23 = vsel %vm1183_vm13, %v1177_v45, %v1194_v20  ;;  %v1111_v17 = vsub.s32 0, %v6476_v34  ;;  %v1265_v5 = vsel %vm1264_vm14, %v1263_v52, 0 }
 0x13c   : > { %v1196_v38 = vsel %vm1182_vm12, %v1193_v57, %v1195_v23  ;;  %v6481_v59 = vmul.u32.u64.low %v6441_v44, %v1192_v62  ;;  %v6482_v46 = vmul.u32.u64.high %v6441_v44, %v1192_v62, %v6481_v59  ;;  %v6492_v18 = vadd.s32 %v6314_v1, %v6308_v3 }
 0x13d   : > { %v6487_v21 = vmul.u32.u64.low %v6441_v44, %v1196_v38  ;;  %v6488_v6 = vmul.u32.u64.high %v6441_v44, %v1196_v38, %v6487_v21  ;;  %v1188_v45 = vsel %vm1182_vm12, %v1185_v26, %v1187_v8  ;;  %v1267_v39 = vand.u32 31, %v1265_v5 }
 0x13e   : > { %v6497_v40 = vor.u32 4788187, %v707_v31  ;;  %v6502_v58 = vsel %vm976_vm9, %v6430_v12, 920167782  ;;  %v5392_v29 = vmin.u32 %v1111_v17, %v6476_v34  ;;  %v6507_v52 = vadd.f32 %v6230_v60, %v6374_v10 }
 0x13f   : > { %9992 = vst [vmem:[#allocation17_spill] sm:$0xff] %v6502_v58  ;;  %v6510_v1 = vadd.s32 4294967294, %v905_v27  ;;  %v1207_v8 = vadd.s32 1, %v6482_v46  ;;  %v1268_v48 = vsub.s32 32, %v1267_v39  ;;  %v1204_v14 = vmul.u32 %v6441_v44, %v1188_v45 }
 0x140   : > { %v1113_v31 = vclz %v5392_v29  ;;  %vm1206_vm15 = vc.u32 %v6488_v6, %v6481_v59  ;;  %v1261_v26 = vor.u32 8388608, %v6448_v63  ;;  %v6518_v25 = vshrl.u32 %v1265_v5, 5 }
 0x141   : > { %v1208_v17 = vsel %vm1206_vm15, %v1207_v8, %v6482_v46  ;;  %v9993_v60 = vmov 2475754826   ;;  %v9994_v57 = vmov 2131351028   ;;  %v1270_v23 = vshll.u32 %v9991_v19, %v1267_v39 }
 0x142   : > { %v1271_v10 = vshrl.u32 %v9993_v60, %v1268_v48  ;;  %v1274_v27 = vshrl.u32 %v9994_v57, %v1268_v48  ;;  %v5393_v20 = vadd.s32 4294967294, %v1113_v31  ;;  %v1209_v62 = vadd.s32 %v1208_v17, %v1204_v14 }
 0x143   : > { %v1277_v38 = vshrl.u32 %v9987_v54, %v1268_v48  ;;  %v1273_v44 = vshll.u32 %v9993_v60, %v1267_v39  ;;  %v1276_v21 = vshll.u32 %v9994_v57, %v1267_v39  ;;  %v1279_v63 = vshll.u32 %v9987_v54, %v1267_v39 }
 0x144   : > { %v1280_v46 = vshrl.u32 %v9988_v51, %v1268_v48  ;;  %vm5394_vm0 = vcmp.lt.s32.totalorder %v5393_v20, 0  ;;  %v1210_v5 = vadd.s32 536870912, %v1209_v62  ;;  %v1272_v45 = vor.u32 %v1271_v10, %v1270_v23 }
 0x145   : > { %v1283_v29 = vshrl.u32 %v9989_v0, %v1268_v48  ;;  %v1275_v8 = vor.u32 %v1274_v27, %v1273_v44  ;;  %v1278_v31 = vor.u32 %v1277_v38, %v1276_v21  ;;  %v1282_v17 = vshll.u32 %v9988_v51, %v1267_v39 }
 0x146   : > { %v1281_v14 = vor.u32 %v1280_v46, %v1279_v63  ;;  %v709_v11 = vand.u32 2147483647, %v6497_v40  ;;  %vm5386_vm2 = vcmp.lt.s32.totalorder %v6510_v1, 0  ;;  %v1101_v3 = vadd.s32 %v6421_v47, %v6418_v53 }
 0x147   : > { %v6534_v58 = vshrl.u32 %v1210_v5, 30  ;;  %v1116_v12 = vsel %vm5394_vm0, 0, %v5393_v20  ;;  %v1284_v55 = vor.u32 %v1283_v29, %v1282_v17  ;;  %v1301_v41 = vshll.u32 %v1261_v26, 8 }
 0x148   : > { %v1360_v10 = vand.u32 2139095040, %v6507_v52  ;;  %v1269_v23 = vshrl.u32 %v9991_v19, %v1268_v48  ;;  %vm1285_vm3 = vcmp.lt.s32.totalorder %v6518_v25, 1  ;;  %vm1288_vm4 = vcmp.lt.s32.totalorder %v6518_v25, 4 }
 0x149   : > { %9995 = vst [vmem:[#allocation18_spill] sm:$0xff] %v6534_v58  ;;  %v1212_v27 = vshll.u32 %v6534_v58, 30  ;;  %vm1286_vm5 = vcmp.lt.s32.totalorder %v6518_v25, 2  ;;  %v1290_v39 = vsel %vm1288_vm4, %v1278_v31, 2102212464  ;;  %v1293_v40 = vsel %vm1285_vm3, %v1272_v45, %v1275_v8 }
 0x14a   : > { %v1294_v53 = vsel %vm1288_vm4, %v1281_v14, 920167782  ;;  %v1117_v47 = vsub.s32 32, %v1116_v12  ;;  %v1121_v38 = vsub.s32 4294967266, %v1116_v12  ;;  %vm1287_vm6 = vcmp.lt.s32.totalorder %v6518_v25, 3 }
 0x14b   : > { %v6542_v20 = vsub.s32 %v1209_v62, %v1212_v27  ;;  %v1295_v26 = vsel %vm1287_vm6, %v1278_v31, %v1294_v53  ;;  %v1297_v44 = vsel %vm1285_vm3, %v1275_v8, %v1278_v31  ;;  %v1298_v21 = vsel %vm1288_vm4, %v1284_v55, 1326507024 }
 0x14c   : > { %v1361_v63 = vshrl.u32 %v1360_v10, 23  ;;  %v1289_v46 = vsel %vm1285_vm3, %v1269_v23, %v1272_v45  ;;  %v1291_v5 = vsel %vm1287_vm6, %v1275_v8, %v1290_v39  ;;  %v1296_v29 = vsel %vm1286_vm5, %v1293_v40, %v1295_v26  ;;  %v6556_v10 = vpop.permute.xlu0 %466 }
 0x14d   : > { %v1215_v48 = vsub.s32 0, %v6542_v20  ;;  %v1299_v17 = vsel %vm1287_vm6, %v1281_v14, %v1298_v21  ;;  %v6548_v58 = vmul.u32.u64.low %v1301_v41, %v1296_v29  ;;  %v6549_v13 = vmul.u32.u64.high %v1301_v41, %v1296_v29, %v6548_v58  ;;  %v6580_v21 = vpop.f32.mrb[14].mxu0 }
 0x14e   : > { %v5403_v62 = vadd.s32 4294967169, %v1361_v63  ;;  %v1122_v27 = vadd.s32 127, %v1121_v38  ;;  %v1300_v55 = vsel %vm1286_vm5, %v1297_v44, %v1299_v17  ;;  %v9885_v31 = vand.u32 2147483647, %v6507_v52 }
 0x14f   : > { %v5396_v56 = vmin.u32 %v1215_v48, %v6542_v20  ;;  %v1119_v45 = vshrl.u32 %v1101_v3, %v1117_v47  ;;  %v6558_v8 = vmul.u32.u64.low %v1301_v41, %v1300_v55  ;;  %v6559_v23 = vmul.u32.u64.high %v1301_v41, %v1300_v55, %v6558_v8 }
 0x150   : > { %v1367_v14 = vadd.s32 1, %v5403_v62  ;;  %v9996_v39 = vcvt.s32.f32 %v6463_v4  ;;  %v1292_v38 = vsel %vm1286_vm5, %v1289_v46, %v1291_v5  ;;  %v6569_v26 = vadd.f32 %v6241_v9, %v6556_v10 }
 0x151   : > { %v1217_v53 = vclz %v5396_v56  ;;  %v6574_v3 = vsel %vm5386_vm2, 0, %v6510_v1  ;;  %v1118_v47 = vshll.u32 %v6476_v34, %v1116_v12  ;;  %v1311_v44 = vadd.s32 1, %v6549_v13 }
 0x152   : > { %v6563_v40 = vmul.f32 %v9996_v39, %v709_v11  ;;  %9997 = vst [vmem:[#allocation19_spill] sm:$0xff] %v6569_v26  ;;  %vm1368_vm7 = vcmp.gt.s32.totalorder %v1367_v14, 0  ;;  %v1123_v4 = vshll.u32 %v1122_v27, 23  ;;  %v1364_v56 = vand.u32 8388607, %v9885_v31 }
 0x153   : > { %v5397_v11 = vadd.s32 4294967294, %v1217_v53  ;;  %v1369_v25 = vsel %vm1368_vm7, %v1367_v14, 0  ;;  %v6582_v9 = vor.u32 %v1119_v45, %v1118_v47  ;;  %v1308_v63 = vmul.u32 %v1301_v41, %v1292_v38 }
 0x154   : > { %vm1310_vm8 = vc.u32 %v6559_v23, %v6548_v58  ;;  %v1371_v1 = vand.u32 31, %v1369_v25  ;;  %v6593_v62 = vor.u32 4788187, %v1123_v4  ;;  %v1205_v41 = vadd.s32 %v6481_v59, %v6488_v6 }
 0x155   : > { %vm5398_vm10 = vcmp.lt.s32.totalorder %v5397_v11, 0  ;;  %v1312_v48 = vsel %vm1310_vm8, %v1311_v44, %v6549_v13  ;;  %v1127_v45 = vcvt.s32.f32 %v6582_v9  ;;  %v1365_v14 = vor.u32 8388608, %v1364_v56 }
 0x156   : > { %v6591_v5 = vsel %vm5398_vm10, 0, %v5397_v11  ;;  %v1313_v29 = vadd.s32 %v1312_v48, %v1308_v63  ;;  %v1372_v17 = vsub.s32 32, %v1371_v1  ;;  %v1464_v13 = vand.u32 2139095040, %v6569_v26 }
 0x157   : > { %v1225_v27 = vsub.s32 4294967266, %v6591_v5  ;;  %v1374_v53 = vshll.u32 %v9991_v19, %v1371_v1  ;;  %v1377_v47 = vshll.u32 %v9993_v60, %v1371_v1  ;;  %v1380_v6 = vshll.u32 %v9994_v57, %v1371_v1 }
 0x158   : > { %v1314_v8 = vadd.s32 536870912, %v1313_v29  ;;  %v1375_v38 = vshrl.u32 %v9993_v60, %v1372_v17  ;;  %v1378_v59 = vshrl.u32 %v9994_v57, %v1372_v17  ;;  %v1381_v4 = vshrl.u32 %v9987_v54, %v1372_v17 }
 0x159   : > { %v1226_v39 = vadd.s32 127, %v1225_v27  ;;  %v1221_v11 = vsub.s32 32, %v6591_v5  ;;  %v1370_v56 = vshrl.u32 %v1369_v25, 5  ;;  %v1383_v63 = vshll.u32 %v9987_v54, %v1371_v1 }
 0x15a   : > { %v6604_v44 = vshrl.u32 %v1314_v8, 30  ;;  %v1376_v9 = vor.u32 %v1375_v38, %v1374_v53  ;;  %v1379_v27 = vor.u32 %v1378_v59, %v1377_v47  ;;  %v1382_v31 = vor.u32 %v1381_v4, %v1380_v6 }
 0x15b   : > { %v1384_v12 = vshrl.u32 %v9988_v51, %v1372_v17  ;;  %v1125_v8 = vand.u32 2147483647, %v6593_v62  ;;  %v1227_v46 = vshll.u32 %v1226_v39, 23  ;;  %v1386_v55 = vshll.u32 %v9988_v51, %v1371_v1 }
 0x15c   : > { %9998 = vst [vmem:[#allocation20_spill] sm:$0xff] %v6604_v44  ;;  %v1316_v48 = vshll.u32 %v6604_v44, 30  ;;  %v1387_v34 = vshrl.u32 %v9989_v0, %v1372_v17  ;;  %v1405_v25 = vshll.u32 %v1365_v14, 8  ;;  %v1465_v53 = vshrl.u32 %v1464_v13, 23 }
 0x15d   : > { %v1385_v43 = vor.u32 %v1384_v12, %v1383_v63  ;;  %v1373_v38 = vshrl.u32 %v9991_v19, %v1372_v17  ;;  %vm1389_vm11 = vcmp.lt.s32.totalorder %v1370_v56, 1  ;;  %vm1392_vm12 = vcmp.lt.s32.totalorder %v1370_v56, 4 }
 0x15e   : > { %v6616_v33 = vsub.s32 %v1313_v29, %v1316_v48  ;;  %v1388_v7 = vor.u32 %v1387_v34, %v1386_v55  ;;  %v1223_v47 = vshrl.u32 %v1205_v41, %v1221_v11  ;;  %v1394_v6 = vsel %vm1392_vm12, %v1382_v31, 2102212464 }
 0x15f   : > { %v1397_v62 = vsel %vm1389_vm11, %v1376_v9, %v1379_v27  ;;  %v1228_v39 = vor.u32 4788187, %v1227_v46  ;;  %vm1391_vm13 = vcmp.lt.s32.totalorder %v1370_v56, 3  ;;  %v1398_v1 = vsel %vm1392_vm12, %v1385_v43, 920167782  ;;  %v6627_v46 = vpop.f32.mrb[15].mxu0 }
 0x160   : > { %v1319_v59 = vsub.s32 0, %v6616_v33  ;;  %v1401_v4 = vsel %vm1389_vm11, %v1379_v27, %v1382_v31  ;;  %vm1390_vm14 = vcmp.lt.s32.totalorder %v1370_v56, 2  ;;  %v1399_v12 = vsel %vm1391_vm13, %v1382_v31, %v1398_v1 }
 0x161   : > { %v1402_v14 = vsel %vm1392_vm12, %v1388_v7, 1326507024  ;;  %v1393_v13 = vsel %vm1389_vm11, %v1373_v38, %v1376_v9  ;;  %v1395_v63 = vsel %vm1391_vm13, %v1379_v27, %v1394_v6  ;;  %v1400_v34 = vsel %vm1390_vm14, %v1397_v62, %v1399_v12 }
 0x162   : > { %v5400_v29 = vmin.u32 %v1319_v59, %v6616_v33  ;;  %v1403_v17 = vsel %vm1391_vm13, %v1385_v43, %v1402_v14  ;;  %v6623_v11 = vmul.u32.u64.low %v1405_v25, %v1400_v34  ;;  %v6624_v48 = vmul.u32.u64.high %v1405_v25, %v1400_v34, %v6623_v11 }
 0x163   : > { %v1404_v41 = vsel %vm1390_vm14, %v1401_v4, %v1403_v17  ;;  %v1222_v59 = vshll.u32 %v6542_v20, %v6591_v5  ;;  %v5407_v7 = vadd.s32 4294967169, %v1465_v53  ;;  %v9999_v9 = vsub.s32 32, %v6574_v3 }
 0x164   : > { %v1321_v55 = vclz %v5400_v29  ;;  %v6631_v44 = vmul.u32.u64.low %v1405_v25, %v1404_v41  ;;  %v6632_v31 = vmul.u32.u64.high %v1405_v25, %v1404_v41, %v6631_v44  ;;  %v1396_v38 = vsel %vm1390_vm14, %v1393_v13, %v1395_v63 }
 0x165   : > { %v911_v43 = vshrl.u32 %v6492_v18, %v9999_v9  ;;  %v10000_v6 = vand.u32 2147483647, %v6569_v26  ;;  %v10001_v1 = vsub.s32 4294967266, %v6574_v3  ;;  %v6644_v29 = vmul.f32 %v1127_v45, %v1125_v8 }
 0x166   : > { %v5401_v27 = vadd.s32 4294967294, %v1321_v55  ;;  %v1224_v20 = vor.u32 %v1223_v47, %v1222_v59  ;;  %v1471_v5 = vadd.s32 1, %v5407_v7  ;;  %v1229_v44 = vand.u32 2147483647, %v1228_v39 }
 0x167   : > { %v1468_v62 = vand.u32 8388607, %v10000_v6  ;;  %v6642_v4 = vadd.s32 127, %v10001_v1  ;;  %v1415_v53 = vadd.s32 1, %v6624_v48  ;;  %v6649_v18 = vadd.f32 %v6247_v16, %v6556_v10 }
 0x168   : > { %vm5402_vm15 = vcmp.lt.s32.totalorder %v5401_v27, 0  ;;  %v1412_v12 = vmul.u32 %v1405_v25, %v1396_v38  ;;  %vm1414_vm0 = vc.u32 %v6632_v31, %v6623_v11  ;;  %vm1472_vm2 = vcmp.gt.s32.totalorder %v1471_v5, 0 }
 0x169   : > { %v6651_v56 = vsel %vm5402_vm15, 0, %v5401_v27  ;;  %v1416_v47 = vsel %vm1414_vm0, %v1415_v53, %v6624_v48  ;;  %v1469_v39 = vor.u32 8388608, %v1468_v62  ;;  %v10002_v14 = vshll.u32 %v6405_v32, %v6574_v3 }
 0x16a   : > { %v1329_v8 = vsub.s32 4294967266, %v6651_v56  ;;  %v1231_v16 = vcvt.s32.f32 %v1224_v20  ;;  %v1417_v10 = vadd.s32 %v1416_v47, %v1412_v12  ;;  %v1473_v63 = vsel %vm1472_vm2, %v1471_v5, 0 }
 0x16b   : > { %v6661_v13 = vor.u32 %v911_v43, %v10002_v14  ;;  %v1475_v55 = vand.u32 31, %v1473_v63  ;;  %v1309_v48 = vadd.s32 %v6548_v58, %v6559_v23  ;;  %v1325_v32 = vsub.s32 32, %v6651_v56 }
 0x16c   : > { %v1330_v17 = vadd.s32 127, %v1329_v8  ;;  %v6665_v41 = vmul.f32 %v1231_v16, %v1229_v44  ;;  %v1418_v59 = vadd.s32 536870912, %v1417_v10  ;;  %v6671_v9 = vshll.u32 %v1469_v39, 8 }
 0x16d   : > { %v1476_v3 = vsub.s32 32, %v1475_v55  ;;  %v1568_v43 = vand.u32 2139095040, %v6649_v18  ;;  %v6676_v6 = vshrl.u32 %v1473_v63, 5  ;;  %v1478_v62 = vshll.u32 %v9991_v19, %v1475_v55 }
 0x16e   : > { %v1331_v27 = vshll.u32 %v1330_v17, 23  ;;  %v6674_v38 = vshrl.u32 %v1418_v59, 30  ;;  %v1481_v58 = vshll.u32 %v9993_v60, %v1475_v55  ;;  %v1484_v23 = vshll.u32 %v9994_v57, %v1475_v55 }
 0x16f   : > { %v1479_v1 = vshrl.u32 %v9993_v60, %v1476_v3  ;;  %v1487_v20 = vshll.u32 %v9987_v54, %v1475_v55  ;;  %v1482_v44 = vshrl.u32 %v9994_v57, %v1476_v3  ;;  %v1485_v53 = vshrl.u32 %v9987_v54, %v1476_v3 }
 0x170   : > { %10003 = vst [vmem:[#allocation21_spill] sm:$0xff] %v6674_v38  ;;  %v1420_v5 = vshll.u32 %v6674_v38, 30  ;;  %v1488_v12 = vshrl.u32 %v9988_v51, %v1476_v3  ;;  %v1326_v8 = vshll.u32 %v6616_v33, %v6651_v56  ;;  %v1490_v39 = vshll.u32 %v9988_v51, %v1475_v55 }
 0x171   : > { %v1480_v47 = vor.u32 %v1479_v1, %v1478_v62  ;;  %v1491_v14 = vshrl.u32 %v9989_v0, %v1476_v3  ;;  %v1483_v63 = vor.u32 %v1482_v44, %v1481_v58  ;;  %v1486_v17 = vor.u32 %v1485_v53, %v1484_v23 }
 0x172   : > { %v6691_v16 = vsub.s32 %v1417_v10, %v1420_v5  ;;  %v1489_v59 = vor.u32 %v1488_v12, %v1487_v20  ;;  %vm9913_vm3 = vcmp.lt.s32.totalorder %v6270_v2, 0  ;;  %v1327_v45 = vshrl.u32 %v1309_v48, %v1325_v32 }
 0x173   : > { %v1332_v34 = vor.u32 4788187, %v1331_v27  ;;  %v1492_v25 = vor.u32 %v1491_v14, %v1490_v39  ;;  %v1569_v7 = vshrl.u32 %v1568_v43, 23  ;;  %v1477_v33 = vshrl.u32 %v9991_v19, %v1476_v3  ;;  %v6732_v14 = vpop.permute.xlu1 %471 }
 0x174   : > { %v1423_v38 = vsub.s32 0, %v6691_v16  ;;  %vm1493_vm4 = vcmp.lt.s32.totalorder %v6676_v6, 1  ;;  %vm1496_vm5 = vcmp.lt.s32.totalorder %v6676_v6, 4  ;;  %vm9940_vm6 = vcmp.lt.s32.totalorder %v6209_v35, 0 }
 0x175   : > { %vm1494_vm7 = vcmp.lt.s32.totalorder %v6676_v6, 2  ;;  %vm1495_vm8 = vcmp.lt.s32.totalorder %v6676_v6, 3  ;;  %v1501_v56 = vsel %vm1493_vm4, %v1480_v47, %v1483_v63  ;;  %v1502_v10 = vsel %vm1496_vm5, %v1489_v59, 920167782 }
 0x176   : > { %v5404_v55 = vmin.u32 %v1423_v38, %v6691_v16  ;;  %v1498_v48 = vsel %vm1496_vm5, %v1486_v17, 2102212464  ;;  %v1503_v32 = vsel %vm1495_vm8, %v1486_v17, %v1502_v10  ;;  %v1505_v3 = vsel %vm1493_vm4, %v1483_v63, %v1486_v17 }
 0x177   : > { %v10004_v43 = vand.u32 2147483647, %v6270_v2  ;;  %v10005_v27 = vmov 0  ;;  %v1504_v62 = vsel %vm1494_vm7, %v1501_v56, %v1503_v32  ;;  %v1506_v1 = vsel %vm1496_vm5, %v1492_v25, 1326507024 }
 0x178   : > { %v5411_v58 = vadd.s32 4294967169, %v1569_v7  ;;  %v10008_v38 = vand.u32 2147483647, %v6649_v18  ;;  %vm9938_vm11 = vcmp.lt.s32.totalorder %v6329_v22, 0  ;;  %v1328_v20 = vor.u32 %v1327_v45, %v1326_v8 }
 0x179   : > { %vm6710_vm10 = vcmp.le.f32.partialorder %v10004_v43, 0.7853982  ;;  %v1425_v5 = vclz %v5404_v55  ;;  %v1497_v44 = vsel %vm1493_vm4, %v1477_v33, %v1480_v47  ;;  %v1507_v53 = vsel %vm1495_vm8, %v1489_v59, %v1506_v1 }
 0x17a   : > { %v10006_v27 = vsel %vm6710_vm10, 4294967295, %v10005_v27  ;;  %v1572_v23 = vand.u32 8388607, %v10008_v38  ;;  %v1499_v12 = vsel %vm1495_vm8, %v1483_v63, %v1498_v48  ;;  %v1508_v25 = vsel %vm1494_vm7, %v1505_v3, %v1507_v53 }
 0x17b   : > { %10007 = vst [vmem:[#allocation22_spill] sm:$0xff] %v10006_v27  ;;  %v6728_v7 = vmul.u32.u64.low %v6671_v9, %v1504_v62  ;;  %v6729_v39 = vmul.u32.u64.high %v6671_v9, %v1504_v62, %v6728_v7  ;;  %v1333_v45 = vand.u32 2147483647, %v1332_v34  ;;  %v5405_v8 = vadd.s32 4294967294, %v1425_v5 }
 0x17c   : > { %v6735_v47 = vmul.u32.u64.low %v6671_v9, %v1508_v25  ;;  %v6736_v17 = vmul.u32.u64.high %v6671_v9, %v1508_v25, %v6735_v47  ;;  %v10009_v59 = vshll.u32 %v6642_v4, 23  ;;  %v10010_v63 = vor.u32 %v6434_v30, %v6428_v61 }
 0x17d   : > { %v1575_v10 = vadd.s32 1, %v5411_v58  ;;  %v6751_v34 = vadd.f32 %v6254_v42, %v6732_v14  ;;  %v10012_v55 = vxor.u32 2147483648, %v6644_v29  ;;  %v1335_v48 = vcvt.s32.f32 %v1328_v20 }
 0x17e   : > { %v6740_v33 = vor.u32 4788187, %v10009_v59  ;;  %v6747_v56 = vsel %vm976_vm9, %v10010_v63, 1326507024  ;;  %vm5406_vm12 = vcmp.lt.s32.totalorder %v5405_v8, 0  ;;  %v1500_v61 = vsel %vm1494_vm7, %v1497_v44, %v1499_v12 }
 0x17f   : > { %10011 = vst [vmem:[#allocation23_spill] sm:$0xff] %v6751_v34  ;;  %v1130_v4 = vsel %vm9913_vm3, %v10012_v55, %v6644_v29  ;;  %v1233_v30 = vxor.u32 2147483648, %v6665_v41  ;;  %v6761_v32 = vsel %vm5406_vm12, 0, %v5405_v8  ;;  %v1519_v3 = vadd.s32 1, %v6729_v39 }
 0x180   : > { %vm1576_vm13 = vcmp.gt.s32.totalorder %v1575_v10, 0  ;;  %v10013_v42 = vxor.u32 2147483648, %v6563_v40  ;;  %v6772_v62 = vmul.f32 %v1335_v48, %v1333_v45  ;;  %v1573_v6 = vor.u32 8388608, %v1572_v23 }
 0x181   : > { %v1516_v1 = vmul.u32 %v6671_v9, %v1500_v61  ;;  %vm1518_vm14 = vc.u32 %v6736_v17, %v6728_v7  ;;  %v1577_v58 = vsel %vm1576_vm13, %v1575_v10, 0  ;;  %v1672_v38 = vand.u32 2139095040, %v6751_v34 }
 0x182   : > { %v6769_v43 = vsel %vm9940_vm6, %v10013_v42, %v6563_v40  ;;  %v917_v20 = vand.u32 2147483647, %v6740_v33  ;;  %v6782_v40 = vsel %vm6710_vm10, %v6270_v2, %v1130_v4  ;;  %v1433_v5 = vsub.s32 4294967266, %v6761_v32 }
 0x183   : > { %v1520_v44 = vsel %vm1518_vm14, %v1519_v3, %v6729_v39  ;;  %v6789_v9 = vsel %vm9938_vm11, %v1233_v30, %v6665_v41  ;;  %v1413_v23 = vadd.s32 %v6623_v11, %v6632_v31  ;;  %v1579_v12 = vand.u32 31, %v1577_v58 }
 0x184   : > { %v1521_v53 = vadd.s32 %v1520_v44, %v1516_v1  ;;  %v1429_v45 = vsub.s32 32, %v6761_v32  ;;  %v6795_v8 = vshll.u32 %v1573_v6, 8  ;;  %v1430_v39 = vshll.u32 %v6691_v16, %v6761_v32 }
 0x185   : > { %v1580_v33 = vsub.s32 32, %v1579_v12  ;;  %v1673_v41 = vshrl.u32 %v1672_v38, 23  ;;  %v1434_v63 = vadd.s32 127, %v1433_v5  ;;  %v1578_v10 = vshrl.u32 %v1577_v58, 5 }
 0x186   : > { %v1522_v59 = vadd.s32 536870912, %v1521_v53  ;;  %v1582_v11 = vshll.u32 %v9991_v19, %v1579_v12  ;;  %v1585_v31 = vshll.u32 %v9993_v60, %v1579_v12  ;;  %v1588_v61 = vshll.u32 %v9994_v57, %v1579_v12 }
 0x187   : > { %v1583_v4 = vshrl.u32 %v9993_v60, %v1580_v33  ;;  %v1586_v48 = vshrl.u32 %v9994_v57, %v1580_v33  ;;  %v1589_v30 = vshrl.u32 %v9987_v54, %v1580_v33  ;;  %v1591_v16 = vshll.u32 %v9987_v54, %v1579_v12 }
 0x188   : > { %v6802_v55 = vshrl.u32 %v1522_v59, 30  ;;  %v1592_v32 = vshrl.u32 %v9988_v51, %v1580_v33  ;;  %v1594_v3 = vshll.u32 %v9988_v51, %v1579_v12  ;;  %v1595_v58 = vshrl.u32 %v9989_v0, %v1580_v33 }
 0x189   : > { %v1584_v6 = vor.u32 %v1583_v4, %v1582_v11  ;;  %v1587_v1 = vor.u32 %v1586_v48, %v1585_v31  ;;  %v10015_v38 = vand.u32 2147483647, %v6329_v22  ;;  %vm9912_vm0 = vcmp.lt.s32.totalorder %v6386_v24, 0 }
 0x18a   : > { %10014 = vst [vmem:[#allocation24_spill] sm:$0xff] %v6802_v55  ;;  %v1524_v42 = vshll.u32 %v6802_v55, 30  ;;  %v1435_v44 = vshll.u32 %v1434_v63, 23  ;;  %v1590_v59 = vor.u32 %v1589_v30, %v1588_v61  ;;  %v1593_v47 = vor.u32 %v1592_v32, %v1591_v16 }
 0x18b   : > { %vm6815_vm15 = vcmp.le.f32.partialorder %v10015_v38, 0.7853982  ;;  %vm1597_vm2 = vcmp.lt.s32.totalorder %v1578_v10, 1  ;;  %v1596_v12 = vor.u32 %v1595_v58, %v1594_v3  ;;  %vm1598_vm4 = vcmp.lt.s32.totalorder %v1578_v10, 2 }
 0x18c   : > { %v6820_v25 = vsub.s32 %v1521_v53, %v1524_v42  ;;  %vm1600_vm5 = vcmp.lt.s32.totalorder %v1578_v10, 4  ;;  %vm1599_vm7 = vcmp.lt.s32.totalorder %v1578_v10, 3  ;;  %v1605_v31 = vsel %vm1597_vm2, %v1584_v6, %v1587_v1 }
 0x18d   : > { %v1602_v11 = vsel %vm1600_vm5, %v1590_v59, 2102212464  ;;  %v1606_v4 = vsel %vm1600_vm5, %v1593_v47, 920167782  ;;  %v1581_v38 = vshrl.u32 %v9991_v19, %v1580_v33  ;;  %v1609_v63 = vsel %vm1597_vm2, %v1587_v1, %v1590_v59 }
 0x18e   : > { %v1527_v48 = vsub.s32 0, %v6820_v25  ;;  %v1607_v29 = vsel %vm1599_vm7, %v1590_v59, %v1606_v4  ;;  %v1431_v61 = vshrl.u32 %v1413_v23, %v1429_v45  ;;  %v1610_v53 = vsel %vm1600_vm5, %v1596_v12, 1326507024 }
 0x18f   : > { %v1608_v30 = vsel %vm1598_vm4, %v1605_v31, %v1607_v29  ;;  %v5415_v16 = vadd.s32 4294967169, %v1673_v41  ;;  %v1601_v3 = vsel %vm1597_vm2, %v1581_v38, %v1584_v6  ;;  %v1603_v42 = vsel %vm1599_vm7, %v1587_v1, %v1602_v11  ;;  %v6865_v31 = vpop.permute.xlu0 %476 }
 0x190   : > { %v5408_v32 = vmin.u32 %v1527_v48, %v6820_v25  ;;  %v1611_v58 = vsel %vm1599_vm7, %v1593_v47, %v1610_v53  ;;  %v1436_v55 = vor.u32 4788187, %v1435_v44  ;;  %v10018_v23 = vcvt.s32.f32 %v6661_v13 }
 0x191   : > { %v1612_v27 = vsel %vm1598_vm4, %v1609_v63, %v1611_v58  ;;  %v6831_v2 = vmul.u32.u64.low %v6795_v8, %v1608_v30  ;;  %v6832_v33 = vmul.u32.u64.high %v6795_v8, %v1608_v30, %v6831_v2  ;;  %5800 = vcosq.f32 %v6782_v40 }
 0x192   : > { %v6837_v45 = vmul.f32 %v10018_v23, %v917_v20  ;;  %v1529_v29 = vclz %v5408_v32  ;;  %v6840_v41 = vmul.u32.u64.low %v6795_v8, %v1612_v27  ;;  %v6841_v59 = vmul.u32.u64.high %v6795_v8, %v1612_v27, %v6840_v41 }
 0x193   : > { %v1432_v47 = vor.u32 %v1431_v61, %v1430_v39  ;;  %v1604_v6 = vsel %vm1598_vm4, %v1601_v3, %v1603_v42  ;;  %v1679_v1 = vadd.s32 1, %v5415_v16  ;;  %5802 = vsinq.f32 %v6782_v40 }
 0x194   : > { %v6850_v13 = vsel %vm6815_vm15, %v6329_v22, %v6789_v9  ;;  %v10019_v20 = vxor.u32 2147483648, %v6772_v62  ;;  %v5409_v44 = vadd.s32 4294967294, %v1529_v29  ;;  %v1437_v39 = vand.u32 2147483647, %v1436_v55 }
 0x195   : > { %v1623_v10 = vadd.s32 1, %v6832_v33  ;;  %v10020_v12 = vand.u32 2147483647, %v6751_v34  ;;  %vm1680_vm8 = vcmp.gt.s32.totalorder %v1679_v1, 0  ;;  %v1620_v11 = vmul.u32 %v6795_v8, %v1604_v6 }
 0x196   : > { %v6857_v27 = vsel %vm9912_vm0, %v10019_v20, %v6772_v62  ;;  %vm5410_vm12 = vcmp.lt.s32.totalorder %v5409_v44, 0  ;;  %vm1622_vm13 = vc.u32 %v6841_v59, %v6831_v2  ;;  %v1681_v9 = vsel %vm1680_vm8, %v1679_v1, 0 }
 0x197   : > { %v1676_v40 = vand.u32 8388607, %v10020_v12  ;;  %v1439_v4 = vcvt.s32.f32 %v1432_v47  ;;  %v6867_v62 = vsel %vm5410_vm12, 0, %v5409_v44  ;;  %v1624_v55 = vsel %vm1622_vm13, %v1623_v10, %v6832_v33 }
 0x198   : > { %v1683_v48 = vand.u32 31, %v1681_v9  ;;  %v1517_v38 = vadd.s32 %v6728_v7, %v6736_v17  ;;  %v1625_v63 = vadd.s32 %v1624_v55, %v1620_v11  ;;  %v6874_v61 = vadd.f32 %v6318_v15, %v6732_v14 }
 0x199   : > { %v6878_v8 = vadd.f32 %v6409_v36, %v6865_v31  ;;  %v6880_v30 = vmul.f32 %v1439_v4, %v1437_v39  ;;  %v1533_v53 = vsub.s32 32, %v6867_v62  ;;  %v1677_v16 = vor.u32 8388608, %v1676_v40 }
 0x19a   : > { %v1684_v32 = vsub.s32 32, %v1683_v48  ;;  %v1537_v3 = vsub.s32 4294967266, %v6867_v62  ;;  %v1626_v42 = vadd.s32 536870912, %v1625_v63  ;;  %v1686_v7 = vshll.u32 %v9991_v19, %v1683_v48 }
 0x19b   : > { %v1689_v17 = vshll.u32 %v9993_v60, %v1683_v48  ;;  %v1692_v36 = vshll.u32 %v9994_v57, %v1683_v48  ;;  %v1682_v23 = vshrl.u32 %v1681_v9, 5  ;;  %v1695_v29 = vshll.u32 %v9987_v54, %v1683_v48  ;;  %v6894_v47 = vpop.eup %5800 }
 0x19c   : > { %v1687_v15 = vshrl.u32 %v9993_v60, %v1684_v32  ;;  %v1690_v14 = vshrl.u32 %v9994_v57, %v1684_v32  ;;  %v1693_v58 = vshrl.u32 %v9987_v54, %v1684_v32  ;;  %v6890_v33 = vshrl.u32 %v1626_v42, 30  ;;  %10022 = vst [vmem:[#allocation26_spill] sm:$0xff] %v6894_v47 }
 0x19d   : > { %v1696_v41 = vshrl.u32 %v9988_v51, %v1684_v32  ;;  %v6897_v39 = vpop.eup %5802  ;;  %v1717_v40 = vshll.u32 %v1677_v16, 8  ;;  %v1776_v11 = vand.u32 2139095040, %v6874_v61  ;;  %v10024_v9 = vand.u32 2147483647, %v6386_v24 }
 0x19e   : > { %10021 = vst [vmem:[#allocation25_spill] sm:$0xff] %v6890_v33  ;;  %v1688_v6 = vor.u32 %v1687_v15, %v1686_v7  ;;  %v1691_v1 = vor.u32 %v1690_v14, %v1689_v17  ;;  %v1694_v20 = vor.u32 %v1693_v58, %v1692_v36  ;;  %10023 = vst [vmem:[#allocation27_spill] sm:$0xff] %v6897_v39  ;;  %v1628_v10 = vshll.u32 %v6890_v33, 30 }
 0x19f   : > { %v1697_v12 = vor.u32 %v1696_v41, %v1695_v29  ;;  %vm6903_vm14 = vcmp.le.f32.partialorder %v10024_v9, 0.7853982  ;;  %v10025_v4 = vmov 0  ;;  %v1535_v55 = vshrl.u32 %v1517_v38, %v1533_v53 }
 0x1a0   : > { %v10026_v4 = vsel %vm6903_vm14, 4294967295, %v10025_v4  ;;  %v1538_v42 = vadd.s32 127, %v1537_v3  ;;  %v1698_v7 = vshll.u32 %v9988_v51, %v1683_v48  ;;  %v1699_v17 = vshrl.u32 %v9989_v0, %v1684_v32 }
 0x1a1   : > { %10027 = vst [vmem:[#allocation28_spill] sm:$0xff] %v10026_v4  ;;  %v6909_v15 = vsub.s32 %v1625_v63, %v1628_v10  ;;  %vm1701_vm2 = vcmp.lt.s32.totalorder %v1682_v23, 1  ;;  %vm1703_vm4 = vcmp.lt.s32.totalorder %v1682_v23, 3  ;;  %vm1704_vm5 = vcmp.lt.s32.totalorder %v1682_v23, 4 }
 0x1a2   : > { %vm9914_vm7 = vcmp.lt.s32.totalorder %v6507_v52, 0  ;;  %v1700_v16 = vor.u32 %v1699_v17, %v1698_v7  ;;  %v1706_v14 = vsel %vm1704_vm5, %v1694_v20, 2102212464  ;;  %v1709_v36 = vsel %vm1701_vm2, %v1688_v6, %v1691_v1 }
 0x1a3   : > { %v1710_v58 = vsel %vm1704_vm5, %v1697_v12, 920167782  ;;  %v1631_v29 = vsub.s32 0, %v6909_v15  ;;  %v1685_v38 = vshrl.u32 %v9991_v19, %v1684_v32  ;;  %vm1702_vm8 = vcmp.lt.s32.totalorder %v1682_v23, 2 }
 0x1a4   : > { %v1711_v48 = vsel %vm1703_vm4, %v1694_v20, %v1710_v58  ;;  %v1539_v53 = vshll.u32 %v1538_v42, 23  ;;  %v1713_v3 = vsel %vm1701_vm2, %v1691_v1, %v1694_v20  ;;  %v1714_v41 = vsel %vm1704_vm5, %v1700_v16, 1326507024 }
 0x1a5   : > { %v1712_v63 = vsel %vm1702_vm8, %v1709_v36, %v1711_v48  ;;  %v5412_v10 = vmin.u32 %v1631_v29, %v6909_v15  ;;  %v1705_v9 = vsel %vm1701_vm2, %v1685_v38, %v1688_v6  ;;  %v1707_v7 = vsel %vm1703_vm4, %v1691_v1, %v1706_v14 }
 0x1a6   : > { %v1715_v17 = vsel %vm1703_vm4, %v1697_v12, %v1714_v41  ;;  %v6923_v32 = vmul.u32.u64.low %v1717_v40, %v1712_v63  ;;  %v6924_v33 = vmul.u32.u64.high %v1717_v40, %v1712_v63, %v6923_v32  ;;  %v1777_v42 = vshrl.u32 %v1776_v11, 23 }
 0x1a7   : > { %v1716_v44 = vsel %vm1702_vm8, %v1713_v3, %v1715_v17  ;;  %v1441_v36 = vxor.u32 2147483648, %v6880_v30  ;;  %v1633_v58 = vclz %v5412_v10  ;;  %v1534_v6 = vshll.u32 %v6820_v25, %v6867_v62 }
 0x1a8   : > { %v6928_v20 = vmul.u32.u64.low %v1717_v40, %v1716_v44  ;;  %v6929_v16 = vmul.u32.u64.high %v1717_v40, %v1716_v44, %v6928_v20  ;;  %v1540_v29 = vor.u32 4788187, %v1539_v53  ;;  %v1708_v1 = vsel %vm1702_vm8, %v1705_v9, %v1707_v7 }
 0x1a9   : > { %v5419_v12 = vadd.s32 4294967169, %v1777_v42  ;;  %5804 = vcosq.f32 %v6850_v13  ;;  %v6939_v11 = vsel %vm6903_vm14, %v6386_v24, %v6857_v27  ;;  %v5413_v14 = vadd.s32 4294967294, %v1633_v58 }
 0x1aa   : > { %v10028_v38 = vand.u32 2147483647, %v6874_v61  ;;  %v1536_v48 = vor.u32 %v1535_v55, %v1534_v6  ;;  %v1727_v63 = vadd.s32 1, %v6924_v33  ;;  %v1880_v62 = vand.u32 2139095040, %v6878_v8 }
 0x1ab   : > { %v1783_v25 = vadd.s32 1, %v5419_v12  ;;  %v1442_v23 = vsel %vm9914_vm7, %v1441_v36, %v6880_v30  ;;  %vm5414_vm12 = vcmp.lt.s32.totalorder %v5413_v14, 0  ;;  %v1724_v53 = vmul.u32 %v1717_v40, %v1708_v1 }
 0x1ac   : > { %v1780_v44 = vand.u32 8388607, %v10028_v38  ;;  %vm1726_vm13 = vc.u32 %v6929_v16, %v6923_v32  ;;  %v1541_v27 = vand.u32 2147483647, %v1540_v29  ;;  %v6950_v3 = vsel %vm5414_vm12, 0, %v5413_v14 }
 0x1ad   : > { %v1728_v41 = vsel %vm1726_vm13, %v1727_v63, %v6924_v33  ;;  %vm1784_vm2 = vcmp.gt.s32.totalorder %v1783_v25, 0  ;;  %v1641_v55 = vsub.s32 4294967266, %v6950_v3  ;;  %v9903_v7 = vand.u32 2147483647, %v6878_v8 }
 0x1ae   : > { %v1729_v10 = vadd.s32 %v1728_v41, %v1724_v53  ;;  %v1781_v9 = vor.u32 8388608, %v1780_v44  ;;  %5806 = vsinq.f32 %v6850_v13  ;;  %v1543_v30 = vcvt.s32.f32 %v1536_v48 }
 0x1af   : > { %v1785_v17 = vsel %vm1784_vm2, %v1783_v25, 0  ;;  %v1881_v40 = vshrl.u32 %v1880_v62, 23  ;;  %5808 = vcosq.f32 %v6939_v11  ;;  %v10029_v42 = vand.u32 2147483647, %v6507_v52 }
 0x1b0   : > { %v1642_v33 = vadd.s32 127, %v1641_v55  ;;  %v1730_v58 = vadd.s32 536870912, %v1729_v10  ;;  %v6968_v6 = vmul.f32 %v1543_v30, %v1541_v27  ;;  %v1621_v13 = vadd.s32 %v6831_v2, %v6841_v59 }
 0x1b1   : > { %vm6959_vm4 = vcmp.le.f32.partialorder %v10029_v42, 0.7853982  ;;  %v1787_v29 = vand.u32 31, %v1785_v17  ;;  %v1637_v1 = vsub.s32 32, %v6950_v3  ;;  %v6975_v14 = vshll.u32 %v1781_v9, 8 }
 0x1b2   : > { %v6966_v20 = vsel %vm6959_vm4, %v6507_v52, %v1442_v23  ;;  %v6973_v12 = vshrl.u32 %v1730_v58, 30  ;;  %v6979_v38 = vand.u32 8388607, %v9903_v7  ;;  %v1638_v44 = vshll.u32 %v6909_v15, %v6950_v3 }
 0x1b3   : > { %v1786_v48 = vshrl.u32 %v1785_v17, 5  ;;  %v1788_v63 = vsub.s32 32, %v1787_v29  ;;  %v5423_v25 = vadd.s32 4294967169, %v1881_v40  ;;  %v6983_v62 = vpop.eup %5804  ;;  %v1643_v2 = vshll.u32 %v1642_v33, 23 }
 0x1b4   : > { %10032 = vst [vmem:[#allocation29_spill] sm:$0xff] %v6973_v12  ;;  %10033 = vst [vmem:[#allocation30_spill] sm:$0xff] %v6983_v62  ;;  %v1732_v59 = vshll.u32 %v6973_v12, 30  ;;  %v1790_v23 = vshll.u32 %v9991_v19, %v1787_v29  ;;  %v1793_v53 = vshll.u32 %v9993_v60, %v1787_v29  ;;  %v1796_v55 = vshll.u32 %v9994_v57, %v1787_v29 }
 0x1b5   : > { %v1791_v27 = vshrl.u32 %v9993_v60, %v1788_v63  ;;  %v1794_v41 = vshrl.u32 %v9994_v57, %v1788_v63  ;;  %v1797_v15 = vshrl.u32 %v9987_v54, %v1788_v63  ;;  %v1799_v9 = vshll.u32 %v9987_v54, %v1787_v29 }
 0x1b6   : > { %v6992_v3 = vsub.s32 %v1729_v10, %v1732_v59  ;;  %v1800_v30 = vshrl.u32 %v9988_v51, %v1788_v63  ;;  %v1802_v17 = vshll.u32 %v9988_v51, %v1787_v29  ;;  %v1803_v58 = vshrl.u32 %v9989_v0, %v1788_v63 }
 0x1b7   : > { %v1792_v40 = vor.u32 %v1791_v27, %v1790_v23  ;;  %v1795_v42 = vor.u32 %v1794_v41, %v1793_v53  ;;  %v1798_v33 = vor.u32 %v1797_v15, %v1796_v55  ;;  %v1639_v7 = vshrl.u32 %v1621_v13, %v1637_v1 }
 0x1b8   : > { %v1735_v12 = vsub.s32 0, %v6992_v3  ;;  %v1801_v47 = vor.u32 %v1800_v30, %v1799_v9  ;;  %v1887_v4 = vadd.s32 1, %v5423_v25  ;;  %v6999_v39 = vpop.eup %5806  ;;  %v1644_v10 = vor.u32 4788187, %v1643_v2 }
 0x1b9   : > { %v1789_v59 = vshrl.u32 %v9991_v19, %v1788_v63  ;;  %v1804_v24 = vor.u32 %v1803_v58, %v1802_v17  ;;  %vm1805_vm5 = vcmp.lt.s32.totalorder %v1786_v48, 1  ;;  %v7002_v62 = vpop.eup %5808  ;;  %vm1807_vm8 = vcmp.lt.s32.totalorder %v1786_v48, 3 }
 0x1ba   : > { %v5416_v29 = vmin.u32 %v1735_v12, %v6992_v3  ;;  %vm1808_vm12 = vcmp.lt.s32.totalorder %v1786_v48, 4  ;;  %v1813_v23 = vsel %vm1805_vm5, %v1792_v40, %v1795_v42  ;;  %v1817_v1 = vsel %vm1805_vm5, %v1795_v42, %v1798_v33 }
 0x1bb   : > { %v1810_v53 = vsel %vm1808_vm12, %v1798_v33, 2102212464  ;;  %v1814_v13 = vsel %vm1808_vm12, %v1801_v47, 920167782  ;;  %v1818_v27 = vsel %vm1808_vm12, %v1804_v24, 1326507024  ;;  %v1640_v63 = vor.u32 %v1639_v7, %v1638_v44 }
 0x1bc   : > { %v1737_v41 = vclz %v5416_v29  ;;  %vm1806_vm13 = vcmp.lt.s32.totalorder %v1786_v48, 2  ;;  %v1815_v25 = vsel %vm1807_vm8, %v1798_v33, %v1814_v13  ;;  %v1885_v2 = vor.u32 8388608, %v6979_v38 }
 0x1bd   : > { %v1809_v55 = vsel %vm1805_vm5, %v1789_v59, %v1792_v40  ;;  %v1816_v15 = vsel %vm1806_vm13, %v1813_v23, %v1815_v25  ;;  %v1819_v9 = vsel %vm1807_vm8, %v1801_v47, %v1818_v27  ;;  %v1811_v30 = vsel %vm1807_vm8, %v1795_v42, %v1810_v53 }
 0x1be   : > { %v5417_v12 = vadd.s32 4294967294, %v1737_v41  ;;  %v1820_v17 = vsel %vm1806_vm13, %v1817_v1, %v1819_v9  ;;  %vm1888_vm2 = vcmp.gt.s32.totalorder %v1887_v4, 0  ;;  %v1645_v58 = vand.u32 2147483647, %v1644_v10 }
 0x1bf   : > { %v7012_v24 = vmul.u32.u64.low %v6975_v14, %v1820_v17  ;;  %v7013_v29 = vmul.u32.u64.high %v6975_v14, %v1820_v17, %v7012_v24  ;;  %v1889_v33 = vsel %vm1888_vm2, %v1887_v4, 0  ;;  %v1545_v38 = vxor.u32 2147483648, %v6968_v6 }
 0x1c0   : > { %vm5418_vm12 = vcmp.lt.s32.totalorder %v5417_v12, 0  ;;  %v7017_v7 = vmul.u32.u64.low %v6975_v14, %v1816_v15  ;;  %v7018_v44 = vmul.u32.u64.high %v6975_v14, %v1816_v15, %v7017_v7  ;;  %v1647_v47 = vcvt.s32.f32 %v1640_v63 }
 0x1c1   : > { %v1740_v40 = vsel %vm5418_vm12, 0, %v5417_v12  ;;  %v1812_v42 = vsel %vm1806_vm13, %v1809_v55, %v1811_v30  ;;  %v1891_v59 = vand.u32 31, %v1889_v33  ;;  %v1725_v10 = vadd.s32 %v6923_v32, %v6929_v16 }
 0x1c2   : > { %v1745_v23 = vsub.s32 4294967266, %v1740_v40  ;;  %v7024_v53 = vshll.u32 %v1885_v2, 8  ;;  %v7028_v4 = vadd.f32 %v6473_v50, %v6865_v31  ;;  %v7030_v13 = vmul.f32 %v1647_v47, %v1645_v58 }
 0x1c3   : > { %v1741_v1 = vsub.s32 32, %v1740_v40  ;;  %vm1830_vm5 = vc.u32 %v7013_v29, %v7017_v7  ;;  %v1892_v27 = vsub.s32 32, %v1891_v59  ;;  %v1828_v41 = vmul.u32 %v6975_v14, %v1812_v42 }
 0x1c4   : > { %v1746_v48 = vadd.s32 127, %v1745_v23  ;;  %v1831_v25 = vadd.s32 1, %v7018_v44  ;;  %v1890_v32 = vshrl.u32 %v1889_v33, 5  ;;  %v1894_v16 = vshll.u32 %v9991_v19, %v1891_v59 }
 0x1c5   : > { %v1895_v2 = vshrl.u32 %v9993_v60, %v1892_v27  ;;  %v1897_v50 = vshll.u32 %v9993_v60, %v1891_v59  ;;  %v1898_v31 = vshrl.u32 %v9994_v57, %v1892_v27  ;;  %v1900_v15 = vshll.u32 %v9994_v57, %v1891_v59 }
 0x1c6   : > { %v1747_v63 = vshll.u32 %v1746_v48, 23  ;;  %v1832_v55 = vsel %vm1830_vm5, %v1831_v25, %v7018_v44  ;;  %v1901_v9 = vshrl.u32 %v9987_v54, %v1892_v27  ;;  %v1742_v14 = vshll.u32 %v6992_v3, %v1740_v40 }
 0x1c7   : > { %v1743_v12 = vshrl.u32 %v1725_v10, %v1741_v1  ;;  %v1833_v30 = vadd.s32 %v1832_v55, %v1828_v41  ;;  %v1896_v17 = vor.u32 %v1895_v2, %v1894_v16  ;;  %v1899_v58 = vor.u32 %v1898_v31, %v1897_v50 }
 0x1c8   : > { %v1902_v24 = vor.u32 %v1901_v9, %v1900_v15  ;;  %v1903_v33 = vshll.u32 %v9987_v54, %v1891_v59  ;;  %v1904_v47 = vshrl.u32 %v9988_v51, %v1892_v27  ;;  %vm9924_vm8 = vcmp.lt.s32.totalorder %v6569_v26, 0 }
 0x1c9   : > { %v1748_v42 = vor.u32 4788187, %v1747_v63  ;;  %v1834_v23 = vadd.s32 536870912, %v1833_v30  ;;  %v1906_v44 = vshll.u32 %v9988_v51, %v1891_v59  ;;  %v1907_v48 = vshrl.u32 %v9989_v0, %v1892_v27 }
 0x1ca   : > { %v1893_v25 = vshrl.u32 %v9991_v19, %v1892_v27  ;;  %v1905_v3 = vor.u32 %v1904_v47, %v1903_v33  ;;  %vm1909_vm13 = vcmp.lt.s32.totalorder %v1890_v32, 1  ;;  %vm1912_vm2 = vcmp.lt.s32.totalorder %v1890_v32, 4 }
 0x1cb   : > { %vm9928_vm12 = vcmp.lt.s32.totalorder %v6649_v18, 0  ;;  %v1744_v40 = vor.u32 %v1743_v12, %v1742_v14  ;;  %v7051_v10 = vshrl.u32 %v1834_v23, 30  ;;  %v1908_v1 = vor.u32 %v1907_v48, %v1906_v44 }
 0x1cc   : > { %v1914_v41 = vsel %vm1912_vm2, %v1902_v24, 2102212464  ;;  %v10035_v16 = vand.u32 2147483647, %v6569_v26  ;;  %v10036_v2 = vmov 0  ;;  %vm1910_vm0 = vcmp.lt.s32.totalorder %v1890_v32, 2 }
 0x1cd   : > { %10034 = vst [vmem:[#allocation31_spill] sm:$0xff] %v7051_v10  ;;  %vm1911_vm3 = vcmp.lt.s32.totalorder %v1890_v32, 3  ;;  %v1917_v59 = vsel %vm1909_vm13, %v1896_v17, %v1899_v58  ;;  %v1918_v27 = vsel %vm1912_vm2, %v1905_v3, 920167782  ;;  %v1749_v50 = vand.u32 2147483647, %v1748_v42 }
 0x1ce   : > { %vm7056_vm5 = vcmp.le.f32.partialorder %v10035_v16, 0.7853982  ;;  %v1836_v31 = vshll.u32 %v7051_v10, 30  ;;  %v1919_v63 = vsel %vm1911_vm3, %v1902_v24, %v1918_v27  ;;  %v1921_v55 = vsel %vm1909_vm13, %v1899_v58, %v1902_v24 }
 0x1cf   : > { %v10037_v2 = vsel %vm7056_vm5, 4294967295, %v10036_v2  ;;  %v10039_v15 = vand.u32 2147483647, %v6649_v18  ;;  %v10040_v9 = vmov 0  ;;  %v1913_v14 = vsel %vm1909_vm13, %v1893_v25, %v1896_v17 }
 0x1d0   : > { %10038 = vst [vmem:[#allocation32_spill] sm:$0xff] %v10037_v2  ;;  %v1915_v12 = vsel %vm1911_vm3, %v1899_v58, %v1914_v41  ;;  %v1920_v33 = vsel %vm1910_vm0, %v1917_v59, %v1919_v63  ;;  %v1922_v47 = vsel %vm1912_vm2, %v1908_v1, 1326507024  ;;  %v7073_v23 = vsub.s32 %v1833_v30, %v1836_v31  ;;  %v482_v31 = vpop.permute.xlu1 %481 }
 0x1d1   : > { %vm7066_vm7 = vcmp.le.f32.partialorder %v10039_v15, 0.7853982  ;;  %v1923_v42 = vsel %vm1911_vm3, %v1905_v3, %v1922_v47  ;;  %v7076_v44 = vmul.u32.u64.low %v7024_v53, %v1920_v33  ;;  %v7077_v48 = vmul.u32.u64.high %v7024_v53, %v1920_v33, %v7076_v44 }
 0x1d2   : > { %v10041_v9 = vsel %vm7066_vm7, 4294967295, %v10040_v9  ;;  %v1649_v24 = vxor.u32 2147483648, %v7030_v13  ;;  %v1924_v16 = vsel %vm1910_vm0, %v1921_v55, %v1923_v42  ;;  %v9915_v27 = vand.u32 2147483647, %v7028_v4 }
 0x1d3   : > { %10042 = vst [vmem:[#allocation33_spill] sm:$0xff] %v10041_v9  ;;  %v1984_v17 = vand.u32 2139095040, %v7028_v4  ;;  %v1751_v58 = vcvt.s32.f32 %v1744_v40  ;;  %v1839_v25 = vsub.s32 0, %v7073_v23  ;;  %5810 = vsinq.f32 %v6939_v11 }
 0x1d4   : > { %v7086_v30 = vmul.u32.u64.low %v7024_v53, %v1924_v16  ;;  %v7087_v1 = vmul.u32.u64.high %v7024_v53, %v1924_v16, %v7086_v30  ;;  %v1546_v3 = vsel %vm9924_vm8, %v1545_v38, %v6968_v6  ;;  %v1916_v41 = vsel %vm1910_vm0, %v1913_v14, %v1915_v12 }
 0x1d5   : > { %v1985_v59 = vshrl.u32 %v1984_v17, 23  ;;  %5812 = vcosq.f32 %v6966_v20  ;;  %v1752_v40 = vmul.f32 %v1751_v58, %v1749_v50  ;;  %v5420_v63 = vmin.u32 %v1839_v25, %v7073_v23 }
 0x1d6   : > { %v1935_v55 = vadd.s32 1, %v7077_v48  ;;  %v1650_v11 = vsel %vm9928_vm12, %v1649_v24, %v7030_v13  ;;  %v1988_v33 = vand.u32 8388607, %v9915_v27  ;;  %v7105_v6 = vadd.f32 %v6580_v21, %v482_v31 }
 0x1d7   : > { %v5427_v15 = vadd.s32 4294967169, %v1985_v59  ;;  %v1549_v38 = vsel %vm7056_vm5, %v6569_v26, %v1546_v3  ;;  %v1841_v32 = vclz %v5420_v63  ;;  %v1932_v50 = vmul.u32 %v7024_v53, %v1916_v41 }
 0x1d8   : > { %vm1934_vm3 = vc.u32 %v7087_v1, %v7076_v44  ;;  %5814 = vsinq.f32 %v6966_v20  ;;  %vm9923_vm0 = vcmp.lt.s32.totalorder %v6751_v34, 0  ;;  %v7119_v21 = vsel %vm7066_vm7, %v6649_v18, %v1650_v11 }
 0x1d9   : > { %v1936_v13 = vsel %vm1934_vm3, %v1935_v55, %v7077_v48  ;;  %v1991_v14 = vadd.s32 1, %v5427_v15  ;;  %v1753_v12 = vxor.u32 2147483648, %v1752_v40  ;;  %v5421_v47 = vadd.s32 4294967294, %v1841_v32 }
 0x1da   : > { %v1937_v42 = vadd.s32 %v1936_v13, %v1932_v50  ;;  %5816 = vcosq.f32 %v1549_v38  ;;  %v1989_v53 = vor.u32 8388608, %v1988_v33  ;;  %v2088_v24 = vand.u32 2139095040, %v7105_v6 }
 0x1db   : > { %vm1992_vm13 = vcmp.gt.s32.totalorder %v1991_v14, 0  ;;  %5818 = vsinq.f32 %v1549_v38  ;;  %vm5422_vm2 = vcmp.lt.s32.totalorder %v5421_v47, 0  ;;  %v1829_v48 = vadd.s32 %v7017_v7, %v7013_v29 }
 0x1dc   : > { %v1938_v20 = vadd.s32 536870912, %v1937_v42  ;;  %v1993_v16 = vsel %vm1992_vm13, %v1991_v14, 0  ;;  %5820 = vcosq.f32 %v7119_v21  ;;  %v7125_v17 = vsel %vm5422_vm2, 0, %v5421_v47 }
 0x1dd   : > { %v1995_v58 = vand.u32 31, %v1993_v16  ;;  %v7129_v25 = vsel %vm9923_vm0, %v1753_v12, %v1752_v40  ;;  %v1849_v30 = vsub.s32 4294967266, %v7125_v17  ;;  %v7135_v41 = vadd.f32 %v6627_v46, %v482_v31  ;;  %v7137_v59 = vpop.eup %5810 }
 0x1de   : > { %v7132_v3 = vshrl.u32 %v1938_v20, 30  ;;  %v1845_v63 = vsub.s32 32, %v7125_v17  ;;  %v7140_v29 = vshll.u32 %v1989_v53, 8  ;;  %v2089_v7 = vshrl.u32 %v2088_v24, 23 }
 0x1df   : > { %v1996_v55 = vsub.s32 32, %v1995_v58  ;;  %v7142_v11 = vpop.eup %5812  ;;  %v1998_v15 = vshll.u32 %v9991_v19, %v1995_v58  ;;  %v2001_v33 = vshll.u32 %v9993_v60, %v1995_v58  ;;  %v2004_v38 = vshll.u32 %v9994_v57, %v1995_v58 }
 0x1e0   : > { %10043 = vst [vmem:[#allocation34_spill] sm:$0xff] %v7132_v3  ;;  %v1940_v40 = vshll.u32 %v7132_v3, 30  ;;  %v1850_v46 = vadd.s32 127, %v1849_v30  ;;  %v1994_v14 = vshrl.u32 %v1993_v16, 5  ;;  %v2007_v12 = vshll.u32 %v9987_v54, %v1995_v58 }
 0x1e1   : > { %v1999_v31 = vshrl.u32 %v9993_v60, %v1996_v55  ;;  %v2002_v32 = vshrl.u32 %v9994_v57, %v1996_v55  ;;  %v2005_v50 = vshrl.u32 %v9987_v54, %v1996_v55  ;;  %v2008_v47 = vshrl.u32 %v9988_v51, %v1996_v55 }
 0x1e2   : > { %v7151_v13 = vsub.s32 %v1937_v42, %v1940_v40  ;;  %v7155_v53 = vpop.eup %5814  ;;  %v1846_v3 = vshll.u32 %v7073_v23, %v7125_v17  ;;  %v5431_v42 = vadd.s32 4294967169, %v2089_v7  ;;  %v10045_v16 = vand.u32 2147483647, %v6751_v34 }
 0x1e3   : > { %v2000_v24 = vor.u32 %v1999_v31, %v1998_v15  ;;  %v2003_v20 = vor.u32 %v2002_v32, %v2001_v33  ;;  %v2006_v27 = vor.u32 %v2005_v50, %v2004_v38  ;;  %v2009_v26 = vor.u32 %v2008_v47, %v2007_v12 }
 0x1e4   : > { %v1943_v2 = vsub.s32 0, %v7151_v13  ;;  %v7161_v40 = vpop.eup %5816  ;;  %vm7165_vm3 = vcmp.le.f32.partialorder %v10045_v16, 0.7853982  ;;  %v10046_v10 = vmov 0  ;;  %v1847_v15 = vshrl.u32 %v1829_v48, %v1845_v63 }
 0x1e5   : > { %10044 = vst [vmem:[#allocation35_spill] sm:$0xff] %v7161_v40  ;;  %v10047_v10 = vsel %vm7165_vm3, 4294967295, %v10046_v10  ;;  %v1851_v33 = vshll.u32 %v1850_v46, 23  ;;  %v2010_v38 = vshll.u32 %v9988_v51, %v1995_v58  ;;  %v2011_v31 = vshrl.u32 %v9989_v0, %v1996_v55  ;;  %v7171_v32 = vpop.eup %5818 }
 0x1e6   : > { %10048 = vst [vmem:[#allocation36_spill] sm:$0xff] %v10047_v10  ;;  %10049 = vst [vmem:[#allocation37_spill] sm:$0xff] %v7171_v32  ;;  %v5424_v23 = vmin.u32 %v1943_v2, %v7151_v13  ;;  %vm2013_vm13 = vcmp.lt.s32.totalorder %v1994_v14, 1  ;;  %vm2015_vm2 = vcmp.lt.s32.totalorder %v1994_v14, 3  ;;  %vm2016_vm0 = vcmp.lt.s32.totalorder %v1994_v14, 4  ;;  %v7174_v17 = vpop.eup %5820 }
 0x1e7   : > { %10050 = vst [vmem:[#allocation38_spill] sm:$0xff] %v7174_v17  ;;  %v2012_v7 = vor.u32 %v2011_v31, %v2010_v38  ;;  %v2018_v50 = vsel %vm2016_vm0, %v2006_v27, 2102212464  ;;  %v2021_v12 = vsel %vm2013_vm13, %v2000_v24, %v2003_v20  ;;  %v2022_v47 = vsel %vm2016_vm0, %v2009_v26, 920167782 }
 0x1e8   : > { %v1945_v48 = vclz %v5424_v23  ;;  %v1997_v63 = vshrl.u32 %v9991_v19, %v1996_v55  ;;  %vm2014_vm8 = vcmp.lt.s32.totalorder %v1994_v14, 2  ;;  %v2023_v58 = vsel %vm2015_vm2, %v2006_v27, %v2022_v47 }
 0x1e9   : > { %v1852_v46 = vor.u32 4788187, %v1851_v33  ;;  %v2024_v16 = vsel %vm2014_vm8, %v2021_v12, %v2023_v58  ;;  %v2025_v2 = vsel %vm2013_vm13, %v2003_v20, %v2006_v27  ;;  %v2026_v30 = vsel %vm2016_vm0, %v2012_v7, 1326507024 }
 0x1ea   : > { %v5425_v40 = vadd.s32 4294967294, %v1945_v48  ;;  %v2017_v32 = vsel %vm2013_vm13, %v1997_v63, %v2000_v24  ;;  %v2019_v38 = vsel %vm2015_vm2, %v2003_v20, %v2018_v50  ;;  %v2027_v31 = vsel %vm2015_vm2, %v2009_v26, %v2026_v30 }
 0x1eb   : > { %v2028_v23 = vsel %vm2014_vm8, %v2025_v2, %v2027_v31  ;;  %v7186_v55 = vmul.u32.u64.low %v7140_v29, %v2024_v16  ;;  %v7187_v17 = vmul.u32.u64.high %v7140_v29, %v2024_v16, %v7186_v55  ;;  %v2095_v33 = vadd.s32 1, %v5431_v42 }
 0x1ec   : > { %v1848_v47 = vor.u32 %v1847_v15, %v1846_v3  ;;  %vm5426_vm12 = vcmp.lt.s32.totalorder %v5425_v40, 0  ;;  %v7191_v27 = vmul.u32.u64.low %v7140_v29, %v2028_v23  ;;  %v7192_v7 = vmul.u32.u64.high %v7140_v29, %v2028_v23, %v7191_v27 }
 0x1ed   : > { %5822 = vsinq.f32 %v7119_v21  ;;  %v1948_v24 = vsel %vm5426_vm12, 0, %v5425_v40  ;;  %v2020_v20 = vsel %vm2014_vm8, %v2017_v32, %v2019_v38  ;;  %vm2096_vm0 = vcmp.gt.s32.totalorder %v2095_v33, 0 }
 0x1ee   : > { %v7200_v26 = vsel %vm7165_vm3, %v6751_v34, %v7129_v25  ;;  %v1853_v30 = vand.u32 2147483647, %v1852_v46  ;;  %v1953_v42 = vsub.s32 4294967266, %v1948_v24  ;;  %v10051_v3 = vand.u32 2147483647, %v7105_v6 }
 0x1ef   : > { %v1949_v50 = vsub.s32 32, %v1948_v24  ;;  %v2039_v12 = vadd.s32 1, %v7187_v17  ;;  %v2097_v48 = vsel %vm2096_vm0, %v2095_v33, 0  ;;  %v2192_v21 = vand.u32 2139095040, %v7135_v41 }
 0x1f0   : > { %v2092_v15 = vand.u32 8388607, %v10051_v3  ;;  %v1855_v14 = vcvt.s32.f32 %v1848_v47  ;;  %v1954_v40 = vadd.s32 127, %v1953_v42  ;;  %v2036_v32 = vmul.u32 %v7140_v29, %v2020_v20 }
 0x1f1   : > { %vm2038_vm8 = vc.u32 %v7192_v7, %v7186_v55  ;;  %v1933_v25 = vadd.s32 %v7076_v44, %v7087_v1  ;;  %v2099_v58 = vand.u32 31, %v2097_v48  ;;  %v1950_v2 = vshll.u32 %v7151_v13, %v1948_v24 }
 0x1f2   : > { %v2040_v63 = vsel %vm2038_vm8, %v2039_v12, %v7187_v17  ;;  %v7213_v16 = vmul.f32 %v1855_v14, %v1853_v30  ;;  %v2093_v31 = vor.u32 8388608, %v2092_v15  ;;  %v2098_v33 = vshrl.u32 %v2097_v48, 5 }
 0x1f3   : > { %v2041_v38 = vadd.s32 %v2040_v63, %v2036_v32  ;;  %v1951_v23 = vshrl.u32 %v1933_v25, %v1949_v50  ;;  %v2100_v29 = vsub.s32 32, %v2099_v58  ;;  %v2193_v47 = vshrl.u32 %v2192_v21, 23 }
 0x1f4   : > { %v1955_v27 = vshll.u32 %v1954_v40, 23  ;;  %v2102_v42 = vshll.u32 %v9991_v19, %v2099_v58  ;;  %v2105_v44 = vshll.u32 %v9993_v60, %v2099_v58  ;;  %v2108_v30 = vshll.u32 %v9994_v57, %v2099_v58 }
 0x1f5   : > { %v2042_v20 = vadd.s32 536870912, %v2041_v38  ;;  %v2103_v1 = vshrl.u32 %v9993_v60, %v2100_v29  ;;  %v2106_v17 = vshrl.u32 %v9994_v57, %v2100_v29  ;;  %v2109_v13 = vshrl.u32 %v9987_v54, %v2100_v29 }
 0x1f6   : > { %v2111_v3 = vshll.u32 %v9987_v54, %v2099_v58  ;;  %v2112_v15 = vshrl.u32 %v9988_v51, %v2100_v29  ;;  %v2114_v50 = vshll.u32 %v9988_v51, %v2099_v58  ;;  %v2115_v40 = vshrl.u32 %v9989_v0, %v2100_v29 }
 0x1f7   : > { %v7222_v24 = vshrl.u32 %v2042_v20, 30  ;;  %v7227_v12 = vpop.eup %5822  ;;  %v2104_v48 = vor.u32 %v2103_v1, %v2102_v42  ;;  %v2107_v21 = vor.u32 %v2106_v17, %v2105_v44  ;;  %v2110_v14 = vor.u32 %v2109_v13, %v2108_v30 }
 0x1f8   : > { %10053 = vst [vmem:[#allocation40_spill] sm:$0xff] %v7227_v12  ;;  %vm9937_vm12 = vcmp.lt.s32.totalorder %v6874_v61, 0  ;;  %v1857_v32 = vxor.u32 2147483648, %v7213_v16  ;;  %v2113_v63 = vor.u32 %v2112_v15, %v2111_v3  ;;  %v2133_v20 = vshll.u32 %v2093_v31, 8 }
 0x1f9   : > { %10052 = vst [vmem:[#allocation39_spill] sm:$0xff] %v7222_v24  ;;  %v2044_v25 = vshll.u32 %v7222_v24, 30  ;;  %v1952_v46 = vor.u32 %v1951_v23, %v1950_v2  ;;  %v1956_v10 = vor.u32 4788187, %v1955_v27  ;;  %v2116_v34 = vor.u32 %v2115_v40, %v2114_v50 }
 0x1fa   : > { %v5435_v9 = vadd.s32 4294967169, %v2193_v47  ;;  %v2101_v42 = vshrl.u32 %v9991_v19, %v2100_v29  ;;  %vm2117_vm13 = vcmp.lt.s32.totalorder %v2098_v33, 1  ;;  %vm2120_vm2 = vcmp.lt.s32.totalorder %v2098_v33, 4 }
 0x1fb   : > { %v7233_v58 = vsub.s32 %v2041_v38, %v2044_v25  ;;  %vm2119_vm0 = vcmp.lt.s32.totalorder %v2098_v33, 3  ;;  %v2122_v44 = vsel %vm2120_vm2, %v2110_v14, 2102212464  ;;  %v2125_v1 = vsel %vm2117_vm13, %v2104_v48, %v2107_v21 }
 0x1fc   : > { %v2126_v17 = vsel %vm2120_vm2, %v2113_v63, 920167782  ;;  %vm2118_vm8 = vcmp.lt.s32.totalorder %v2098_v33, 2  ;;  %v2129_v3 = vsel %vm2117_vm13, %v2107_v21, %v2110_v14  ;;  %v1957_v31 = vand.u32 2147483647, %v1956_v10 }
 0x1fd   : > { %v2047_v30 = vsub.s32 0, %v7233_v58  ;;  %v2127_v13 = vsel %vm2119_vm0, %v2110_v14, %v2126_v17  ;;  %v2130_v23 = vsel %vm2120_vm2, %v2116_v34, 1326507024  ;;  %v10054_v38 = vand.u32 2147483647, %v7135_v41 }
 0x1fe   : > { %v2128_v2 = vsel %vm2118_vm8, %v2125_v1, %v2127_v13  ;;  %v2121_v27 = vsel %vm2117_vm13, %v2101_v42, %v2104_v48  ;;  %v2123_v15 = vsel %vm2119_vm0, %v2107_v21, %v2122_v44  ;;  %v2131_v50 = vsel %vm2119_vm0, %v2113_v63, %v2130_v23 }
 0x1ff   : > { %v2196_v47 = vand.u32 8388607, %v10054_v38  ;;  %v5428_v29 = vmin.u32 %v2047_v30, %v7233_v58  ;;  %v1959_v40 = vcvt.s32.f32 %v1952_v46  ;;  %v2132_v25 = vsel %vm2118_vm8, %v2129_v3, %v2131_v50 }
 0x200   : > { %v7242_v24 = vmul.u32.u64.low %v2133_v20, %v2128_v2  ;;  %v7243_v12 = vmul.u32.u64.high %v2133_v20, %v2128_v2, %v7242_v24  ;;  %v7246_v10 = vmul.u32.u64.low %v2133_v20, %v2132_v25  ;;  %v7247_v17 = vmul.u32.u64.high %v2133_v20, %v2132_v25, %v7246_v10 }
 0x201   : > { %v2049_v14 = vclz %v5428_v29  ;;  %v2199_v34 = vadd.s32 1, %v5435_v9  ;;  %5824 = vcosq.f32 %v7200_v26  ;;  %v1858_v48 = vsel %vm9937_vm12, %v1857_v32, %v7213_v16 }
 0x202   : > { %v2124_v46 = vsel %vm2118_vm8, %v2121_v27, %v2123_v15  ;;  %v7255_v21 = vmul.f32 %v1959_v40, %v1957_v31  ;;  %v2197_v42 = vor.u32 8388608, %v2196_v47  ;;  %5826 = vsinq.f32 %v7200_v26 }
 0x203   : > { %v5429_v63 = vadd.s32 4294967294, %v2049_v14  ;;  %vm2200_vm13 = vcmp.gt.s32.totalorder %v2199_v34, 0  ;;  %v10055_v44 = vand.u32 2147483647, %v6874_v61  ;;  %v2143_v30 = vadd.s32 1, %v7243_v12 }
 0x204   : > { %v2201_v13 = vsel %vm2200_vm13, %v2199_v34, 0  ;;  %v2140_v33 = vmul.u32 %v2133_v20, %v2124_v46  ;;  %vm2142_vm8 = vc.u32 %v7247_v17, %v7242_v24  ;;  %v2037_v26 = vadd.s32 %v7186_v55, %v7192_v7 }
 0x205   : > { %vm7260_vm2 = vcmp.le.f32.partialorder %v10055_v44, 0.7853982  ;;  %vm5430_vm0 = vcmp.lt.s32.totalorder %v5429_v63, 0  ;;  %v2144_v3 = vsel %vm2142_vm8, %v2143_v30, %v7243_v12  ;;  %v2203_v31 = vand.u32 31, %v2201_v13 }
 0x206   : > { %v7268_v16 = vsel %vm7260_vm2, %v6874_v61, %v1858_v48  ;;  %v2052_v32 = vsel %vm5430_vm0, 0, %v5429_v63  ;;  %v2145_v38 = vadd.s32 %v2144_v3, %v2140_v33  ;;  %v7276_v47 = vshll.u32 %v2197_v42, 8 }
 0x207   : > { %v2057_v23 = vsub.s32 4294967266, %v2052_v32  ;;  %v2053_v29 = vsub.s32 32, %v2052_v32  ;;  %v2202_v27 = vshrl.u32 %v2201_v13, 5  ;;  %v2204_v15 = vsub.s32 32, %v2203_v31 }
 0x208   : > { %v2146_v40 = vadd.s32 536870912, %v2145_v38  ;;  %v2206_v25 = vshll.u32 %v9991_v19, %v2203_v31  ;;  %v2209_v55 = vshll.u32 %v9993_v60, %v2203_v31  ;;  %v2212_v14 = vshll.u32 %v9994_v57, %v2203_v31 }
 0x209   : > { %v2058_v50 = vadd.s32 127, %v2057_v23  ;;  %v2207_v7 = vshrl.u32 %v9993_v60, %v2204_v15  ;;  %v2210_v12 = vshrl.u32 %v9994_v57, %v2204_v15  ;;  %v2213_v10 = vshrl.u32 %v9987_v54, %v2204_v15 }
 0x20a   : > { %v7285_v48 = vshrl.u32 %v2146_v40, 30  ;;  %v2215_v46 = vshll.u32 %v9987_v54, %v2203_v31  ;;  %v2216_v63 = vshrl.u32 %v9988_v51, %v2204_v15  ;;  %v750_v33 = vshll.u32 %v9991_v19, %v6292_v28 }
 0x20b   : > { %v2059_v34 = vshll.u32 %v2058_v50, 23  ;;  %v7289_v42 = vpop.eup %5824  ;;  %v2208_v44 = vor.u32 %v2207_v7, %v2206_v25  ;;  %v2211_v30 = vor.u32 %v2210_v12, %v2209_v55  ;;  %v2214_v13 = vor.u32 %v2213_v10, %v2212_v14  ;;  %v10060_v50 = vld [vmem:[#allocation6_spill] sm:$0xff] }
 0x20c   : > { %10058 = vst [vmem:[#allocation41_spill] sm:$0xff] %v7285_v48  ;;  %10059 = vst [vmem:[#allocation42_spill] sm:$0xff] %v7289_v42  ;;  %v2054_v3 = vshll.u32 %v7233_v58, %v2052_v32  ;;  %v2148_v23 = vshll.u32 %v7285_v48, 30  ;;  %v2217_v1 = vor.u32 %v2216_v63, %v2215_v46  ;;  %v751_v40 = vshrl.u32 %v9993_v60, %v10060_v50  ;;  %v7297_v2 = vpop.eup %5826 }
 0x20d   : > { %vm9941_vm13 = vcmp.lt.s32.totalorder %v6878_v8, 0  ;;  %v2055_v20 = vshrl.u32 %v2037_v26, %v2053_v29  ;;  %v2060_v42 = vor.u32 4788187, %v2059_v34  ;;  %v2218_v25 = vshll.u32 %v9988_v51, %v2203_v31 }
 0x20e   : > { %v2219_v55 = vshrl.u32 %v9989_v0, %v2204_v15  ;;  %v7302_v7 = vsub.s32 %v2145_v38, %v2148_v23  ;;  %vm2221_vm0 = vcmp.lt.s32.totalorder %v2202_v27, 1  ;;  %vm2223_vm8 = vcmp.lt.s32.totalorder %v2202_v27, 3 }
 0x20f   : > { %vm2224_vm12 = vcmp.lt.s32.totalorder %v2202_v27, 4  ;;  %v2229_v12 = vsel %vm2221_vm0, %v2208_v44, %v2211_v30  ;;  %v2205_v46 = vshrl.u32 %v9991_v19, %v2204_v15  ;;  %vm2222_vm11 = vcmp.lt.s32.totalorder %v2202_v27, 2 }
 0x210   : > { %v2220_v58 = vor.u32 %v2219_v55, %v2218_v25  ;;  %v2226_v32 = vsel %vm2224_vm12, %v2214_v13, 2102212464  ;;  %v2230_v14 = vsel %vm2224_vm12, %v2217_v1, 920167782  ;;  %v2151_v10 = vsub.s32 0, %v7302_v7 }
 0x211   : > { %v2231_v26 = vsel %vm2223_vm8, %v2214_v13, %v2230_v14  ;;  %v2056_v31 = vor.u32 %v2055_v20, %v2054_v3  ;;  %v2233_v38 = vsel %vm2221_vm0, %v2211_v30, %v2214_v13  ;;  %v2225_v23 = vsel %vm2221_vm0, %v2205_v46, %v2208_v44 }
 0x212   : > { %v2232_v29 = vsel %vm2222_vm11, %v2229_v12, %v2231_v26  ;;  %v2234_v34 = vsel %vm2224_vm12, %v2220_v58, 1326507024  ;;  %v5432_v63 = vmin.u32 %v2151_v10, %v7302_v7  ;;  %v2227_v25 = vsel %vm2223_vm8, %v2211_v30, %v2226_v32 }
 0x213   : > { %v2235_v55 = vsel %vm2223_vm8, %v2217_v1, %v2234_v34  ;;  %v10061_v0 = vand.u32 2147483647, %v6878_v8  ;;  %v10062_v15 = vmov 0  ;;  %v2061_v20 = vand.u32 2147483647, %v2060_v42 }
 0x214   : > { %v2236_v3 = vsel %vm2222_vm11, %v2233_v38, %v2235_v55  ;;  %v7322_v13 = vmul.u32.u64.low %v7276_v47, %v2232_v29  ;;  %v7323_v58 = vmul.u32.u64.high %v7276_v47, %v2232_v29, %v7322_v13  ;;  %v2153_v12 = vclz %v5432_v63 }
 0x215   : > { %vm7316_vm6 = vcmp.le.f32.partialorder %v10061_v0, 0.7853982  ;;  %v7327_v44 = vmul.u32.u64.low %v7276_v47, %v2236_v3  ;;  %v7328_v30 = vmul.u32.u64.high %v7276_v47, %v2236_v3, %v7327_v44  ;;  %v10065_v1 = vand.u32 2147483647, %v6211_v37 }
 0x216   : > { %v10063_v15 = vsel %vm7316_vm6, 4294967295, %v10062_v15  ;;  %v2063_v0 = vcvt.s32.f32 %v2056_v31  ;;  %v2228_v14 = vsel %vm2222_vm11, %v2225_v23, %v2227_v25  ;;  %v753_v42 = vshll.u32 %v9993_v60, %v6292_v28  ;;  %v10067_v31 = vld [vmem:[#allocation2_spill] sm:$0xff] }
 0x217   : > { %10064 = vst [vmem:[#allocation6_spill] sm:$0xff] %v10063_v15  ;;  %v740_v32 = vand.u32 8388607, %v10065_v1  ;;  %v754_v10 = vshrl.u32 %v9994_v57, %v10060_v50  ;;  %v10066_v46 = vxor.u32 2147483648, %v7255_v21  ;;  %v5433_v29 = vadd.s32 4294967294, %v2153_v12 }
 0x218   : > { %v756_v38 = vshll.u32 %v9994_v57, %v6292_v28  ;;  %v757_v27 = vshrl.u32 %v9987_v54, %v10060_v50  ;;  %vm9947_vm11 = vcmp.lt.s32.totalorder %v10067_v31, 0  ;;  %v2064_v34 = vmul.f32 %v2063_v0, %v2061_v20  ;;  %v10069_v0 = vld [vmem:[#allocation11_spill] sm:$0xff] }
 0x219   : > { %v1962_v26 = vsel %vm9941_vm13, %v10066_v46, %v7255_v21  ;;  %v2247_v63 = vadd.s32 1, %v7323_v58  ;;  %v752_v23 = vor.u32 %v751_v40, %v750_v33  ;;  %v755_v25 = vor.u32 %v754_v10, %v753_v42  ;;  %v10068_v33 = vld [vmem:[#allocation8_spill] sm:$0xff] }
 0x21a   : > { %vm5434_vm12 = vcmp.lt.s32.totalorder %v5433_v29, 0  ;;  %v2244_v55 = vmul.u32 %v7276_v47, %v2228_v14  ;;  %vm2246_vm0 = vc.u32 %v7328_v30, %v7322_v13  ;;  %v758_v21 = vor.u32 %v757_v27, %v756_v38  ;;  %v10071_v38 = vld [vmem:[#allocation9_spill] sm:$0xff] }
 0x21b   : > { %v7351_v3 = vsel %vm5434_vm12, 0, %v5433_v29  ;;  %v2248_v28 = vsel %vm2246_vm0, %v2247_v63, %v7323_v58  ;;  %v741_v12 = vor.u32 8388608, %v740_v32  ;;  %v749_v44 = vshrl.u32 %v9991_v19, %v10060_v50  ;;  %v10070_v29 = vld [vmem:[#allocation12_spill] sm:$0xff] }
 0x21c   : > { %v2161_v20 = vsub.s32 4294967266, %v7351_v3  ;;  %v2249_v1 = vadd.s32 %v2248_v28, %v2244_v55  ;;  %vm765_vm8 = vcmp.lt.s32.totalorder %v10068_v33, 1  ;;  %vm767_vm13 = vcmp.lt.s32.totalorder %v10068_v33, 3 }
 0x21d   : > { %v770_v47 = vsel %vm768_vm1, %v758_v21, 2102212464  ;;  %v773_v40 = vsel %vm765_vm8, %v752_v23, %v755_v25  ;;  %v775_v14 = vsel %vm767_vm13, %v758_v21, %v10069_v0  ;;  %v777_v42 = vsel %vm765_vm8, %v755_v25, %v758_v21 }
 0x21e   : > { %v1965_v58 = vsel %vm7316_vm6, %v6878_v8, %v1962_v26  ;;  %v2065_v32 = vxor.u32 2147483648, %v2064_v34  ;;  %v2250_v50 = vadd.s32 536870912, %v2249_v1  ;;  %vm766_vm12 = vcmp.lt.s32.totalorder %v10068_v33, 2 }
 0x21f   : > { %v769_v10 = vsel %vm765_vm8, %v749_v44, %v752_v23  ;;  %v776_v46 = vsel %vm766_vm12, %v773_v40, %v775_v14  ;;  %v779_v27 = vsel %vm767_vm13, %v10071_v38, %v10070_v29  ;;  %v781_v63 = vshll.u32 %v741_v12, 8 }
 0x220   : > { %v2162_v55 = vadd.s32 127, %v2161_v20  ;;  %v7370_v28 = vshrl.u32 %v2250_v50, 30  ;;  %v771_v21 = vsel %vm767_vm13, %v755_v25, %v770_v47  ;;  %v780_v0 = vsel %vm766_vm12, %v777_v42, %v779_v27 }
 0x221   : > { %v7374_v26 = vmul.u32.u64.low %v781_v63, %v780_v0  ;;  %v7375_v51 = vmul.u32.u64.high %v781_v63, %v780_v0, %v7374_v26  ;;  %v7377_v48 = vmul.u32.u64.low %v781_v63, %v776_v46  ;;  %v7378_v15 = vmul.u32.u64.high %v781_v63, %v776_v46, %v7377_v48  ;;  %v10076_v46 = vld [vmem:[#allocation3_spill] sm:$0xff] }
 0x222   : > { %v10072_v23 = vxor.u32 2147483648, %v6837_v45  ;;  %5828 = vcosq.f32 %v7268_v16  ;;  %v10073_v25 = vand.u32 2147483647, %v7028_v4  ;;  %v10074_v44 = vmov 0 }
 0x223   : > { %v2252_v20 = vshll.u32 %v7370_v28, 30  ;;  %5830 = vsinq.f32 %v7268_v16  ;;  %vm9946_vm13 = vcmp.lt.s32.totalorder %v7028_v4, 0  ;;  %v2157_v47 = vsub.s32 32, %v7351_v3 }
 0x224   : > { %v7386_v12 = vsel %vm9947_vm11, %v10072_v23, %v6837_v45  ;;  %vm7391_vm1 = vcmp.le.f32.partialorder %v10073_v25, 0.7853982  ;;  %v772_v45 = vsel %vm766_vm12, %v769_v10, %v771_v21  ;;  %5832 = vcosq.f32 %v1965_v58 }
 0x225   : > { %v10075_v44 = vsel %vm7391_vm1, 4294967295, %v10074_v44  ;;  %v2141_v40 = vadd.s32 %v7242_v24, %v7247_v17  ;;  %v2163_v14 = vshll.u32 %v2162_v55, 23  ;;  %v7403_v42 = vsub.s32 %v2249_v1, %v2252_v20  ;;  %v10077_v24 = vld [vmem:[#allocation10_spill] sm:$0xff] }
 0x226   : > { %v2066_v50 = vsel %vm9946_vm13, %v2065_v32, %v2064_v34  ;;  %vm790_vm0 = vc.u32 %v7375_v51, %v7377_v48  ;;  %v791_v16 = vadd.s32 1, %v7378_v15  ;;  %v9949_v29 = vand.u32 2147483647, %v10076_v46  ;;  %v10078_v34 = vld [vmem:[#allocation7_spill] sm:$0xff] }
 0x227   : > { %v2158_v33 = vshll.u32 %v7302_v7, %v7351_v3  ;;  %v2255_v10 = vsub.s32 0, %v7403_v42  ;;  %v788_v38 = vmul.u32 %v781_v63, %v772_v45  ;;  %v959_v17 = vshrl.u32 %v9993_v60, %v10077_v24 }
 0x228   : > { %v2159_v1 = vshrl.u32 %v2141_v40, %v2157_v47  ;;  %v792_v27 = vsel %vm790_vm0, %v791_v16, %v7378_v15  ;;  %v961_v32 = vshll.u32 %v9993_v60, %v10078_v34  ;;  %v962_v55 = vshrl.u32 %v9994_v57, %v10077_v24 }
 0x229   : > { %v2164_v21 = vor.u32 4788187, %v2163_v14  ;;  %v5436_v0 = vmin.u32 %v2255_v10, %v7403_v42  ;;  %v793_v26 = vadd.s32 %v792_v27, %v788_v38  ;;  %v958_v7 = vshll.u32 %v9991_v19, %v10078_v34 }
 0x22a   : > { %v948_v3 = vand.u32 8388607, %v9949_v29  ;;  %v963_v63 = vor.u32 %v962_v55, %v961_v32  ;;  %v964_v15 = vshll.u32 %v9994_v57, %v10078_v34  ;;  %v965_v23 = vshrl.u32 %v9987_v54, %v10077_v24  ;;  %v10080_v55 = vld [vmem:[#allocation17_spill] sm:$0xff]  ;;  %v10112_v57 = vld [vmem:[#allocation16_spill] sm:$0xff] }
 0x22b   : > { %5834 = vsinq.f32 %v1965_v58  ;;  %v2257_v25 = vclz %v5436_v0  ;;  %v794_v20 = vadd.s32 536870912, %v793_v26  ;;  %v960_v47 = vor.u32 %v959_v17, %v958_v7 }
 0x22c   : > { %v7433_v45 = vsel %vm7391_vm1, %v7028_v4, %v2066_v50  ;;  %v2160_v40 = vor.u32 %v2159_v1, %v2158_v33  ;;  %v2245_v14 = vadd.s32 %v7322_v13, %v7328_v30  ;;  %v966_v16 = vor.u32 %v965_v23, %v964_v15  ;;  %v7437_v10 = vpop.eup %5828  ;;  %v10079_v33 = vld [vmem:[#allocation15_spill] sm:$0xff] }
 0x22d   : > { %v5437_v38 = vadd.s32 4294967294, %v2257_v25  ;;  %v795_v27 = vshrl.u32 %v794_v20, 30  ;;  %vm973_vm8 = vcmp.lt.s32.totalorder %v6372_v49, 1  ;;  %vm975_vm12 = vcmp.lt.s32.totalorder %v6372_v49, 3  ;;  %v7441_v58 = vpop.eup %5830 }
 0x22e   : > { %v2165_v17 = vand.u32 2147483647, %v2164_v21  ;;  %v949_v34 = vor.u32 8388608, %v948_v3  ;;  %v985_v50 = vsel %vm973_vm8, %v963_v63, %v966_v16  ;;  %v987_v13 = vsel %vm975_vm12, %v10079_v33, %v6747_v56  ;;  %v7449_v30 = vpop.eup %5832 }
 0x22f   : > { %vm5438_vm0 = vcmp.lt.s32.totalorder %v5437_v38, 0  ;;  %v796_v1 = vshll.u32 %v795_v27, 30  ;;  %v981_v32 = vsel %vm973_vm8, %v960_v47, %v963_v63  ;;  %v983_v21 = vsel %vm975_vm12, %v966_v16, %v10080_v55 }
 0x230   : > { %v2167_v0 = vcvt.s32.f32 %v2160_v40  ;;  %v2260_v7 = vsel %vm5438_vm0, 0, %v5437_v38  ;;  %vm974_vm13 = vcmp.lt.s32.totalorder %v6372_v49, 2  ;;  %v978_v3 = vsel %vm976_vm9, %v966_v16, 2102212464 }
 0x231   : > { %v2261_v56 = vsub.s32 32, %v2260_v7  ;;  %v2265_v15 = vsub.s32 4294967266, %v2260_v7  ;;  %v7461_v23 = vsub.s32 %v793_v26, %v796_v1  ;;  %v988_v25 = vsel %vm974_vm13, %v985_v50, %v987_v13 }
 0x232   : > { %v2168_v20 = vmul.f32 %v2167_v0, %v2165_v17  ;;  %v957_v40 = vshrl.u32 %v9991_v19, %v10077_v24  ;;  %v984_v38 = vsel %vm974_vm13, %v981_v32, %v983_v21  ;;  %v989_v33 = vshll.u32 %v949_v34, 8  ;;  %v10084_v21 = vld [vmem:[#allocation5_spill] sm:$0xff] }
 0x233   : > { %v2262_v16 = vshll.u32 %v7403_v42, %v2260_v7  ;;  %v2263_v55 = vshrl.u32 %v2245_v14, %v2261_v56  ;;  %v2266_v29 = vadd.s32 127, %v2265_v15  ;;  %v799_v54 = vsub.s32 0, %v7461_v23 }
 0x234   : > { %v10081_v26 = vand.u32 2147483647, %v7105_v6  ;;  %v10082_v1 = vmov 0  ;;  %v977_v17 = vsel %vm973_vm8, %v957_v40, %v960_v47  ;;  %v979_v24 = vsel %vm975_vm12, %v963_v63, %v978_v3 }
 0x235   : > { %v7481_v50 = vmul.u32.u64.low %v989_v33, %v988_v25  ;;  %v7482_v34 = vmul.u32.u64.high %v989_v33, %v988_v25, %v7481_v50  ;;  %v7484_v42 = vpop.eup %5834  ;;  %v2264_v14 = vor.u32 %v2263_v55, %v2262_v16  ;;  %v2267_v13 = vshll.u32 %v2266_v29, 23 }
 0x236   : > { %vm7473_vm9 = vcmp.le.f32.partialorder %v10081_v26, 0.7853982  ;;  %v5380_v32 = vmin.u32 %v799_v54, %v7461_v23  ;;  %v715_v0 = vsub.s32 4, %v10084_v21  ;;  %v2169_v7 = vxor.u32 2147483648, %v2168_v20 }
 0x237   : > { %v10083_v1 = vsel %vm7473_vm9, 4294967295, %v10082_v1  ;;  %v819_v56 = vsub.s32 4, %v795_v27  ;;  %v7488_v15 = vmul.u32.u64.low %v989_v33, %v984_v38  ;;  %v7489_v26 = vmul.u32.u64.high %v989_v33, %v984_v38, %v7488_v15 }
 0x238   : > { %v2268_v47 = vor.u32 4788187, %v2267_v13  ;;  %v10085_v63 = vand.u32 2147483647, %v6211_v37  ;;  %v801_v25 = vclz %v5380_v32  ;;  %v10088_v29 = vand.u32 2147483647, %v6209_v35 }
 0x239   : > { %5836 = vcosq.f32 %v7433_v45  ;;  %v980_v40 = vsel %vm974_vm13, %v977_v17, %v979_v24  ;;  %vm10091_vm0 = vcmp.lt.s32.totalorder %v6209_v35, 0  ;;  %vm9952_vm6 = vcmp.lt.s32.totalorder %v7135_v41, 0 }
 0x23a   : > { %vm7494_vm8 = vcmp.le.f32.partialorder %v10085_v63, 0.7853982  ;;  %vm7500_vm12 = vcmp.le.f32.partialorder %v10088_v29, 0.7853982  ;;  %v716_v38 = vsel %vm10091_vm0, %v715_v0, %v10084_v21  ;;  %v2269_v55 = vand.u32 2147483647, %v2268_v47 }
 0x23b   : > { %v717_v16 = vsel %vm7500_vm12, %v6209_v35, %v6769_v43  ;;  %v2271_v50 = vcvt.s32.f32 %v2264_v14  ;;  %v5381_v13 = vadd.s32 4294967294, %v801_v25  ;;  %vm998_vm11 = vc.u32 %v7482_v34, %v7488_v15 }
 0x23c   : > { %vm10092_vm1 = vcmp.lt.s32.totalorder %v7105_v6, 0  ;;  %v789_v17 = vadd.s32 %v7377_v48, %v7375_v51  ;;  %vm10093_vm13 = vcmp.lt.s32.totalorder %v6211_v37, 0  ;;  %v999_v32 = vadd.s32 1, %v7489_v26 }
 0x23d   : > { %v2170_v49 = vsel %vm10092_vm1, %v2169_v7, %v2168_v20  ;;  %v820_v24 = vsel %vm10093_vm13, %v819_v56, %v795_v27  ;;  %v2272_v43 = vmul.f32 %v2271_v50, %v2269_v55  ;;  %vm5382_vm0 = vcmp.lt.s32.totalorder %v5381_v13, 0  ;;  %v10094_v27 = vld [vmem:[#allocation14_spill] sm:$0xff] }
 0x23e   : > { %v718_v14 = vsel %vm7500_vm12, 0, %v716_v38  ;;  %5838 = vcosq.f32 %v717_v16  ;;  %v804_v21 = vsel %vm5382_vm0, 0, %v5381_v13  ;;  %v996_v0 = vmul.u32 %v989_v33, %v980_v40 }
 0x23f   : > { %v1000_v47 = vsel %vm998_vm11, %v999_v32, %v7489_v26  ;;  %5840 = vsinq.f32 %v717_v16  ;;  %v2173_v51 = vsel %vm7473_vm9, %v7105_v6, %v2170_v49  ;;  %v805_v48 = vsub.s32 32, %v804_v21 }
 0x240   : > { %v809_v20 = vsub.s32 4294967266, %v804_v21  ;;  %v923_v7 = vsub.s32 4, %v10094_v27  ;;  %v2273_v56 = vxor.u32 2147483648, %v2272_v43  ;;  %v822_v63 = vsel %vm7494_vm8, 0, %v820_v24 }
 0x241   : > { %v1001_v25 = vadd.s32 %v1000_v47, %v996_v0  ;;  %v722_v29 = vadd.s32 3, %v718_v14  ;;  %v806_v54 = vshll.u32 %v7461_v23, %v804_v21  ;;  %v807_v33 = vshrl.u32 %v789_v17, %v805_v48  ;;  %v10102_v21 = vld [vmem:[#allocation18_spill] sm:$0xff] }
 0x242   : > { %v810_v40 = vadd.s32 127, %v809_v20  ;;  %v10095_v26 = vand.u32 2147483647, %v10067_v31  ;;  %5842 = vsinq.f32 %v7433_v45  ;;  %v10098_v16 = vand.u32 2147483647, %v7135_v41 }
 0x243   : > { %v1002_v50 = vadd.s32 536870912, %v1001_v25  ;;  %5844 = vcosq.f32 %v2173_v51  ;;  %v808_v13 = vor.u32 %v807_v33, %v806_v54  ;;  %vm10101_vm12 = vcmp.lt.s32.totalorder %v10067_v31, 0  ;;  %v7554_v45 = vpop.eup %5836 }
 0x244   : > { %vm7536_vm11 = vcmp.le.f32.partialorder %v10095_v26, 0.7853982  ;;  %vm7543_vm1 = vcmp.le.f32.partialorder %v10098_v16, 0.7853982  ;;  %v811_v49 = vshll.u32 %v810_v40, 23  ;;  %v924_v17 = vsel %vm10101_vm12, %v923_v7, %v10094_v27 }
 0x245   : > { %v925_v23 = vsel %vm7536_vm11, %v10067_v31, %v7386_v12  ;;  %v2274_v24 = vsel %vm9952_vm6, %v2273_v56, %v2272_v43  ;;  %v826_v32 = vadd.s32 3, %v822_v63  ;;  %v1003_v14 = vshrl.u32 %v1002_v50, 30 }
 0x246   : > { %v1235_v0 = vsub.s32 4, %v10102_v21  ;;  %v812_v47 = vor.u32 4788187, %v811_v49  ;;  %vm9953_vm13 = vcmp.lt.s32.totalorder %v10076_v46, 0  ;;  %v723_v12 = vand.u32 3, %v722_v29 }
 0x247   : > { %5846 = vcosq.f32 %v925_v23  ;;  %v10103_v48 = vand.u32 2147483647, %v10076_v46  ;;  %v1004_v27 = vshll.u32 %v1003_v14, 30  ;;  %v926_v7 = vsel %vm7536_vm11, 0, %v924_v17 }
 0x248   : > { %5848 = vsinq.f32 %v925_v23  ;;  %v5839_v43 = vpop.eup %5838  ;;  %v2277_v56 = vsel %vm7543_vm1, %v7135_v41, %v2274_v24  ;;  %v813_v63 = vand.u32 2147483647, %v812_v47  ;;  %v815_v54 = vcvt.s32.f32 %v808_v13 }
 0x249   : > { %vm7562_vm0 = vcmp.le.f32.partialorder %v10103_v48, 0.7853982  ;;  %v1027_v29 = vsub.s32 4, %v1003_v14  ;;  %v5841_v33 = vpop.eup %5840  ;;  %5850 = vsinq.f32 %v2173_v51  ;;  %v7571_v40 = vand.u32 3, %v826_v32 }
 0x24a   : > { %v7573_v26 = vsub.s32 %v1001_v25, %v1004_v27  ;;  %vm10106_vm12 = vcmp.lt.s32.totalorder %v6329_v22, 0  ;;  %v816_v16 = vmul.f32 %v815_v54, %v813_v63  ;;  %v997_v50 = vadd.s32 %v7488_v15, %v7482_v34 }
 0x24b   : > { %v1236_v38 = vsel %vm10106_vm12, %v1235_v0, %v10102_v21  ;;  %v930_v23 = vadd.s32 3, %v926_v7  ;;  %5852 = vcosq.f32 %v2277_v56  ;;  %vm725_vm6 = vcmp.eq.s32.totalorder %v723_v12, 0 }
 0x24c   : > { %v1007_v13 = vsub.s32 0, %v7573_v26  ;;  %v729_v49 = vxor.u32 2147483648, %v5839_v43  ;;  %v817_v51 = vxor.u32 2147483648, %v816_v16  ;;  %v1028_v25 = vsel %vm9953_vm13, %v1027_v29, %v1003_v14  ;;  %v7585_v32 = vpop.eup %5842  ;;  %v10108_v14 = vld [vmem:[#allocation21_spill] sm:$0xff] }
 0x24d   : > { %v726_v17 = vxor.u32 2147483648, %v5841_v33  ;;  %v1238_v24 = vsel %vm6815_vm15, 0, %v1236_v38  ;;  %5854 = vsinq.f32 %v2277_v56  ;;  %vm728_vm12 = vcmp.eq.s32.totalorder %v723_v12, 2  ;;  %v7588_v21 = vpop.eup %5844 }
 0x24e   : > { %v5388_v34 = vmin.u32 %v1007_v13, %v7573_v26  ;;  %v1242_v15 = vadd.s32 3, %v1238_v24  ;;  %vm10107_vm11 = vcmp.lt.s32.totalorder %v6211_v37, 0  ;;  %v931_v47 = vand.u32 3, %v930_v23 }
 0x24f   : > { %v818_v0 = vsel %vm10107_vm11, %v817_v51, %v816_v16  ;;  %v1246_v48 = vxor.u32 2147483648, %v6999_v39  ;;  %v1443_v27 = vsub.s32 4, %v10108_v14  ;;  %v1030_v56 = vsel %vm7562_vm0, 0, %v1028_v25 }
 0x250   : > { %v821_v5 = vsel %vm7494_vm8, %v6211_v37, %v818_v0  ;;  %v1009_v7 = vclz %v5388_v34  ;;  %v730_v63 = vsel %vm728_vm12, %v729_v49, %v5841_v33  ;;  %v727_v29 = vsel %vm725_vm6, %v5839_v43, %v726_v17  ;;  %v10111_v17 = vld [vmem:[#allocation30_spill] sm:$0xff] }
 0x251   : > { %v5847_v54 = vpop.eup %5846  ;;  %5856 = vcosq.f32 %v821_v5  ;;  %v1243_v38 = vand.u32 3, %v1242_v15  ;;  %vm10109_vm15 = vcmp.lt.s32.totalorder %v6507_v52, 0  ;;  %v1034_v25 = vadd.s32 3, %v1030_v56 }
 0x252   : > { %v1444_v16 = vsel %vm10109_vm15, %v1443_v27, %v10108_v14  ;;  %v5849_v23 = vpop.eup %5848  ;;  %5858 = vsinq.f32 %v821_v5  ;;  %v5389_v13 = vadd.s32 4294967294, %v1009_v7  ;;  %v937_v3 = vxor.u32 2147483648, %v5847_v54 }
 0x253   : > { %v1446_v51 = vsel %vm6959_vm4, 0, %v1444_v16  ;;  %vm932_vm12 = vcmp.lt.s32.totalorder %v931_v47, 2  ;;  %vm933_vm13 = vcmp.eq.s32.totalorder %v931_v47, 0  ;;  %v934_v43 = vxor.u32 2147483648, %v5849_v23  ;;  %v7607_v33 = vpop.eup %5850 }
 0x254   : > { %vm5390_vm6 = vcmp.lt.s32.totalorder %v5389_v13, 0  ;;  %vm10110_vm9 = vcmp.lt.s32.totalorder %v723_v12, 2  ;;  %vm936_vm15 = vcmp.eq.s32.totalorder %v931_v47, 2  ;;  %v1249_v24 = vxor.u32 2147483648, %v10111_v17  ;;  %v10114_v47 = vld [vmem:[#allocation4_spill] sm:$0xff] }
 0x255   : > { %v731_v49 = vsel %vm10110_vm9, %v727_v29, %v730_v63  ;;  %v1012_v34 = vsel %vm5390_vm6, 0, %v5389_v13  ;;  %vm1245_vm11 = vcmp.eq.s32.totalorder %v1243_v38, 0  ;;  %v1450_v15 = vadd.s32 3, %v1446_v51  ;;  %v7612_v0 = vpop.eup %5852 }
 0x256   : > { %v1454_v36 = vxor.u32 2147483648, %v7155_v53  ;;  %v1013_v14 = vsub.s32 32, %v1012_v34  ;;  %v1017_v27 = vsub.s32 4294967266, %v1012_v34  ;;  %v935_v5 = vsel %vm933_vm13, %v5847_v54, %v934_v43 }
 0x257   : > { %v938_v7 = vsel %vm936_vm15, %v937_v3, %v5849_v23  ;;  %vm1241_vm4 = vweird.f32 %v6329_v22  ;;  %v1247_v56 = vsel %vm1245_vm11, %v10111_v17, %v1246_v48  ;;  %vm1248_vm8 = vcmp.eq.s32.totalorder %v1243_v38, 2  ;;  %v7617_v29 = vpop.eup %5854 }
 0x258   : > { %v1451_v12 = vand.u32 3, %v1450_v15  ;;  %v1457_v63 = vxor.u32 2147483648, %v7142_v11  ;;  %v1014_v16 = vshll.u32 %v7573_v26, %v1012_v34  ;;  %v1015_v13 = vshrl.u32 %v997_v50, %v1013_v14 }
 0x259   : > { %v1018_v51 = vadd.s32 127, %v1017_v27  ;;  %v1131_v60 = vsub.s32 4, %v10112_v57  ;;  %vm829_vm9 = vcmp.eq.s32.totalorder %v7571_v40, 0  ;;  %v939_v54 = vsel %vm932_vm12, %v935_v5, %v938_v7 }
 0x25a   : > { %v1250_v48 = vsel %vm1248_vm8, %v1249_v24, %v6999_v39  ;;  %vm1453_vm11 = vcmp.eq.s32.totalorder %v1451_v12, 0  ;;  %vm1456_vm6 = vcmp.eq.s32.totalorder %v1451_v12, 2  ;;  %v1016_v23 = vor.u32 %v1015_v13, %v1014_v16  ;;  %v10121_v13 = vld [vmem:[#allocation27_spill] sm:$0xff] }
 0x25b   : > { %v1019_v3 = vshll.u32 %v1018_v51, 23  ;;  %v1455_v43 = vsel %vm1453_vm11, %v7142_v11, %v1454_v36  ;;  %v1458_v26 = vsel %vm1456_vm6, %v1457_v63, %v7155_v53  ;;  %v5857_v50 = vpop.eup %5856  ;;  %v7627_v17 = vand.u32 3, %v1034_v25 }
 0x25c   : > { %vm10113_vm15 = vweird.f32 %v6209_v35  ;;  %vm1244_vm13 = vcmp.lt.s32.totalorder %v1243_v38, 2  ;;  %vm10115_vm12 = vcmp.lt.s32.totalorder %v10114_v47, 0  ;;  %v5859_v24 = vpop.eup %5858  ;;  %vm10116_vm8 = vweird.f32 %v10067_v31  ;;  %v10119_v31 = vld [vmem:[#allocation13_spill] sm:$0xff] }
 0x25d   : > { %v7631_v34 = vsel %vm10113_vm15, nan, %v731_v49  ;;  %v1132_v39 = vsel %vm10115_vm12, %v1131_v60, %v10112_v57  ;;  %v1020_v15 = vor.u32 4788187, %v1019_v3  ;;  %v7638_v14 = vsel %vm10116_vm8, nan, %v939_v54  ;;  %v10118_v49 = vld [vmem:[#allocation20_spill] sm:$0xff]  ;;  %v10123_v3 = vld [vmem:[#allocation26_spill] sm:$0xff] }
 0x25e   : > { %v1251_v11 = vsel %vm1244_vm13, %v1247_v56, %v1250_v48  ;;  %vm1452_vm11 = vcmp.lt.s32.totalorder %v1451_v12, 2  ;;  %v833_v53 = vxor.u32 2147483648, %v5857_v50  ;;  %v1134_v35 = vsel %vm6710_vm10, 0, %v1132_v39  ;;  %v10130_v54 = vld [vmem:[#allocation38_spill] sm:$0xff] }
 0x25f   : > { %v1459_v25 = vsel %vm1452_vm11, %v1455_v43, %v1458_v26  ;;  %v1339_v27 = vsub.s32 4, %v10118_v49  ;;  %v830_v38 = vxor.u32 2147483648, %v5859_v24  ;;  %v1021_v5 = vand.u32 2147483647, %v1020_v15  ;;  %v10124_v26 = vld [vmem:[#allocation25_spill] sm:$0xff] }
 0x260   : > { %v1023_v7 = vcvt.s32.f32 %v1016_v23  ;;  %v1138_v63 = vadd.s32 3, %v1134_v35  ;;  %vm828_vm6 = vcmp.lt.s32.totalorder %v7571_v40, 2  ;;  %v5552_v60 = vpack.c.bf16 %v7638_v14, %v7631_v34 }
 0x261   : > { %v7648_v57 = vsel %vm1241_vm4, nan, %v1251_v11  ;;  %vm1449_vm13 = vweird.f32 %v6507_v52  ;;  %vm10120_vm10 = vcmp.lt.s32.totalorder %v10119_v31, 0  ;;  %v1142_v51 = vxor.u32 2147483648, %v10121_v13 }
 0x262   : > { %v1340_v56 = vsel %vm10120_vm10, %v1339_v27, %v10118_v49  ;;  %v1024_v12 = vmul.f32 %v1023_v7, %v1021_v5  ;;  %v1139_v16 = vand.u32 3, %v1138_v63  ;;  %v7657_v23 = vsel %vm1449_vm13, nan, %v1459_v25  ;;  %v10129_v7 = vld [vmem:[#allocation40_spill] sm:$0xff] }
 0x263   : > { %v1342_v48 = vsel %vm6903_vm14, 0, %v1340_v56  ;;  %v1145_v43 = vxor.u32 2147483648, %v10123_v3  ;;  %v1651_v39 = vsub.s32 4, %v10124_v26  ;;  %v831_v52 = vsel %vm829_vm9, %v5857_v50, %v830_v38 }
 0x264   : > { %v1346_v22 = vadd.s32 3, %v1342_v48  ;;  %vm10125_vm4 = vcmp.eq.s32.totalorder %v7571_v40, 2  ;;  %v1025_v11 = vxor.u32 2147483648, %v1024_v12  ;;  %v1350_v36 = vxor.u32 2147483648, %v7137_v59  ;;  %v10131_v48 = vld [vmem:[#allocation31_spill] sm:$0xff] }
 0x265   : > { %v834_v15 = vsel %vm10125_vm4, %v833_v53, %v5859_v24  ;;  %vm1141_vm15 = vcmp.eq.s32.totalorder %v1139_v16, 0  ;;  %v1353_v49 = vxor.u32 2147483648, %v7002_v62  ;;  %vm10126_vm14 = vcmp.lt.s32.totalorder %v6649_v18, 0 }
 0x266   : > { %v1347_v35 = vand.u32 3, %v1346_v22  ;;  %v1652_v25 = vsel %vm10126_vm14, %v1651_v39, %v10124_v26  ;;  %vm10127_vm12 = vcmp.lt.s32.totalorder %v10076_v46, 0  ;;  %v1143_v5 = vsel %vm1141_vm15, %v10123_v3, %v1142_v51  ;;  %v10133_v26 = vld [vmem:[#allocation24_spill] sm:$0xff] }
 0x267   : > { %v1026_v27 = vsel %vm10127_vm12, %v1025_v11, %v1024_v12  ;;  %vm1144_vm9 = vcmp.eq.s32.totalorder %v1139_v16, 2  ;;  %v1654_v24 = vsel %vm7066_vm7, 0, %v1652_v25  ;;  %vm1137_vm8 = vweird.f32 %v10114_v47 }
 0x268   : > { %v1029_v53 = vsel %vm7562_vm0, %v10076_v46, %v1026_v27  ;;  %v1146_v38 = vsel %vm1144_vm9, %v1145_v43, %v10121_v13  ;;  %vm1349_vm11 = vcmp.eq.s32.totalorder %v1347_v35, 0  ;;  %v1662_v63 = vxor.u32 2147483648, %v10129_v7 }
 0x269   : > { %vm825_vm13 = vweird.f32 %v6211_v37  ;;  %5860 = vcosq.f32 %v1029_v53  ;;  %v1351_v56 = vsel %vm1349_vm11, %v7002_v62, %v1350_v36  ;;  %vm1352_vm10 = vcmp.eq.s32.totalorder %v1347_v35, 2 }
 0x26a   : > { %v1658_v12 = vadd.s32 3, %v1654_v24  ;;  %5862 = vsinq.f32 %v1029_v53  ;;  %v1354_v51 = vsel %vm1352_vm10, %v1353_v49, %v7137_v59  ;;  %v1665_v20 = vxor.u32 2147483648, %v10130_v54 }
 0x26b   : > { %v1859_v3 = vsub.s32 4, %v10131_v48  ;;  %v835_v13 = vsel %vm828_vm6, %v831_v52, %v834_v15  ;;  %vm1345_vm7 = vweird.f32 %v10119_v31  ;;  %vm1348_vm0 = vcmp.lt.s32.totalorder %v1347_v35, 2  ;;  %v10134_v15 = vld [vmem:[#allocation19_spill] sm:$0xff] }
 0x26c   : > { %v1659_v43 = vand.u32 3, %v1658_v12  ;;  %vm1140_vm4 = vcmp.lt.s32.totalorder %v1139_v16, 2  ;;  %v1355_v22 = vsel %vm1348_vm0, %v1351_v56, %v1354_v51  ;;  %vm10132_vm15 = vcmp.lt.s32.totalorder %v6874_v61, 0  ;;  %v10138_v12 = vld [vmem:[#allocation39_spill] sm:$0xff] }
 0x26d   : > { %v1860_v62 = vsel %vm10132_vm15, %v1859_v3, %v10131_v48  ;;  %v1547_v39 = vsub.s32 4, %v10133_v26  ;;  %vm1040_vm14 = vcmp.eq.s32.totalorder %v7627_v17, 2  ;;  %v1147_v59 = vsel %vm1140_vm4, %v1143_v5, %v1146_v38  ;;  %v10137_v38 = vld [vmem:[#allocation29_spill] sm:$0xff]  ;;  %v10139_v48 = vld [vmem:[#allocation23_spill] sm:$0xff] }
 0x26e   : > { %vm1660_vm12 = vcmp.lt.s32.totalorder %v1659_v43, 2  ;;  %vm1661_vm9 = vcmp.eq.s32.totalorder %v1659_v43, 0  ;;  %vm1664_vm11 = vcmp.eq.s32.totalorder %v1659_v43, 2  ;;  %vm1037_vm6 = vcmp.eq.s32.totalorder %v7627_v17, 0  ;;  %v10141_v43 = vld [vmem:[#allocation37_spill] sm:$0xff] }
 0x26f   : > { %v1663_v40 = vsel %vm1661_vm9, %v10130_v54, %v1662_v63  ;;  %v1666_v52 = vsel %vm1664_vm11, %v1665_v20, %v10129_v7  ;;  %v1862_v16 = vsel %vm7260_vm2, 0, %v1860_v62  ;;  %vm10135_vm10 = vcmp.lt.s32.totalorder %v10134_v15, 0  ;;  %v10142_v62 = vld [vmem:[#allocation35_spill] sm:$0xff] }
 0x270   : > { %v1548_v11 = vsel %vm10135_vm10, %v1547_v39, %v10133_v26  ;;  %vm1036_vm0 = vcmp.lt.s32.totalorder %v7627_v17, 2  ;;  %v7705_v36 = vsel %vm1345_vm7, nan, %v1355_v22  ;;  %v1667_v35 = vsel %vm1660_vm12, %v1663_v40, %v1666_v52  ;;  %v10143_v52 = vld [vmem:[#allocation42_spill] sm:$0xff] }
 0x271   : > { %v1866_v49 = vadd.s32 3, %v1862_v16  ;;  %v1550_v27 = vsel %vm7056_vm5, 0, %v1548_v11  ;;  %vm1033_vm4 = vweird.f32 %v10076_v46  ;;  %v5554_v9 = vpack.c.bf16 %v7657_v23, %v7648_v57 }
 0x272   : > { %v1870_v5 = vxor.u32 2147483648, %v7441_v58  ;;  %v1873_v50 = vxor.u32 2147483648, %v7437_v10  ;;  %v1554_v24 = vadd.s32 3, %v1550_v27  ;;  %v7716_v31 = vsel %vm1137_vm8, nan, %v1147_v59 }
 0x273   : > { %vm1657_vm2 = vweird.f32 %v6649_v18  ;;  %v1867_v53 = vand.u32 3, %v1866_v49  ;;  %v1755_v7 = vsub.s32 4, %v10137_v38  ;;  %v836_v63 = vsel %vm825_vm13, nan, %v835_v13  ;;  %v5861_v56 = vpop.eup %5860 }
 0x274   : > { %v5556_v57 = vpack.c.bf16 %v7705_v36, %v7716_v31  ;;  %v7724_v23 = vsel %vm1657_vm2, nan, %v1667_v35  ;;  %vm1865_vm5 = vweird.f32 %v6874_v61  ;;  %v1555_v47 = vand.u32 3, %v1554_v24  ;;  %v5863_v18 = vpop.eup %5862  ;;  %v10147_v61 = vld [vmem:[#allocation34_spill] sm:$0xff] }
 0x275   : > { %vm1869_vm7 = vcmp.eq.s32.totalorder %v1867_v53, 0  ;;  %vm1872_vm15 = vcmp.eq.s32.totalorder %v1867_v53, 2  ;;  %v2067_v51 = vsub.s32 4, %v10138_v12  ;;  %v1041_v54 = vxor.u32 2147483648, %v5861_v56 }
 0x276   : > { %v1871_v20 = vsel %vm1869_vm7, %v7437_v10, %v1870_v5  ;;  %v1874_v37 = vsel %vm1872_vm15, %v1873_v50, %v7441_v58  ;;  %vm10140_vm8 = vcmp.lt.s32.totalorder %v10139_v48, 0  ;;  %v1038_v13 = vxor.u32 2147483648, %v5863_v18 }
 0x277   : > { %v1756_v3 = vsel %vm10140_vm8, %v1755_v7, %v10137_v38  ;;  %vm1868_vm13 = vcmp.lt.s32.totalorder %v1867_v53, 2  ;;  %v1558_v22 = vxor.u32 2147483648, %v10141_v43  ;;  %v1561_v26 = vxor.u32 2147483648, %v10142_v62 }
 0x278   : > { %v1042_v39 = vsel %vm1040_vm14, %v1041_v54, %v5863_v18  ;;  %v1875_v59 = vsel %vm1868_vm13, %v1871_v20, %v1874_v37  ;;  %v1766_v40 = vxor.u32 2147483648, %v7297_v2  ;;  %v1769_v10 = vxor.u32 2147483648, %v10143_v52 }
 0x279   : > { %v1039_v58 = vsel %vm1037_vm6, %v5861_v56, %v1038_v13  ;;  %vm1556_vm12 = vcmp.lt.s32.totalorder %v1555_v47, 2  ;;  %vm1557_vm9 = vcmp.eq.s32.totalorder %v1555_v47, 0  ;;  %v1758_v11 = vsel %vm7165_vm3, 0, %v1756_v3 }
 0x27a   : > { %v1043_v35 = vsel %vm1036_vm0, %v1039_v58, %v1042_v39  ;;  %vm1560_vm11 = vcmp.eq.s32.totalorder %v1555_v47, 2  ;;  %v1762_v49 = vadd.s32 3, %v1758_v11  ;;  %vm10145_vm14 = vcmp.lt.s32.totalorder %v7028_v4, 0 }
 0x27b   : > { %v2068_v25 = vsel %vm10145_vm14, %v2067_v51, %v10138_v12  ;;  %v1044_v27 = vsel %vm1033_vm4, nan, %v1043_v35  ;;  %v1876_v5 = vsel %vm1865_vm5, nan, %v1875_v59  ;;  %vm1553_vm6 = vweird.f32 %v10134_v15 }
 0x27c   : > { %v1559_v50 = vsel %vm1557_vm9, %v10142_v62, %v1558_v22  ;;  %vm10146_vm3 = vnez %v10075_v44  ;;  %v5550_v24 = vpack.c.bf16 %v1044_v27, %v836_v63  ;;  %v1763_v53 = vand.u32 3, %v1762_v49 }
 0x27d   : > { %v2070_v17 = vsel %vm10146_vm3, 0, %v2068_v25  ;;  %v2275_v7 = vsub.s32 4, %v7370_v28  ;;  %v1562_v56 = vsel %vm1560_vm11, %v1561_v26, %v10141_v43  ;;  %v2078_v46 = vxor.u32 2147483648, %v7585_v32  ;;  %v10150_v43 = vld [vmem:[#allocation6_spill] sm:$0xff] }
 0x27e   : > { %v2074_v38 = vadd.s32 3, %v2070_v17  ;;  %v2081_v12 = vxor.u32 2147483648, %v7554_v45  ;;  %v1963_v51 = vsub.s32 4, %v10147_v61  ;;  %5551 = vmatprep.subr.bf16.mxu1 %v5550_v24  ;;  %vm1764_vm10 = vcmp.lt.s32.totalorder %v1763_v53, 2 }
 0x27f   : > { %vm1765_vm0 = vcmp.eq.s32.totalorder %v1763_v53, 0  ;;  %vm1768_vm4 = vcmp.eq.s32.totalorder %v1763_v53, 2  ;;  %5553 = vmatpush1.bf16.msra.mxu1 %v5552_v60  ;;  %vm10148_vm2 = vcmp.lt.s32.totalorder %v7135_v41, 0  ;;  %vm10149_vm5 = vcmp.lt.s32.totalorder %v6878_v8, 0 }
 0x280   : > { %v2075_v18 = vand.u32 3, %v2074_v38  ;;  %v1767_v44 = vsel %vm1765_vm0, %v10143_v52, %v1766_v40  ;;  %v1770_v63 = vsel %vm1768_vm4, %v1769_v10, %v7297_v2  ;;  %v2276_v54 = vsel %vm10148_vm2, %v2275_v7, %v7370_v28  ;;  %5555 = vmatprep.subr.bf16.mxu1 %v5554_v9 }
 0x281   : > { %v1964_v20 = vsel %vm10149_vm5, %v1963_v51, %v10147_v61  ;;  %v5558_v37 = vpack.c.bf16 %v1876_v5, %v7724_v23  ;;  %v1563_v3 = vsel %vm1556_vm12, %v1559_v50, %v1562_v56  ;;  %vm1761_vm7 = vweird.f32 %v10139_v48  ;;  %v10152_v48 = vld [vmem:[#allocation41_spill] sm:$0xff]  ;;  %v2293_v50 = vld [vmem:[%s9841_s3] sm:$0xff] }
 0x282   : > { %v1771_v34 = vsel %vm1764_vm10, %v1767_v44, %v1770_v63  ;;  %vm2077_vm15 = vcmp.eq.s32.totalorder %v2075_v18, 0  ;;  %vm2080_vm8 = vcmp.eq.s32.totalorder %v2075_v18, 2  ;;  %v2278_v2 = vsel %vm7543_vm1, 0, %v2276_v54 }
 0x283   : > { %v1772_v14 = vsel %vm1761_vm7, nan, %v1771_v34  ;;  %v2079_v28 = vsel %vm2077_vm15, %v7554_v45, %v2078_v46  ;;  %v2082_v60 = vsel %vm2080_vm8, %v2081_v12, %v7585_v32  ;;  %v2282_v13 = vadd.s32 3, %v2278_v2  ;;  %5557 = vmatpush1.bf16.msra.mxu1 %v5556_v57  ;;  %v2309_v12 = vpop.permute.xlu1 %2308 }
 0x284   : > { %vm10151_vm13 = vnez %v10150_v43  ;;  %vm2073_vm12 = vweird.f32 %v7028_v4  ;;  %v2286_v23 = vxor.u32 2147483648, %v7617_v29  ;;  %v2289_v47 = vxor.u32 2147483648, %v7612_v0  ;;  %5559 = vmatprep.subr.bf16.mxu1 %v5558_v37 }
 0x285   : > { %v1966_v9 = vsel %vm10151_vm13, 0, %v1964_v20  ;;  %v1564_v45 = vsel %vm1553_vm6, nan, %v1563_v3  ;;  %vm2076_vm1 = vcmp.lt.s32.totalorder %v2075_v18, 2  ;;  %v2283_v32 = vand.u32 3, %v2282_v13 }
 0x286   : > { %v1970_v55 = vadd.s32 3, %v1966_v9  ;;  %v2171_v22 = vsub.s32 4, %v10152_v48  ;;  %v5560_v62 = vpack.c.bf16 %v1772_v14, %v1564_v45  ;;  %v2083_v26 = vsel %vm2076_vm1, %v2079_v28, %v2082_v60 }
 0x287   : > { %v1974_v36 = vxor.u32 2147483648, %v7484_v42  ;;  %vm2285_vm9 = vcmp.eq.s32.totalorder %v2283_v32, 0  ;;  %vm2288_vm11 = vcmp.eq.s32.totalorder %v2283_v32, 2  ;;  %v1977_v31 = vxor.u32 2147483648, %v7449_v30 }
 0x288   : > { %v1971_v39 = vand.u32 3, %v1970_v55  ;;  %vm10153_vm14 = vcmp.lt.s32.totalorder %v7105_v6, 0  ;;  %5561 = vmatpush1.bf16.msra.mxu1 %v5560_v62  ;;  %vm2281_vm6 = vweird.f32 %v7135_v41  ;;  %vm2284_vm3 = vcmp.lt.s32.totalorder %v2283_v32, 2 }
 0x289   : > { %v2172_v57 = vsel %vm10153_vm14, %v2171_v22, %v10152_v48  ;;  %v2287_v15 = vsel %vm2285_vm9, %v7612_v0, %v2286_v23  ;;  %v2290_v59 = vsel %vm2288_vm11, %v2289_v47, %v7617_v29  ;;  %v2084_v40 = vsel %vm2073_vm12, nan, %v2083_v26 }
 0x28a   : > { %v2291_v52 = vsel %vm2284_vm3, %v2287_v15, %v2290_v59  ;;  %vm10154_vm10 = vnez %v10083_v1  ;;  %v2182_v58 = vxor.u32 2147483648, %v7607_v33  ;;  %vm1973_vm0 = vcmp.eq.s32.totalorder %v1971_v39, 0 }
 0x28b   : > { %v2174_v10 = vsel %vm10154_vm10, 0, %v2172_v57  ;;  %v2292_v16 = vsel %vm2281_vm6, nan, %v2291_v52  ;;  %vm1976_vm4 = vcmp.eq.s32.totalorder %v1971_v39, 2  ;;  %v1975_v41 = vsel %vm1973_vm0, %v7449_v30, %v1974_v36 }
 0x28c   : > { %v2178_v11 = vadd.s32 3, %v2174_v10  ;;  %v5562_v35 = vpack.c.bf16 %v2292_v16, %v2084_v40  ;;  %v1978_v0 = vsel %vm1976_vm4, %v1977_v31, %v7484_v42  ;;  %v2185_v29 = vxor.u32 2147483648, %v7588_v21 }
 0x28d   : > { %vm1972_vm2 = vcmp.lt.s32.totalorder %v1971_v39, 2  ;;  %vm1969_vm8 = vweird.f32 %v6878_v8  ;;  %vm2177_vm13 = vweird.f32 %v7105_v6  ;;  %vm2321_vm12 = vcmask 523264   ;;  %v2295_v8 = vld [vmem:[%s9841_s3 + $0x10] sm:$0xff]  ;;  %v2296_v6 = vld [vmem:[%s9841_s3 + $0x18] sm:$0xff] }
 0x28e   : > { %v2179_v49 = vand.u32 3, %v2178_v11  ;;  %5563 = vmatprep.subr.bf16.mxu1 %v5562_v35  ;;  %v1979_v4 = vsel %vm1972_vm2, %v1975_v41, %v1978_v0  ;;  %v10155_v17 = vmov 0.0   ;;  %v10157_v11 = vmov 2131351028  }
 0x28f   : > { %v1980_v27 = vsel %vm1969_vm8, nan, %v1979_v4  ;;  %v10158_v41 = vmov 2102212464  }
 0x290   : > { %vm2181_vm5 = vcmp.eq.s32.totalorder %v2179_v49, 0  ;;  %vm2184_vm7 = vcmp.eq.s32.totalorder %v2179_v49, 2  ;;  %vm2180_vm15 = vcmp.lt.s32.totalorder %v2179_v49, 2 }
 0x291   : > { %v2183_v1 = vsel %vm2181_vm5, %v7588_v21, %v2182_v58  ;;  %v2186_v25 = vsel %vm2184_vm7, %v2185_v29, %v7607_v33  ;;  %v2294_v21 = vld [vmem:[%s9841_s3 + $0x8] sm:$0xff]  ;;  %v2304_v33 = vpop.permute.xlu0 %2303  ;;  %v10156_v58 = vmov 2475754826   ;;  %v10159_v29 = vmov 920167782  }
 0x292   : > { %v2187_v30 = vsel %vm2180_vm15, %v2183_v1, %v2186_v25 }
 0x293   : > { %v2188_v42 = vsel %vm2177_vm13, nan, %v2187_v30 }
 0x294   : > { %v5564_v5 = vpack.c.bf16 %v2188_v42, %v1980_v27  ;;  %v10160_v42 = vmov 1326507024  }
 0x296   : > { %5565 = vmatpush1.bf16.msra.mxu1 %v5564_v5 }
 0x299   : > { %5439 = vmatmul.mubr.msk.f32.vlgmr.msra.gmra.mrb[0].mxu1 %vm2321_vm12, %v2293_v50 }
 0x29a   : > { %2404 = vmatprep.mubr.f32.mxu1 %v10155_v17 }
 0x29d   : > { %5440 = vmatmul.mubr.msk.f32.gmra.mrb[2].mxu1 %vm2321_vm12, %v2294_v21 }
 0x29e   : > { %2410 = vmatprep.mubr.f32.mxu1 %v10155_v17 }
 0x2a1   : > { %5441 = vmatmul.mubr.msk.f32.gmra.mrb[4].mxu1 %vm2321_vm12, %v2295_v8 }
 0x2a2   : > { %2416 = vmatprep.mubr.f32.mxu1 %v10155_v17 }
 0x2a5   : > { %5442 = vmatmul.mubr.msk.f32.gmra.mrb[6].mxu1 %vm2321_vm12, %v2296_v6 }
 0x2a6   : > { %3360 = vmatprep.mubr.f32.mxu1 %v10155_v17 }
 0x36c   : > { %v2400_v24 = vpop.f32.mrb[0].mxu1 }
 0x36d   : > { %v7826_v53 = vadd.f32 %v2400_v24, %v2304_v33  ;;  %v2402_v38 = vpop.f32.mrb[1].mxu1 }
 0x36e   : > { %v7828_v7 = vadd.f32 %v2402_v38, %v2304_v33 }
 0x36f   : > { %v2423_v56 = vand.u32 2147483647, %v7826_v53  ;;  %v2426_v46 = vand.u32 2139095040, %v7826_v53 }
 0x370   : > { %v2527_v61 = vand.u32 2147483647, %v7828_v7  ;;  %v2530_v51 = vand.u32 2139095040, %v7828_v7  ;;  %v2406_v18 = vpop.f32.mrb[2].mxu1 }
 0x371   : > { %v2427_v44 = vshrl.u32 %v2426_v46, 23  ;;  %v7834_v63 = vadd.f32 %v2406_v18, %v2309_v12  ;;  %v2408_v54 = vpop.f32.mrb[3].mxu1  ;;  %v2430_v20 = vand.u32 8388607, %v2423_v56 }
 0x372   : > { %v2531_v37 = vshrl.u32 %v2530_v51, 23  ;;  %v2534_v3 = vand.u32 8388607, %v2527_v61  ;;  %v7847_v26 = vadd.f32 %v2408_v54, %v2309_v12 }
 0x373   : > { %v5443_v34 = vadd.s32 4294967169, %v2427_v44  ;;  %v2634_v2 = vand.u32 2139095040, %v7834_v63  ;;  %v2431_v13 = vor.u32 8388608, %v2430_v20  ;;  %v9960_v15 = vand.u32 2147483647, %v7834_v63 }
 0x374   : > { %v5447_v14 = vadd.s32 4294967169, %v2531_v37  ;;  %v7841_v28 = vpop.f32.mrb[4].mxu1  ;;  %v2535_v43 = vor.u32 8388608, %v2534_v3 }
 0x375   : > { %v2433_v60 = vadd.s32 1, %v5443_v34  ;;  %v2635_v23 = vshrl.u32 %v2634_v2, 23  ;;  %v7843_v47 = vpop.f32.mrb[5].mxu1  ;;  %v7851_v36 = vshll.u32 %v2431_v13, 8 }
 0x376   : > { %v2537_v9 = vadd.s32 1, %v5447_v14  ;;  %v7855_v57 = vshll.u32 %v2535_v43, 8 }
 0x377   : > { %vm2434_vm1 = vcmp.gt.s32.totalorder %v2433_v60, 0  ;;  %v5451_v45 = vadd.s32 4294967169, %v2635_v23 }
 0x378   : > { %v2435_v55 = vsel %vm2434_vm1, %v2433_v60, 0  ;;  %vm2538_vm9 = vcmp.gt.s32.totalorder %v2537_v9, 0  ;;  %v7845_v32 = vpop.f32.mrb[6].mxu1 }
 0x379   : > { %v2436_v48 = vshrl.u32 %v2435_v55, 5  ;;  %v2437_v22 = vand.u32 31, %v2435_v55  ;;  %v2539_v62 = vsel %vm2538_vm9, %v2537_v9, 0  ;;  %v7849_v39 = vpop.f32.mrb[7].mxu1  ;;  %v7859_v10 = vadd.s32 1, %v5451_v45 }
 0x37a   : > { %v7853_v31 = vshrl.u32 %v2539_v62, 5  ;;  %v2541_v52 = vand.u32 31, %v2539_v62 }
 0x37b   : > { %v2438_v59 = vsub.s32 32, %v2437_v22  ;;  %v2440_v40 = vshll.u32 %v9991_v19, %v2437_v22  ;;  %v2443_v16 = vshll.u32 %v10156_v58, %v2437_v22  ;;  %v2446_v35 = vshll.u32 %v10157_v11, %v2437_v22 }
 0x37c   : > { %v2449_v0 = vshll.u32 %v10158_v41, %v2437_v22  ;;  %v2452_v49 = vshll.u32 %v10159_v29, %v2437_v22  ;;  %vm2455_vm11 = vcmp.lt.s32.totalorder %v2436_v48, 1  ;;  %vm2456_vm14 = vcmp.lt.s32.totalorder %v2436_v48, 2 }
 0x37d   : > { %v2441_v4 = vshrl.u32 %v10156_v58, %v2438_v59  ;;  %v2444_v1 = vshrl.u32 %v10157_v11, %v2438_v59  ;;  %v2447_v25 = vshrl.u32 %v10158_v41, %v2438_v59  ;;  %v2439_v30 = vshrl.u32 %v9991_v19, %v2438_v59 }
 0x37e   : > { %v2450_v27 = vshrl.u32 %v10159_v29, %v2438_v59  ;;  %v2453_v5 = vshrl.u32 %v10160_v42, %v2438_v59  ;;  %v2542_v6 = vsub.s32 32, %v2541_v52  ;;  %vm2457_vm6 = vcmp.lt.s32.totalorder %v2436_v48, 3 }
 0x37f   : > { %v2442_v50 = vor.u32 %v2441_v4, %v2440_v40  ;;  %v2445_v21 = vor.u32 %v2444_v1, %v2443_v16  ;;  %v2448_v8 = vor.u32 %v2447_v25, %v2446_v35  ;;  %vm2458_vm3 = vcmp.lt.s32.totalorder %v2436_v48, 4 }
 0x380   : > { %v2451_v33 = vor.u32 %v2450_v27, %v2449_v0  ;;  %v2454_v24 = vor.u32 %v2453_v5, %v2452_v49  ;;  %v2544_v20 = vshll.u32 %v9991_v19, %v2541_v52  ;;  %v2545_v34 = vshrl.u32 %v10156_v58, %v2542_v6 }
 0x381   : > { %v2459_v38 = vsel %vm2455_vm11, %v2439_v30, %v2442_v50  ;;  %v2460_v46 = vsel %vm2458_vm3, %v2448_v8, 2102212464  ;;  %v2463_v12 = vsel %vm2455_vm11, %v2442_v50, %v2445_v21  ;;  %v2467_v51 = vsel %vm2455_vm11, %v2445_v21, %v2448_v8 }
 0x382   : > { %v2461_v18 = vsel %vm2457_vm6, %v2445_v21, %v2460_v46  ;;  %v2464_v44 = vsel %vm2458_vm3, %v2451_v33, 920167782  ;;  %v2468_v54 = vsel %vm2458_vm3, %v2454_v24, 1326507024  ;;  %v2547_v14 = vshll.u32 %v10156_v58, %v2541_v52 }
 0x383   : > { %v2465_v37 = vsel %vm2457_vm6, %v2448_v8, %v2464_v44  ;;  %v2469_v3 = vsel %vm2457_vm6, %v2451_v33, %v2468_v54  ;;  %v2462_v2 = vsel %vm2456_vm14, %v2459_v38, %v2461_v18  ;;  %v2548_v43 = vshrl.u32 %v10157_v11, %v2542_v6 }
 0x384   : > { %v2466_v60 = vsel %vm2456_vm14, %v2463_v12, %v2465_v37  ;;  %v2470_v13 = vsel %vm2456_vm14, %v2467_v51, %v2469_v3  ;;  %v2546_v22 = vor.u32 %v2545_v34, %v2544_v20  ;;  %v2550_v59 = vshll.u32 %v10157_v11, %v2541_v52 }
 0x385   : > { %v7882_v9 = vmul.u32.u64.low %v7851_v36, %v2470_v13  ;;  %v7883_v23 = vmul.u32.u64.high %v7851_v36, %v2470_v13, %v7882_v9  ;;  %v7886_v55 = vmul.u32.u64.low %v7851_v36, %v2466_v60  ;;  %v7887_v45 = vmul.u32.u64.high %v7851_v36, %v2466_v60, %v7886_v55 }
 0x386   : > { %v2549_v62 = vor.u32 %v2548_v43, %v2547_v14  ;;  %v2551_v40 = vshrl.u32 %v10158_v41, %v2542_v6  ;;  %v2543_v48 = vshrl.u32 %v9991_v19, %v2542_v6  ;;  %v2553_v16 = vshll.u32 %v10158_v41, %v2541_v52 }
 0x387   : > { %v2554_v35 = vshrl.u32 %v10159_v29, %v2542_v6  ;;  %v2557_v0 = vshrl.u32 %v10160_v42, %v2542_v6  ;;  %v2478_v49 = vmul.u32 %v7851_v36, %v2462_v2  ;;  %v2556_v1 = vshll.u32 %v10159_v29, %v2541_v52 }
 0x388   : > { %v2552_v4 = vor.u32 %v2551_v40, %v2550_v59  ;;  %vm2559_vm10 = vcmp.lt.s32.totalorder %v7853_v31, 1  ;;  %vm2480_vm0 = vc.u32 %v7883_v23, %v7886_v55  ;;  %v2481_v25 = vadd.s32 1, %v7887_v45 }
 0x389   : > { %v2555_v30 = vor.u32 %v2554_v35, %v2553_v16  ;;  %vm2560_vm4 = vcmp.lt.s32.totalorder %v7853_v31, 2  ;;  %v2558_v27 = vor.u32 %v2557_v0, %v2556_v1  ;;  %vm2561_vm2 = vcmp.lt.s32.totalorder %v7853_v31, 3 }
 0x38a   : > { %vm2562_vm5 = vcmp.lt.s32.totalorder %v7853_v31, 4  ;;  %v2567_v5 = vsel %vm2559_vm10, %v2546_v22, %v2549_v62  ;;  %v2482_v36 = vsel %vm2480_vm0, %v2481_v25, %v7887_v45  ;;  %v2571_v21 = vsel %vm2559_vm10, %v2549_v62, %v2552_v4 }
 0x38b   : > { %v2564_v50 = vsel %vm2562_vm5, %v2552_v4, 2102212464  ;;  %v2568_v52 = vsel %vm2562_vm5, %v2555_v30, 920167782  ;;  %v2483_v8 = vadd.s32 %v2482_v36, %v2478_v49  ;;  %v2563_v6 = vsel %vm2559_vm10, %v2543_v48, %v2546_v22 }
 0x38c   : > { %v2569_v33 = vsel %vm2561_vm2, %v2552_v4, %v2568_v52  ;;  %v2572_v24 = vsel %vm2562_vm5, %v2558_v27, 1326507024  ;;  %v2565_v38 = vsel %vm2561_vm2, %v2549_v62, %v2564_v50  ;;  %vm2642_vm7 = vcmp.gt.s32.totalorder %v7859_v10, 0 }
 0x38d   : > { %v2570_v46 = vsel %vm2560_vm4, %v2567_v5, %v2569_v33  ;;  %v2573_v12 = vsel %vm2561_vm2, %v2555_v30, %v2572_v24  ;;  %v2484_v51 = vadd.s32 536870912, %v2483_v8  ;;  %v2638_v3 = vand.u32 8388607, %v9960_v15 }
 0x38e   : > { %v2574_v18 = vsel %vm2560_vm4, %v2571_v21, %v2573_v12  ;;  %v7912_v44 = vmul.u32.u64.low %v7855_v57, %v2570_v46  ;;  %v7913_v54 = vmul.u32.u64.high %v7855_v57, %v2570_v46, %v7912_v44  ;;  %v2643_v34 = vsel %vm2642_vm7, %v7859_v10, 0 }
 0x38f   : > { %v7917_v20 = vmul.u32.u64.low %v7855_v57, %v2574_v18  ;;  %v7918_v37 = vmul.u32.u64.high %v7855_v57, %v2574_v18, %v7917_v20  ;;  %v7923_v14 = vshrl.u32 %v2484_v51, 30  ;;  %v2566_v2 = vsel %vm2560_vm4, %v2563_v6, %v2565_v38 }
 0x390   : > { %v2645_v60 = vand.u32 31, %v2643_v34  ;;  %v2738_v13 = vand.u32 2139095040, %v7847_v26  ;;  %v2585_v9 = vadd.s32 1, %v7913_v54  ;;  %v2582_v22 = vmul.u32 %v7855_v57, %v2566_v2 }
 0x391   : > { %v2486_v43 = vshll.u32 %v7923_v14, 30  ;;  %vm2584_vm15 = vc.u32 %v7918_v37, %v7912_v44  ;;  %v2639_v62 = vor.u32 8388608, %v2638_v3  ;;  %v2644_v49 = vshrl.u32 %v2643_v34, 5 }
 0x392   : > { %v2646_v45 = vsub.s32 32, %v2645_v60  ;;  %v2586_v59 = vsel %vm2584_vm15, %v2585_v9, %v7913_v54  ;;  %v2739_v31 = vshrl.u32 %v2738_v13, 23  ;;  %v2648_v48 = vshll.u32 %v9991_v19, %v2645_v60 }
 0x393   : > { %v7933_v10 = vsub.s32 %v2483_v8, %v2486_v43  ;;  %v2587_v40 = vadd.s32 %v2586_v59, %v2582_v22  ;;  %v2651_v57 = vshll.u32 %v10156_v58, %v2645_v60  ;;  %v2654_v30 = vshll.u32 %v10157_v11, %v2645_v60 }
 0x394   : > { %v2649_v16 = vshrl.u32 %v10156_v58, %v2646_v45  ;;  %v2652_v35 = vshrl.u32 %v10157_v11, %v2646_v45  ;;  %v2655_v4 = vshrl.u32 %v10158_v41, %v2646_v45  ;;  %v2679_v27 = vshll.u32 %v2639_v62, 8 }
 0x395   : > { %v2489_v0 = vsub.s32 0, %v7933_v10  ;;  %v2588_v1 = vadd.s32 536870912, %v2587_v40  ;;  %v2657_v50 = vshll.u32 %v10158_v41, %v2645_v60  ;;  %v2658_v52 = vshrl.u32 %v10159_v29, %v2646_v45 }
 0x396   : > { %v2650_v25 = vor.u32 %v2649_v16, %v2648_v48  ;;  %v2653_v36 = vor.u32 %v2652_v35, %v2651_v57  ;;  %v2656_v8 = vor.u32 %v2655_v4, %v2654_v30  ;;  %v2660_v6 = vshll.u32 %v10159_v29, %v2645_v60 }
 0x397   : > { %v5444_v5 = vmin.u32 %v2489_v0, %v7933_v10  ;;  %v7946_v21 = vshrl.u32 %v2588_v1, 30  ;;  %v2661_v33 = vshrl.u32 %v10160_v42, %v2646_v45  ;;  %v2659_v38 = vor.u32 %v2658_v52, %v2657_v50 }
 0x398   : > { %vm2663_vm8 = vcmp.lt.s32.totalorder %v2644_v49, 1  ;;  %v5455_v46 = vadd.s32 4294967169, %v2739_v31  ;;  %vm2664_vm13 = vcmp.lt.s32.totalorder %v2644_v49, 2  ;;  %vm2666_vm12 = vcmp.lt.s32.totalorder %v2644_v49, 4 }
 0x399   : > { %v2491_v24 = vclz %v5444_v5  ;;  %v2590_v12 = vshll.u32 %v7946_v21, 30  ;;  %v2662_v51 = vor.u32 %v2661_v33, %v2660_v6  ;;  %vm2665_vm1 = vcmp.lt.s32.totalorder %v2644_v49, 3 }
 0x39a   : > { %v2671_v54 = vsel %vm2663_vm8, %v2650_v25, %v2653_v36  ;;  %v2672_v20 = vsel %vm2666_vm12, %v2659_v38, 920167782  ;;  %v2668_v34 = vsel %vm2666_vm12, %v2656_v8, 2102212464  ;;  %v2675_v60 = vsel %vm2663_vm8, %v2653_v36, %v2656_v8 }
 0x39b   : > { %v5445_v18 = vadd.s32 4294967294, %v2491_v24  ;;  %v7952_v3 = vsub.s32 %v2587_v40, %v2590_v12  ;;  %v2673_v2 = vsel %vm2665_vm1, %v2656_v8, %v2672_v20  ;;  %v2647_v13 = vshrl.u32 %v9991_v19, %v2646_v45  ;;  %v2314_v20 = vpop.permute.xlu0 %2313 }
 0x39c   : > { %v2674_v43 = vsel %vm2664_vm13, %v2671_v54, %v2673_v2  ;;  %v2676_v9 = vsel %vm2666_vm12, %v2662_v51, 1326507024  ;;  %v2745_v31 = vadd.s32 1, %v5455_v46  ;;  %v2669_v16 = vsel %vm2665_vm1, %v2653_v36, %v2668_v34 }
 0x39d   : > { %vm5446_vm9 = vcmp.lt.s32.totalorder %v5445_v18, 0  ;;  %v2593_v62 = vsub.s32 0, %v7952_v3  ;;  %v2677_v59 = vsel %vm2665_vm1, %v2659_v38, %v2676_v9  ;;  %v2667_v40 = vsel %vm2663_vm8, %v2647_v13, %v2650_v25 }
 0x39e   : > { %v2494_v22 = vsel %vm5446_vm9, 0, %v5445_v18  ;;  %v2678_v35 = vsel %vm2664_vm13, %v2675_v60, %v2677_v59  ;;  %vm2746_vm11 = vcmp.gt.s32.totalorder %v2745_v31, 0  ;;  %v9959_v5 = vand.u32 2147483647, %v7847_v26 }
 0x39f   : > { %v2499_v48 = vsub.s32 4294967266, %v2494_v22  ;;  %v5448_v0 = vmin.u32 %v2593_v62, %v7952_v3  ;;  %v7964_v57 = vmul.u32.u64.low %v2679_v27, %v2678_v35  ;;  %v7965_v45 = vmul.u32.u64.high %v2679_v27, %v2678_v35, %v7964_v57 }
 0x3a0   : > { %v7967_v4 = vmul.u32.u64.low %v2679_v27, %v2674_v43  ;;  %v7968_v1 = vmul.u32.u64.high %v2679_v27, %v2674_v43, %v7967_v4  ;;  %v2747_v50 = vsel %vm2746_vm11, %v2745_v31, 0  ;;  %v2495_v52 = vsub.s32 32, %v2494_v22 }
 0x3a1   : > { %v2595_v30 = vclz %v5448_v0  ;;  %v2500_v25 = vadd.s32 127, %v2499_v48  ;;  %v2670_v36 = vsel %vm2664_vm13, %v2667_v40, %v2669_v16  ;;  %v2749_v8 = vand.u32 31, %v2747_v50 }
 0x3a2   : > { %vm2688_vm14 = vc.u32 %v7965_v45, %v7967_v4  ;;  %v2479_v33 = vadd.s32 %v7886_v55, %v7883_v23  ;;  %v2689_v24 = vadd.s32 1, %v7968_v1  ;;  %v2686_v38 = vmul.u32 %v2679_v27, %v2670_v36 }
 0x3a3   : > { %v5449_v6 = vadd.s32 4294967294, %v2595_v30  ;;  %v2742_v46 = vand.u32 8388607, %v9959_v5  ;;  %v2501_v51 = vshll.u32 %v2500_v25, 23  ;;  %v2750_v18 = vsub.s32 32, %v2749_v8 }
 0x3a4   : > { %v2497_v12 = vshrl.u32 %v2479_v33, %v2495_v52  ;;  %v2690_v49 = vsel %vm2688_vm14, %v2689_v24, %v7968_v1  ;;  %v2496_v34 = vshll.u32 %v7933_v10, %v2494_v22  ;;  %v7983_v23 = vadd.f32 %v7841_v28, %v2314_v20 }
 0x3a5   : > { %vm5450_vm6 = vcmp.lt.s32.totalorder %v5449_v6, 0  ;;  %v2691_v54 = vadd.s32 %v2690_v49, %v2686_v38  ;;  %v2743_v13 = vor.u32 8388608, %v2742_v46  ;;  %v2502_v27 = vor.u32 4788187, %v2501_v51 }
 0x3a6   : > { %v2598_v2 = vsel %vm5450_vm6, 0, %v5449_v6  ;;  %v2498_v55 = vor.u32 %v2497_v12, %v2496_v34  ;;  %v2753_v43 = vshrl.u32 %v10156_v58, %v2750_v18  ;;  %v2756_v9 = vshrl.u32 %v10157_v11, %v2750_v18 }
 0x3a7   : > { %v2692_v60 = vadd.s32 536870912, %v2691_v54  ;;  %v2603_v62 = vsub.s32 4294967266, %v2598_v2  ;;  %v2759_v31 = vshrl.u32 %v10158_v41, %v2750_v18  ;;  %v2762_v48 = vshrl.u32 %v10159_v29, %v2750_v18 }
 0x3a8   : > { %v2752_v10 = vshll.u32 %v9991_v19, %v2749_v8  ;;  %v2755_v22 = vshll.u32 %v10156_v58, %v2749_v8  ;;  %v2761_v28 = vshll.u32 %v10158_v41, %v2749_v8  ;;  %v2765_v40 = vshrl.u32 %v10160_v42, %v2750_v18 }
 0x3a9   : > { %v7987_v59 = vshrl.u32 %v2692_v60, 30  ;;  %v2748_v35 = vshrl.u32 %v2747_v50, 5  ;;  %v2758_v0 = vshll.u32 %v10157_v11, %v2749_v8  ;;  %v7998_v57 = vadd.f32 %v7843_v47, %v2314_v20 }
 0x3aa   : > { %v2754_v1 = vor.u32 %v2753_v43, %v2752_v10  ;;  %v2757_v30 = vor.u32 %v2756_v9, %v2755_v22  ;;  %v2763_v52 = vor.u32 %v2762_v48, %v2761_v28  ;;  %v2764_v25 = vshll.u32 %v10159_v29, %v2749_v8 }
 0x3ab   : > { %v2694_v16 = vshll.u32 %v7987_v59, 30  ;;  %v2583_v36 = vadd.s32 %v7912_v44, %v7918_v37  ;;  %v2604_v6 = vadd.s32 127, %v2603_v62  ;;  %v2760_v24 = vor.u32 %v2759_v31, %v2758_v0 }
 0x3ac   : > { %v2503_v38 = vand.u32 2147483647, %v2502_v27  ;;  %v2505_v46 = vcvt.s32.f32 %v2498_v55  ;;  %v2766_v50 = vor.u32 %v2765_v40, %v2764_v25  ;;  %v2783_v12 = vshll.u32 %v2743_v13, 8 }
 0x3ad   : > { %v8003_v33 = vsub.s32 %v2691_v54, %v2694_v16  ;;  %v2599_v51 = vsub.s32 32, %v2598_v2  ;;  %vm2767_vm3 = vcmp.lt.s32.totalorder %v2748_v35, 1  ;;  %vm2770_vm10 = vcmp.lt.s32.totalorder %v2748_v35, 4 }
 0x3ae   : > { %v2751_v49 = vshrl.u32 %v9991_v19, %v2750_v18  ;;  %vm2769_vm0 = vcmp.lt.s32.totalorder %v2748_v35, 3  ;;  %v2775_v8 = vsel %vm2767_vm3, %v2754_v1, %v2757_v30  ;;  %v2776_v20 = vsel %vm2770_vm10, %v2763_v52, 920167782 }
 0x3af   : > { %v2697_v47 = vsub.s32 0, %v8003_v33  ;;  %v2605_v44 = vshll.u32 %v2604_v6, 23  ;;  %vm2768_vm4 = vcmp.lt.s32.totalorder %v2748_v35, 2  ;;  %v2772_v37 = vsel %vm2770_vm10, %v2760_v24, 2102212464 }
 0x3b0   : > { %v2777_v54 = vsel %vm2769_vm0, %v2760_v24, %v2776_v20  ;;  %v2779_v13 = vsel %vm2767_vm3, %v2757_v30, %v2760_v24  ;;  %v2780_v55 = vsel %vm2770_vm10, %v2766_v50, 1326507024  ;;  %v2600_v27 = vshll.u32 %v7952_v3, %v2598_v2 }
 0x3b1   : > { %v5452_v34 = vmin.u32 %v2697_v47, %v8003_v33  ;;  %v2778_v60 = vsel %vm2768_vm4, %v2775_v8, %v2777_v54  ;;  %v2601_v43 = vshrl.u32 %v2583_v36, %v2599_v51  ;;  %v2771_v18 = vsel %vm2767_vm3, %v2751_v49, %v2754_v1 }
 0x3b2   : > { %v2781_v9 = vsel %vm2769_vm0, %v2763_v52, %v2780_v55  ;;  %v2773_v62 = vsel %vm2769_vm0, %v2757_v30, %v2772_v37  ;;  %v8014_v48 = vmul.u32.u64.low %v2783_v12, %v2778_v60  ;;  %v8015_v10 = vmul.u32.u64.high %v2783_v12, %v2778_v60, %v8014_v48 }
 0x3b3   : > { %v2782_v31 = vsel %vm2768_vm4, %v2779_v13, %v2781_v9  ;;  %v2506_v22 = vmul.f32 %v2505_v46, %v2503_v38  ;;  %v2606_v28 = vor.u32 4788187, %v2605_v44  ;;  %v2699_v0 = vclz %v5452_v34  ;;  %v8038_v34 = vpop.permute.xlu1 %2318 }
 0x3b4   : > { %v8018_v40 = vmul.u32.u64.low %v2783_v12, %v2782_v31  ;;  %v8019_v16 = vmul.u32.u64.high %v2783_v12, %v2782_v31, %v8018_v40  ;;  %v2842_v25 = vand.u32 2139095040, %v7983_v23  ;;  %v2602_v3 = vor.u32 %v2601_v43, %v2600_v27 }
 0x3b5   : > { %v2774_v2 = vsel %vm2768_vm4, %v2771_v18, %v2773_v62  ;;  %v2946_v1 = vand.u32 2139095040, %v7998_v57  ;;  %v2793_v30 = vadd.s32 1, %v8015_v10  ;;  %v2507_v36 = vxor.u32 2147483648, %v2506_v22 }
 0x3b6   : > { %v2843_v52 = vshrl.u32 %v2842_v25, 23  ;;  %v2509_v6 = vsub.s32 4, %v7923_v14  ;;  %v2607_v24 = vand.u32 2147483647, %v2606_v28  ;;  %v9957_v38 = vand.u32 2147483647, %v7983_v23 }
 0x3b7   : > { %v5453_v46 = vadd.s32 4294967294, %v2699_v0  ;;  %v2790_v50 = vmul.u32 %v2783_v12, %v2774_v2  ;;  %vm2792_vm2 = vc.u32 %v8019_v16, %v8014_v48  ;;  %v2609_v47 = vcvt.s32.f32 %v2602_v3 }
 0x3b8   : > { %v5459_v51 = vadd.s32 4294967169, %v2843_v52  ;;  %v2794_v35 = vsel %vm2792_vm2, %v2793_v30, %v8015_v10  ;;  %v2947_v49 = vshrl.u32 %v2946_v1, 23  ;;  %vm2425_vm5 = vcmp.lt.s32.totalorder %v7826_v53, 0 }
 0x3b9   : > { %v2795_v8 = vadd.s32 %v2794_v35, %v2790_v50  ;;  %v2508_v44 = vsel %vm2425_vm5, %v2507_v36, %v2506_v22  ;;  %v8032_v37 = vsel %vm2425_vm5, %v2509_v6, %v7923_v14  ;;  %v8034_v54 = vmul.f32 %v2609_v47, %v2607_v24 }
 0x3ba   : > { %v2849_v20 = vadd.s32 1, %v5459_v51  ;;  %v2846_v12 = vand.u32 8388607, %v9957_v38  ;;  %vm5454_vm7 = vcmp.lt.s32.totalorder %v5453_v46, 0  ;;  %v5463_v13 = vadd.s32 4294967169, %v2947_v49 }
 0x3bb   : > { %v2796_v60 = vadd.s32 536870912, %v2795_v8  ;;  %vm8042_vm8 = vcmp.le.f32.partialorder %v2423_v56, 0.7853982  ;;  %v8048_v14 = vadd.f32 %v7845_v32, %v8038_v34  ;;  %v8055_v18 = vadd.s32 %v7967_v4, %v7965_v45 }
 0x3bc   : > { %vm2850_vm15 = vcmp.gt.s32.totalorder %v2849_v20, 0  ;;  %v8062_v56 = vsel %vm8042_vm8, %v7826_v53, %v2508_v44  ;;  %v2611_v31 = vxor.u32 2147483648, %v8034_v54  ;;  %v8065_v32 = vsel %vm5454_vm7, 0, %v5453_v46 }
 0x3bd   : > { %v2851_v27 = vsel %vm2850_vm15, %v2849_v20, 0  ;;  %v8057_v9 = vshrl.u32 %v2796_v60, 30  ;;  %v2847_v28 = vor.u32 8388608, %v2846_v12  ;;  %v2953_v45 = vadd.s32 1, %v5463_v13 }
 0x3be   : > { %v2853_v62 = vand.u32 31, %v2851_v27  ;;  %v2852_v4 = vshrl.u32 %v2851_v27, 5  ;;  %v9958_v35 = vand.u32 2147483647, %v7998_v57  ;;  %vm2529_vm13 = vcmp.lt.s32.totalorder %v7828_v7, 0 }
 0x3bf   : > { %v2798_v22 = vshll.u32 %v8057_v9, 30  ;;  %v2707_v49 = vsub.s32 4294967266, %v8065_v32  ;;  %v2887_v60 = vshll.u32 %v2847_v28, 8  ;;  %vm2954_vm1 = vcmp.gt.s32.totalorder %v2953_v45, 0 }
 0x3c0   : > { %v2854_v40 = vsub.s32 32, %v2853_v62  ;;  %v2856_v0 = vshll.u32 %v9991_v19, %v2853_v62  ;;  %v2859_v25 = vshll.u32 %v10156_v58, %v2853_v62  ;;  %v2862_v3 = vshll.u32 %v10157_v11, %v2853_v62 }
 0x3c1   : > { %v8072_v2 = vsub.s32 %v2795_v8, %v2798_v22  ;;  %v2865_v52 = vshll.u32 %v10158_v41, %v2853_v62  ;;  %v2868_v24 = vshll.u32 %v10159_v29, %v2853_v62  ;;  %vm2871_vm12 = vcmp.lt.s32.totalorder %v2852_v4, 1 }
 0x3c2   : > { %v2857_v1 = vshrl.u32 %v10156_v58, %v2854_v40  ;;  %v2860_v30 = vshrl.u32 %v10157_v11, %v2854_v40  ;;  %v2863_v36 = vshrl.u32 %v10158_v41, %v2854_v40  ;;  %v2866_v6 = vshrl.u32 %v10159_v29, %v2854_v40 }
 0x3c3   : > { %v2869_v46 = vshrl.u32 %v10160_v42, %v2854_v40  ;;  %v2801_v50 = vsub.s32 0, %v8072_v2  ;;  %v2855_v13 = vshrl.u32 %v9991_v19, %v2854_v40  ;;  %vm2872_vm9 = vcmp.lt.s32.totalorder %v2852_v4, 2 }
 0x3c4   : > { %v2858_v51 = vor.u32 %v2857_v1, %v2856_v0  ;;  %v2861_v47 = vor.u32 %v2860_v30, %v2859_v25  ;;  %v2864_v8 = vor.u32 %v2863_v36, %v2862_v3  ;;  %v2867_v20 = vor.u32 %v2866_v6, %v2865_v52 }
 0x3c5   : > { %v2870_v44 = vor.u32 %v2869_v46, %v2868_v24  ;;  %v5456_v12 = vmin.u32 %v2801_v50, %v8072_v2  ;;  %vm2874_vm11 = vcmp.lt.s32.totalorder %v2852_v4, 4  ;;  %vm2873_vm14 = vcmp.lt.s32.totalorder %v2852_v4, 3 }
 0x3c6   : > { %v2879_v27 = vsel %vm2871_vm12, %v2858_v51, %v2861_v47  ;;  %v2876_v22 = vsel %vm2874_vm11, %v2864_v8, 2102212464  ;;  %v2880_v0 = vsel %vm2874_vm11, %v2867_v20, 920167782  ;;  %v2875_v25 = vsel %vm2871_vm12, %v2855_v13, %v2858_v51 }
 0x3c7   : > { %v2803_v62 = vclz %v5456_v12  ;;  %v2881_v1 = vsel %vm2873_vm14, %v2864_v8, %v2880_v0  ;;  %v2883_v30 = vsel %vm2871_vm12, %v2861_v47, %v2864_v8  ;;  %v2884_v3 = vsel %vm2874_vm11, %v2870_v44, 1326507024 }
 0x3c8   : > { %v2877_v36 = vsel %vm2873_vm14, %v2861_v47, %v2876_v22  ;;  %v2882_v6 = vsel %vm2872_vm9, %v2879_v27, %v2881_v1  ;;  %v2885_v24 = vsel %vm2873_vm14, %v2867_v20, %v2884_v3  ;;  %v2708_v28 = vadd.s32 127, %v2707_v49 }
 0x3c9   : > { %v5457_v52 = vadd.s32 4294967294, %v2803_v62  ;;  %v2886_v46 = vsel %vm2872_vm9, %v2883_v30, %v2885_v24  ;;  %v8089_v40 = vmul.u32.u64.low %v2887_v60, %v2882_v6  ;;  %v8090_v50 = vmul.u32.u64.high %v2887_v60, %v2882_v6, %v8089_v40 }
 0x3ca   : > { %v8093_v12 = vmul.u32.u64.low %v2887_v60, %v2886_v46  ;;  %v8094_v38 = vmul.u32.u64.high %v2887_v60, %v2886_v46, %v8093_v12  ;;  %v2955_v51 = vsel %vm2954_vm1, %v2953_v45, 0  ;;  %v2878_v47 = vsel %vm2872_vm9, %v2875_v25, %v2877_v36 }
 0x3cb   : > { %vm5458_vm6 = vcmp.lt.s32.totalorder %v5457_v52, 0  ;;  %v2950_v20 = vand.u32 8388607, %v9958_v35  ;;  %v2957_v49 = vand.u32 31, %v2955_v51  ;;  %v8105_v44 = vsel %vm2529_vm13, %v2611_v31, %v8034_v54 }
 0x3cc   : > { %v8097_v8 = vsel %vm5458_vm6, 0, %v5457_v52  ;;  %v2703_v13 = vsub.s32 32, %v8065_v32  ;;  %v3050_v62 = vand.u32 2139095040, %v8048_v14  ;;  %v2897_v22 = vadd.s32 1, %v8090_v50 }
 0x3cd   : > { %v2811_v4 = vsub.s32 4294967266, %v8097_v8  ;;  %v2958_v0 = vsub.s32 32, %v2957_v49  ;;  %v2709_v25 = vshll.u32 %v2708_v28, 23  ;;  %v2791_v1 = vadd.s32 %v8014_v48, %v8019_v16 }
 0x3ce   : > { %v2894_v54 = vmul.u32 %v2887_v60, %v2878_v47  ;;  %vm2896_vm3 = vc.u32 %v8094_v38, %v8089_v40  ;;  %v2951_v30 = vor.u32 8388608, %v2950_v20  ;;  %v2807_v36 = vsub.s32 32, %v8097_v8 }
 0x3cf   : > { %v2898_v31 = vsel %vm2896_vm3, %v2897_v22, %v8090_v50  ;;  %v2961_v3 = vshrl.u32 %v10156_v58, %v2958_v0  ;;  %v2964_v52 = vshrl.u32 %v10157_v11, %v2958_v0  ;;  %v2956_v24 = vshrl.u32 %v2955_v51, 5 }
 0x3d0   : > { %v2899_v6 = vadd.s32 %v2898_v31, %v2894_v54  ;;  %v3051_v46 = vshrl.u32 %v3050_v62, 23  ;;  %v2812_v28 = vadd.s32 127, %v2811_v4  ;;  %v2960_v12 = vshll.u32 %v9991_v19, %v2957_v49 }
 0x3d1   : > { %v2963_v48 = vshll.u32 %v10156_v58, %v2957_v49  ;;  %v2967_v16 = vshrl.u32 %v10158_v41, %v2958_v0  ;;  %v2966_v50 = vshll.u32 %v10157_v11, %v2957_v49  ;;  %v2969_v47 = vshll.u32 %v10158_v41, %v2957_v49 }
 0x3d2   : > { %v2900_v60 = vadd.s32 536870912, %v2899_v6  ;;  %v2970_v20 = vshrl.u32 %v10159_v29, %v2958_v0  ;;  %vm8130_vm10 = vcmp.le.f32.partialorder %v2527_v61, 0.7853982  ;;  %v2962_v51 = vor.u32 %v2961_v3, %v2960_v12 }
 0x3d3   : > { %v2965_v62 = vor.u32 %v2964_v52, %v2963_v48  ;;  %v2972_v4 = vshll.u32 %v10159_v29, %v2957_v49  ;;  %v2973_v54 = vshrl.u32 %v10160_v42, %v2958_v0  ;;  %v2705_v31 = vshrl.u32 %v8055_v18, %v2703_v13 }
 0x3d4   : > { %v8137_v35 = vshrl.u32 %v2900_v60, 30  ;;  %v2968_v43 = vor.u32 %v2967_v16, %v2966_v50  ;;  %v2971_v5 = vor.u32 %v2970_v20, %v2969_v47  ;;  %v2710_v15 = vor.u32 4788187, %v2709_v25 }
 0x3d5   : > { %v2974_v10 = vor.u32 %v2973_v54, %v2972_v4  ;;  %v2991_v27 = vshll.u32 %v2951_v30, 8  ;;  %v5467_v45 = vadd.s32 4294967169, %v3051_v46  ;;  %v2813_v61 = vshll.u32 %v2812_v28, 23 }
 0x3d6   : > { %v2902_v17 = vshll.u32 %v8137_v35, 30  ;;  %vm2975_vm0 = vcmp.lt.s32.totalorder %v2956_v24, 1  ;;  %vm2978_vm4 = vcmp.lt.s32.totalorder %v2956_v24, 4  ;;  %vm2633_vm2 = vcmp.lt.s32.totalorder %v7834_v63, 0 }
 0x3d7   : > { %v2808_v49 = vshll.u32 %v8072_v2, %v8097_v8  ;;  %v2809_v3 = vshrl.u32 %v2791_v1, %v2807_v36  ;;  %v2983_v18 = vsel %vm2975_vm0, %v2962_v51, %v2965_v62  ;;  %v2984_v13 = vsel %vm2978_vm4, %v2971_v5, 920167782 }
 0x3d8   : > { %v8144_v52 = vsub.s32 %v2899_v6, %v2902_v17  ;;  %v2959_v25 = vshrl.u32 %v9991_v19, %v2958_v0  ;;  %vm2977_vm5 = vcmp.lt.s32.totalorder %v2956_v24, 3  ;;  %v2980_v30 = vsel %vm2978_vm4, %v2968_v43, 2102212464 }
 0x3d9   : > { %vm2976_vm7 = vcmp.lt.s32.totalorder %v2956_v24, 2  ;;  %v2985_v46 = vsel %vm2977_vm5, %v2968_v43, %v2984_v13  ;;  %v2987_v28 = vsel %vm2975_vm0, %v2965_v62, %v2968_v43  ;;  %v2988_v12 = vsel %vm2978_vm4, %v2974_v10, 1326507024 }
 0x3da   : > { %v2814_v48 = vor.u32 4788187, %v2813_v61  ;;  %v2905_v16 = vsub.s32 0, %v8144_v52  ;;  %v2979_v2 = vsel %vm2975_vm0, %v2959_v25, %v2962_v51  ;;  %v2986_v8 = vsel %vm2976_vm7, %v2983_v18, %v2985_v46 }
 0x3db   : > { %v2981_v1 = vsel %vm2977_vm5, %v2965_v62, %v2980_v30  ;;  %v2989_v36 = vsel %vm2977_vm5, %v2971_v5, %v2988_v12  ;;  %v8151_v17 = vmul.u32.u64.low %v2991_v27, %v2986_v8  ;;  %v8152_v6 = vmul.u32.u64.high %v2991_v27, %v2986_v8, %v8151_v17 }
 0x3dc   : > { %v2615_v0 = vsel %vm8130_vm10, %v7828_v7, %v8105_v44  ;;  %v5460_v43 = vmin.u32 %v2905_v16, %v8144_v52  ;;  %v2990_v10 = vsel %vm2976_vm7, %v2987_v28, %v2989_v36  ;;  %v3057_v60 = vadd.s32 1, %v5467_v45 }
 0x3dd   : > { %v10165_v50 = vshll.u32 %v8003_v33, %v8065_v32  ;;  %v2810_v20 = vor.u32 %v2809_v3, %v2808_v49  ;;  %v8164_v5 = vmul.u32.u64.low %v2991_v27, %v2990_v10  ;;  %v8165_v51 = vmul.u32.u64.high %v2991_v27, %v2990_v10, %v8164_v5 }
 0x3de   : > { %v2711_v62 = vand.u32 2147483647, %v2710_v15  ;;  %v2907_v4 = vclz %v5460_v43  ;;  %v2982_v54 = vsel %vm2976_vm7, %v2979_v2, %v2981_v1  ;;  %vm3058_vm15 = vcmp.gt.s32.totalorder %v3057_v60, 0 }
 0x3df   : > { %v2706_v47 = vor.u32 %v2705_v31, %v10165_v50  ;;  %v2815_v61 = vand.u32 2147483647, %v2814_v48  ;;  %v3001_v44 = vadd.s32 1, %v8152_v6  ;;  %v10166_v18 = vand.u32 2147483647, %v8048_v14 }
 0x3e0   : > { %v3059_v45 = vsel %vm3058_vm15, %v3057_v60, 0  ;;  %5864 = vcosq.f32 %v2615_v0  ;;  %v10167_v33 = vsub.s32 4, %v7987_v59  ;;  %v5461_v15 = vadd.s32 4294967294, %v2907_v4 }
 0x3e1   : > { %v3054_v13 = vand.u32 8388607, %v10166_v18  ;;  %v3061_v31 = vand.u32 31, %v3059_v45  ;;  %v2713_v24 = vcvt.s32.f32 %v2706_v47  ;;  %v2817_v49 = vcvt.s32.f32 %v2810_v20 }
 0x3e2   : > { %v8176_v32 = vsel %vm2633_vm2, %v10167_v33, %v7987_v59  ;;  %v2998_v3 = vmul.u32 %v2991_v27, %v2982_v54  ;;  %vm3000_vm12 = vc.u32 %v8165_v51, %v8151_v17  ;;  %5866 = vsinq.f32 %v2615_v0 }
 0x3e3   : > { %vm5462_vm1 = vcmp.lt.s32.totalorder %v5461_v15, 0  ;;  %v3002_v25 = vsel %vm3000_vm12, %v3001_v44, %v8152_v6  ;;  %v3062_v30 = vsub.s32 32, %v3061_v31  ;;  %v2714_v46 = vmul.f32 %v2713_v24, %v2711_v62 }
 0x3e4   : > { %v8181_v28 = vmul.f32 %v2817_v49, %v2815_v61  ;;  %v3003_v12 = vadd.s32 %v3002_v25, %v2998_v3  ;;  %v3055_v48 = vor.u32 8388608, %v3054_v13  ;;  %v8183_v59 = vsel %vm5462_vm1, 0, %v5461_v15 }
 0x3e5   : > { %v8185_v16 = vshrl.u32 %v3059_v45, 5  ;;  %v3070_v2 = vshll.u32 %v10157_v11, %v3061_v31  ;;  %v8190_v27 = vadd.f32 %v7849_v39, %v8038_v34  ;;  %v3065_v1 = vshrl.u32 %v10156_v58, %v3062_v30 }
 0x3e6   : > { %v3004_v8 = vadd.s32 536870912, %v3003_v12  ;;  %v3068_v36 = vshrl.u32 %v10157_v11, %v3062_v30  ;;  %v3071_v6 = vshrl.u32 %v10158_v41, %v3062_v30  ;;  %v3064_v0 = vshll.u32 %v9991_v19, %v3061_v31 }
 0x3e7   : > { %v3067_v43 = vshll.u32 %v10156_v58, %v3061_v31  ;;  %v3073_v10 = vshll.u32 %v10158_v41, %v3061_v31  ;;  %v3074_v60 = vshrl.u32 %v10159_v29, %v3062_v30  ;;  %v2715_v50 = vxor.u32 2147483648, %v2714_v46 }
 0x3e8   : > { %v2819_v47 = vxor.u32 2147483648, %v8181_v28  ;;  %v8200_v39 = vshrl.u32 %v3004_v8, 30  ;;  %v3072_v34 = vor.u32 %v3071_v6, %v3070_v2  ;;  %v2915_v20 = vsub.s32 4294967266, %v8183_v59 }
 0x3e9   : > { %v3066_v5 = vor.u32 %v3065_v1, %v3064_v0  ;;  %v3069_v62 = vor.u32 %v3068_v36, %v3067_v43  ;;  %v3075_v4 = vor.u32 %v3074_v60, %v3073_v10  ;;  %v10168_v54 = vand.u32 2147483647, %v7834_v63 }
 0x3ea   : > { %v3006_v44 = vshll.u32 %v8200_v39, 30  ;;  %v3076_v18 = vshll.u32 %v10159_v29, %v3061_v31  ;;  %v3077_v13 = vshrl.u32 %v10160_v42, %v3062_v30  ;;  %v3095_v45 = vshll.u32 %v3055_v48, 8  ;;  %v8212_v33 = vpop.eup %5864 }
 0x3eb   : > { %vm8205_vm9 = vcmp.le.f32.partialorder %v10168_v54, 0.7853982  ;;  %vm2737_vm11 = vcmp.lt.s32.totalorder %v7847_v26, 0  ;;  %v2911_v15 = vsub.s32 32, %v8183_v59  ;;  %v3063_v24 = vshrl.u32 %v9991_v19, %v3062_v30 }
 0x3ec   : > { %vm3082_vm14 = vcmp.lt.s32.totalorder %v8185_v16, 4  ;;  %v3154_v49 = vand.u32 2139095040, %v8190_v27  ;;  %v8219_v3 = vsub.s32 %v3003_v12, %v3006_v44  ;;  %v3078_v25 = vor.u32 %v3077_v13, %v3076_v18  ;;  %v8224_v48 = vpop.eup %5866 }
 0x3ed   : > { %vm3079_vm6 = vcmp.lt.s32.totalorder %v8185_v16, 1  ;;  %v3084_v31 = vsel %vm3082_vm14, %v3072_v34, 2102212464  ;;  %v2916_v2 = vadd.s32 127, %v2915_v20  ;;  %vm3081_vm3 = vcmp.lt.s32.totalorder %v8185_v16, 3 }
 0x3ee   : > { %v3087_v8 = vsel %vm3079_vm6, %v3066_v5, %v3069_v62  ;;  %v3088_v30 = vsel %vm3082_vm14, %v3075_v4, 920167782  ;;  %v10171_v1 = vand.u32 2147483647, %v7847_v26  ;;  %v3009_v36 = vsub.s32 0, %v8219_v3 }
 0x3ef   : > { %vm3080_vm4 = vcmp.lt.s32.totalorder %v8185_v16, 2  ;;  %v3089_v6 = vsel %vm3081_vm3, %v3072_v34, %v3088_v30  ;;  %v3091_v0 = vsel %vm3079_vm6, %v3069_v62, %v3072_v34  ;;  %v3083_v43 = vsel %vm3079_vm6, %v3063_v24, %v3066_v5 }
 0x3f0   : > { %vm8231_vm0 = vcmp.le.f32.partialorder %v10171_v1, 0.7853982  ;;  %v3085_v10 = vsel %vm3081_vm3, %v3069_v62, %v3084_v31  ;;  %v3090_v60 = vsel %vm3080_vm4, %v3087_v8, %v3089_v6  ;;  %v3092_v20 = vsel %vm3082_vm14, %v3078_v25, 1326507024 }
 0x3f1   : > { %v5464_v54 = vmin.u32 %v3009_v36, %v8219_v3  ;;  %v3093_v44 = vsel %vm3081_vm3, %v3075_v4, %v3092_v20  ;;  %v8242_v18 = vmul.u32.u64.low %v3095_v45, %v3090_v60  ;;  %v8243_v13 = vmul.u32.u64.high %v3095_v45, %v3090_v60, %v8242_v18 }
 0x3f2   : > { %v10174_v1 = vsel %vm8042_vm8, 0, %v8032_v37  ;;  %v2716_v34 = vsel %vm2633_vm2, %v2715_v50, %v2714_v46  ;;  %v3094_v5 = vsel %vm3080_vm4, %v3091_v0, %v3093_v44  ;;  %v3155_v62 = vshrl.u32 %v3154_v49, 23 }
 0x3f3   : > { %v8249_v30 = vadd.s32 3, %v10174_v1  ;;  %v2895_v24 = vadd.s32 %v8089_v40, %v8094_v38  ;;  %v3011_v4 = vclz %v5464_v54  ;;  %5868 = vcosq.f32 %v8062_v56 }
 0x3f4   : > { %v8257_v25 = vmul.u32.u64.low %v3095_v45, %v3094_v5  ;;  %v8258_v31 = vmul.u32.u64.high %v3095_v45, %v3094_v5, %v8257_v25  ;;  %v2720_v37 = vsel %vm8205_vm9, 0, %v8176_v32  ;;  %v3086_v55 = vsel %vm3080_vm4, %v3083_v43, %v3085_v10 }
 0x3f5   : > { %v5471_v46 = vadd.s32 4294967169, %v3155_v62  ;;  %v2820_v50 = vsel %vm2737_vm11, %v2819_v47, %v8181_v28  ;;  %v2913_v49 = vshrl.u32 %v2895_v24, %v2911_v15  ;;  %v2917_v38 = vshll.u32 %v2916_v2, 23 }
 0x3f6   : > { %v3105_v40 = vadd.s32 1, %v8243_v13  ;;  %v2719_v8 = vsel %vm8205_vm9, %v7834_v63, %v2716_v34  ;;  %v9962_v36 = vand.u32 2147483647, %v8190_v27  ;;  %v2613_v32 = vsub.s32 4, %v7946_v21 }
 0x3f7   : > { %v3161_v6 = vadd.s32 1, %v5471_v46  ;;  %v2912_v16 = vshll.u32 %v8144_v52, %v8183_v59  ;;  %v5465_v0 = vadd.s32 4294967294, %v3011_v4  ;;  %v3102_v43 = vmul.u32 %v3095_v45, %v3086_v55 }
 0x3f8   : > { %vm3104_vm8 = vc.u32 %v8258_v31, %v8242_v18  ;;  %5870 = vsinq.f32 %v8062_v56  ;;  %v2823_v28 = vsel %vm8231_vm0, %v7847_v26, %v2820_v50  ;;  %v8285_v15 = vor.u32 4788187, %v2917_v38 }
 0x3f9   : > { %v3106_v47 = vsel %vm3104_vm8, %v3105_v40, %v8243_v13  ;;  %vm3162_vm2 = vcmp.gt.s32.totalorder %v3161_v6, 0  ;;  %5872 = vcosq.f32 %v2719_v8  ;;  %v8283_v61 = vor.u32 %v2913_v49, %v2912_v16 }
 0x3fa   : > { %v3107_v2 = vadd.s32 %v3106_v47, %v3102_v43  ;;  %5874 = vsinq.f32 %v2719_v8  ;;  %v8287_v52 = vadd.s32 3, %v2720_v37  ;;  %v3158_v59 = vand.u32 8388607, %v9962_v36 }
 0x3fb   : > { %v3163_v56 = vsel %vm3162_vm2, %v3161_v6, 0  ;;  %5876 = vcosq.f32 %v2823_v28  ;;  %vm5466_vm5 = vcmp.lt.s32.totalorder %v5465_v0, 0  ;;  %v2614_v10 = vsel %vm2529_vm13, %v2613_v32, %v7946_v21 }
 0x3fc   : > { %v3108_v45 = vadd.s32 536870912, %v3107_v2  ;;  %5878 = vsinq.f32 %v2823_v28  ;;  %v8296_v60 = vadd.s32 %v8151_v17, %v8165_v51  ;;  %v3165_v20 = vand.u32 31, %v3163_v56 }
 0x3fd   : > { %v8304_v5 = vpop.eup %5868  ;;  %v8306_v62 = vsel %vm5466_vm5, 0, %v5465_v0  ;;  %v3159_v21 = vor.u32 8388608, %v3158_v59  ;;  %v2616_v17 = vsel %vm8130_vm10, 0, %v2614_v10  ;;  %v8311_v51 = vadd.s32 %v8242_v18, %v8258_v31 }
 0x3fe   : > { %v8301_v1 = vshrl.u32 %v3108_v45, 30  ;;  %v3166_v24 = vsub.s32 32, %v3165_v20  ;;  %v3168_v25 = vshll.u32 %v9991_v19, %v3165_v20  ;;  %v2821_v37 = vsub.s32 4, %v8057_v9 }
 0x3ff   : > { %v3171_v46 = vshll.u32 %v10156_v58, %v3165_v20  ;;  %v3019_v22 = vsub.s32 4294967266, %v8306_v62  ;;  %v3164_v18 = vshrl.u32 %v3163_v56, 5  ;;  %v3174_v31 = vshll.u32 %v10157_v11, %v3165_v20 }
 0x400   : > { %v3110_v4 = vshll.u32 %v8301_v1, 30  ;;  %v3169_v55 = vshrl.u32 %v10156_v58, %v3166_v24  ;;  %v3172_v50 = vshrl.u32 %v10157_v11, %v3166_v24  ;;  %v3175_v49 = vshrl.u32 %v10158_v41, %v3166_v24 }
 0x401   : > { %v3015_v8 = vsub.s32 32, %v8306_v62  ;;  %v8327_v16 = vshll.u32 %v3159_v21, 8  ;;  %v3177_v47 = vshll.u32 %v10158_v41, %v3165_v20  ;;  %v3180_v56 = vshll.u32 %v10159_v29, %v3165_v20 }
 0x402   : > { %v8321_v38 = vsub.s32 %v3107_v2, %v3110_v4  ;;  %v8324_v40 = vpop.eup %5870  ;;  %v3170_v6 = vor.u32 %v3169_v55, %v3168_v25  ;;  %v3173_v32 = vor.u32 %v3172_v50, %v3171_v46  ;;  %v3176_v28 = vor.u32 %v3175_v49, %v3174_v31 }
 0x403   : > { %v8329_v0 = vpop.eup %5872  ;;  %v3178_v2 = vshrl.u32 %v10159_v29, %v3166_v24  ;;  %v3181_v45 = vshrl.u32 %v10160_v42, %v3166_v24  ;;  %v2620_v10 = vadd.s32 3, %v2616_v17  ;;  %v2822_v21 = vsel %vm2737_vm11, %v2821_v37, %v8057_v9 }
 0x404   : > { %v3113_v43 = vsub.s32 0, %v8321_v38  ;;  %v8334_v59 = vpop.eup %5874  ;;  %v3020_v25 = vadd.s32 127, %v3019_v22  ;;  %vm3183_vm13 = vcmp.lt.s32.totalorder %v3164_v18, 1  ;;  %v3167_v49 = vshrl.u32 %v9991_v19, %v3166_v24 }
 0x405   : > { %v8341_v4 = vpop.eup %5876  ;;  %v3179_v46 = vor.u32 %v3178_v2, %v3177_v47  ;;  %v3182_v31 = vor.u32 %v3181_v45, %v3180_v56  ;;  %vm3186_vm10 = vcmp.lt.s32.totalorder %v3164_v18, 4  ;;  %v3191_v20 = vsel %vm3183_vm13, %v3170_v6, %v3173_v32 }
 0x406   : > { %v5468_v55 = vmin.u32 %v3113_v43, %v8321_v38  ;;  %v5879_v50 = vpop.eup %5878  ;;  %vm3185_vm7 = vcmp.lt.s32.totalorder %v3164_v18, 3  ;;  %v3188_v17 = vsel %vm3186_vm10, %v3176_v28, 2102212464  ;;  %vm3184_vm15 = vcmp.lt.s32.totalorder %v3164_v18, 2 }
 0x407   : > { %v3192_v13 = vsel %vm3186_vm10, %v3179_v46, 920167782  ;;  %v3195_v9 = vsel %vm3183_vm13, %v3173_v32, %v3176_v28  ;;  %v2621_v37 = vand.u32 3, %v2620_v10  ;;  %v3187_v22 = vsel %vm3183_vm13, %v3167_v49, %v3170_v6 }
 0x408   : > { %v3115_v36 = vclz %v5468_v55  ;;  %v3193_v44 = vsel %vm3185_vm7, %v3176_v28, %v3192_v13  ;;  %v3196_v47 = vsel %vm3186_vm10, %v3182_v31, 1326507024  ;;  %v3189_v2 = vsel %vm3185_vm7, %v3173_v32, %v3188_v17 }
 0x409   : > { %v3194_v43 = vsel %vm3184_vm15, %v3191_v20, %v3193_v44  ;;  %v3197_v54 = vsel %vm3185_vm7, %v3179_v46, %v3196_v47  ;;  %v3016_v45 = vshll.u32 %v8219_v3, %v8306_v62  ;;  %v3017_v6 = vshrl.u32 %v8296_v60, %v3015_v8 }
 0x40a   : > { %v5469_v34 = vadd.s32 4294967294, %v3115_v36  ;;  %v8347_v24 = vmul.u32.u64.low %v8327_v16, %v3194_v43  ;;  %v8348_v56 = vmul.u32.u64.high %v8327_v16, %v3194_v43, %v8347_v24  ;;  %v3198_v13 = vsel %vm3184_vm15, %v3195_v9, %v3197_v54 }
 0x40b   : > { %v2824_v36 = vsel %vm8231_vm0, 0, %v2822_v21  ;;  %v8358_v32 = vmul.u32.u64.low %v8327_v16, %v3198_v13  ;;  %v8359_v28 = vmul.u32.u64.high %v8327_v16, %v3198_v13, %v8358_v32  ;;  %vm2619_vm1 = vweird.f32 %v7828_v7 }
 0x40c   : > { %vm5470_vm12 = vcmp.lt.s32.totalorder %v5469_v34, 0  ;;  %vm2827_vm9 = vweird.f32 %v7847_v26  ;;  %v3021_v10 = vshll.u32 %v3020_v25, 23  ;;  %v3190_v3 = vsel %vm3184_vm15, %v3187_v22, %v3189_v2 }
 0x40d   : > { %v3118_v44 = vsel %vm5470_vm12, 0, %v5469_v34  ;;  %v2832_v62 = vxor.u32 2147483648, %v5879_v50  ;;  %v3209_v54 = vadd.s32 1, %v8348_v56  ;;  %vm2623_vm11 = vcmp.eq.s32.totalorder %v2621_v37, 0 }
 0x40e   : > { %v3123_v55 = vsub.s32 4294967266, %v3118_v44  ;;  %vm2626_vm14 = vcmp.eq.s32.totalorder %v2621_v37, 2  ;;  %v2828_v12 = vadd.s32 3, %v2824_v36  ;;  %v10175_v34 = vxor.u32 2147483648, %v8224_v48 }
 0x40f   : > { %v10176_v21 = vxor.u32 2147483648, %v8212_v33  ;;  %v2835_v25 = vxor.u32 2147483648, %v8341_v4  ;;  %v3018_v49 = vor.u32 %v3017_v6, %v3016_v45  ;;  %v3206_v18 = vmul.u32 %v8327_v16, %v3190_v3 }
 0x410   : > { %v3124_v60 = vadd.s32 127, %v3123_v55  ;;  %v2625_v8 = vsel %vm2623_vm11, %v8212_v33, %v10175_v34  ;;  %vm3208_vm6 = vc.u32 %v8359_v28, %v8347_v24  ;;  %v2829_v31 = vand.u32 3, %v2828_v12 }
 0x411   : > { %v2628_v46 = vsel %vm2626_vm14, %v10176_v21, %v8224_v48  ;;  %v3022_v20 = vor.u32 4788187, %v3021_v10  ;;  %v3119_v17 = vsub.s32 32, %v3118_v44  ;;  %v3210_v9 = vsel %vm3208_vm6, %v3209_v54, %v8348_v56 }
 0x412   : > { %vm2622_vm3 = vcmp.lt.s32.totalorder %v2621_v37, 2  ;;  %v3211_v22 = vadd.s32 %v3210_v9, %v3206_v18  ;;  %vm2831_vm0 = vcmp.eq.s32.totalorder %v2829_v31, 0  ;;  %vm2834_vm4 = vcmp.eq.s32.totalorder %v2829_v31, 2 }
 0x413   : > { %v2629_v43 = vsel %vm2622_vm3, %v2625_v8, %v2628_v46  ;;  %v3125_v33 = vshll.u32 %v3124_v60, 23  ;;  %vm2830_vm8 = vcmp.lt.s32.totalorder %v2829_v31, 2  ;;  %v2833_v48 = vsel %vm2831_vm0, %v8341_v4, %v2832_v62 }
 0x414   : > { %v2836_v47 = vsel %vm2834_vm4, %v2835_v25, %v5879_v50  ;;  %v3212_v2 = vadd.s32 536870912, %v3211_v22  ;;  %v2517_v45 = vand.u32 3, %v8249_v30  ;;  %v2520_v13 = vxor.u32 2147483648, %v8324_v40 }
 0x415   : > { %v2837_v16 = vsel %vm2830_vm8, %v2833_v48, %v2836_v47  ;;  %v3121_v36 = vshrl.u32 %v8311_v51, %v3119_v17  ;;  %v2630_v37 = vsel %vm2619_vm1, nan, %v2629_v43  ;;  %v2523_v6 = vxor.u32 2147483648, %v8304_v5 }
 0x416   : > { %v2838_v56 = vsel %vm2827_vm9, nan, %v2837_v16  ;;  %v3120_v32 = vshll.u32 %v8321_v38, %v3118_v44  ;;  %v8386_v4 = vshrl.u32 %v3212_v2, 30  ;;  %vm2519_vm2 = vcmp.eq.s32.totalorder %v2517_v45, 0 }
 0x417   : > { %v5566_v50 = vpack.c.bf16 %v2838_v56, %v2630_v37  ;;  %v3126_v10 = vor.u32 4788187, %v3125_v33  ;;  %v2521_v30 = vsel %vm2519_vm2, %v8304_v5, %v2520_v13  ;;  %vm2522_vm5 = vcmp.eq.s32.totalorder %v2517_v45, 2 }
 0x418   : > { %v2725_v51 = vand.u32 3, %v8287_v52  ;;  %v3214_v7 = vshll.u32 %v8386_v4, 30  ;;  %v2524_v26 = vsel %vm2522_vm5, %v2523_v6, %v8324_v40  ;;  %v2728_v55 = vxor.u32 2147483648, %v8334_v59 }
 0x419   : > { %5567 = vmatprep.subr.bf16.mxu1 %v5566_v50  ;;  %v2731_v3 = vxor.u32 2147483648, %v8329_v0  ;;  %v3023_v38 = vand.u32 2147483647, %v3022_v20  ;;  %v3122_v44 = vor.u32 %v3121_v36, %v3120_v32  ;;  %vm2518_vm13 = vcmp.lt.s32.totalorder %v2517_v45, 2 }
 0x41a   : > { %vm2727_vm10 = vcmp.eq.s32.totalorder %v2725_v51, 0  ;;  %v3215_v62 = vsub.s32 %v3211_v22, %v3214_v7  ;;  %v2525_v54 = vsel %vm2518_vm13, %v2521_v30, %v2524_v26  ;;  %vm2730_vm7 = vcmp.eq.s32.totalorder %v2725_v51, 2 }
 0x41b   : > { %v2729_v5 = vsel %vm2727_vm10, %v8329_v0, %v2728_v55  ;;  %v3025_v12 = vcvt.s32.f32 %v3018_v49  ;;  %v3127_v52 = vand.u32 2147483647, %v3126_v10  ;;  %vm2726_vm15 = vcmp.lt.s32.totalorder %v2725_v51, 2 }
 0x41c   : > { %v2732_v60 = vsel %vm2730_vm7, %v2731_v3, %v8334_v59  ;;  %v3217_v34 = vsub.s32 0, %v3215_v62  ;;  %vm2515_vm12 = vweird.f32 %v7826_v53  ;;  %vm2723_vm1 = vweird.f32 %v7834_v63 }
 0x41d   : > { %v2733_v40 = vsel %vm2726_vm15, %v2729_v5, %v2732_v60  ;;  %v10177_v8 = vand.u32 2147483647, %v8285_v15  ;;  %v10178_v21 = vcvt.s32.f32 %v8283_v61  ;;  %v3129_v25 = vcvt.s32.f32 %v3122_v44 }
 0x41e   : > { %v2526_v18 = vsel %vm2515_vm12, nan, %v2525_v54  ;;  %v2734_v0 = vsel %vm2723_vm1, nan, %v2733_v40  ;;  %v3026_v31 = vmul.f32 %v3025_v12, %v3023_v38  ;;  %v5472_v49 = vmin.u32 %v3217_v34, %v3215_v62 }
 0x41f   : > { %v2922_v46 = vmul.f32 %v10178_v21, %v10177_v8  ;;  %v5568_v20 = vpack.c.bf16 %v2734_v0, %v2526_v18  ;;  %v3130_v17 = vmul.f32 %v3129_v25, %v3127_v52  ;;  %vm2841_vm9 = vcmp.lt.s32.totalorder %v7983_v23, 0 }
 0x420   : > { %v3219_v9 = vclz %v5472_v49  ;;  %v3027_v22 = vxor.u32 2147483648, %v3026_v31  ;;  %vm2945_vm14 = vcmp.lt.s32.totalorder %v7998_v57, 0  ;;  %vm3049_vm6 = vcmp.lt.s32.totalorder %v8048_v14, 0 }
 0x421   : > { %5569 = vmatpush1.bf16.msra.mxu1 %v5568_v20  ;;  %v2923_v59 = vxor.u32 2147483648, %v2922_v46  ;;  %v3131_v43 = vxor.u32 2147483648, %v3130_v17  ;;  %v3207_v33 = vadd.s32 %v8347_v24, %v8359_v28  ;;  %v10179_v2 = vand.u32 2147483647, %v7983_v23 }
 0x422   : > { %v5473_v53 = vadd.s32 4294967294, %v3219_v9  ;;  %v3028_v15 = vsel %vm2945_vm14, %v3027_v22, %v3026_v31  ;;  %v10182_v45 = vand.u32 2147483647, %v7998_v57  ;;  %v10185_v32 = vand.u32 2147483647, %v8048_v14 }
 0x423   : > { %v2924_v63 = vsel %vm2841_vm9, %v2923_v59, %v2922_v46  ;;  %vm8413_vm3 = vcmp.le.f32.partialorder %v10179_v2, 0.7853982  ;;  %v3132_v36 = vsel %vm3049_vm6, %v3131_v43, %v3130_v17  ;;  %v3133_v7 = vsub.s32 4, %v8301_v1 }
 0x424   : > { %vm5474_vm11 = vcmp.lt.s32.totalorder %v5473_v53, 0  ;;  %vm8419_vm0 = vcmp.le.f32.partialorder %v10182_v45, 0.7853982  ;;  %v2927_v24 = vsel %vm8413_vm3, %v7983_v23, %v2924_v63  ;;  %vm8433_vm4 = vcmp.le.f32.partialorder %v10185_v32, 0.7853982 }
 0x425   : > { %v3222_v61 = vsel %vm5474_vm11, 0, %v5473_v53  ;;  %v3031_v6 = vsel %vm8419_vm0, %v7998_v57, %v3028_v15  ;;  %v3135_v10 = vsel %vm8433_vm4, %v8048_v14, %v3132_v36  ;;  %5880 = vcosq.f32 %v2927_v24 }
 0x426   : > { %v3223_v48 = vsub.s32 32, %v3222_v61  ;;  %v3227_v47 = vsub.s32 4294967266, %v3222_v61  ;;  %v3224_v28 = vshll.u32 %v3215_v62, %v3222_v61  ;;  %5882 = vcosq.f32 %v3031_v6 }
 0x427   : > { %5884 = vcosq.f32 %v3135_v10  ;;  %v3029_v55 = vsub.s32 4, %v8200_v39  ;;  %v2925_v3 = vsub.s32 4, %v8137_v35  ;;  %v3134_v62 = vsel %vm3049_vm6, %v3133_v7, %v8301_v1 }
 0x428   : > { %v3225_v37 = vshrl.u32 %v3207_v33, %v3223_v48  ;;  %v3228_v56 = vadd.s32 127, %v3227_v47  ;;  %5886 = vsinq.f32 %v3135_v10  ;;  %v3237_v5 = vsub.s32 4, %v8386_v4 }
 0x429   : > { %5888 = vsinq.f32 %v3031_v6  ;;  %v3030_v12 = vsel %vm2945_vm14, %v3029_v55, %v8200_v39  ;;  %v2926_v52 = vsel %vm2841_vm9, %v2925_v3, %v8137_v35  ;;  %v3136_v34 = vsel %vm8433_vm4, 0, %v3134_v62 }
 0x42a   : > { %v3226_v30 = vor.u32 %v3225_v37, %v3224_v28  ;;  %v3229_v51 = vshll.u32 %v3228_v56, 23  ;;  %5890 = vsinq.f32 %v2927_v24  ;;  %vm3153_vm8 = vcmp.lt.s32.totalorder %v8190_v27, 0 }
 0x42b   : > { %v10188_v40 = vand.u32 2147483647, %v8190_v27  ;;  %v3032_v39 = vsel %vm8419_vm0, 0, %v3030_v12  ;;  %v3238_v21 = vsel %vm3153_vm8, %v3237_v5, %v8386_v4  ;;  %v2928_v35 = vsel %vm8413_vm3, 0, %v2926_v52  ;;  %v3255_v12 = vld [vmem:[%s9843_s5] sm:$0xff]  ;;  %v3266_v52 = vpop.permute.xlu0 %3265 }
 0x42c   : > { %v3230_v26 = vor.u32 4788187, %v3229_v51  ;;  %v3233_v44 = vcvt.s32.f32 %v3226_v30  ;;  %v3140_v0 = vadd.s32 3, %v3136_v34  ;;  %v3036_v49 = vadd.s32 3, %v3032_v39 }
 0x42d   : > { %vm8458_vm2 = vcmp.le.f32.partialorder %v10188_v40, 0.7853982  ;;  %v2932_v9 = vadd.s32 3, %v2928_v35  ;;  %vm3139_vm0 = vweird.f32 %v8048_v14  ;;  %vm3035_vm4 = vweird.f32 %v7998_v57  ;;  %v3256_v14 = vld [vmem:[%s9843_s5 + $0x8] sm:$0xff] }
 0x42e   : > { %v3231_v38 = vand.u32 2147483647, %v3230_v26  ;;  %v3240_v20 = vsel %vm8458_vm2, 0, %v3238_v21  ;;  %v3141_v53 = vand.u32 3, %v3140_v0  ;;  %v3037_v43 = vand.u32 3, %v3036_v49  ;;  %v3271_v21 = vpop.permute.xlu1 %3270 }
 0x42f   : > { %v5881_v46 = vpop.eup %5880  ;;  %v3244_v22 = vadd.s32 3, %v3240_v20  ;;  %v2933_v48 = vand.u32 3, %v2932_v9  ;;  %v10191_v57 = vmov 0.0  }
 0x430   : > { %v3234_v54 = vmul.f32 %v3233_v44, %v3231_v38  ;;  %v5883_v18 = vpop.eup %5882  ;;  %v2939_v2 = vxor.u32 2147483648, %v5881_v46  ;;  %vm3143_vm5 = vcmp.eq.s32.totalorder %v3141_v53, 0  ;;  %vm3146_vm13 = vcmp.eq.s32.totalorder %v3141_v53, 2 }
 0x431   : > { %v5885_v31 = vpop.eup %5884  ;;  %v3043_v33 = vxor.u32 2147483648, %v5883_v18  ;;  %v3245_v16 = vand.u32 3, %v3244_v22  ;;  %vm3039_vm10 = vcmp.eq.s32.totalorder %v3037_v43, 0  ;;  %vm3042_vm7 = vcmp.eq.s32.totalorder %v3037_v43, 2 }
 0x432   : > { %v3235_v60 = vxor.u32 2147483648, %v3234_v54  ;;  %v5887_v17 = vpop.eup %5886  ;;  %v3147_v61 = vxor.u32 2147483648, %v5885_v31  ;;  %vm2935_vm15 = vcmp.eq.s32.totalorder %v2933_v48, 0  ;;  %vm2938_vm12 = vcmp.eq.s32.totalorder %v2933_v48, 2 }
 0x433   : > { %v5889_v4 = vpop.eup %5888  ;;  %v3144_v63 = vxor.u32 2147483648, %v5887_v17  ;;  %vm3142_vm1 = vcmp.lt.s32.totalorder %v3141_v53, 2  ;;  %vm3038_vm9 = vcmp.lt.s32.totalorder %v3037_v43, 2  ;;  %vm3250_vm11 = vcmp.eq.s32.totalorder %v3245_v16, 2 }
 0x434   : > { %v3236_v8 = vsel %vm3153_vm8, %v3235_v60, %v3234_v54  ;;  %v5891_v59 = vpop.eup %5890  ;;  %v3040_v15 = vxor.u32 2147483648, %v5889_v4  ;;  %v3148_v13 = vsel %vm3146_vm13, %v3147_v61, %v5887_v17  ;;  %v3044_v28 = vsel %vm3042_vm7, %v3043_v33, %v5889_v4 }
 0x435   : > { %v3239_v25 = vsel %vm8458_vm2, %v8190_v27, %v3236_v8  ;;  %v2936_v47 = vxor.u32 2147483648, %v5891_v59  ;;  %v3145_v45 = vsel %vm3143_vm5, %v5885_v31, %v3144_v63  ;;  %v2940_v32 = vsel %vm2938_vm12, %v2939_v2, %v5891_v59 }
 0x436   : > { %5892 = vcosq.f32 %v3239_v25  ;;  %v3041_v24 = vsel %vm3039_vm10, %v5883_v18, %v3040_v15  ;;  %v3149_v10 = vsel %vm3142_vm1, %v3145_v45, %v3148_v13  ;;  %vm3247_vm14 = vcmp.eq.s32.totalorder %v3245_v16, 0 }
 0x437   : > { %5894 = vsinq.f32 %v3239_v25  ;;  %v2937_v6 = vsel %vm2935_vm15, %v5881_v46, %v2936_v47  ;;  %v3045_v30 = vsel %vm3038_vm9, %v3041_v24, %v3044_v28  ;;  %vm2934_vm6 = vcmp.lt.s32.totalorder %v2933_v48, 2 }
 0x438   : > { %vm3246_vm3 = vcmp.lt.s32.totalorder %v3245_v16, 2  ;;  %v2941_v26 = vsel %vm2934_vm6, %v2937_v6, %v2940_v32  ;;  %vm3243_vm8 = vweird.f32 %v8190_v27  ;;  %v3150_v3 = vsel %vm3139_vm0, nan, %v3149_v10  ;;  %v3258_v27 = vld [vmem:[%s9843_s5 + $0x18] sm:$0xff] }
 0x439   : > { %v3046_v38 = vsel %vm3035_vm4, nan, %v3045_v30  ;;  %vm2931_vm2 = vweird.f32 %v7983_v23  ;;  %vm3283_vm5 = vcmask 261120   ;;  %v3257_v23 = vld [vmem:[%s9843_s5 + $0x10] sm:$0xff] }
 0x43a   : > { %v2942_v54 = vsel %vm2931_vm2, nan, %v2941_v26 }
 0x43b   : > { %v5572_v5 = vpack.c.bf16 %v3150_v3, %v2942_v54 }
 0x440   : > { %v5893_v36 = vpop.eup %5892 }
 0x441   : > { %v5895_v37 = vpop.eup %5894  ;;  %v3251_v56 = vxor.u32 2147483648, %v5893_v36 }
 0x442   : > { %v3248_v50 = vxor.u32 2147483648, %v5895_v37 }
 0x443   : > { %v3252_v51 = vsel %vm3250_vm11, %v3251_v56, %v5895_v37 }
 0x444   : > { %v3249_v7 = vsel %vm3247_vm14, %v5893_v36, %v3248_v50 }
 0x445   : > { %v3253_v55 = vsel %vm3246_vm3, %v3249_v7, %v3252_v51 }
 0x446   : > { %v3254_v44 = vsel %vm3243_vm8, nan, %v3253_v55 }
 0x447   : > { %v5570_v62 = vpack.c.bf16 %v3254_v44, %v3046_v38 }
 0x449   : > { %5571 = vmatprep.subr.bf16.mxu1 %v5570_v62 }
 0x44a   : > { %5573 = vmatpush1.bf16.msra.mxu1 %v5572_v5 }
 0x44d   : > { %5475 = vmatmul.mubr.msk.f32.vlgmr.msra.gmra.mrb[8].mxu1 %vm3283_vm5, %v3255_v12 }
 0x44e   : > { %3366 = vmatprep.mubr.f32.mxu1 %v10191_v57 }
 0x451   : > { %5476 = vmatmul.mubr.msk.f32.gmra.mrb[10].mxu1 %vm3283_vm5, %v3256_v14 }
 0x452   : > { %3372 = vmatprep.mubr.f32.mxu1 %v10191_v57 }
 0x455   : > { %5477 = vmatmul.mubr.msk.f32.gmra.mrb[12].mxu1 %vm3283_vm5, %v3257_v23 }
 0x456   : > { %3378 = vmatprep.mubr.f32.mxu1 %v10191_v57 }
 0x459   : > { %5478 = vmatmul.mubr.msk.f32.gmra.mrb[14].mxu1 %vm3283_vm5, %v3258_v27 }
 0x45a   : > { %5252 = vmatprep.mubr.f32.mxu1 %v10191_v57 }
 0x520   : > { %v3362_v60 = vpop.f32.mrb[8].mxu1 }
 0x521   : > { %v8496_v34 = vadd.f32 %v3362_v60, %v3266_v52  ;;  %v3364_v40 = vpop.f32.mrb[9].mxu1 }
 0x522   : > { %v8498_v1 = vadd.f32 %v3364_v40, %v3266_v52 }
 0x523   : > { %v3385_v8 = vand.u32 2147483647, %v8496_v34  ;;  %v3388_v39 = vand.u32 2139095040, %v8496_v34 }
 0x524   : > { %v3489_v46 = vand.u32 2147483647, %v8498_v1  ;;  %v3492_v35 = vand.u32 2139095040, %v8498_v1  ;;  %v3368_v25 = vpop.f32.mrb[10].mxu1 }
 0x525   : > { %v3389_v18 = vshrl.u32 %v3388_v39, 23  ;;  %v8504_v0 = vadd.f32 %v3368_v25, %v3271_v21  ;;  %v3370_v31 = vpop.f32.mrb[11].mxu1  ;;  %v3392_v49 = vand.u32 8388607, %v3385_v8 }
 0x526   : > { %v3493_v20 = vshrl.u32 %v3492_v35, 23  ;;  %v3496_v17 = vand.u32 8388607, %v3489_v46  ;;  %v8517_v36 = vadd.f32 %v3370_v31, %v3271_v21 }
 0x527   : > { %v5479_v9 = vadd.s32 4294967169, %v3389_v18  ;;  %v3596_v59 = vand.u32 2139095040, %v8504_v0  ;;  %v3393_v43 = vor.u32 8388608, %v3392_v49  ;;  %v9966_v6 = vand.u32 2147483647, %v8504_v0 }
 0x528   : > { %v5483_v4 = vadd.s32 4294967169, %v3493_v20  ;;  %v8511_v22 = vpop.f32.mrb[12].mxu1  ;;  %v3497_v63 = vor.u32 8388608, %v3496_v17 }
 0x529   : > { %v3395_v53 = vadd.s32 1, %v5479_v9  ;;  %v3597_v15 = vshrl.u32 %v3596_v59, 23  ;;  %v8513_v33 = vpop.f32.mrb[13].mxu1  ;;  %v8521_v28 = vshll.u32 %v3393_v43, 8 }
 0x52a   : > { %v3499_v61 = vadd.s32 1, %v5483_v4  ;;  %v8525_v56 = vshll.u32 %v3497_v63, 8 }
 0x52b   : > { %vm3396_vm13 = vcmp.gt.s32.totalorder %v3395_v53, 0  ;;  %v5487_v47 = vadd.s32 4294967169, %v3597_v15 }
 0x52c   : > { %v3397_v48 = vsel %vm3396_vm13, %v3395_v53, 0  ;;  %vm3500_vm10 = vcmp.gt.s32.totalorder %v3499_v61, 0  ;;  %v8515_v2 = vpop.f32.mrb[14].mxu1 }
 0x52d   : > { %v3398_v16 = vshrl.u32 %v3397_v48, 5  ;;  %v3399_v45 = vand.u32 31, %v3397_v48  ;;  %v3501_v13 = vsel %vm3500_vm10, %v3499_v61, 0  ;;  %v8519_v24 = vpop.f32.mrb[15].mxu1  ;;  %v8529_v30 = vadd.s32 1, %v5487_v47 }
 0x52e   : > { %v8523_v37 = vshrl.u32 %v3501_v13, 5  ;;  %v3503_v10 = vand.u32 31, %v3501_v13 }
 0x52f   : > { %v3400_v32 = vsub.s32 32, %v3399_v45  ;;  %v3402_v50 = vshll.u32 %v9991_v19, %v3399_v45  ;;  %v3405_v51 = vshll.u32 %v10156_v58, %v3399_v45  ;;  %v3408_v7 = vshll.u32 %v10157_v11, %v3399_v45 }
 0x530   : > { %v3411_v26 = vshll.u32 %v10158_v41, %v3399_v45  ;;  %v3414_v55 = vshll.u32 %v10159_v29, %v3399_v45  ;;  %vm3417_vm7 = vcmp.lt.s32.totalorder %v3398_v16, 1  ;;  %vm3418_vm15 = vcmp.lt.s32.totalorder %v3398_v16, 2 }
 0x531   : > { %v3403_v3 = vshrl.u32 %v10156_v58, %v3400_v32  ;;  %v3406_v38 = vshrl.u32 %v10157_v11, %v3400_v32  ;;  %v3409_v44 = vshrl.u32 %v10158_v41, %v3400_v32  ;;  %v3401_v62 = vshrl.u32 %v9991_v19, %v3400_v32 }
 0x532   : > { %v3412_v54 = vshrl.u32 %v10159_v29, %v3400_v32  ;;  %v3415_v5 = vshrl.u32 %v10160_v42, %v3400_v32  ;;  %v3504_v27 = vsub.s32 32, %v3503_v10  ;;  %vm3419_vm12 = vcmp.lt.s32.totalorder %v3398_v16, 3 }
 0x533   : > { %v3404_v12 = vor.u32 %v3403_v3, %v3402_v50  ;;  %v3407_v14 = vor.u32 %v3406_v38, %v3405_v51  ;;  %v3410_v23 = vor.u32 %v3409_v44, %v3408_v7  ;;  %vm3420_vm1 = vcmp.lt.s32.totalorder %v3398_v16, 4 }
 0x534   : > { %v3413_v52 = vor.u32 %v3412_v54, %v3411_v26  ;;  %v3416_v60 = vor.u32 %v3415_v5, %v3414_v55  ;;  %v3506_v49 = vshll.u32 %v9991_v19, %v3503_v10  ;;  %v3507_v9 = vshrl.u32 %v10156_v58, %v3504_v27 }
 0x535   : > { %v3421_v40 = vsel %vm3417_vm7, %v3401_v62, %v3404_v12  ;;  %v3422_v39 = vsel %vm3420_vm1, %v3410_v23, 2102212464  ;;  %v3425_v21 = vsel %vm3417_vm7, %v3404_v12, %v3407_v14  ;;  %v3429_v35 = vsel %vm3417_vm7, %v3407_v14, %v3410_v23 }
 0x536   : > { %v3423_v25 = vsel %vm3419_vm12, %v3407_v14, %v3422_v39  ;;  %v3426_v18 = vsel %vm3420_vm1, %v3413_v52, 920167782  ;;  %v3430_v31 = vsel %vm3420_vm1, %v3416_v60, 1326507024  ;;  %v3509_v4 = vshll.u32 %v10156_v58, %v3503_v10 }
 0x537   : > { %v3427_v20 = vsel %vm3419_vm12, %v3410_v23, %v3426_v18  ;;  %v3431_v17 = vsel %vm3419_vm12, %v3413_v52, %v3430_v31  ;;  %v3424_v59 = vsel %vm3418_vm15, %v3421_v40, %v3423_v25  ;;  %v3510_v63 = vshrl.u32 %v10157_v11, %v3504_v27 }
 0x538   : > { %v3428_v53 = vsel %vm3418_vm15, %v3425_v21, %v3427_v20  ;;  %v3432_v43 = vsel %vm3418_vm15, %v3429_v35, %v3431_v17  ;;  %v3508_v45 = vor.u32 %v3507_v9, %v3506_v49  ;;  %v3512_v32 = vshll.u32 %v10157_v11, %v3503_v10 }
 0x539   : > { %v8552_v61 = vmul.u32.u64.low %v8521_v28, %v3432_v43  ;;  %v8553_v15 = vmul.u32.u64.high %v8521_v28, %v3432_v43, %v8552_v61  ;;  %v8556_v48 = vmul.u32.u64.low %v8521_v28, %v3428_v53  ;;  %v8557_v47 = vmul.u32.u64.high %v8521_v28, %v3428_v53, %v8556_v48 }
 0x53a   : > { %v3511_v13 = vor.u32 %v3510_v63, %v3509_v4  ;;  %v3513_v50 = vshrl.u32 %v10158_v41, %v3504_v27  ;;  %v3505_v16 = vshrl.u32 %v9991_v19, %v3504_v27  ;;  %v3515_v51 = vshll.u32 %v10158_v41, %v3503_v10 }
 0x53b   : > { %v3516_v7 = vshrl.u32 %v10159_v29, %v3504_v27  ;;  %v3519_v26 = vshrl.u32 %v10160_v42, %v3504_v27  ;;  %v3440_v55 = vmul.u32 %v8521_v28, %v3424_v59  ;;  %v3518_v38 = vshll.u32 %v10159_v29, %v3503_v10 }
 0x53c   : > { %v3514_v3 = vor.u32 %v3513_v50, %v3512_v32  ;;  %vm3521_vm9 = vcmp.lt.s32.totalorder %v8523_v37, 1  ;;  %vm3442_vm11 = vc.u32 %v8553_v15, %v8556_v48  ;;  %v3443_v44 = vadd.s32 1, %v8557_v47 }
 0x53d   : > { %v3517_v62 = vor.u32 %v3516_v7, %v3515_v51  ;;  %vm3522_vm14 = vcmp.lt.s32.totalorder %v8523_v37, 2  ;;  %v3520_v54 = vor.u32 %v3519_v26, %v3518_v38  ;;  %vm3523_vm6 = vcmp.lt.s32.totalorder %v8523_v37, 3 }
 0x53e   : > { %vm3524_vm3 = vcmp.lt.s32.totalorder %v8523_v37, 4  ;;  %v3529_v5 = vsel %vm3521_vm9, %v3508_v45, %v3511_v13  ;;  %v3444_v28 = vsel %vm3442_vm11, %v3443_v44, %v8557_v47  ;;  %v3533_v14 = vsel %vm3521_vm9, %v3511_v13, %v3514_v3 }
 0x53f   : > { %v3526_v12 = vsel %vm3524_vm3, %v3514_v3, 2102212464  ;;  %v3530_v10 = vsel %vm3524_vm3, %v3517_v62, 920167782  ;;  %v3445_v23 = vadd.s32 %v3444_v28, %v3440_v55  ;;  %v3525_v27 = vsel %vm3521_vm9, %v3505_v16, %v3508_v45 }
 0x540   : > { %v3531_v52 = vsel %vm3523_vm6, %v3514_v3, %v3530_v10  ;;  %v3534_v60 = vsel %vm3524_vm3, %v3520_v54, 1326507024  ;;  %v3527_v40 = vsel %vm3523_vm6, %v3511_v13, %v3526_v12  ;;  %vm3604_vm0 = vcmp.gt.s32.totalorder %v8529_v30, 0 }
 0x541   : > { %v3532_v39 = vsel %vm3522_vm14, %v3529_v5, %v3531_v52  ;;  %v3535_v21 = vsel %vm3523_vm6, %v3517_v62, %v3534_v60  ;;  %v3446_v35 = vadd.s32 536870912, %v3445_v23  ;;  %v3600_v17 = vand.u32 8388607, %v9966_v6 }
 0x542   : > { %v3536_v25 = vsel %vm3522_vm14, %v3533_v14, %v3535_v21  ;;  %v8582_v18 = vmul.u32.u64.low %v8525_v56, %v3532_v39  ;;  %v8583_v31 = vmul.u32.u64.high %v8525_v56, %v3532_v39, %v8582_v18  ;;  %v3605_v9 = vsel %vm3604_vm0, %v8529_v30, 0 }
 0x543   : > { %v8587_v49 = vmul.u32.u64.low %v8525_v56, %v3536_v25  ;;  %v8588_v20 = vmul.u32.u64.high %v8525_v56, %v3536_v25, %v8587_v49  ;;  %v8593_v4 = vshrl.u32 %v3446_v35, 30  ;;  %v3528_v59 = vsel %vm3522_vm14, %v3525_v27, %v3527_v40 }
 0x544   : > { %v3607_v53 = vand.u32 31, %v3605_v9  ;;  %v3700_v43 = vand.u32 2139095040, %v8517_v36  ;;  %v3547_v61 = vadd.s32 1, %v8583_v31  ;;  %v3544_v45 = vmul.u32 %v8525_v56, %v3528_v59 }
 0x545   : > { %v3448_v63 = vshll.u32 %v8593_v4, 30  ;;  %vm3546_vm4 = vc.u32 %v8588_v20, %v8582_v18  ;;  %v3601_v13 = vor.u32 8388608, %v3600_v17  ;;  %v3606_v55 = vshrl.u32 %v3605_v9, 5 }
 0x546   : > { %v3608_v47 = vsub.s32 32, %v3607_v53  ;;  %v3548_v32 = vsel %vm3546_vm4, %v3547_v61, %v8583_v31  ;;  %v3701_v37 = vshrl.u32 %v3700_v43, 23  ;;  %v3610_v16 = vshll.u32 %v9991_v19, %v3607_v53 }
 0x547   : > { %v8603_v30 = vsub.s32 %v3445_v23, %v3448_v63  ;;  %v3549_v50 = vadd.s32 %v3548_v32, %v3544_v45  ;;  %v3613_v56 = vshll.u32 %v10156_v58, %v3607_v53  ;;  %v3616_v62 = vshll.u32 %v10157_v11, %v3607_v53 }
 0x548   : > { %v3611_v51 = vshrl.u32 %v10156_v58, %v3608_v47  ;;  %v3614_v7 = vshrl.u32 %v10157_v11, %v3608_v47  ;;  %v3617_v3 = vshrl.u32 %v10158_v41, %v3608_v47  ;;  %v3641_v54 = vshll.u32 %v3601_v13, 8 }
 0x549   : > { %v3451_v26 = vsub.s32 0, %v8603_v30  ;;  %v3550_v38 = vadd.s32 536870912, %v3549_v50  ;;  %v3619_v12 = vshll.u32 %v10158_v41, %v3607_v53  ;;  %v3620_v10 = vshrl.u32 %v10159_v29, %v3608_v47 }
 0x54a   : > { %v3612_v44 = vor.u32 %v3611_v51, %v3610_v16  ;;  %v3615_v28 = vor.u32 %v3614_v7, %v3613_v56  ;;  %v3618_v23 = vor.u32 %v3617_v3, %v3616_v62  ;;  %v3622_v27 = vshll.u32 %v10159_v29, %v3607_v53 }
 0x54b   : > { %v5480_v5 = vmin.u32 %v3451_v26, %v8603_v30  ;;  %v8616_v14 = vshrl.u32 %v3550_v38, 30  ;;  %v3623_v52 = vshrl.u32 %v10160_v42, %v3608_v47  ;;  %v3621_v40 = vor.u32 %v3620_v10, %v3619_v12 }
 0x54c   : > { %vm3625_vm8 = vcmp.lt.s32.totalorder %v3606_v55, 1  ;;  %v5491_v39 = vadd.s32 4294967169, %v3701_v37  ;;  %vm3626_vm2 = vcmp.lt.s32.totalorder %v3606_v55, 2  ;;  %vm3628_vm13 = vcmp.lt.s32.totalorder %v3606_v55, 4 }
 0x54d   : > { %v3453_v60 = vclz %v5480_v5  ;;  %v3552_v21 = vshll.u32 %v8616_v14, 30  ;;  %v3624_v35 = vor.u32 %v3623_v52, %v3622_v27  ;;  %vm3627_vm10 = vcmp.lt.s32.totalorder %v3606_v55, 3 }
 0x54e   : > { %v3633_v31 = vsel %vm3625_vm8, %v3612_v44, %v3615_v28  ;;  %v3634_v49 = vsel %vm3628_vm13, %v3621_v40, 920167782  ;;  %v3630_v9 = vsel %vm3628_vm13, %v3618_v23, 2102212464  ;;  %v3637_v53 = vsel %vm3625_vm8, %v3615_v28, %v3618_v23 }
 0x54f   : > { %v5481_v25 = vadd.s32 4294967294, %v3453_v60  ;;  %v8622_v17 = vsub.s32 %v3549_v50, %v3552_v21  ;;  %v3635_v59 = vsel %vm3627_vm10, %v3618_v23, %v3634_v49  ;;  %v3609_v43 = vshrl.u32 %v9991_v19, %v3608_v47  ;;  %v3276_v49 = vpop.permute.xlu0 %3275 }
 0x550   : > { %v3636_v63 = vsel %vm3626_vm2, %v3633_v31, %v3635_v59  ;;  %v3638_v61 = vsel %vm3628_vm13, %v3624_v35, 1326507024  ;;  %v3707_v37 = vadd.s32 1, %v5491_v39  ;;  %v3631_v51 = vsel %vm3627_vm10, %v3615_v28, %v3630_v9 }
 0x551   : > { %vm5482_vm7 = vcmp.lt.s32.totalorder %v5481_v25, 0  ;;  %v3555_v13 = vsub.s32 0, %v8622_v17  ;;  %v3639_v32 = vsel %vm3627_vm10, %v3621_v40, %v3638_v61  ;;  %v3629_v50 = vsel %vm3625_vm8, %v3609_v43, %v3612_v44 }
 0x552   : > { %v3456_v45 = vsel %vm5482_vm7, 0, %v5481_v25  ;;  %v3640_v7 = vsel %vm3626_vm2, %v3637_v53, %v3639_v32  ;;  %vm3708_vm15 = vcmp.gt.s32.totalorder %v3707_v37, 0  ;;  %v9965_v5 = vand.u32 2147483647, %v8517_v36 }
 0x553   : > { %v3461_v16 = vsub.s32 4294967266, %v3456_v45  ;;  %v5484_v26 = vmin.u32 %v3555_v13, %v8622_v17  ;;  %v8634_v56 = vmul.u32.u64.low %v3641_v54, %v3640_v7  ;;  %v8635_v47 = vmul.u32.u64.high %v3641_v54, %v3640_v7, %v8634_v56 }
 0x554   : > { %v8637_v3 = vmul.u32.u64.low %v3641_v54, %v3636_v63  ;;  %v8638_v38 = vmul.u32.u64.high %v3641_v54, %v3636_v63, %v8637_v3  ;;  %v3709_v12 = vsel %vm3708_vm15, %v3707_v37, 0  ;;  %v3457_v10 = vsub.s32 32, %v3456_v45 }
 0x555   : > { %v3557_v62 = vclz %v5484_v26  ;;  %v3462_v44 = vadd.s32 127, %v3461_v16  ;;  %v3632_v28 = vsel %vm3626_vm2, %v3629_v50, %v3631_v51  ;;  %v3711_v23 = vand.u32 31, %v3709_v12 }
 0x556   : > { %vm3650_vm12 = vc.u32 %v8635_v47, %v8637_v3  ;;  %v3441_v52 = vadd.s32 %v8556_v48, %v8553_v15  ;;  %v3651_v60 = vadd.s32 1, %v8638_v38  ;;  %v3648_v40 = vmul.u32 %v3641_v54, %v3632_v28 }
 0x557   : > { %v5485_v27 = vadd.s32 4294967294, %v3557_v62  ;;  %v3704_v39 = vand.u32 8388607, %v9965_v5  ;;  %v3463_v35 = vshll.u32 %v3462_v44, 23  ;;  %v3712_v25 = vsub.s32 32, %v3711_v23 }
 0x558   : > { %v3459_v21 = vshrl.u32 %v3441_v52, %v3457_v10  ;;  %v3652_v55 = vsel %vm3650_vm12, %v3651_v60, %v8638_v38  ;;  %v3458_v9 = vshll.u32 %v8603_v30, %v3456_v45  ;;  %v8653_v15 = vadd.f32 %v8511_v22, %v3276_v49 }
 0x559   : > { %vm5486_vm1 = vcmp.lt.s32.totalorder %v5485_v27, 0  ;;  %v3653_v31 = vadd.s32 %v3652_v55, %v3648_v40  ;;  %v3705_v43 = vor.u32 8388608, %v3704_v39  ;;  %v3464_v54 = vor.u32 4788187, %v3463_v35 }
 0x55a   : > { %v3560_v59 = vsel %vm5486_vm1, 0, %v5485_v27  ;;  %v3460_v48 = vor.u32 %v3459_v21, %v3458_v9  ;;  %v3715_v63 = vshrl.u32 %v10156_v58, %v3712_v25  ;;  %v3718_v61 = vshrl.u32 %v10157_v11, %v3712_v25 }
 0x55b   : > { %v3654_v53 = vadd.s32 536870912, %v3653_v31  ;;  %v3565_v13 = vsub.s32 4294967266, %v3560_v59  ;;  %v3721_v37 = vshrl.u32 %v10158_v41, %v3712_v25  ;;  %v3724_v16 = vshrl.u32 %v10159_v29, %v3712_v25 }
 0x55c   : > { %v3714_v30 = vshll.u32 %v9991_v19, %v3711_v23  ;;  %v3717_v45 = vshll.u32 %v10156_v58, %v3711_v23  ;;  %v3723_v22 = vshll.u32 %v10158_v41, %v3711_v23  ;;  %v3727_v50 = vshrl.u32 %v10160_v42, %v3712_v25 }
 0x55d   : > { %v8657_v32 = vshrl.u32 %v3654_v53, 30  ;;  %v3710_v7 = vshrl.u32 %v3709_v12, 5  ;;  %v3720_v26 = vshll.u32 %v10157_v11, %v3711_v23  ;;  %v8668_v56 = vadd.f32 %v8513_v33, %v3276_v49 }
 0x55e   : > { %v3716_v38 = vor.u32 %v3715_v63, %v3714_v30  ;;  %v3719_v62 = vor.u32 %v3718_v61, %v3717_v45  ;;  %v3725_v10 = vor.u32 %v3724_v16, %v3723_v22  ;;  %v3726_v44 = vshll.u32 %v10159_v29, %v3711_v23 }
 0x55f   : > { %v3656_v51 = vshll.u32 %v8657_v32, 30  ;;  %v3545_v28 = vadd.s32 %v8582_v18, %v8588_v20  ;;  %v3566_v27 = vadd.s32 127, %v3565_v13  ;;  %v3722_v60 = vor.u32 %v3721_v37, %v3720_v26 }
 0x560   : > { %v3465_v40 = vand.u32 2147483647, %v3464_v54  ;;  %v3467_v39 = vcvt.s32.f32 %v3460_v48  ;;  %v3728_v12 = vor.u32 %v3727_v50, %v3726_v44  ;;  %v3745_v21 = vshll.u32 %v3705_v43, 8 }
 0x561   : > { %v8673_v52 = vsub.s32 %v3653_v31, %v3656_v51  ;;  %v3561_v35 = vsub.s32 32, %v3560_v59  ;;  %vm3729_vm9 = vcmp.lt.s32.totalorder %v3710_v7, 1  ;;  %vm3732_vm11 = vcmp.lt.s32.totalorder %v3710_v7, 4 }
 0x562   : > { %v3713_v55 = vshrl.u32 %v9991_v19, %v3712_v25  ;;  %vm3731_vm14 = vcmp.lt.s32.totalorder %v3710_v7, 3  ;;  %v3737_v23 = vsel %vm3729_vm9, %v3716_v38, %v3719_v62  ;;  %v3738_v49 = vsel %vm3732_vm11, %v3725_v10, 920167782 }
 0x563   : > { %v3659_v33 = vsub.s32 0, %v8673_v52  ;;  %v3567_v18 = vshll.u32 %v3566_v27, 23  ;;  %vm3730_vm6 = vcmp.lt.s32.totalorder %v3710_v7, 2  ;;  %v3734_v20 = vsel %vm3732_vm11, %v3722_v60, 2102212464 }
 0x564   : > { %v3739_v31 = vsel %vm3731_vm14, %v3722_v60, %v3738_v49  ;;  %v3741_v43 = vsel %vm3729_vm9, %v3719_v62, %v3722_v60  ;;  %v3742_v48 = vsel %vm3732_vm11, %v3728_v12, 1326507024  ;;  %v3562_v54 = vshll.u32 %v8622_v17, %v3560_v59 }
 0x565   : > { %v5488_v9 = vmin.u32 %v3659_v33, %v8673_v52  ;;  %v3740_v53 = vsel %vm3730_vm6, %v3737_v23, %v3739_v31  ;;  %v3563_v63 = vshrl.u32 %v3545_v28, %v3561_v35  ;;  %v3733_v25 = vsel %vm3729_vm9, %v3713_v55, %v3716_v38 }
 0x566   : > { %v3743_v61 = vsel %vm3731_vm14, %v3725_v10, %v3742_v48  ;;  %v3735_v13 = vsel %vm3731_vm14, %v3719_v62, %v3734_v20  ;;  %v8684_v16 = vmul.u32.u64.low %v3745_v21, %v3740_v53  ;;  %v8685_v30 = vmul.u32.u64.high %v3745_v21, %v3740_v53, %v8684_v16 }
 0x567   : > { %v3744_v37 = vsel %vm3730_vm6, %v3741_v43, %v3743_v61  ;;  %v3468_v45 = vmul.f32 %v3467_v39, %v3465_v40  ;;  %v3568_v22 = vor.u32 4788187, %v3567_v18  ;;  %v3661_v26 = vclz %v5488_v9  ;;  %v8708_v9 = vpop.permute.xlu1 %3280 }
 0x568   : > { %v8688_v50 = vmul.u32.u64.low %v3745_v21, %v3744_v37  ;;  %v8689_v51 = vmul.u32.u64.high %v3745_v21, %v3744_v37, %v8688_v50  ;;  %v3804_v44 = vand.u32 2139095040, %v8653_v15  ;;  %v3564_v17 = vor.u32 %v3563_v63, %v3562_v54 }
 0x569   : > { %v3736_v59 = vsel %vm3730_vm6, %v3733_v25, %v3735_v13  ;;  %v3908_v38 = vand.u32 2139095040, %v8668_v56  ;;  %v3755_v62 = vadd.s32 1, %v8685_v30  ;;  %v3469_v28 = vxor.u32 2147483648, %v3468_v45 }
 0x56a   : > { %v3805_v10 = vshrl.u32 %v3804_v44, 23  ;;  %v3471_v27 = vsub.s32 4, %v8593_v4  ;;  %v3569_v60 = vand.u32 2147483647, %v3568_v22  ;;  %v9963_v40 = vand.u32 2147483647, %v8653_v15 }
 0x56b   : > { %v5489_v39 = vadd.s32 4294967294, %v3661_v26  ;;  %v3752_v12 = vmul.u32 %v3745_v21, %v3736_v59  ;;  %vm3754_vm3 = vc.u32 %v8689_v51, %v8684_v16  ;;  %v3571_v33 = vcvt.s32.f32 %v3564_v17 }
 0x56c   : > { %v5495_v35 = vadd.s32 4294967169, %v3805_v10  ;;  %v3756_v7 = vsel %vm3754_vm3, %v3755_v62, %v8685_v30  ;;  %v3909_v55 = vshrl.u32 %v3908_v38, 23  ;;  %vm3387_vm0 = vcmp.lt.s32.totalorder %v8496_v34, 0 }
 0x56d   : > { %v3757_v23 = vadd.s32 %v3756_v7, %v3752_v12  ;;  %v3470_v18 = vsel %vm3387_vm0, %v3469_v28, %v3468_v45  ;;  %v8702_v20 = vsel %vm3387_vm0, %v3471_v27, %v8593_v4  ;;  %v8704_v31 = vmul.f32 %v3571_v33, %v3569_v60 }
 0x56e   : > { %v3811_v49 = vadd.s32 1, %v5495_v35  ;;  %v3808_v21 = vand.u32 8388607, %v9963_v40  ;;  %vm5490_vm4 = vcmp.lt.s32.totalorder %v5489_v39, 0  ;;  %v5499_v43 = vadd.s32 4294967169, %v3909_v55 }
 0x56f   : > { %v3758_v53 = vadd.s32 536870912, %v3757_v23  ;;  %vm8712_vm2 = vcmp.le.f32.partialorder %v3385_v8, 0.7853982  ;;  %v8718_v4 = vadd.f32 %v8515_v2, %v8708_v9  ;;  %v8725_v25 = vadd.s32 %v8637_v3, %v8635_v47 }
 0x570   : > { %vm3812_vm8 = vcmp.gt.s32.totalorder %v3811_v49, 0  ;;  %v8732_v8 = vsel %vm8712_vm2, %v8496_v34, %v3470_v18  ;;  %v3573_v37 = vxor.u32 2147483648, %v8704_v31  ;;  %v8735_v2 = vsel %vm5490_vm4, 0, %v5489_v39 }
 0x571   : > { %v3813_v54 = vsel %vm3812_vm8, %v3811_v49, 0  ;;  %v8727_v61 = vshrl.u32 %v3758_v53, 30  ;;  %v3809_v22 = vor.u32 8388608, %v3808_v21  ;;  %v3915_v47 = vadd.s32 1, %v5499_v43 }
 0x572   : > { %v3815_v13 = vand.u32 31, %v3813_v54  ;;  %v3814_v3 = vshrl.u32 %v3813_v54, 5  ;;  %v9964_v7 = vand.u32 2147483647, %v8668_v56  ;;  %vm3491_vm13 = vcmp.lt.s32.totalorder %v8498_v1, 0 }
 0x573   : > { %v3760_v45 = vshll.u32 %v8727_v61, 30  ;;  %v3669_v55 = vsub.s32 4294967266, %v8735_v2  ;;  %v3849_v53 = vshll.u32 %v3809_v22, 8  ;;  %vm3916_vm7 = vcmp.gt.s32.totalorder %v3915_v47, 0 }
 0x574   : > { %v3816_v50 = vsub.s32 32, %v3815_v13  ;;  %v3818_v26 = vshll.u32 %v9991_v19, %v3815_v13  ;;  %v3821_v44 = vshll.u32 %v10156_v58, %v3815_v13  ;;  %v3824_v17 = vshll.u32 %v10157_v11, %v3815_v13 }
 0x575   : > { %v8742_v59 = vsub.s32 %v3757_v23, %v3760_v45  ;;  %v3827_v10 = vshll.u32 %v10158_v41, %v3815_v13  ;;  %v3830_v60 = vshll.u32 %v10159_v29, %v3815_v13  ;;  %vm3833_vm10 = vcmp.lt.s32.totalorder %v3814_v3, 1 }
 0x576   : > { %v3819_v38 = vshrl.u32 %v10156_v58, %v3816_v50  ;;  %v3822_v62 = vshrl.u32 %v10157_v11, %v3816_v50  ;;  %v3825_v28 = vshrl.u32 %v10158_v41, %v3816_v50  ;;  %v3828_v27 = vshrl.u32 %v10159_v29, %v3816_v50 }
 0x577   : > { %v3831_v39 = vshrl.u32 %v10160_v42, %v3816_v50  ;;  %v3763_v12 = vsub.s32 0, %v8742_v59  ;;  %v3817_v43 = vshrl.u32 %v9991_v19, %v3816_v50  ;;  %vm3834_vm15 = vcmp.lt.s32.totalorder %v3814_v3, 2 }
 0x578   : > { %v3820_v35 = vor.u32 %v3819_v38, %v3818_v26  ;;  %v3823_v33 = vor.u32 %v3822_v62, %v3821_v44  ;;  %v3826_v23 = vor.u32 %v3825_v28, %v3824_v17  ;;  %v3829_v49 = vor.u32 %v3828_v27, %v3827_v10 }
 0x579   : > { %v3832_v18 = vor.u32 %v3831_v39, %v3830_v60  ;;  %v5492_v21 = vmin.u32 %v3763_v12, %v8742_v59  ;;  %vm3836_vm12 = vcmp.lt.s32.totalorder %v3814_v3, 4  ;;  %vm3835_vm1 = vcmp.lt.s32.totalorder %v3814_v3, 3 }
 0x57a   : > { %v3841_v54 = vsel %vm3833_vm10, %v3820_v35, %v3823_v33  ;;  %v3838_v45 = vsel %vm3836_vm12, %v3826_v23, 2102212464  ;;  %v3842_v26 = vsel %vm3836_vm12, %v3829_v49, 920167782  ;;  %v3837_v44 = vsel %vm3833_vm10, %v3817_v43, %v3820_v35 }
 0x57b   : > { %v3765_v13 = vclz %v5492_v21  ;;  %v3843_v38 = vsel %vm3835_vm1, %v3826_v23, %v3842_v26  ;;  %v3845_v62 = vsel %vm3833_vm10, %v3823_v33, %v3826_v23  ;;  %v3846_v17 = vsel %vm3836_vm12, %v3832_v18, 1326507024 }
 0x57c   : > { %v3839_v28 = vsel %vm3835_vm1, %v3823_v33, %v3838_v45  ;;  %v3844_v27 = vsel %vm3834_vm15, %v3841_v54, %v3843_v38  ;;  %v3847_v60 = vsel %vm3835_vm1, %v3829_v49, %v3846_v17  ;;  %v3670_v22 = vadd.s32 127, %v3669_v55 }
 0x57d   : > { %v5493_v10 = vadd.s32 4294967294, %v3765_v13  ;;  %v3848_v39 = vsel %vm3834_vm15, %v3845_v62, %v3847_v60  ;;  %v8759_v50 = vmul.u32.u64.low %v3849_v53, %v3844_v27  ;;  %v8760_v12 = vmul.u32.u64.high %v3849_v53, %v3844_v27, %v8759_v50 }
 0x57e   : > { %v8763_v21 = vmul.u32.u64.low %v3849_v53, %v3848_v39  ;;  %v8764_v40 = vmul.u32.u64.high %v3849_v53, %v3848_v39, %v8763_v21  ;;  %v3917_v35 = vsel %vm3916_vm7, %v3915_v47, 0  ;;  %v3840_v33 = vsel %vm3834_vm15, %v3837_v44, %v3839_v28 }
 0x57f   : > { %vm5494_vm9 = vcmp.lt.s32.totalorder %v5493_v10, 0  ;;  %v3912_v49 = vand.u32 8388607, %v9964_v7  ;;  %v3919_v55 = vand.u32 31, %v3917_v35  ;;  %v8775_v18 = vsel %vm3491_vm13, %v3573_v37, %v8704_v31 }
 0x580   : > { %v8767_v23 = vsel %vm5494_vm9, 0, %v5493_v10  ;;  %v3665_v43 = vsub.s32 32, %v8735_v2  ;;  %v4012_v13 = vand.u32 2139095040, %v8718_v4  ;;  %v3859_v45 = vadd.s32 1, %v8760_v12 }
 0x581   : > { %v3773_v3 = vsub.s32 4294967266, %v8767_v23  ;;  %v3920_v26 = vsub.s32 32, %v3919_v55  ;;  %v3671_v44 = vshll.u32 %v3670_v22, 23  ;;  %v3753_v38 = vadd.s32 %v8684_v16, %v8689_v51 }
 0x582   : > { %v3856_v31 = vmul.u32 %v3849_v53, %v3840_v33  ;;  %vm3858_vm11 = vc.u32 %v8764_v40, %v8759_v50  ;;  %v3913_v62 = vor.u32 8388608, %v3912_v49  ;;  %v3769_v28 = vsub.s32 32, %v8767_v23 }
 0x583   : > { %v3860_v37 = vsel %vm3858_vm11, %v3859_v45, %v8760_v12  ;;  %v3923_v17 = vshrl.u32 %v10156_v58, %v3920_v26  ;;  %v3926_v10 = vshrl.u32 %v10157_v11, %v3920_v26  ;;  %v3918_v60 = vshrl.u32 %v3917_v35, 5 }
 0x584   : > { %v3861_v27 = vadd.s32 %v3860_v37, %v3856_v31  ;;  %v4013_v39 = vshrl.u32 %v4012_v13, 23  ;;  %v3774_v22 = vadd.s32 127, %v3773_v3  ;;  %v3922_v21 = vshll.u32 %v9991_v19, %v3919_v55 }
 0x585   : > { %v3925_v16 = vshll.u32 %v10156_v58, %v3919_v55  ;;  %v3929_v51 = vshrl.u32 %v10158_v41, %v3920_v26  ;;  %v3928_v12 = vshll.u32 %v10157_v11, %v3919_v55  ;;  %v3931_v33 = vshll.u32 %v10158_v41, %v3919_v55 }
 0x586   : > { %v3862_v53 = vadd.s32 536870912, %v3861_v27  ;;  %v3932_v49 = vshrl.u32 %v10159_v29, %v3920_v26  ;;  %vm8800_vm14 = vcmp.le.f32.partialorder %v3489_v46, 0.7853982  ;;  %v3924_v35 = vor.u32 %v3923_v17, %v3922_v21 }
 0x587   : > { %v3927_v13 = vor.u32 %v3926_v10, %v3925_v16  ;;  %v3934_v3 = vshll.u32 %v10159_v29, %v3919_v55  ;;  %v3935_v31 = vshrl.u32 %v10160_v42, %v3920_v26  ;;  %v3667_v37 = vshrl.u32 %v8725_v25, %v3665_v43 }
 0x588   : > { %v8807_v7 = vshrl.u32 %v3862_v53, 30  ;;  %v3930_v63 = vor.u32 %v3929_v51, %v3928_v12  ;;  %v3933_v5 = vor.u32 %v3932_v49, %v3931_v33  ;;  %v3672_v6 = vor.u32 4788187, %v3671_v44 }
 0x589   : > { %v3936_v30 = vor.u32 %v3935_v31, %v3934_v3  ;;  %v3953_v54 = vshll.u32 %v3913_v62, 8  ;;  %v5503_v47 = vadd.s32 4294967169, %v4013_v39  ;;  %v3775_v46 = vshll.u32 %v3774_v22, 23 }
 0x58a   : > { %v3864_v57 = vshll.u32 %v8807_v7, 30  ;;  %vm3937_vm6 = vcmp.lt.s32.totalorder %v3918_v60, 1  ;;  %vm3940_vm3 = vcmp.lt.s32.totalorder %v3918_v60, 4  ;;  %vm3595_vm0 = vcmp.lt.s32.totalorder %v8504_v0, 0 }
 0x58b   : > { %v3770_v55 = vshll.u32 %v8742_v59, %v8767_v23  ;;  %v3771_v17 = vshrl.u32 %v3753_v38, %v3769_v28  ;;  %v3945_v25 = vsel %vm3937_vm6, %v3924_v35, %v3927_v13  ;;  %v3946_v43 = vsel %vm3940_vm3, %v3933_v5, 920167782 }
 0x58c   : > { %v8814_v10 = vsub.s32 %v3861_v27, %v3864_v57  ;;  %v3921_v44 = vshrl.u32 %v9991_v19, %v3920_v26  ;;  %vm3939_vm4 = vcmp.lt.s32.totalorder %v3918_v60, 3  ;;  %v3942_v62 = vsel %vm3940_vm3, %v3930_v63, 2102212464 }
 0x58d   : > { %vm3938_vm8 = vcmp.lt.s32.totalorder %v3918_v60, 2  ;;  %v3947_v39 = vsel %vm3939_vm4, %v3930_v63, %v3946_v43  ;;  %v3949_v22 = vsel %vm3937_vm6, %v3927_v13, %v3930_v63  ;;  %v3950_v21 = vsel %vm3940_vm3, %v3936_v30, 1326507024 }
 0x58e   : > { %v3776_v16 = vor.u32 4788187, %v3775_v46  ;;  %v3867_v51 = vsub.s32 0, %v8814_v10  ;;  %v3941_v59 = vsel %vm3937_vm6, %v3921_v44, %v3924_v35  ;;  %v3948_v23 = vsel %vm3938_vm8, %v3945_v25, %v3947_v39 }
 0x58f   : > { %v3943_v38 = vsel %vm3939_vm4, %v3927_v13, %v3942_v62  ;;  %v3951_v28 = vsel %vm3939_vm4, %v3933_v5, %v3950_v21  ;;  %v8821_v57 = vmul.u32.u64.low %v3953_v54, %v3948_v23  ;;  %v8822_v27 = vmul.u32.u64.high %v3953_v54, %v3948_v23, %v8821_v57 }
 0x590   : > { %v3577_v26 = vsel %vm8800_vm14, %v8498_v1, %v8775_v18  ;;  %v5496_v63 = vmin.u32 %v3867_v51, %v8814_v10  ;;  %v3952_v30 = vsel %vm3938_vm8, %v3949_v22, %v3951_v28  ;;  %v4019_v53 = vadd.s32 1, %v5503_v47 }
 0x591   : > { %v10196_v12 = vshll.u32 %v8673_v52, %v8735_v2  ;;  %v3772_v49 = vor.u32 %v3771_v17, %v3770_v55  ;;  %v8834_v5 = vmul.u32.u64.low %v3953_v54, %v3952_v30  ;;  %v8835_v35 = vmul.u32.u64.high %v3953_v54, %v3952_v30, %v8834_v5 }
 0x592   : > { %v3673_v13 = vand.u32 2147483647, %v3672_v6  ;;  %v3869_v3 = vclz %v5496_v63  ;;  %v3944_v31 = vsel %vm3938_vm8, %v3941_v59, %v3943_v38  ;;  %vm4020_vm10 = vcmp.gt.s32.totalorder %v4019_v53, 0 }
 0x593   : > { %v3668_v33 = vor.u32 %v3667_v37, %v10196_v12  ;;  %v3777_v46 = vand.u32 2147483647, %v3776_v16  ;;  %v3963_v18 = vadd.s32 1, %v8822_v27  ;;  %v10197_v25 = vand.u32 2147483647, %v8718_v4 }
 0x594   : > { %v4021_v47 = vsel %vm4020_vm10, %v4019_v53, 0  ;;  %5896 = vcosq.f32 %v3577_v26  ;;  %v10198_v52 = vsub.s32 4, %v8657_v32  ;;  %v5497_v6 = vadd.s32 4294967294, %v3869_v3 }
 0x595   : > { %v4016_v43 = vand.u32 8388607, %v10197_v25  ;;  %v4023_v37 = vand.u32 31, %v4021_v47  ;;  %v3675_v60 = vcvt.s32.f32 %v3668_v33  ;;  %v3779_v55 = vcvt.s32.f32 %v3772_v49 }
 0x596   : > { %v8846_v2 = vsel %vm3595_vm0, %v10198_v52, %v8657_v32  ;;  %v3960_v17 = vmul.u32 %v3953_v54, %v3944_v31  ;;  %vm3962_vm7 = vc.u32 %v8835_v35, %v8821_v57  ;;  %5898 = vsinq.f32 %v3577_v26 }
 0x597   : > { %vm5498_vm15 = vcmp.lt.s32.totalorder %v5497_v6, 0  ;;  %v3964_v44 = vsel %vm3962_vm7, %v3963_v18, %v8822_v27  ;;  %v4024_v62 = vsub.s32 32, %v4023_v37  ;;  %v3676_v39 = vmul.f32 %v3675_v60, %v3673_v13 }
 0x598   : > { %v8851_v22 = vmul.f32 %v3779_v55, %v3777_v46  ;;  %v3965_v21 = vadd.s32 %v3964_v44, %v3960_v17  ;;  %v4017_v16 = vor.u32 8388608, %v4016_v43  ;;  %v8853_v32 = vsel %vm5498_vm15, 0, %v5497_v6 }
 0x599   : > { %v8855_v51 = vshrl.u32 %v4021_v47, 5  ;;  %v4032_v59 = vshll.u32 %v10157_v11, %v4023_v37  ;;  %v8860_v54 = vadd.f32 %v8519_v24, %v8708_v9  ;;  %v4027_v38 = vshrl.u32 %v10156_v58, %v4024_v62 }
 0x59a   : > { %v3966_v23 = vadd.s32 536870912, %v3965_v21  ;;  %v4030_v28 = vshrl.u32 %v10157_v11, %v4024_v62  ;;  %v4033_v27 = vshrl.u32 %v10158_v41, %v4024_v62  ;;  %v4026_v26 = vshll.u32 %v9991_v19, %v4023_v37 }
 0x59b   : > { %v4029_v63 = vshll.u32 %v10156_v58, %v4023_v37  ;;  %v4035_v30 = vshll.u32 %v10158_v41, %v4023_v37  ;;  %v4036_v53 = vshrl.u32 %v10159_v29, %v4024_v62  ;;  %v3677_v12 = vxor.u32 2147483648, %v3676_v39 }
 0x59c   : > { %v3781_v33 = vxor.u32 2147483648, %v8851_v22  ;;  %v8870_v24 = vshrl.u32 %v3966_v23, 30  ;;  %v4034_v9 = vor.u32 %v4033_v27, %v4032_v59  ;;  %v3877_v49 = vsub.s32 4294967266, %v8853_v32 }
 0x59d   : > { %v4028_v5 = vor.u32 %v4027_v38, %v4026_v26  ;;  %v4031_v13 = vor.u32 %v4030_v28, %v4029_v63  ;;  %v4037_v3 = vor.u32 %v4036_v53, %v4035_v30  ;;  %v10199_v31 = vand.u32 2147483647, %v8504_v0 }
 0x59e   : > { %v3968_v18 = vshll.u32 %v8870_v24, 30  ;;  %v4038_v25 = vshll.u32 %v10159_v29, %v4023_v37  ;;  %v4039_v43 = vshrl.u32 %v10160_v42, %v4024_v62  ;;  %v4057_v47 = vshll.u32 %v4017_v16, 8  ;;  %v8882_v52 = vpop.eup %5896 }
 0x59f   : > { %vm8875_vm12 = vcmp.le.f32.partialorder %v10199_v31, 0.7853982  ;;  %vm3699_vm1 = vcmp.lt.s32.totalorder %v8517_v36, 0  ;;  %v3873_v6 = vsub.s32 32, %v8853_v32  ;;  %v4025_v60 = vshrl.u32 %v9991_v19, %v4024_v62 }
 0x5a0   : > { %vm4044_vm9 = vcmp.lt.s32.totalorder %v8855_v51, 4  ;;  %v4116_v55 = vand.u32 2139095040, %v8860_v54  ;;  %v8889_v17 = vsub.s32 %v3965_v21, %v3968_v18  ;;  %v4040_v44 = vor.u32 %v4039_v43, %v4038_v25  ;;  %v8894_v16 = vpop.eup %5898 }
 0x5a1   : > { %vm4041_vm11 = vcmp.lt.s32.totalorder %v8855_v51, 1  ;;  %v4046_v37 = vsel %vm4044_vm9, %v4034_v9, 2102212464  ;;  %v3878_v59 = vadd.s32 127, %v3877_v49  ;;  %vm4043_vm6 = vcmp.lt.s32.totalorder %v8855_v51, 3 }
 0x5a2   : > { %v4049_v23 = vsel %vm4041_vm11, %v4028_v5, %v4031_v13  ;;  %v4050_v62 = vsel %vm4044_vm9, %v4037_v3, 920167782  ;;  %v10202_v38 = vand.u32 2147483647, %v8517_v36  ;;  %v3971_v28 = vsub.s32 0, %v8889_v17 }
 0x5a3   : > { %vm4042_vm4 = vcmp.lt.s32.totalorder %v8855_v51, 2  ;;  %v4051_v27 = vsel %vm4043_vm6, %v4034_v9, %v4050_v62  ;;  %v4053_v26 = vsel %vm4041_vm11, %v4031_v13, %v4034_v9  ;;  %v4045_v63 = vsel %vm4041_vm11, %v4025_v60, %v4028_v5 }
 0x5a4   : > { %vm8901_vm3 = vcmp.le.f32.partialorder %v10202_v38, 0.7853982  ;;  %v4047_v30 = vsel %vm4043_vm6, %v4031_v13, %v4046_v37  ;;  %v4052_v53 = vsel %vm4042_vm4, %v4049_v23, %v4051_v27  ;;  %v4054_v49 = vsel %vm4044_vm9, %v4040_v44, 1326507024 }
 0x5a5   : > { %v5500_v31 = vmin.u32 %v3971_v28, %v8889_v17  ;;  %v4055_v18 = vsel %vm4043_vm6, %v4037_v3, %v4054_v49  ;;  %v8912_v25 = vmul.u32.u64.low %v4057_v47, %v4052_v53  ;;  %v8913_v43 = vmul.u32.u64.high %v4057_v47, %v4052_v53, %v8912_v25 }
 0x5a6   : > { %v10205_v38 = vsel %vm8712_vm2, 0, %v8702_v20  ;;  %v3678_v9 = vsel %vm3595_vm0, %v3677_v12, %v3676_v39  ;;  %v4056_v5 = vsel %vm4042_vm4, %v4053_v26, %v4055_v18  ;;  %v4117_v13 = vshrl.u32 %v4116_v55, 23 }
 0x5a7   : > { %v8919_v62 = vadd.s32 3, %v10205_v38  ;;  %v3857_v60 = vadd.s32 %v8759_v50, %v8764_v40  ;;  %v3973_v3 = vclz %v5500_v31  ;;  %5900 = vcosq.f32 %v8732_v8 }
 0x5a8   : > { %v8927_v44 = vmul.u32.u64.low %v4057_v47, %v4056_v5  ;;  %v8928_v37 = vmul.u32.u64.high %v4057_v47, %v4056_v5, %v8927_v44  ;;  %v3682_v20 = vsel %vm8875_vm12, 0, %v8846_v2  ;;  %v4048_v48 = vsel %vm4042_vm4, %v4045_v63, %v4047_v30 }
 0x5a9   : > { %v5507_v39 = vadd.s32 4294967169, %v4117_v13  ;;  %v3782_v12 = vsel %vm3699_vm1, %v3781_v33, %v8851_v22  ;;  %v3875_v55 = vshrl.u32 %v3857_v60, %v3873_v6  ;;  %v3879_v40 = vshll.u32 %v3878_v59, 23 }
 0x5aa   : > { %v4067_v50 = vadd.s32 1, %v8913_v43  ;;  %v3681_v23 = vsel %vm8875_vm12, %v8504_v0, %v3678_v9  ;;  %v9968_v28 = vand.u32 2147483647, %v8860_v54  ;;  %v3575_v2 = vsub.s32 4, %v8616_v14 }
 0x5ab   : > { %v4123_v27 = vadd.s32 1, %v5507_v39  ;;  %v3874_v51 = vshll.u32 %v8814_v10, %v8853_v32  ;;  %v5501_v26 = vadd.s32 4294967294, %v3973_v3  ;;  %v4064_v63 = vmul.u32 %v4057_v47, %v4048_v48 }
 0x5ac   : > { %vm4066_vm2 = vc.u32 %v8928_v37, %v8912_v25  ;;  %5902 = vsinq.f32 %v8732_v8  ;;  %v3785_v22 = vsel %vm8901_vm3, %v8517_v36, %v3782_v12  ;;  %v8955_v6 = vor.u32 4788187, %v3879_v40 }
 0x5ad   : > { %v4068_v33 = vsel %vm4066_vm2, %v4067_v50, %v8913_v43  ;;  %vm4124_vm0 = vcmp.gt.s32.totalorder %v4123_v27, 0  ;;  %5904 = vcosq.f32 %v3681_v23  ;;  %v8953_v46 = vor.u32 %v3875_v55, %v3874_v51 }
 0x5ae   : > { %v4069_v59 = vadd.s32 %v4068_v33, %v4064_v63  ;;  %5906 = vsinq.f32 %v3681_v23  ;;  %v8957_v10 = vadd.s32 3, %v3682_v20  ;;  %v4120_v32 = vand.u32 8388607, %v9968_v28 }
 0x5af   : > { %v4125_v8 = vsel %vm4124_vm0, %v4123_v27, 0  ;;  %5908 = vcosq.f32 %v3785_v22  ;;  %vm5502_vm8 = vcmp.lt.s32.totalorder %v5501_v26, 0  ;;  %v3576_v30 = vsel %vm3491_vm13, %v3575_v2, %v8616_v14 }
 0x5b0   : > { %v4070_v47 = vadd.s32 536870912, %v4069_v59  ;;  %5910 = vsinq.f32 %v3785_v22  ;;  %v8966_v53 = vadd.s32 %v8821_v57, %v8835_v35  ;;  %v4127_v49 = vand.u32 31, %v4125_v8 }
 0x5b1   : > { %v8974_v5 = vpop.eup %5900  ;;  %v8976_v13 = vsel %vm5502_vm8, 0, %v5501_v26  ;;  %v4121_v14 = vor.u32 8388608, %v4120_v32  ;;  %v3578_v57 = vsel %vm8800_vm14, 0, %v3576_v30  ;;  %v8981_v35 = vadd.s32 %v8912_v25, %v8928_v37 }
 0x5b2   : > { %v8971_v38 = vshrl.u32 %v4070_v47, 30  ;;  %v4128_v60 = vsub.s32 32, %v4127_v49  ;;  %v4130_v44 = vshll.u32 %v9991_v19, %v4127_v49  ;;  %v3783_v20 = vsub.s32 4, %v8727_v61 }
 0x5b3   : > { %v4133_v39 = vshll.u32 %v10156_v58, %v4127_v49  ;;  %v3981_v45 = vsub.s32 4294967266, %v8976_v13  ;;  %v4126_v25 = vshrl.u32 %v4125_v8, 5  ;;  %v4136_v37 = vshll.u32 %v10157_v11, %v4127_v49 }
 0x5b4   : > { %v4072_v3 = vshll.u32 %v8971_v38, 30  ;;  %v4131_v48 = vshrl.u32 %v10156_v58, %v4128_v60  ;;  %v4134_v12 = vshrl.u32 %v10157_v11, %v4128_v60  ;;  %v4137_v55 = vshrl.u32 %v10158_v41, %v4128_v60 }
 0x5b5   : > { %v3977_v23 = vsub.s32 32, %v8976_v13  ;;  %v8997_v51 = vshll.u32 %v4121_v14, 8  ;;  %v4139_v33 = vshll.u32 %v10158_v41, %v4127_v49  ;;  %v4142_v8 = vshll.u32 %v10159_v29, %v4127_v49 }
 0x5b6   : > { %v8991_v40 = vsub.s32 %v4069_v59, %v4072_v3  ;;  %v8994_v50 = vpop.eup %5902  ;;  %v4132_v27 = vor.u32 %v4131_v48, %v4130_v44  ;;  %v4135_v2 = vor.u32 %v4134_v12, %v4133_v39  ;;  %v4138_v22 = vor.u32 %v4137_v55, %v4136_v37 }
 0x5b7   : > { %v8999_v26 = vpop.eup %5904  ;;  %v4140_v59 = vshrl.u32 %v10159_v29, %v4128_v60  ;;  %v4143_v47 = vshrl.u32 %v10160_v42, %v4128_v60  ;;  %v3582_v30 = vadd.s32 3, %v3578_v57  ;;  %v3784_v14 = vsel %vm3699_vm1, %v3783_v20, %v8727_v61 }
 0x5b8   : > { %v4075_v63 = vsub.s32 0, %v8991_v40  ;;  %v9004_v32 = vpop.eup %5906  ;;  %v3982_v44 = vadd.s32 127, %v3981_v45  ;;  %vm4145_vm13 = vcmp.lt.s32.totalorder %v4126_v25, 1  ;;  %v4129_v55 = vshrl.u32 %v9991_v19, %v4128_v60 }
 0x5b9   : > { %v9011_v3 = vpop.eup %5908  ;;  %v4141_v39 = vor.u32 %v4140_v59, %v4139_v33  ;;  %v4144_v37 = vor.u32 %v4143_v47, %v4142_v8  ;;  %vm4148_vm14 = vcmp.lt.s32.totalorder %v4126_v25, 4  ;;  %v4153_v49 = vsel %vm4145_vm13, %v4132_v27, %v4135_v2 }
 0x5ba   : > { %v5504_v48 = vmin.u32 %v4075_v63, %v8991_v40  ;;  %v5911_v12 = vpop.eup %5910  ;;  %vm4147_vm10 = vcmp.lt.s32.totalorder %v4126_v25, 3  ;;  %v4150_v57 = vsel %vm4148_vm14, %v4138_v22, 2102212464  ;;  %vm4146_vm7 = vcmp.lt.s32.totalorder %v4126_v25, 2 }
 0x5bb   : > { %v4154_v43 = vsel %vm4148_vm14, %v4141_v39, 920167782  ;;  %v4157_v61 = vsel %vm4145_vm13, %v4135_v2, %v4138_v22  ;;  %v3583_v20 = vand.u32 3, %v3582_v30  ;;  %v4149_v45 = vsel %vm4145_vm13, %v4129_v55, %v4132_v27 }
 0x5bc   : > { %v4077_v28 = vclz %v5504_v48  ;;  %v4155_v18 = vsel %vm4147_vm10, %v4138_v22, %v4154_v43  ;;  %v4158_v33 = vsel %vm4148_vm14, %v4144_v37, 1326507024  ;;  %v4151_v59 = vsel %vm4147_vm10, %v4135_v2, %v4150_v57 }
 0x5bd   : > { %v4156_v63 = vsel %vm4146_vm7, %v4153_v49, %v4155_v18  ;;  %v4159_v31 = vsel %vm4147_vm10, %v4141_v39, %v4158_v33  ;;  %v3978_v47 = vshll.u32 %v8889_v17, %v8976_v13  ;;  %v3979_v27 = vshrl.u32 %v8966_v53, %v3977_v23 }
 0x5be   : > { %v5505_v9 = vadd.s32 4294967294, %v4077_v28  ;;  %v9017_v60 = vmul.u32.u64.low %v8997_v51, %v4156_v63  ;;  %v9018_v8 = vmul.u32.u64.high %v8997_v51, %v4156_v63, %v9017_v60  ;;  %v4160_v43 = vsel %vm4146_vm7, %v4157_v61, %v4159_v31 }
 0x5bf   : > { %v3786_v28 = vsel %vm8901_vm3, 0, %v3784_v14  ;;  %v9028_v2 = vmul.u32.u64.low %v8997_v51, %v4160_v43  ;;  %v9029_v22 = vmul.u32.u64.high %v8997_v51, %v4160_v43, %v9028_v2  ;;  %vm3581_vm12 = vweird.f32 %v8498_v1 }
 0x5c0   : > { %vm5506_vm15 = vcmp.lt.s32.totalorder %v5505_v9, 0  ;;  %vm3789_vm1 = vweird.f32 %v8517_v36  ;;  %v3983_v30 = vshll.u32 %v3982_v44, 23  ;;  %v4152_v17 = vsel %vm4146_vm7, %v4149_v45, %v4151_v59 }
 0x5c1   : > { %v4080_v18 = vsel %vm5506_vm15, 0, %v5505_v9  ;;  %v3794_v13 = vxor.u32 2147483648, %v5911_v12  ;;  %v4171_v31 = vadd.s32 1, %v9018_v8  ;;  %vm3585_vm9 = vcmp.eq.s32.totalorder %v3583_v20, 0 }
 0x5c2   : > { %v4085_v48 = vsub.s32 4294967266, %v4080_v18  ;;  %vm3588_vm11 = vcmp.eq.s32.totalorder %v3583_v20, 2  ;;  %v3790_v21 = vadd.s32 3, %v3786_v28  ;;  %v10206_v9 = vxor.u32 2147483648, %v8894_v16 }
 0x5c3   : > { %v10207_v14 = vxor.u32 2147483648, %v8882_v52  ;;  %v3797_v44 = vxor.u32 2147483648, %v9011_v3  ;;  %v3980_v55 = vor.u32 %v3979_v27, %v3978_v47  ;;  %v4168_v25 = vmul.u32 %v8997_v51, %v4152_v17 }
 0x5c4   : > { %v4086_v53 = vadd.s32 127, %v4085_v48  ;;  %v3587_v23 = vsel %vm3585_vm9, %v8882_v52, %v10206_v9  ;;  %vm4170_vm6 = vc.u32 %v9029_v22, %v9017_v60  ;;  %v3791_v37 = vand.u32 3, %v3790_v21 }
 0x5c5   : > { %v3590_v39 = vsel %vm3588_vm11, %v10207_v14, %v8894_v16  ;;  %v3984_v49 = vor.u32 4788187, %v3983_v30  ;;  %v4081_v57 = vsub.s32 32, %v4080_v18  ;;  %v4172_v61 = vsel %vm4170_vm6, %v4171_v31, %v9018_v8 }
 0x5c6   : > { %vm3584_vm3 = vcmp.lt.s32.totalorder %v3583_v20, 2  ;;  %v4173_v45 = vadd.s32 %v4172_v61, %v4168_v25  ;;  %vm3793_vm4 = vcmp.eq.s32.totalorder %v3791_v37, 0  ;;  %vm3796_vm2 = vcmp.eq.s32.totalorder %v3791_v37, 2 }
 0x5c7   : > { %v3591_v63 = vsel %vm3584_vm3, %v3587_v23, %v3590_v39  ;;  %v4087_v52 = vshll.u32 %v4086_v53, 23  ;;  %vm3792_vm0 = vcmp.lt.s32.totalorder %v3791_v37, 2  ;;  %v3795_v16 = vsel %vm3793_vm4, %v9011_v3, %v3794_v13 }
 0x5c8   : > { %v3798_v33 = vsel %vm3796_vm2, %v3797_v44, %v5911_v12  ;;  %v4174_v59 = vadd.s32 536870912, %v4173_v45  ;;  %v3479_v47 = vand.u32 3, %v8919_v62  ;;  %v3482_v43 = vxor.u32 2147483648, %v8994_v50 }
 0x5c9   : > { %v3799_v51 = vsel %vm3792_vm0, %v3795_v16, %v3798_v33  ;;  %v4083_v28 = vshrl.u32 %v8981_v35, %v4081_v57  ;;  %v3592_v20 = vsel %vm3581_vm12, nan, %v3591_v63  ;;  %v3485_v27 = vxor.u32 2147483648, %v8974_v5 }
 0x5ca   : > { %v3800_v8 = vsel %vm3789_vm1, nan, %v3799_v51  ;;  %v4082_v2 = vshll.u32 %v8991_v40, %v4080_v18  ;;  %v9056_v3 = vshrl.u32 %v4174_v59, 30  ;;  %vm3481_vm8 = vcmp.eq.s32.totalorder %v3479_v47, 0 }
 0x5cb   : > { %v5574_v12 = vpack.c.bf16 %v3800_v8, %v3592_v20  ;;  %v4088_v30 = vor.u32 4788187, %v4087_v52  ;;  %v3483_v62 = vsel %vm3481_vm8, %v8974_v5, %v3482_v43  ;;  %vm3484_vm13 = vcmp.eq.s32.totalorder %v3479_v47, 2 }
 0x5cc   : > { %v3687_v35 = vand.u32 3, %v8957_v10  ;;  %v4176_v1 = vshll.u32 %v9056_v3, 30  ;;  %v3486_v36 = vsel %vm3484_vm13, %v3485_v27, %v8994_v50  ;;  %v3690_v48 = vxor.u32 2147483648, %v9004_v32 }
 0x5cd   : > { %5575 = vmatprep.subr.bf16.mxu0 %v5574_v12  ;;  %v3693_v17 = vxor.u32 2147483648, %v8999_v26  ;;  %v3985_v40 = vand.u32 2147483647, %v3984_v49  ;;  %v4084_v18 = vor.u32 %v4083_v28, %v4082_v2  ;;  %vm3480_vm14 = vcmp.lt.s32.totalorder %v3479_v47, 2 }
 0x5ce   : > { %vm3689_vm10 = vcmp.eq.s32.totalorder %v3687_v35, 0  ;;  %v4177_v13 = vsub.s32 %v4173_v45, %v4176_v1  ;;  %v3487_v31 = vsel %vm3480_vm14, %v3483_v62, %v3486_v36  ;;  %vm3692_vm7 = vcmp.eq.s32.totalorder %v3687_v35, 2 }
 0x5cf   : > { %v3691_v5 = vsel %vm3689_vm10, %v8999_v26, %v3690_v48  ;;  %v3987_v21 = vcvt.s32.f32 %v3980_v55  ;;  %v4089_v10 = vand.u32 2147483647, %v4088_v30  ;;  %vm3688_vm15 = vcmp.lt.s32.totalorder %v3687_v35, 2 }
 0x5d0   : > { %v3694_v53 = vsel %vm3692_vm7, %v3693_v17, %v9004_v32  ;;  %v4179_v9 = vsub.s32 0, %v4177_v13  ;;  %vm3477_vm12 = vweird.f32 %v8496_v34  ;;  %vm3685_vm1 = vweird.f32 %v8504_v0 }
 0x5d1   : > { %v3695_v50 = vsel %vm3688_vm15, %v3691_v5, %v3694_v53  ;;  %v10208_v23 = vand.u32 2147483647, %v8955_v6  ;;  %v10209_v14 = vcvt.s32.f32 %v8953_v46  ;;  %v4091_v44 = vcvt.s32.f32 %v4084_v18 }
 0x5d2   : > { %v3488_v25 = vsel %vm3477_vm12, nan, %v3487_v31  ;;  %v3696_v26 = vsel %vm3685_vm1, nan, %v3695_v50  ;;  %v3988_v37 = vmul.f32 %v3987_v21, %v3985_v40  ;;  %v5508_v55 = vmin.u32 %v4179_v9, %v4177_v13 }
 0x5d3   : > { %v3884_v39 = vmul.f32 %v10209_v14, %v10208_v23  ;;  %v5576_v49 = vpack.c.bf16 %v3696_v26, %v3488_v25  ;;  %v4092_v57 = vmul.f32 %v4091_v44, %v4089_v10  ;;  %vm3803_vm9 = vcmp.lt.s32.totalorder %v8653_v15, 0 }
 0x5d4   : > { %v4181_v61 = vclz %v5508_v55  ;;  %v3989_v45 = vxor.u32 2147483648, %v3988_v37  ;;  %vm3907_vm6 = vcmp.lt.s32.totalorder %v8668_v56, 0  ;;  %vm4011_vm3 = vcmp.lt.s32.totalorder %v8718_v4, 0 }
 0x5d5   : > { %5577 = vmatpush1.bf16.msra.mxu0 %v5576_v49  ;;  %v3885_v32 = vxor.u32 2147483648, %v3884_v39  ;;  %v4093_v63 = vxor.u32 2147483648, %v4092_v57  ;;  %v4169_v52 = vadd.s32 %v9017_v60, %v9029_v22  ;;  %v10210_v59 = vand.u32 2147483647, %v8653_v15 }
 0x5d6   : > { %v5509_v34 = vadd.s32 4294967294, %v4181_v61  ;;  %v3990_v6 = vsel %vm3907_vm6, %v3989_v45, %v3988_v37  ;;  %v10213_v47 = vand.u32 2147483647, %v8668_v56  ;;  %v10216_v2 = vand.u32 2147483647, %v8718_v4 }
 0x5d7   : > { %v3886_v0 = vsel %vm3803_vm9, %v3885_v32, %v3884_v39  ;;  %vm9083_vm4 = vcmp.le.f32.partialorder %v10210_v59, 0.7853982  ;;  %v4094_v28 = vsel %vm4011_vm3, %v4093_v63, %v4092_v57  ;;  %v4095_v1 = vsub.s32 4, %v8971_v38 }
 0x5d8   : > { %vm5510_vm11 = vcmp.lt.s32.totalorder %v5509_v34, 0  ;;  %vm9089_vm2 = vcmp.le.f32.partialorder %v10213_v47, 0.7853982  ;;  %v3889_v60 = vsel %vm9083_vm4, %v8653_v15, %v3886_v0  ;;  %vm9103_vm0 = vcmp.le.f32.partialorder %v10216_v2, 0.7853982 }
 0x5d9   : > { %v4184_v46 = vsel %vm5510_vm11, 0, %v5509_v34  ;;  %v3993_v27 = vsel %vm9089_vm2, %v8668_v56, %v3990_v6  ;;  %v4097_v30 = vsel %vm9103_vm0, %v8718_v4, %v4094_v28  ;;  %5912 = vcosq.f32 %v3889_v60 }
 0x5da   : > { %v4185_v16 = vsub.s32 32, %v4184_v46  ;;  %v4189_v33 = vsub.s32 4294967266, %v4184_v46  ;;  %v4186_v22 = vshll.u32 %v4177_v13, %v4184_v46  ;;  %5914 = vcosq.f32 %v3993_v27 }
 0x5db   : > { %5916 = vcosq.f32 %v4097_v30  ;;  %v3991_v48 = vsub.s32 4, %v8870_v24  ;;  %v3887_v17 = vsub.s32 4, %v8807_v7  ;;  %v4096_v13 = vsel %vm4011_vm3, %v4095_v1, %v8971_v38 }
 0x5dc   : > { %v4187_v20 = vshrl.u32 %v4169_v52, %v4185_v16  ;;  %v4190_v8 = vadd.s32 127, %v4189_v33  ;;  %5918 = vsinq.f32 %v4097_v30  ;;  %v4199_v5 = vsub.s32 4, %v9056_v3 }
 0x5dd   : > { %5920 = vsinq.f32 %v3993_v27  ;;  %v3992_v21 = vsel %vm3907_vm6, %v3991_v48, %v8870_v24  ;;  %v3888_v10 = vsel %vm3803_vm9, %v3887_v17, %v8807_v7  ;;  %v4098_v9 = vsel %vm9103_vm0, 0, %v4096_v13 }
 0x5de   : > { %v4188_v62 = vor.u32 %v4187_v20, %v4186_v22  ;;  %v4191_v35 = vshll.u32 %v4190_v8, 23  ;;  %5922 = vsinq.f32 %v3889_v60  ;;  %vm4115_vm8 = vcmp.lt.s32.totalorder %v8860_v54, 0 }
 0x5df   : > { %v10219_v50 = vand.u32 2147483647, %v8860_v54  ;;  %v3994_v24 = vsel %vm9089_vm2, 0, %v3992_v21  ;;  %v4200_v14 = vsel %vm4115_vm8, %v4199_v5, %v9056_v3  ;;  %v3890_v7 = vsel %vm9083_vm4, 0, %v3888_v10  ;;  %v4217_v21 = vld [vmem:[%s9845_s7] sm:$0xff]  ;;  %v4228_v10 = vpop.permute.xlu0 %4227 }
 0x5e0   : > { %v4192_v36 = vor.u32 4788187, %v4191_v35  ;;  %v4195_v18 = vcvt.s32.f32 %v4188_v62  ;;  %v4102_v26 = vadd.s32 3, %v4098_v9  ;;  %v3998_v55 = vadd.s32 3, %v3994_v24 }
 0x5e1   : > { %vm9128_vm13 = vcmp.le.f32.partialorder %v10219_v50, 0.7853982  ;;  %v3894_v61 = vadd.s32 3, %v3890_v7  ;;  %vm4101_vm0 = vweird.f32 %v8718_v4  ;;  %v4218_v4 = vld [vmem:[%s9845_s7 + $0x8] sm:$0xff] }
 0x5e2   : > { %v4193_v40 = vand.u32 2147483647, %v4192_v36  ;;  %v4202_v49 = vsel %vm9128_vm13, 0, %v4200_v14  ;;  %v4103_v34 = vand.u32 3, %v4102_v26  ;;  %v3999_v63 = vand.u32 3, %v3998_v55  ;;  %v4233_v14 = vpop.permute.xlu1 %4232 }
 0x5e3   : > { %v5913_v39 = vpop.eup %5912  ;;  %v4206_v45 = vadd.s32 3, %v4202_v49  ;;  %v3895_v16 = vand.u32 3, %v3894_v61 }
 0x5e4   : > { %v4196_v31 = vmul.f32 %v4195_v18, %v4193_v40  ;;  %v5915_v25 = vpop.eup %5914  ;;  %v3901_v59 = vxor.u32 2147483648, %v5913_v39  ;;  %vm4105_vm14 = vcmp.eq.s32.totalorder %v4103_v34, 0  ;;  %vm4108_vm10 = vcmp.eq.s32.totalorder %v4103_v34, 2 }
 0x5e5   : > { %v5917_v37 = vpop.eup %5916  ;;  %v4005_v52 = vxor.u32 2147483648, %v5915_v25  ;;  %v4207_v51 = vand.u32 3, %v4206_v45  ;;  %vm4001_vm7 = vcmp.eq.s32.totalorder %v3999_v63, 0  ;;  %vm4004_vm15 = vcmp.eq.s32.totalorder %v3999_v63, 2 }
 0x5e6   : > { %v4197_v53 = vxor.u32 2147483648, %v4196_v31  ;;  %v5919_v57 = vpop.eup %5918  ;;  %v4109_v46 = vxor.u32 2147483648, %v5917_v37  ;;  %vm3897_vm12 = vcmp.eq.s32.totalorder %v3895_v16, 0  ;;  %vm3900_vm1 = vcmp.eq.s32.totalorder %v3895_v16, 2 }
 0x5e7   : > { %v5921_v3 = vpop.eup %5920  ;;  %v4106_v0 = vxor.u32 2147483648, %v5919_v57  ;;  %vm4104_vm9 = vcmp.lt.s32.totalorder %v4103_v34, 2  ;;  %vm4000_vm11 = vcmp.lt.s32.totalorder %v3999_v63, 2  ;;  %vm4212_vm6 = vcmp.eq.s32.totalorder %v4207_v51, 2 }
 0x5e8   : > { %v4198_v23 = vsel %vm4115_vm8, %v4197_v53, %v4196_v31  ;;  %v5923_v32 = vpop.eup %5922  ;;  %v4002_v6 = vxor.u32 2147483648, %v5921_v3  ;;  %v4110_v43 = vsel %vm4108_vm10, %v4109_v46, %v5919_v57  ;;  %v4006_v22 = vsel %vm4004_vm15, %v4005_v52, %v5921_v3 }
 0x5e9   : > { %v4201_v44 = vsel %vm9128_vm13, %v8860_v54, %v4198_v23  ;;  %v3898_v33 = vxor.u32 2147483648, %v5923_v32  ;;  %v4107_v47 = vsel %vm4105_vm14, %v5917_v37, %v4106_v0  ;;  %v3902_v2 = vsel %vm3900_vm1, %v3901_v59, %v5923_v32 }
 0x5ea   : > { %5924 = vcosq.f32 %v4201_v44  ;;  %v4003_v60 = vsel %vm4001_vm7, %v5915_v25, %v4002_v6  ;;  %v4111_v30 = vsel %vm4104_vm9, %v4107_v47, %v4110_v43  ;;  %vm4209_vm3 = vcmp.eq.s32.totalorder %v4207_v51, 0 }
 0x5eb   : > { %5926 = vsinq.f32 %v4201_v44  ;;  %v3899_v27 = vsel %vm3897_vm12, %v5913_v39, %v3898_v33  ;;  %v4007_v62 = vsel %vm4000_vm11, %v4003_v60, %v4006_v22  ;;  %vm3896_vm4 = vcmp.lt.s32.totalorder %v3895_v16, 2 }
 0x5ec   : > { %vm4208_vm2 = vcmp.lt.s32.totalorder %v4207_v51, 2  ;;  %v3903_v36 = vsel %vm3896_vm4, %v3899_v27, %v3902_v2  ;;  %vm3997_vm8 = vweird.f32 %v8668_v56  ;;  %vm4205_vm13 = vweird.f32 %v8860_v54  ;;  %v4220_v54 = vld [vmem:[%s9845_s7 + $0x18] sm:$0xff] }
 0x5ed   : > { %v4112_v17 = vsel %vm4101_vm0, nan, %v4111_v30  ;;  %v4008_v40 = vsel %vm3997_vm8, nan, %v4007_v62  ;;  %vm3893_vm14 = vweird.f32 %v8653_v15  ;;  %v10222_v56 = vmov 0.0   ;;  %v4219_v15 = vld [vmem:[%s9845_s7 + $0x10] sm:$0xff] }
 0x5ee   : > { %v3904_v31 = vsel %vm3893_vm14, nan, %v3903_v36 }
 0x5ef   : > { %v5580_v5 = vpack.c.bf16 %v4112_v17, %v3904_v31 }
 0x5f4   : > { %v5925_v28 = vpop.eup %5924 }
 0x5f5   : > { %v5927_v20 = vpop.eup %5926  ;;  %v4213_v8 = vxor.u32 2147483648, %v5925_v28 }
 0x5f6   : > { %v4210_v12 = vxor.u32 2147483648, %v5927_v20 }
 0x5f7   : > { %v4214_v35 = vsel %vm4212_vm6, %v4213_v8, %v5927_v20 }
 0x5f8   : > { %v4211_v1 = vsel %vm4209_vm3, %v5925_v28, %v4210_v12 }
 0x5f9   : > { %v4215_v48 = vsel %vm4208_vm2, %v4211_v1, %v4214_v35 }
 0x5fa   : > { %v4216_v18 = vsel %vm4205_vm13, nan, %v4215_v48 }
 0x5fb   : > { %v5578_v13 = vpack.c.bf16 %v4216_v18, %v4008_v40 }
 0x5fd   : > { %5579 = vmatprep.subr.bf16.mxu0 %v5578_v13 }
 0x5fe   : > { %5581 = vmatpush1.bf16.msra.mxu0 %v5580_v5 }
 0x601   : > { %5511 = vmatmul.mubr.msk.f32.vlgmr.msra.gmra.mrb[16].mxu0 %vm3283_vm5, %v4217_v21 }
 0x602   : > { %4327 = vmatprep.mubr.f32.mxu0 %v10222_v56 }
 0x605   : > { %5512 = vmatmul.mubr.msk.f32.gmra.mrb[18].mxu0 %vm3283_vm5, %v4218_v4 }
 0x606   : > { %4333 = vmatprep.mubr.f32.mxu0 %v10222_v56 }
 0x609   : > { %5513 = vmatmul.mubr.msk.f32.gmra.mrb[20].mxu0 %vm3283_vm5, %v4219_v15 }
 0x60a   : > { %4339 = vmatprep.mubr.f32.mxu0 %v10222_v56 }
 0x60d   : > { %5514 = vmatmul.mubr.msk.f32.gmra.mrb[22].mxu0 %vm3283_vm5, %v4220_v54 }
 0x6d4   : > { %v4323_v53 = vpop.f32.mrb[16].mxu0 }
 0x6d5   : > { %v9165_v9 = vadd.f32 %v4323_v53, %v4228_v10  ;;  %v4325_v50 = vpop.f32.mrb[17].mxu0 }
 0x6d6   : > { %v9167_v38 = vadd.f32 %v4325_v50, %v4228_v10 }
 0x6d7   : > { %v4346_v23 = vand.u32 2147483647, %v9165_v9  ;;  %v4349_v24 = vand.u32 2139095040, %v9165_v9 }
 0x6d8   : > { %v4450_v39 = vand.u32 2147483647, %v9167_v38  ;;  %v4453_v7 = vand.u32 2139095040, %v9167_v38  ;;  %v4329_v44 = vpop.f32.mrb[18].mxu0 }
 0x6d9   : > { %v4350_v25 = vshrl.u32 %v4349_v24, 23  ;;  %v9173_v26 = vadd.f32 %v4329_v44, %v4233_v14  ;;  %v4331_v37 = vpop.f32.mrb[19].mxu0  ;;  %v4353_v55 = vand.u32 8388607, %v4346_v23 }
 0x6da   : > { %v4454_v49 = vshrl.u32 %v4453_v7, 23  ;;  %v4457_v57 = vand.u32 8388607, %v4450_v39  ;;  %v9186_v28 = vadd.f32 %v4331_v37, %v4233_v14 }
 0x6db   : > { %v5515_v61 = vadd.s32 4294967169, %v4350_v25  ;;  %v4557_v32 = vand.u32 2139095040, %v9173_v26  ;;  %v4354_v63 = vor.u32 8388608, %v4353_v55  ;;  %v9972_v27 = vand.u32 2147483647, %v9173_v26 }
 0x6dc   : > { %v5519_v3 = vadd.s32 4294967169, %v4454_v49  ;;  %v9180_v45 = vpop.f32.mrb[20].mxu0  ;;  %v4458_v0 = vor.u32 8388608, %v4457_v57 }
 0x6dd   : > { %v4356_v34 = vadd.s32 1, %v5515_v61  ;;  %v4558_v6 = vshrl.u32 %v4557_v32, 23  ;;  %v9182_v52 = vpop.f32.mrb[21].mxu0  ;;  %v9190_v22 = vshll.u32 %v4354_v63, 8 }
 0x6de   : > { %v4460_v46 = vadd.s32 1, %v5519_v3  ;;  %v9194_v8 = vshll.u32 %v4458_v0, 8 }
 0x6df   : > { %vm4357_vm10 = vcmp.gt.s32.totalorder %v4356_v34, 0  ;;  %v5523_v33 = vadd.s32 4294967169, %v4558_v6 }
 0x6e0   : > { %v4358_v16 = vsel %vm4357_vm10, %v4356_v34, 0  ;;  %vm4461_vm7 = vcmp.gt.s32.totalorder %v4460_v46, 0  ;;  %v9184_v59 = vpop.f32.mrb[22].mxu0 }
 0x6e1   : > { %v4359_v51 = vshrl.u32 %v4358_v16, 5  ;;  %v4360_v47 = vand.u32 31, %v4358_v16  ;;  %v4462_v43 = vsel %vm4461_vm7, %v4460_v46, 0  ;;  %v9188_v60 = vpop.f32.mrb[23].mxu0  ;;  %v9198_v62 = vadd.s32 1, %v5523_v33 }
 0x6e2   : > { %v9192_v20 = vshrl.u32 %v4462_v43, 5  ;;  %v4464_v30 = vand.u32 31, %v4462_v43 }
 0x6e3   : > { %v4361_v2 = vsub.s32 32, %v4360_v47  ;;  %v4363_v12 = vshll.u32 %v9991_v19, %v4360_v47  ;;  %v4366_v35 = vshll.u32 %v10156_v58, %v4360_v47  ;;  %v4369_v1 = vshll.u32 %v10157_v11, %v4360_v47 }
 0x6e4   : > { %v4372_v36 = vshll.u32 %v10158_v41, %v4360_v47  ;;  %v4375_v48 = vshll.u32 %v10159_v29, %v4360_v47  ;;  %vm4378_vm15 = vcmp.lt.s32.totalorder %v4359_v51, 1  ;;  %vm4379_vm12 = vcmp.lt.s32.totalorder %v4359_v51, 2 }
 0x6e5   : > { %v4364_v17 = vshrl.u32 %v10156_v58, %v4361_v2  ;;  %v4367_v40 = vshrl.u32 %v10157_v11, %v4361_v2  ;;  %v4370_v18 = vshrl.u32 %v10158_v41, %v4361_v2  ;;  %v4362_v13 = vshrl.u32 %v9991_v19, %v4361_v2 }
 0x6e6   : > { %v4373_v31 = vshrl.u32 %v10159_v29, %v4361_v2  ;;  %v4376_v5 = vshrl.u32 %v10160_v42, %v4361_v2  ;;  %v4465_v15 = vsub.s32 32, %v4464_v30  ;;  %vm4380_vm1 = vcmp.lt.s32.totalorder %v4359_v51, 3 }
 0x6e7   : > { %v4365_v21 = vor.u32 %v4364_v17, %v4363_v12  ;;  %v4368_v56 = vor.u32 %v4367_v40, %v4366_v35  ;;  %v4371_v4 = vor.u32 %v4370_v18, %v4369_v1  ;;  %vm4381_vm9 = vcmp.lt.s32.totalorder %v4359_v51, 4 }
 0x6e8   : > { %v4374_v54 = vor.u32 %v4373_v31, %v4372_v36  ;;  %v4377_v10 = vor.u32 %v4376_v5, %v4375_v48  ;;  %v4467_v37 = vshll.u32 %v9991_v19, %v4464_v30  ;;  %v4468_v57 = vshrl.u32 %v10156_v58, %v4465_v15 }
 0x6e9   : > { %v4382_v53 = vsel %vm4378_vm15, %v4362_v13, %v4365_v21  ;;  %v4383_v50 = vsel %vm4381_vm9, %v4371_v4, 2102212464  ;;  %v4386_v24 = vsel %vm4378_vm15, %v4365_v21, %v4368_v56  ;;  %v4390_v14 = vsel %vm4378_vm15, %v4368_v56, %v4371_v4 }
 0x6ea   : > { %v4384_v7 = vsel %vm4380_vm1, %v4368_v56, %v4383_v50  ;;  %v4387_v44 = vsel %vm4381_vm9, %v4374_v54, 920167782  ;;  %v4391_v25 = vsel %vm4381_vm9, %v4377_v10, 1326507024  ;;  %v4470_v61 = vshll.u32 %v10156_v58, %v4464_v30 }
 0x6eb   : > { %v4388_v55 = vsel %vm4380_vm1, %v4371_v4, %v4387_v44  ;;  %v4392_v49 = vsel %vm4380_vm1, %v4374_v54, %v4391_v25  ;;  %v4385_v3 = vsel %vm4379_vm12, %v4382_v53, %v4384_v7  ;;  %v4471_v63 = vshrl.u32 %v10157_v11, %v4465_v15 }
 0x6ec   : > { %v4389_v32 = vsel %vm4379_vm12, %v4386_v24, %v4388_v55  ;;  %v4393_v34 = vsel %vm4379_vm12, %v4390_v14, %v4392_v49  ;;  %v4469_v33 = vor.u32 %v4468_v57, %v4467_v37  ;;  %v4473_v43 = vshll.u32 %v10157_v11, %v4464_v30 }
 0x6ed   : > { %v9221_v0 = vmul.u32.u64.low %v9190_v22, %v4393_v34  ;;  %v9222_v46 = vmul.u32.u64.high %v9190_v22, %v4393_v34, %v9221_v0  ;;  %v9225_v6 = vmul.u32.u64.low %v9190_v22, %v4389_v32  ;;  %v9226_v16 = vmul.u32.u64.high %v9190_v22, %v4389_v32, %v9225_v6 }
 0x6ee   : > { %v4472_v47 = vor.u32 %v4471_v63, %v4470_v61  ;;  %v4474_v2 = vshrl.u32 %v10158_v41, %v4465_v15  ;;  %v4466_v51 = vshrl.u32 %v9991_v19, %v4465_v15  ;;  %v4476_v12 = vshll.u32 %v10158_v41, %v4464_v30 }
 0x6ef   : > { %v4477_v35 = vshrl.u32 %v10159_v29, %v4465_v15  ;;  %v4480_v1 = vshrl.u32 %v10160_v42, %v4465_v15  ;;  %v4401_v36 = vmul.u32 %v9190_v22, %v4385_v3  ;;  %v4479_v17 = vshll.u32 %v10159_v29, %v4464_v30 }
 0x6f0   : > { %v4475_v48 = vor.u32 %v4474_v2, %v4473_v43  ;;  %vm4482_vm11 = vcmp.lt.s32.totalorder %v9192_v20, 1  ;;  %vm4403_vm6 = vc.u32 %v9222_v46, %v9225_v6  ;;  %v4404_v40 = vadd.s32 1, %v9226_v16 }
 0x6f1   : > { %v4478_v18 = vor.u32 %v4477_v35, %v4476_v12  ;;  %vm4483_vm3 = vcmp.lt.s32.totalorder %v9192_v20, 2  ;;  %v4481_v13 = vor.u32 %v4480_v1, %v4479_v17  ;;  %vm4484_vm4 = vcmp.lt.s32.totalorder %v9192_v20, 3 }
 0x6f2   : > { %vm4485_vm2 = vcmp.lt.s32.totalorder %v9192_v20, 4  ;;  %v4490_v31 = vsel %vm4482_vm11, %v4469_v33, %v4472_v47  ;;  %v4405_v22 = vsel %vm4403_vm6, %v4404_v40, %v9226_v16  ;;  %v4494_v21 = vsel %vm4482_vm11, %v4472_v47, %v4475_v48 }
 0x6f3   : > { %v4487_v5 = vsel %vm4485_vm2, %v4475_v48, 2102212464  ;;  %v4491_v30 = vsel %vm4485_vm2, %v4478_v18, 920167782  ;;  %v4406_v56 = vadd.s32 %v4405_v22, %v4401_v36  ;;  %v4486_v4 = vsel %vm4482_vm11, %v4466_v51, %v4469_v33 }
 0x6f4   : > { %v4492_v15 = vsel %vm4484_vm4, %v4475_v48, %v4491_v30  ;;  %v4495_v54 = vsel %vm4485_vm2, %v4481_v13, 1326507024  ;;  %v4488_v10 = vsel %vm4484_vm4, %v4472_v47, %v4487_v5  ;;  %vm4565_vm0 = vcmp.gt.s32.totalorder %v9198_v62, 0 }
 0x6f5   : > { %v4493_v53 = vsel %vm4483_vm3, %v4490_v31, %v4492_v15  ;;  %v4496_v50 = vsel %vm4484_vm4, %v4478_v18, %v4495_v54  ;;  %v4407_v24 = vadd.s32 536870912, %v4406_v56  ;;  %v4561_v55 = vand.u32 8388607, %v9972_v27 }
 0x6f6   : > { %v4497_v14 = vsel %vm4483_vm3, %v4494_v21, %v4496_v50  ;;  %v9251_v7 = vmul.u32.u64.low %v9194_v8, %v4493_v53  ;;  %v9252_v44 = vmul.u32.u64.high %v9194_v8, %v4493_v53, %v9251_v7  ;;  %v4566_v49 = vsel %vm4565_vm0, %v9198_v62, 0 }
 0x6f7   : > { %v9256_v25 = vmul.u32.u64.low %v9194_v8, %v4497_v14  ;;  %v9257_v37 = vmul.u32.u64.high %v9194_v8, %v4497_v14, %v9256_v25  ;;  %v9262_v57 = vshrl.u32 %v4407_v24, 30  ;;  %v4489_v61 = vsel %vm4483_vm3, %v4486_v4, %v4488_v10 }
 0x6f8   : > { %v4568_v3 = vand.u32 31, %v4566_v49  ;;  %v4661_v32 = vand.u32 2139095040, %v9186_v28  ;;  %v4508_v63 = vadd.s32 1, %v9252_v44  ;;  %v4505_v16 = vmul.u32 %v9194_v8, %v4489_v61 }
 0x6f9   : > { %v4409_v34 = vshll.u32 %v9262_v57, 30  ;;  %vm4507_vm8 = vc.u32 %v9257_v37, %v9251_v7  ;;  %v4562_v33 = vor.u32 8388608, %v4561_v55  ;;  %v4567_v1 = vshrl.u32 %v4566_v49, 5 }
 0x6fa   : > { %v4569_v0 = vsub.s32 32, %v4568_v3  ;;  %v4509_v47 = vsel %vm4507_vm8, %v4508_v63, %v9252_v44  ;;  %v4662_v20 = vshrl.u32 %v4661_v32, 23  ;;  %v4571_v2 = vshll.u32 %v9991_v19, %v4568_v3 }
 0x6fb   : > { %v9272_v62 = vsub.s32 %v4406_v56, %v4409_v34  ;;  %v4510_v43 = vadd.s32 %v4509_v47, %v4505_v16  ;;  %v4574_v8 = vshll.u32 %v10156_v58, %v4568_v3  ;;  %v4577_v40 = vshll.u32 %v10157_v11, %v4568_v3 }
 0x6fc   : > { %v4572_v51 = vshrl.u32 %v10156_v58, %v4569_v0  ;;  %v4575_v12 = vshrl.u32 %v10157_v11, %v4569_v0  ;;  %v4578_v36 = vshrl.u32 %v10158_v41, %v4569_v0  ;;  %v4602_v18 = vshll.u32 %v4562_v33, 8 }
 0x6fd   : > { %v4412_v35 = vsub.s32 0, %v9272_v62  ;;  %v4511_v48 = vadd.s32 536870912, %v4510_v43  ;;  %v4580_v22 = vshll.u32 %v10158_v41, %v4568_v3  ;;  %v4581_v5 = vshrl.u32 %v10159_v29, %v4569_v0 }
 0x6fe   : > { %v4573_v17 = vor.u32 %v4572_v51, %v4571_v2  ;;  %v4576_v31 = vor.u32 %v4575_v12, %v4574_v8  ;;  %v4579_v21 = vor.u32 %v4578_v36, %v4577_v40  ;;  %v4583_v56 = vshll.u32 %v10159_v29, %v4568_v3 }
 0x6ff   : > { %v5516_v13 = vmin.u32 %v4412_v35, %v9272_v62  ;;  %v9285_v30 = vshrl.u32 %v4511_v48, 30  ;;  %v4584_v4 = vshrl.u32 %v10160_v42, %v4569_v0  ;;  %v4582_v54 = vor.u32 %v4581_v5, %v4580_v22 }
 0x700   : > { %vm4586_vm13 = vcmp.lt.s32.totalorder %v4567_v1, 1  ;;  %v5527_v10 = vadd.s32 4294967169, %v4662_v20  ;;  %vm4587_vm14 = vcmp.lt.s32.totalorder %v4567_v1, 2  ;;  %vm4589_vm10 = vcmp.lt.s32.totalorder %v4567_v1, 4 }
 0x701   : > { %v4414_v15 = vclz %v5516_v13  ;;  %v4513_v53 = vshll.u32 %v9285_v30, 30  ;;  %v4585_v50 = vor.u32 %v4584_v4, %v4583_v56  ;;  %vm4588_vm7 = vcmp.lt.s32.totalorder %v4567_v1, 3 }
 0x702   : > { %v4594_v14 = vsel %vm4586_vm13, %v4573_v17, %v4576_v31  ;;  %v4595_v44 = vsel %vm4589_vm10, %v4582_v54, 920167782  ;;  %v4591_v55 = vsel %vm4589_vm10, %v4579_v21, 2102212464  ;;  %v4598_v61 = vsel %vm4586_vm13, %v4576_v31, %v4579_v21 }
 0x703   : > { %v5517_v24 = vadd.s32 4294967294, %v4414_v15  ;;  %v9291_v25 = vsub.s32 %v4510_v43, %v4513_v53  ;;  %v4596_v49 = vsel %vm4588_vm7, %v4579_v21, %v4595_v44  ;;  %v4570_v3 = vshrl.u32 %v9991_v19, %v4569_v0 }
 0x704   : > { %v4597_v32 = vsel %vm4587_vm14, %v4594_v14, %v4596_v49  ;;  %v4599_v34 = vsel %vm4589_vm10, %v4585_v50, 1326507024  ;;  %v4668_v47 = vadd.s32 1, %v5527_v10  ;;  %v4592_v2 = vsel %vm4588_vm7, %v4576_v31, %v4591_v55  ;;  %v4238_v14 = vpop.permute.xlu0 %4237 }
 0x705   : > { %vm5518_vm15 = vcmp.lt.s32.totalorder %v5517_v24, 0  ;;  %v4516_v16 = vsub.s32 0, %v9291_v25  ;;  %v4600_v33 = vsel %vm4588_vm7, %v4582_v54, %v4599_v34  ;;  %v4590_v43 = vsel %vm4586_vm13, %v4570_v3, %v4573_v17 }
 0x706   : > { %v4417_v63 = vsel %vm5518_vm15, 0, %v5517_v24  ;;  %v4601_v51 = vsel %vm4587_vm14, %v4598_v61, %v4600_v33  ;;  %vm4669_vm12 = vcmp.gt.s32.totalorder %v4668_v47, 0  ;;  %v9971_v40 = vand.u32 2147483647, %v9186_v28 }
 0x707   : > { %v4422_v20 = vsub.s32 4294967266, %v4417_v63  ;;  %v5520_v12 = vmin.u32 %v4516_v16, %v9291_v25  ;;  %v9303_v35 = vmul.u32.u64.low %v4602_v18, %v4601_v51  ;;  %v9304_v0 = vmul.u32.u64.high %v4602_v18, %v4601_v51, %v9303_v35 }
 0x708   : > { %v9306_v8 = vmul.u32.u64.low %v4602_v18, %v4597_v32  ;;  %v9307_v36 = vmul.u32.u64.high %v4602_v18, %v4597_v32, %v9306_v8  ;;  %v4670_v13 = vsel %vm4669_vm12, %v4668_v47, 0  ;;  %v4418_v22 = vsub.s32 32, %v4417_v63 }
 0x709   : > { %v4518_v48 = vclz %v5520_v12  ;;  %v4423_v17 = vadd.s32 127, %v4422_v20  ;;  %v4593_v31 = vsel %vm4587_vm14, %v4590_v43, %v4592_v2  ;;  %v4672_v5 = vand.u32 31, %v4670_v13 }
 0x70a   : > { %vm4611_vm1 = vc.u32 %v9304_v0, %v9306_v8  ;;  %v4402_v56 = vadd.s32 %v9225_v6, %v9222_v46  ;;  %v4612_v4 = vadd.s32 1, %v9307_v36  ;;  %v4609_v15 = vmul.u32 %v4602_v18, %v4593_v31 }
 0x70b   : > { %v5521_v21 = vadd.s32 4294967294, %v4518_v48  ;;  %v4665_v54 = vand.u32 8388607, %v9971_v40  ;;  %v4424_v53 = vshll.u32 %v4423_v17, 23  ;;  %v4673_v50 = vsub.s32 32, %v4672_v5 }
 0x70c   : > { %v4420_v10 = vshrl.u32 %v4402_v56, %v4418_v22  ;;  %v4613_v1 = vsel %vm4611_vm1, %v4612_v4, %v9307_v36  ;;  %v4419_v44 = vshll.u32 %v9272_v62, %v4417_v63  ;;  %v9322_v46 = vadd.f32 %v9180_v45, %v4238_v14 }
 0x70d   : > { %vm5522_vm9 = vcmp.lt.s32.totalorder %v5521_v21, 0  ;;  %v4614_v24 = vadd.s32 %v4613_v1, %v4609_v15  ;;  %v4666_v61 = vor.u32 8388608, %v4665_v54  ;;  %v4425_v18 = vor.u32 4788187, %v4424_v53 }
 0x70e   : > { %v4521_v55 = vsel %vm5522_vm9, 0, %v5521_v21  ;;  %v4421_v6 = vor.u32 %v4420_v10, %v4419_v44  ;;  %v4676_v3 = vshrl.u32 %v10156_v58, %v4673_v50  ;;  %v4679_v32 = vshrl.u32 %v10157_v11, %v4673_v50 }
 0x70f   : > { %v4615_v49 = vadd.s32 536870912, %v4614_v24  ;;  %v4526_v34 = vsub.s32 4294967266, %v4521_v55  ;;  %v4682_v33 = vshrl.u32 %v10158_v41, %v4673_v50  ;;  %v4685_v47 = vshrl.u32 %v10159_v29, %v4673_v50 }
 0x710   : > { %v4675_v62 = vshll.u32 %v9991_v19, %v4672_v5  ;;  %v4678_v63 = vshll.u32 %v10156_v58, %v4672_v5  ;;  %v4684_v45 = vshll.u32 %v10158_v41, %v4672_v5  ;;  %v4688_v20 = vshrl.u32 %v10160_v42, %v4673_v50 }
 0x711   : > { %v9326_v16 = vshrl.u32 %v4615_v49, 30  ;;  %v4671_v2 = vshrl.u32 %v4670_v13, 5  ;;  %v4681_v51 = vshll.u32 %v10157_v11, %v4672_v5  ;;  %v9337_v12 = vadd.f32 %v9182_v52, %v4238_v14 }
 0x712   : > { %v4677_v35 = vor.u32 %v4676_v3, %v4675_v62  ;;  %v4680_v36 = vor.u32 %v4679_v32, %v4678_v63  ;;  %v4686_v48 = vor.u32 %v4685_v47, %v4684_v45  ;;  %v4687_v22 = vshll.u32 %v10159_v29, %v4672_v5 }
 0x713   : > { %v4617_v43 = vshll.u32 %v9326_v16, 30  ;;  %v4506_v17 = vadd.s32 %v9251_v7, %v9257_v37  ;;  %v4527_v31 = vadd.s32 127, %v4526_v34  ;;  %v4683_v56 = vor.u32 %v4682_v33, %v4681_v51 }
 0x714   : > { %v4426_v4 = vand.u32 2147483647, %v4425_v18  ;;  %v4428_v15 = vcvt.s32.f32 %v4421_v6  ;;  %v4689_v13 = vor.u32 %v4688_v20, %v4687_v22  ;;  %v4706_v54 = vshll.u32 %v4666_v61, 8 }
 0x715   : > { %v9342_v21 = vsub.s32 %v4614_v24, %v4617_v43  ;;  %v4522_v10 = vsub.s32 32, %v4521_v55  ;;  %vm4690_vm11 = vcmp.lt.s32.totalorder %v4671_v2, 1  ;;  %vm4693_vm6 = vcmp.lt.s32.totalorder %v4671_v2, 4 }
 0x716   : > { %v4674_v53 = vshrl.u32 %v9991_v19, %v4673_v50  ;;  %vm4692_vm3 = vcmp.lt.s32.totalorder %v4671_v2, 3  ;;  %v4698_v5 = vsel %vm4690_vm11, %v4677_v35, %v4680_v36  ;;  %v4699_v1 = vsel %vm4693_vm6, %v4686_v48, 920167782 }
 0x717   : > { %v4620_v52 = vsub.s32 0, %v9342_v21  ;;  %v4528_v7 = vshll.u32 %v4527_v31, 23  ;;  %vm4691_vm4 = vcmp.lt.s32.totalorder %v4671_v2, 2  ;;  %v4695_v37 = vsel %vm4693_vm6, %v4683_v56, 2102212464 }
 0x718   : > { %v4700_v24 = vsel %vm4692_vm3, %v4683_v56, %v4699_v1  ;;  %v4702_v49 = vsel %vm4690_vm11, %v4680_v36, %v4683_v56  ;;  %v4703_v61 = vsel %vm4693_vm6, %v4689_v13, 1326507024  ;;  %v4523_v6 = vshll.u32 %v9291_v25, %v4521_v55 }
 0x719   : > { %v5524_v14 = vmin.u32 %v4620_v52, %v9342_v21  ;;  %v4701_v44 = vsel %vm4691_vm4, %v4698_v5, %v4700_v24  ;;  %v4524_v18 = vshrl.u32 %v4506_v17, %v4522_v10  ;;  %v4694_v50 = vsel %vm4690_vm11, %v4674_v53, %v4677_v35  ;;  %v9377_v24 = vpop.permute.xlu1 %4242 }
 0x71a   : > { %v4704_v3 = vsel %vm4692_vm3, %v4686_v48, %v4703_v61  ;;  %v4696_v32 = vsel %vm4692_vm3, %v4680_v36, %v4695_v37  ;;  %v9353_v33 = vmul.u32.u64.low %v4706_v54, %v4701_v44  ;;  %v9354_v47 = vmul.u32.u64.high %v4706_v54, %v4701_v44, %v9353_v33 }
 0x71b   : > { %v4705_v34 = vsel %vm4691_vm4, %v4702_v49, %v4704_v3  ;;  %v4429_v62 = vmul.f32 %v4428_v15, %v4426_v4  ;;  %v4529_v63 = vor.u32 4788187, %v4528_v7  ;;  %v4622_v43 = vclz %v5524_v14 }
 0x71c   : > { %v9357_v45 = vmul.u32.u64.low %v4706_v54, %v4705_v34  ;;  %v9358_v20 = vmul.u32.u64.high %v4706_v54, %v4705_v34, %v9357_v45  ;;  %v4765_v51 = vand.u32 2139095040, %v9322_v46  ;;  %v4525_v25 = vor.u32 %v4524_v18, %v4523_v6 }
 0x71d   : > { %v4697_v55 = vsel %vm4691_vm4, %v4694_v50, %v4696_v32  ;;  %v4869_v35 = vand.u32 2139095040, %v9337_v12  ;;  %v4716_v36 = vadd.s32 1, %v9354_v47  ;;  %v4430_v22 = vxor.u32 2147483648, %v4429_v62 }
 0x71e   : > { %v4766_v48 = vshrl.u32 %v4765_v51, 23  ;;  %v4432_v17 = vsub.s32 4, %v9262_v57  ;;  %v4530_v31 = vand.u32 2147483647, %v4529_v63  ;;  %v9970_v56 = vand.u32 2147483647, %v9322_v46 }
 0x71f   : > { %v5525_v4 = vadd.s32 4294967294, %v4622_v43  ;;  %v4713_v15 = vmul.u32 %v4706_v54, %v4697_v55  ;;  %vm4715_vm2 = vc.u32 %v9358_v20, %v9353_v33  ;;  %v4532_v10 = vcvt.s32.f32 %v4525_v25 }
 0x720   : > { %v5531_v13 = vadd.s32 4294967169, %v4766_v48  ;;  %v4717_v2 = vsel %vm4715_vm2, %v4716_v36, %v9354_v47  ;;  %v4870_v52 = vshrl.u32 %v4869_v35, 23  ;;  %vm4348_vm0 = vcmp.lt.s32.totalorder %v9165_v9, 0 }
 0x721   : > { %v4718_v53 = vadd.s32 %v4717_v2, %v4713_v15  ;;  %v4431_v1 = vsel %vm4348_vm0, %v4430_v22, %v4429_v62  ;;  %v9371_v7 = vsel %vm4348_vm0, %v4432_v17, %v9262_v57  ;;  %v9373_v37 = vmul.f32 %v4532_v10, %v4530_v31 }
 0x722   : > { %v4772_v5 = vadd.s32 1, %v5531_v13  ;;  %v4769_v54 = vand.u32 8388607, %v9970_v56  ;;  %vm5526_vm8 = vcmp.lt.s32.totalorder %v5525_v4, 0  ;;  %v5535_v44 = vadd.s32 4294967169, %v4870_v52 }
 0x723   : > { %v4719_v14 = vadd.s32 536870912, %v4718_v53  ;;  %vm9381_vm14 = vcmp.le.f32.partialorder %v4346_v23, 0.7853982  ;;  %v9387_v57 = vadd.f32 %v9184_v59, %v9377_v24  ;;  %v9394_v18 = vadd.s32 %v9306_v8, %v9304_v0 }
 0x724   : > { %vm4773_vm13 = vcmp.gt.s32.totalorder %v4772_v5, 0  ;;  %v9401_v23 = vsel %vm9381_vm14, %v9165_v9, %v4431_v1  ;;  %v4534_v32 = vxor.u32 2147483648, %v9373_v37  ;;  %v9404_v59 = vsel %vm5526_vm8, 0, %v5525_v4 }
 0x725   : > { %v4774_v61 = vsel %vm4773_vm13, %v4772_v5, 0  ;;  %v9396_v50 = vshrl.u32 %v4719_v14, 30  ;;  %v4770_v62 = vor.u32 8388608, %v4769_v54  ;;  %v4876_v0 = vadd.s32 1, %v5535_v44 }
 0x726   : > { %v4776_v3 = vand.u32 31, %v4774_v61  ;;  %v4775_v8 = vshrl.u32 %v4774_v61, 5  ;;  %v9969_v10 = vand.u32 2147483647, %v9337_v12  ;;  %vm4452_vm10 = vcmp.lt.s32.totalorder %v9167_v38, 0 }
 0x727   : > { %v4721_v47 = vshll.u32 %v9396_v50, 30  ;;  %v4630_v2 = vsub.s32 4294967266, %v9404_v59  ;;  %v4810_v54 = vshll.u32 %v4770_v62, 8  ;;  %vm4877_vm15 = vcmp.gt.s32.totalorder %v4876_v0, 0 }
 0x728   : > { %v4777_v63 = vsub.s32 32, %v4776_v3  ;;  %v4779_v45 = vshll.u32 %v9991_v19, %v4776_v3  ;;  %v4782_v43 = vshll.u32 %v10156_v58, %v4776_v3  ;;  %v4785_v51 = vshll.u32 %v10157_v11, %v4776_v3 }
 0x729   : > { %v9411_v25 = vsub.s32 %v4718_v53, %v4721_v47  ;;  %v4788_v36 = vshll.u32 %v10158_v41, %v4776_v3  ;;  %v4791_v17 = vshll.u32 %v10159_v29, %v4776_v3  ;;  %vm4794_vm7 = vcmp.lt.s32.totalorder %v4775_v8, 1 }
 0x72a   : > { %v4780_v55 = vshrl.u32 %v10156_v58, %v4777_v63  ;;  %v4783_v35 = vshrl.u32 %v10157_v11, %v4777_v63  ;;  %v4786_v48 = vshrl.u32 %v10158_v41, %v4777_v63  ;;  %v4789_v22 = vshrl.u32 %v10159_v29, %v4777_v63 }
 0x72b   : > { %v4792_v31 = vshrl.u32 %v10160_v42, %v4777_v63  ;;  %v4724_v4 = vsub.s32 0, %v9411_v25  ;;  %v4778_v14 = vshrl.u32 %v9991_v19, %v4777_v63  ;;  %vm4795_vm12 = vcmp.lt.s32.totalorder %v4775_v8, 2 }
 0x72c   : > { %v4781_v15 = vor.u32 %v4780_v55, %v4779_v45  ;;  %v4784_v13 = vor.u32 %v4783_v35, %v4782_v43  ;;  %v4787_v52 = vor.u32 %v4786_v48, %v4785_v51  ;;  %v4790_v53 = vor.u32 %v4789_v22, %v4788_v36 }
 0x72d   : > { %v4793_v5 = vor.u32 %v4792_v31, %v4791_v17  ;;  %v5528_v1 = vmin.u32 %v4724_v4, %v9411_v25  ;;  %vm4797_vm1 = vcmp.lt.s32.totalorder %v4775_v8, 4  ;;  %vm4796_vm9 = vcmp.lt.s32.totalorder %v4775_v8, 3 }
 0x72e   : > { %v4802_v44 = vsel %vm4794_vm7, %v4781_v15, %v4784_v13  ;;  %v4799_v3 = vsel %vm4797_vm1, %v4787_v52, 2102212464  ;;  %v4803_v47 = vsel %vm4797_vm1, %v4790_v53, 920167782  ;;  %v4798_v45 = vsel %vm4794_vm7, %v4778_v14, %v4781_v15 }
 0x72f   : > { %v4726_v61 = vclz %v5528_v1  ;;  %v4804_v43 = vsel %vm4796_vm9, %v4787_v52, %v4803_v47  ;;  %v4806_v55 = vsel %vm4794_vm7, %v4784_v13, %v4787_v52  ;;  %v4807_v51 = vsel %vm4797_vm1, %v4793_v5, 1326507024 }
 0x730   : > { %v4800_v36 = vsel %vm4796_vm9, %v4784_v13, %v4799_v3  ;;  %v4805_v48 = vsel %vm4795_vm12, %v4802_v44, %v4804_v43  ;;  %v4808_v22 = vsel %vm4796_vm9, %v4790_v53, %v4807_v51  ;;  %v4631_v62 = vadd.s32 127, %v4630_v2 }
 0x731   : > { %v5529_v35 = vadd.s32 4294967294, %v4726_v61  ;;  %v4809_v17 = vsel %vm4795_vm12, %v4806_v55, %v4808_v22  ;;  %v9428_v63 = vmul.u32.u64.low %v4810_v54, %v4805_v48  ;;  %v9429_v31 = vmul.u32.u64.high %v4810_v54, %v4805_v48, %v9428_v63 }
 0x732   : > { %v9432_v4 = vmul.u32.u64.low %v4810_v54, %v4809_v17  ;;  %v9433_v1 = vmul.u32.u64.high %v4810_v54, %v4809_v17, %v9432_v4  ;;  %v4878_v15 = vsel %vm4877_vm15, %v4876_v0, 0  ;;  %v4801_v13 = vsel %vm4795_vm12, %v4798_v45, %v4800_v36 }
 0x733   : > { %vm5530_vm11 = vcmp.lt.s32.totalorder %v5529_v35, 0  ;;  %v4873_v53 = vand.u32 8388607, %v9969_v10  ;;  %v4880_v2 = vand.u32 31, %v4878_v15  ;;  %v9444_v5 = vsel %vm4452_vm10, %v4534_v32, %v9373_v37 }
 0x734   : > { %v9436_v52 = vsel %vm5530_vm11, 0, %v5529_v35  ;;  %v4626_v14 = vsub.s32 32, %v9404_v59  ;;  %v4973_v61 = vand.u32 2139095040, %v9387_v57  ;;  %v4820_v3 = vadd.s32 1, %v9429_v31 }
 0x735   : > { %v4734_v8 = vsub.s32 4294967266, %v9436_v52  ;;  %v4881_v47 = vsub.s32 32, %v4880_v2  ;;  %v4632_v45 = vshll.u32 %v4631_v62, 23  ;;  %v4714_v43 = vadd.s32 %v9353_v33, %v9358_v20 }
 0x736   : > { %v4817_v37 = vmul.u32 %v4810_v54, %v4801_v13  ;;  %vm4819_vm6 = vc.u32 %v9433_v1, %v9428_v63  ;;  %v4874_v55 = vor.u32 8388608, %v4873_v53  ;;  %v4730_v36 = vsub.s32 32, %v9436_v52 }
 0x737   : > { %v4821_v32 = vsel %vm4819_vm6, %v4820_v3, %v9429_v31  ;;  %v4884_v51 = vshrl.u32 %v10156_v58, %v4881_v47  ;;  %v4887_v35 = vshrl.u32 %v10157_v11, %v4881_v47  ;;  %v4879_v22 = vshrl.u32 %v4878_v15, 5 }
 0x738   : > { %v4822_v48 = vadd.s32 %v4821_v32, %v4817_v37  ;;  %v4974_v17 = vshrl.u32 %v4973_v61, 23  ;;  %v4735_v62 = vadd.s32 127, %v4734_v8  ;;  %v4883_v4 = vshll.u32 %v9991_v19, %v4880_v2 }
 0x739   : > { %v4886_v33 = vshll.u32 %v10156_v58, %v4880_v2  ;;  %v4890_v20 = vshrl.u32 %v10158_v41, %v4881_v47  ;;  %v4889_v31 = vshll.u32 %v10157_v11, %v4880_v2  ;;  %v4892_v13 = vshll.u32 %v10158_v41, %v4880_v2 }
 0x73a   : > { %v4823_v54 = vadd.s32 536870912, %v4822_v48  ;;  %v4893_v53 = vshrl.u32 %v10159_v29, %v4881_v47  ;;  %vm9469_vm3 = vcmp.le.f32.partialorder %v4450_v39, 0.7853982  ;;  %v4885_v15 = vor.u32 %v4884_v51, %v4883_v4 }
 0x73b   : > { %v4888_v61 = vor.u32 %v4887_v35, %v4886_v33  ;;  %v4895_v8 = vshll.u32 %v10159_v29, %v4880_v2  ;;  %v4896_v37 = vshrl.u32 %v10160_v42, %v4881_v47  ;;  %v4628_v32 = vshrl.u32 %v9394_v18, %v4626_v14 }
 0x73c   : > { %v9476_v10 = vshrl.u32 %v4823_v54, 30  ;;  %v4891_v56 = vor.u32 %v4890_v20, %v4889_v31  ;;  %v4894_v6 = vor.u32 %v4893_v53, %v4892_v13  ;;  %v4633_v40 = vor.u32 4788187, %v4632_v45 }
 0x73d   : > { %v4897_v27 = vor.u32 %v4896_v37, %v4895_v8  ;;  %v4914_v34 = vshll.u32 %v4874_v55, 8  ;;  %v5539_v44 = vadd.s32 4294967169, %v4974_v17  ;;  %v4736_v39 = vshll.u32 %v4735_v62, 23 }
 0x73e   : > { %v4825_v0 = vshll.u32 %v9476_v10, 30  ;;  %vm4898_vm4 = vcmp.lt.s32.totalorder %v4879_v22, 1  ;;  %vm4901_vm2 = vcmp.lt.s32.totalorder %v4879_v22, 4  ;;  %vm4556_vm0 = vcmp.lt.s32.totalorder %v9173_v26, 0 }
 0x73f   : > { %v4731_v2 = vshll.u32 %v9411_v25, %v9436_v52  ;;  %v4732_v51 = vshrl.u32 %v4714_v43, %v4730_v36  ;;  %v4906_v18 = vsel %vm4898_vm4, %v4885_v15, %v4888_v61  ;;  %v4907_v14 = vsel %vm4901_vm2, %v4894_v6, 920167782 }
 0x740   : > { %v9483_v35 = vsub.s32 %v4822_v48, %v4825_v0  ;;  %v4882_v45 = vshrl.u32 %v9991_v19, %v4881_v47  ;;  %vm4900_vm8 = vcmp.lt.s32.totalorder %v4879_v22, 3  ;;  %v4903_v55 = vsel %vm4901_vm2, %v4891_v56, 2102212464 }
 0x741   : > { %vm4899_vm13 = vcmp.lt.s32.totalorder %v4879_v22, 2  ;;  %v4908_v17 = vsel %vm4900_vm8, %v4891_v56, %v4907_v14  ;;  %v4910_v62 = vsel %vm4898_vm4, %v4888_v61, %v4891_v56  ;;  %v4911_v4 = vsel %vm4901_vm2, %v4897_v27, 1326507024 }
 0x742   : > { %v4737_v33 = vor.u32 4788187, %v4736_v39  ;;  %v4828_v20 = vsub.s32 0, %v9483_v35  ;;  %v4902_v25 = vsel %vm4898_vm4, %v4882_v45, %v4885_v15  ;;  %v4909_v52 = vsel %vm4899_vm13, %v4906_v18, %v4908_v17 }
 0x743   : > { %v4904_v43 = vsel %vm4900_vm8, %v4888_v61, %v4903_v55  ;;  %v4912_v36 = vsel %vm4900_vm8, %v4894_v6, %v4911_v4  ;;  %v9490_v0 = vmul.u32.u64.low %v4914_v34, %v4909_v52  ;;  %v9491_v48 = vmul.u32.u64.high %v4914_v34, %v4909_v52, %v9490_v0 }
 0x744   : > { %v4538_v47 = vsel %vm9469_vm3, %v9167_v38, %v9444_v5  ;;  %v5532_v27 = vmin.u32 %v4828_v20, %v9483_v35  ;;  %v4913_v56 = vsel %vm4899_vm13, %v4910_v62, %v4912_v36  ;;  %v4980_v54 = vadd.s32 1, %v5539_v44 }
 0x745   : > { %v10227_v31 = vshll.u32 %v9342_v21, %v9404_v59  ;;  %v4733_v53 = vor.u32 %v4732_v51, %v4731_v2  ;;  %v9503_v6 = vmul.u32.u64.low %v4914_v34, %v4913_v56  ;;  %v9504_v15 = vmul.u32.u64.high %v4914_v34, %v4913_v56, %v9503_v6 }
 0x746   : > { %v4634_v61 = vand.u32 2147483647, %v4633_v40  ;;  %v4830_v8 = vclz %v5532_v27  ;;  %v4905_v37 = vsel %vm4899_vm13, %v4902_v25, %v4904_v43  ;;  %vm4981_vm7 = vcmp.gt.s32.totalorder %v4980_v54, 0 }
 0x747   : > { %v4629_v13 = vor.u32 %v4628_v32, %v10227_v31  ;;  %v4738_v39 = vand.u32 2147483647, %v4737_v33  ;;  %v4924_v5 = vadd.s32 1, %v9491_v48  ;;  %v10228_v18 = vand.u32 2147483647, %v9387_v57 }
 0x748   : > { %v4982_v44 = vsel %vm4981_vm7, %v4980_v54, 0  ;;  %5928 = vcosq.f32 %v4538_v47  ;;  %v10229_v21 = vsub.s32 4, %v9326_v16  ;;  %v5533_v40 = vadd.s32 4294967294, %v4830_v8 }
 0x749   : > { %v4977_v14 = vand.u32 8388607, %v10228_v18  ;;  %v4984_v32 = vand.u32 31, %v4982_v44  ;;  %v4636_v22 = vcvt.s32.f32 %v4629_v13  ;;  %v4740_v2 = vcvt.s32.f32 %v4733_v53 }
 0x74a   : > { %v9515_v59 = vsel %vm4556_vm0, %v10229_v21, %v9326_v16  ;;  %v4921_v51 = vmul.u32 %v4914_v34, %v4905_v37  ;;  %vm4923_vm15 = vc.u32 %v9504_v15, %v9490_v0  ;;  %5930 = vsinq.f32 %v4538_v47 }
 0x74b   : > { %vm5534_vm12 = vcmp.lt.s32.totalorder %v5533_v40, 0  ;;  %v4925_v45 = vsel %vm4923_vm15, %v4924_v5, %v9491_v48  ;;  %v4985_v55 = vsub.s32 32, %v4984_v32  ;;  %v4637_v17 = vmul.f32 %v4636_v22, %v4634_v61 }
 0x74c   : > { %v9520_v62 = vmul.f32 %v4740_v2, %v4738_v39  ;;  %v4926_v4 = vadd.s32 %v4925_v45, %v4921_v51  ;;  %v4978_v33 = vor.u32 8388608, %v4977_v14  ;;  %v9522_v16 = vsel %vm5534_vm12, 0, %v5533_v40 }
 0x74d   : > { %v9524_v20 = vshrl.u32 %v4982_v44, 5  ;;  %v4993_v25 = vshll.u32 %v10157_v11, %v4984_v32  ;;  %v9529_v34 = vadd.f32 %v9188_v60, %v9377_v24  ;;  %v4988_v43 = vshrl.u32 %v10156_v58, %v4985_v55 }
 0x74e   : > { %v4927_v52 = vadd.s32 536870912, %v4926_v4  ;;  %v4991_v36 = vshrl.u32 %v10157_v11, %v4985_v55  ;;  %v4994_v48 = vshrl.u32 %v10158_v41, %v4985_v55  ;;  %v4987_v47 = vshll.u32 %v9991_v19, %v4984_v32 }
 0x74f   : > { %v4990_v27 = vshll.u32 %v10156_v58, %v4984_v32  ;;  %v4996_v56 = vshll.u32 %v10158_v41, %v4984_v32  ;;  %v4997_v54 = vshrl.u32 %v10159_v29, %v4985_v55  ;;  %v4638_v31 = vxor.u32 2147483648, %v4637_v17 }
 0x750   : > { %v4742_v13 = vxor.u32 2147483648, %v9520_v62  ;;  %v9539_v60 = vshrl.u32 %v4927_v52, 30  ;;  %v4995_v24 = vor.u32 %v4994_v48, %v4993_v25  ;;  %v4838_v53 = vsub.s32 4294967266, %v9522_v16 }
 0x751   : > { %v4989_v6 = vor.u32 %v4988_v43, %v4987_v47  ;;  %v4992_v61 = vor.u32 %v4991_v36, %v4990_v27  ;;  %v4998_v8 = vor.u32 %v4997_v54, %v4996_v56  ;;  %v10230_v37 = vand.u32 2147483647, %v9173_v26 }
 0x752   : > { %v4929_v5 = vshll.u32 %v9539_v60, 30  ;;  %v4999_v18 = vshll.u32 %v10159_v29, %v4984_v32  ;;  %v5000_v14 = vshrl.u32 %v10160_v42, %v4985_v55  ;;  %v5018_v44 = vshll.u32 %v4978_v33, 8  ;;  %v9551_v21 = vpop.eup %5928 }
 0x753   : > { %vm9544_vm1 = vcmp.le.f32.partialorder %v10230_v37, 0.7853982  ;;  %vm4660_vm9 = vcmp.lt.s32.totalorder %v9186_v28, 0  ;;  %v4834_v40 = vsub.s32 32, %v9522_v16  ;;  %v4986_v22 = vshrl.u32 %v9991_v19, %v4985_v55 }
 0x754   : > { %vm5005_vm11 = vcmp.lt.s32.totalorder %v9524_v20, 4  ;;  %v5077_v2 = vand.u32 2139095040, %v9529_v34  ;;  %v9558_v51 = vsub.s32 %v4926_v4, %v4929_v5  ;;  %v5001_v45 = vor.u32 %v5000_v14, %v4999_v18  ;;  %v9563_v33 = vpop.eup %5930 }
 0x755   : > { %vm5002_vm6 = vcmp.lt.s32.totalorder %v9524_v20, 1  ;;  %v5007_v32 = vsel %vm5005_vm11, %v4995_v24, 2102212464  ;;  %v4839_v25 = vadd.s32 127, %v4838_v53  ;;  %vm5004_vm4 = vcmp.lt.s32.totalorder %v9524_v20, 3 }
 0x756   : > { %v5010_v52 = vsel %vm5002_vm6, %v4989_v6, %v4992_v61  ;;  %v5011_v55 = vsel %vm5005_vm11, %v4998_v8, 920167782  ;;  %v10233_v43 = vand.u32 2147483647, %v9186_v28  ;;  %v4932_v36 = vsub.s32 0, %v9558_v51 }
 0x757   : > { %vm5003_vm8 = vcmp.lt.s32.totalorder %v9524_v20, 2  ;;  %v5012_v48 = vsel %vm5004_vm4, %v4995_v24, %v5011_v55  ;;  %v5014_v47 = vsel %vm5002_vm6, %v4992_v61, %v4995_v24  ;;  %v5006_v27 = vsel %vm5002_vm6, %v4986_v22, %v4989_v6 }
 0x758   : > { %vm9570_vm2 = vcmp.le.f32.partialorder %v10233_v43, 0.7853982  ;;  %v5008_v56 = vsel %vm5004_vm4, %v4992_v61, %v5007_v32  ;;  %v5013_v54 = vsel %vm5003_vm8, %v5010_v52, %v5012_v48  ;;  %v5015_v53 = vsel %vm5005_vm11, %v5001_v45, 1326507024 }
 0x759   : > { %v5536_v37 = vmin.u32 %v4932_v36, %v9558_v51  ;;  %v5016_v5 = vsel %vm5004_vm4, %v4998_v8, %v5015_v53  ;;  %v9581_v18 = vmul.u32.u64.low %v5018_v44, %v5013_v54  ;;  %v9582_v14 = vmul.u32.u64.high %v5018_v44, %v5013_v54, %v9581_v18 }
 0x75a   : > { %v10236_v43 = vsel %vm9381_vm14, 0, %v9371_v7  ;;  %v4639_v24 = vsel %vm4556_vm0, %v4638_v31, %v4637_v17  ;;  %v5017_v6 = vsel %vm5003_vm8, %v5014_v47, %v5016_v5  ;;  %v5078_v61 = vshrl.u32 %v5077_v2, 23 }
 0x75b   : > { %v9588_v55 = vadd.s32 3, %v10236_v43  ;;  %v4818_v22 = vadd.s32 %v9428_v63, %v9433_v1  ;;  %v4934_v8 = vclz %v5536_v37  ;;  %5932 = vcosq.f32 %v9401_v23 }
 0x75c   : > { %v9596_v45 = vmul.u32.u64.low %v5018_v44, %v5017_v6  ;;  %v9597_v32 = vmul.u32.u64.high %v5018_v44, %v5017_v6, %v9596_v45  ;;  %v4643_v7 = vsel %vm9544_vm1, 0, %v9515_v59  ;;  %v5009_v49 = vsel %vm5003_vm8, %v5006_v27, %v5008_v56 }
 0x75d   : > { %v5543_v17 = vadd.s32 4294967169, %v5078_v61  ;;  %v4743_v31 = vsel %vm4660_vm9, %v4742_v13, %v9520_v62  ;;  %v4836_v2 = vshrl.u32 %v4818_v22, %v4834_v40  ;;  %v4840_v63 = vshll.u32 %v4839_v25, 23 }
 0x75e   : > { %v5028_v1 = vadd.s32 1, %v9582_v14  ;;  %v4642_v52 = vsel %vm9544_vm1, %v9173_v26, %v4639_v24  ;;  %v5074_v36 = vand.u32 2147483647, %v9529_v34  ;;  %v4536_v59 = vsub.s32 4, %v9285_v30 }
 0x75f   : > { %v5084_v48 = vadd.s32 1, %v5543_v17  ;;  %v4835_v20 = vshll.u32 %v9483_v35, %v9522_v16  ;;  %v5537_v47 = vadd.s32 4294967294, %v4934_v8  ;;  %v5025_v27 = vmul.u32 %v5018_v44, %v5009_v49 }
 0x760   : > { %vm5027_vm14 = vc.u32 %v9597_v32, %v9581_v18  ;;  %5934 = vsinq.f32 %v9401_v23  ;;  %v4746_v62 = vsel %vm9570_vm2, %v9186_v28, %v4743_v31  ;;  %v9624_v40 = vor.u32 4788187, %v4840_v63 }
 0x761   : > { %v5029_v13 = vsel %vm5027_vm14, %v5028_v1, %v9582_v14  ;;  %vm5085_vm0 = vcmp.gt.s32.totalorder %v5084_v48, 0  ;;  %5936 = vcosq.f32 %v4642_v52  ;;  %v9622_v39 = vor.u32 %v4836_v2, %v4835_v20 }
 0x762   : > { %v5030_v25 = vadd.s32 %v5029_v13, %v5025_v27  ;;  %5938 = vsinq.f32 %v4642_v52  ;;  %v9626_v35 = vadd.s32 3, %v4643_v7  ;;  %v5081_v16 = vand.u32 8388607, %v5074_v36 }
 0x763   : > { %v5086_v23 = vsel %vm5085_vm0, %v5084_v48, 0  ;;  %5940 = vcosq.f32 %v4746_v62  ;;  %vm5538_vm13 = vcmp.lt.s32.totalorder %v5537_v47, 0  ;;  %v4537_v56 = vsel %vm4452_vm10, %v4536_v59, %v9285_v30 }
 0x764   : > { %v5031_v44 = vadd.s32 536870912, %v5030_v25  ;;  %5942 = vsinq.f32 %v4746_v62  ;;  %v9635_v54 = vadd.s32 %v9490_v0, %v9504_v15  ;;  %v5088_v53 = vand.u32 31, %v5086_v23 }
 0x765   : > { %v4547_v37 = vxor.u32 2147483648, %v9563_v33  ;;  %v4842_v5 = vand.u32 2147483647, %v9624_v40  ;;  %v4844_v14 = vcvt.s32.f32 %v9622_v39  ;;  %v4550_v24 = vxor.u32 2147483648, %v9551_v21  ;;  %v9643_v6 = vpop.eup %5932 }
 0x766   : > { %v9640_v43 = vshrl.u32 %v5031_v44, 30  ;;  %v9645_v61 = vsel %vm5538_vm13, 0, %v5537_v47  ;;  %v5082_v30 = vor.u32 8388608, %v5081_v16  ;;  %v5089_v22 = vsub.s32 32, %v5088_v53 }
 0x767   : > { %v4539_v0 = vsel %vm9469_vm3, 0, %v4537_v56  ;;  %v9650_v15 = vadd.s32 %v9581_v18, %v9597_v32  ;;  %v5091_v45 = vshll.u32 %v9991_v19, %v5088_v53  ;;  %v4744_v7 = vsub.s32 4, %v9396_v50 }
 0x768   : > { %v5033_v8 = vshll.u32 %v9640_v43, 30  ;;  %v5092_v49 = vshrl.u32 %v10156_v58, %v5089_v22  ;;  %v5094_v17 = vshll.u32 %v10156_v58, %v5088_v53  ;;  %v5095_v31 = vshrl.u32 %v10157_v11, %v5089_v22 }
 0x769   : > { %v5098_v2 = vshrl.u32 %v10158_v41, %v5089_v22  ;;  %v4942_v3 = vsub.s32 4294967266, %v9645_v61  ;;  %v5087_v18 = vshrl.u32 %v5086_v23, 5  ;;  %v5097_v32 = vshll.u32 %v10157_v11, %v5088_v53 }
 0x76a   : > { %v9660_v63 = vsub.s32 %v5030_v25, %v5033_v8  ;;  %v9663_v1 = vpop.eup %5934  ;;  %v4938_v52 = vsub.s32 32, %v9645_v61  ;;  %v5093_v48 = vor.u32 %v5092_v49, %v5091_v45  ;;  %v5096_v59 = vor.u32 %v5095_v31, %v5094_v17 }
 0x76b   : > { %v9666_v20 = vshll.u32 %v5082_v30, 8  ;;  %v9668_v58 = vpop.eup %5936  ;;  %v5099_v27 = vor.u32 %v5098_v2, %v5097_v32  ;;  %v5100_v62 = vshll.u32 %v10158_v41, %v5088_v53  ;;  %v5101_v13 = vshrl.u32 %v10159_v29, %v5089_v22 }
 0x76c   : > { %v5036_v47 = vsub.s32 0, %v9660_v63  ;;  %v9673_v25 = vpop.eup %5938  ;;  %v5103_v11 = vshll.u32 %v10159_v29, %v5088_v53  ;;  %v5104_v16 = vshrl.u32 %v10160_v42, %v5089_v22  ;;  %v4543_v23 = vadd.s32 3, %v4539_v0 }
 0x76d   : > { %v4745_v44 = vsel %vm4660_vm9, %v4744_v7, %v9396_v50  ;;  %v9680_v56 = vpop.eup %5940  ;;  %v4943_v30 = vadd.s32 127, %v4942_v3  ;;  %v5102_v45 = vor.u32 %v5101_v13, %v5100_v62  ;;  %vm5106_vm10 = vcmp.lt.s32.totalorder %v5087_v18, 1 }
 0x76e   : > { %v5540_v8 = vmin.u32 %v5036_v47, %v9660_v63  ;;  %v5943_v41 = vpop.eup %5942  ;;  %v5090_v49 = vshrl.u32 %v9991_v19, %v5089_v22  ;;  %v5105_v17 = vor.u32 %v5104_v16, %v5103_v11  ;;  %vm5109_vm3 = vcmp.lt.s32.totalorder %v5087_v18, 4 }
 0x76f   : > { %v5114_v29 = vsel %vm5106_vm10, %v5093_v48, %v5096_v59  ;;  %vm5108_vm7 = vcmp.lt.s32.totalorder %v5087_v18, 3  ;;  %v5111_v42 = vsel %vm5109_vm3, %v5099_v27, 2102212464  ;;  %v5115_v0 = vsel %vm5109_vm3, %v5102_v45, 920167782 }
 0x770   : > { %v5038_v53 = vclz %v5540_v8  ;;  %vm5107_vm15 = vcmp.lt.s32.totalorder %v5087_v18, 2  ;;  %v5116_v31 = vsel %vm5108_vm7, %v5099_v27, %v5115_v0  ;;  %v5118_v50 = vsel %vm5106_vm10, %v5096_v59, %v5099_v27 }
 0x771   : > { %v4544_v7 = vand.u32 3, %v4543_v23  ;;  %v5110_v3 = vsel %vm5106_vm10, %v5090_v49, %v5093_v48  ;;  %v5117_v32 = vsel %vm5107_vm15, %v5114_v29, %v5116_v31  ;;  %v5119_v47 = vsel %vm5109_vm3, %v5105_v17, 1326507024 }
 0x772   : > { %v5541_v2 = vadd.s32 4294967294, %v5038_v53  ;;  %v5112_v62 = vsel %vm5108_vm7, %v5096_v59, %v5111_v42  ;;  %v5120_v13 = vsel %vm5108_vm7, %v5102_v45, %v5119_v47  ;;  %v4939_v11 = vshll.u32 %v9558_v51, %v9645_v61 }
 0x773   : > { %v9686_v19 = vmul.u32.u64.low %v9666_v20, %v5117_v32  ;;  %v9687_v22 = vmul.u32.u64.high %v9666_v20, %v5117_v32, %v9686_v19  ;;  %v5121_v16 = vsel %vm5107_vm15, %v5118_v50, %v5120_v13  ;;  %v4747_v27 = vsel %vm9570_vm2, 0, %v4745_v44 }
 0x774   : > { %vm5542_vm12 = vcmp.lt.s32.totalorder %v5541_v2, 0  ;;  %v4940_v48 = vshrl.u32 %v9635_v54, %v4938_v52  ;;  %v9697_v59 = vmul.u32.u64.low %v9666_v20, %v5121_v16  ;;  %v9698_v8 = vmul.u32.u64.high %v9666_v20, %v5121_v16, %v9697_v59 }
 0x775   : > { %v5041_v23 = vsel %vm5542_vm12, 0, %v5541_v2  ;;  %vm4542_vm1 = vweird.f32 %v9167_v38  ;;  %vm4750_vm9 = vweird.f32 %v9186_v28  ;;  %v4944_v45 = vshll.u32 %v4943_v30, 23 }
 0x776   : > { %v5046_v49 = vsub.s32 4294967266, %v5041_v23  ;;  %v5113_v51 = vsel %vm5107_vm15, %v5110_v3, %v5112_v62  ;;  %v4755_v61 = vxor.u32 2147483648, %v5943_v41  ;;  %v5132_v17 = vadd.s32 1, %v9687_v22 }
 0x777   : > { %vm4546_vm11 = vcmp.eq.s32.totalorder %v4544_v7, 0  ;;  %vm4549_vm6 = vcmp.eq.s32.totalorder %v4544_v7, 2  ;;  %v4751_v4 = vadd.s32 3, %v4747_v27  ;;  %v4758_v30 = vxor.u32 2147483648, %v9680_v56 }
 0x778   : > { %v5047_v54 = vadd.s32 127, %v5046_v49  ;;  %v4548_v52 = vsel %vm4546_vm11, %v9551_v21, %v4547_v37  ;;  %v4551_v44 = vsel %vm4549_vm6, %v4550_v24, %v9563_v33  ;;  %v4941_v29 = vor.u32 %v4940_v48, %v4939_v11 }
 0x779   : > { %v5129_v18 = vmul.u32 %v9666_v20, %v5113_v51  ;;  %vm5131_vm4 = vc.u32 %v9698_v8, %v9686_v19  ;;  %v4752_v53 = vand.u32 3, %v4751_v4  ;;  %v4945_v42 = vor.u32 4788187, %v4944_v45 }
 0x77a   : > { %v5042_v0 = vsub.s32 32, %v5041_v23  ;;  %v5133_v31 = vsel %vm5131_vm4, %v5132_v17, %v9687_v22  ;;  %vm4545_vm2 = vcmp.lt.s32.totalorder %v4544_v7, 2  ;;  %v5048_v21 = vshll.u32 %v5047_v54, 23 }
 0x77b   : > { %v5134_v50 = vadd.s32 %v5133_v31, %v5129_v18  ;;  %v4552_v37 = vsel %vm4545_vm2, %v4548_v52, %v4551_v44  ;;  %vm4754_vm8 = vcmp.eq.s32.totalorder %v4752_v53, 0  ;;  %vm4757_vm14 = vcmp.eq.s32.totalorder %v4752_v53, 2 }
 0x77c   : > { %vm4753_vm0 = vcmp.lt.s32.totalorder %v4752_v53, 2  ;;  %v4756_v33 = vsel %vm4754_vm8, %v9680_v56, %v4755_v61  ;;  %v4759_v24 = vsel %vm4757_vm14, %v4758_v30, %v5943_v41  ;;  %v4440_v3 = vand.u32 3, %v9588_v55 }
 0x77d   : > { %v5135_v2 = vadd.s32 536870912, %v5134_v50  ;;  %v4760_v20 = vsel %vm4753_vm0, %v4756_v33, %v4759_v24  ;;  %v4443_v32 = vxor.u32 2147483648, %v9663_v1  ;;  %v5044_v47 = vshrl.u32 %v9650_v15, %v5042_v0 }
 0x77e   : > { %v4553_v7 = vsel %vm4542_vm1, nan, %v4552_v37  ;;  %v4761_v62 = vsel %vm4750_vm9, nan, %v4760_v20  ;;  %v4446_v13 = vxor.u32 2147483648, %v9643_v6  ;;  %v5043_v22 = vshll.u32 %v9660_v63, %v5041_v23 }
 0x77f   : > { %v9725_v56 = vshrl.u32 %v5135_v2, 30  ;;  %v5582_v41 = vpack.c.bf16 %v4761_v62, %v4553_v7  ;;  %vm4442_vm13 = vcmp.eq.s32.totalorder %v4440_v3, 0  ;;  %v5049_v11 = vor.u32 4788187, %v5048_v21 }
 0x780   : > { %v4444_v55 = vsel %vm4442_vm13, %v9643_v6, %v4443_v32  ;;  %vm4445_vm10 = vcmp.eq.s32.totalorder %v4440_v3, 2  ;;  %v4648_v15 = vand.u32 3, %v9626_v35  ;;  %v4651_v16 = vxor.u32 2147483648, %v9673_v25 }
 0x781   : > { %v5137_v38 = vshll.u32 %v9725_v56, 30  ;;  %5583 = vmatprep.subr.bf16.mxu1 %v5582_v41  ;;  %v4447_v28 = vsel %vm4445_vm10, %v4446_v13, %v9663_v1  ;;  %v4654_v27 = vxor.u32 2147483648, %v9668_v58  ;;  %v4946_v63 = vand.u32 2147483647, %v4945_v42 }
 0x782   : > { %v5045_v48 = vor.u32 %v5044_v47, %v5043_v22  ;;  %vm4441_vm3 = vcmp.lt.s32.totalorder %v4440_v3, 2  ;;  %vm4650_vm7 = vcmp.eq.s32.totalorder %v4648_v15, 0  ;;  %vm4653_vm15 = vcmp.eq.s32.totalorder %v4648_v15, 2 }
 0x783   : > { %v5138_v23 = vsub.s32 %v5134_v50, %v5137_v38  ;;  %v4448_v59 = vsel %vm4441_vm3, %v4444_v55, %v4447_v28  ;;  %v4652_v6 = vsel %vm4650_vm7, %v9668_v58, %v4651_v16  ;;  %v4948_v45 = vcvt.s32.f32 %v4941_v29 }
 0x784   : > { %v5050_v35 = vand.u32 2147483647, %v5049_v11  ;;  %vm4649_vm12 = vcmp.lt.s32.totalorder %v4648_v15, 2  ;;  %v4655_v49 = vsel %vm4653_vm15, %v4654_v27, %v9673_v25  ;;  %vm4438_vm1 = vweird.f32 %v9165_v9 }
 0x785   : > { %v5140_v51 = vsub.s32 0, %v5138_v23  ;;  %vm4646_vm9 = vweird.f32 %v9173_v26  ;;  %v4656_v1 = vsel %vm4649_vm12, %v4652_v6, %v4655_v49  ;;  %v4845_v61 = vmul.f32 %v4844_v14, %v4842_v5 }
 0x786   : > { %v5052_v17 = vcvt.s32.f32 %v5045_v48  ;;  %v4449_v4 = vsel %vm4438_vm1, nan, %v4448_v59  ;;  %v4657_v58 = vsel %vm4646_vm9, nan, %v4656_v1  ;;  %v4949_v54 = vmul.f32 %v4948_v45, %v4946_v63 }
 0x787   : > { %v5544_v52 = vmin.u32 %v5140_v51, %v5138_v23  ;;  %v5584_v44 = vpack.c.bf16 %v4657_v58, %v4449_v4  ;;  %v4846_v25 = vxor.u32 2147483648, %v4845_v61  ;;  %vm4764_vm11 = vcmp.lt.s32.totalorder %v9322_v46, 0 }
 0x788   : > { %v5053_v30 = vmul.f32 %v5052_v17, %v5050_v35  ;;  %v4950_v18 = vxor.u32 2147483648, %v4949_v54  ;;  %vm4868_vm4 = vcmp.lt.s32.totalorder %v9337_v12, 0  ;;  %vm4972_vm2 = vcmp.lt.s32.totalorder %v9387_v57, 0 }
 0x789   : > { %v5142_v29 = vclz %v5544_v52  ;;  %5585 = vmatpush1.bf16.msra.mxu1 %v5584_v44  ;;  %v4847_v26 = vsel %vm4764_vm11, %v4846_v25, %v4845_v61  ;;  %v5130_v5 = vadd.s32 %v9686_v19, %v9698_v8  ;;  %v10237_v0 = vand.u32 2147483647, %v9322_v46 }
 0x78a   : > { %v5054_v53 = vxor.u32 2147483648, %v5053_v30  ;;  %v4951_v40 = vsel %vm4868_vm4, %v4950_v18, %v4949_v54  ;;  %v10240_v50 = vand.u32 2147483647, %v9337_v12  ;;  %v10243_v20 = vand.u32 2147483647, %v9387_v57 }
 0x78b   : > { %v5545_v9 = vadd.s32 4294967294, %v5142_v29  ;;  %vm9752_vm8 = vcmp.le.f32.partialorder %v10237_v0, 0.7853982  ;;  %v5056_v62 = vsub.s32 4, %v9640_v43  ;;  %v4952_v22 = vsub.s32 4, %v9539_v60 }
 0x78c   : > { %vm9758_vm14 = vcmp.le.f32.partialorder %v10240_v50, 0.7853982  ;;  %v5055_v21 = vsel %vm4972_vm2, %v5054_v53, %v5053_v30  ;;  %v4850_v19 = vsel %vm9752_vm8, %v9322_v46, %v4847_v26  ;;  %vm9772_vm0 = vcmp.le.f32.partialorder %v10243_v20, 0.7853982 }
 0x78d   : > { %vm5546_vm6 = vcmp.lt.s32.totalorder %v5545_v9, 0  ;;  %v4954_v2 = vsel %vm9758_vm14, %v9337_v12, %v4951_v40  ;;  %v5058_v32 = vsel %vm9772_vm0, %v9387_v57, %v5055_v21  ;;  %5944 = vcosq.f32 %v4850_v19 }
 0x78e   : > { %v5145_v39 = vsel %vm5546_vm6, 0, %v5545_v9  ;;  %5946 = vcosq.f32 %v4954_v2  ;;  %v4848_v41 = vsub.s32 4, %v9476_v10  ;;  %v5057_v15 = vsel %vm4972_vm2, %v5056_v62, %v9640_v43 }
 0x78f   : > { %v5146_v14 = vsub.s32 32, %v5145_v39  ;;  %v5150_v42 = vsub.s32 4294967266, %v5145_v39  ;;  %v5147_v8 = vshll.u32 %v5138_v23, %v5145_v39  ;;  %5948 = vcosq.f32 %v5058_v32 }
 0x790   : > { %5950 = vsinq.f32 %v5058_v32  ;;  %v5160_v28 = vsub.s32 4, %v9725_v56  ;;  %v4953_v16 = vsel %vm4868_vm4, %v4952_v22, %v9539_v60  ;;  %v4849_v27 = vsel %vm4764_vm11, %v4848_v41, %v9476_v10  ;;  %v5178_v22 = vld [vmem:[%s9847_s9] sm:$0x7] }
 0x791   : > { %v5148_v33 = vshrl.u32 %v5130_v5, %v5146_v14  ;;  %v5151_v24 = vadd.s32 127, %v5150_v42  ;;  %5952 = vsinq.f32 %v4954_v2  ;;  %v5059_v48 = vsel %vm9772_vm0, 0, %v5057_v15 }
 0x792   : > { %5954 = vsinq.f32 %v4850_v19  ;;  %vm5076_vm13 = vcmp.lt.s32.totalorder %v9529_v34, 0  ;;  %vm9797_vm10 = vcmp.le.f32.partialorder %v5074_v36, 0.7853982  ;;  %v4955_v60 = vsel %vm9758_vm14, 0, %v4953_v16 }
 0x793   : > { %v5149_v47 = vor.u32 %v5148_v33, %v5147_v8  ;;  %v5152_v7 = vshll.u32 %v5151_v24, 23  ;;  %v5161_v59 = vsel %vm5076_vm13, %v5160_v28, %v9725_v56  ;;  %v4851_v10 = vsel %vm9752_vm8, 0, %v4849_v27 }
 0x794   : > { %v5063_v49 = vadd.s32 3, %v5059_v48  ;;  %v4959_v51 = vadd.s32 3, %v4955_v60  ;;  %v5163_v1 = vsel %vm9797_vm10, 0, %v5161_v59  ;;  %v4855_v17 = vadd.s32 3, %v4851_v10 }
 0x795   : > { %v5153_v13 = vor.u32 4788187, %v5152_v7  ;;  %v5156_v55 = vcvt.s32.f32 %v5149_v47  ;;  %v5167_v58 = vadd.s32 3, %v5163_v1  ;;  %vm5062_vm0 = vweird.f32 %v9387_v57 }
 0x796   : > { %v5064_v54 = vand.u32 3, %v5063_v49  ;;  %v4960_v52 = vand.u32 3, %v4959_v51  ;;  %v4856_v18 = vand.u32 3, %v4855_v17 }
 0x797   : > { %v5154_v11 = vand.u32 2147483647, %v5153_v13  ;;  %v5945_v6 = vpop.eup %5944  ;;  %v5168_v26 = vand.u32 3, %v5167_v58 }
 0x798   : > { %v5947_v35 = vpop.eup %5946  ;;  %v4862_v53 = vxor.u32 2147483648, %v5945_v6  ;;  %vm5066_vm3 = vcmp.eq.s32.totalorder %v5064_v54, 0  ;;  %vm5069_vm7 = vcmp.eq.s32.totalorder %v5064_v54, 2  ;;  %vm4962_vm15 = vcmp.eq.s32.totalorder %v4960_v52, 0 }
 0x799   : > { %v5157_v38 = vmul.f32 %v5156_v55, %v5154_v11  ;;  %v5949_v36 = vpop.eup %5948  ;;  %v4966_v25 = vxor.u32 2147483648, %v5947_v35  ;;  %vm4965_vm12 = vcmp.eq.s32.totalorder %v4960_v52, 2  ;;  %vm4858_vm1 = vcmp.eq.s32.totalorder %v4856_v18, 0 }
 0x79a   : > { %v5951_v61 = vpop.eup %5950  ;;  %v5070_v30 = vxor.u32 2147483648, %v5949_v36  ;;  %vm4861_vm9 = vcmp.eq.s32.totalorder %v4856_v18, 2  ;;  %vm5065_vm11 = vcmp.lt.s32.totalorder %v5064_v54, 2  ;;  %vm4961_vm6 = vcmp.lt.s32.totalorder %v4960_v52, 2 }
 0x79b   : > { %v5158_v63 = vxor.u32 2147483648, %v5157_v38  ;;  %v5953_v56 = vpop.eup %5952  ;;  %v5067_v44 = vxor.u32 2147483648, %v5951_v61  ;;  %vm5173_vm4 = vcmp.eq.s32.totalorder %v5168_v26, 2  ;;  %vm5170_vm2 = vcmp.eq.s32.totalorder %v5168_v26, 0 }
 0x79c   : > { %v5955_v4 = vpop.eup %5954  ;;  %v4963_v29 = vxor.u32 2147483648, %v5953_v56  ;;  %v5071_v40 = vsel %vm5069_vm7, %v5070_v30, %v5951_v61  ;;  %v4967_v42 = vsel %vm4965_vm12, %v4966_v25, %v5953_v56  ;;  %vm4857_vm8 = vcmp.lt.s32.totalorder %v4856_v18, 2 }
 0x79d   : > { %v5159_v23 = vsel %vm5076_vm13, %v5158_v63, %v5157_v38  ;;  %v4859_v9 = vxor.u32 2147483648, %v5955_v4  ;;  %v5068_v39 = vsel %vm5066_vm3, %v5949_v36, %v5067_v44  ;;  %v4863_v37 = vsel %vm4861_vm9, %v4862_v53, %v5955_v4 }
 0x79e   : > { %v5162_v45 = vsel %vm9797_vm10, %v9529_v34, %v5159_v23  ;;  %v4964_v14 = vsel %vm4962_vm15, %v5947_v35, %v4963_v29  ;;  %v5072_v19 = vsel %vm5065_vm11, %v5068_v39, %v5071_v40  ;;  %vm5169_vm14 = vcmp.lt.s32.totalorder %v5168_v26, 2 }
 0x79f   : > { %5956 = vcosq.f32 %v5162_v45  ;;  %v4860_v50 = vsel %vm4858_vm1, %v5945_v6, %v4859_v9  ;;  %v4968_v8 = vsel %vm4961_vm6, %v4964_v14, %v4967_v42  ;;  %vm4958_vm13 = vweird.f32 %v9337_v12  ;;  %v5183_v12 = vpop.permute.xlu0 %5182 }
 0x7a0   : > { %5958 = vsinq.f32 %v5162_v45  ;;  %v4864_v2 = vsel %vm4857_vm8, %v4860_v50, %v4863_v37  ;;  %vm5166_vm10 = vweird.f32 %v9529_v34  ;;  %v5073_v3 = vsel %vm5062_vm0, nan, %v5072_v19 }
 0x7a1   : > { %v4969_v32 = vsel %vm4958_vm13, nan, %v4968_v8  ;;  %vm4854_vm3 = vweird.f32 %v9322_v46 }
 0x7a2   : > { %v4865_v62 = vsel %vm4854_vm3, nan, %v4864_v2 }
 0x7a3   : > { %v5588_v13 = vpack.c.bf16 %v5073_v3, %v4865_v62 }
 0x7a9   : > { %v5957_v5 = vpop.eup %5956 }
 0x7aa   : > { %v5959_v0 = vpop.eup %5958  ;;  %v5174_v31 = vxor.u32 2147483648, %v5957_v5 }
 0x7ab   : > { %v5171_v21 = vxor.u32 2147483648, %v5959_v0 }
 0x7ac   : > { %v5175_v33 = vsel %vm5173_vm4, %v5174_v31, %v5959_v0 }
 0x7ad   : > { %v5172_v24 = vsel %vm5170_vm2, %v5957_v5, %v5171_v21 }
 0x7ae   : > { %v5176_v20 = vsel %vm5169_vm14, %v5172_v24, %v5175_v33 }
 0x7af   : > { %v5177_v47 = vsel %vm5166_vm10, nan, %v5176_v20 }
 0x7b0   : > { %v5586_v7 = vpack.c.bf16 %v5177_v47, %v4969_v32 }
 0x7b2   : > { %5587 = vmatprep.subr.bf16.mxu1 %v5586_v7 }
 0x7b3   : > { %5589 = vmatpush1.bf16.msra.mxu1 %v5588_v13 }
 0x7b6   : > { %5547 = vmatmul.mubr.msk.f32.vlgmr.msra.gmra.mrb[16].mxu1 %vm3283_vm5, %v5178_v22 }
 0x889   : > { %v5254_v57 = vpop.f32.mrb[16].mxu1 }
 0x88a   : > { %v5255_v34 = vadd.f32 %v5254_v57, %v5183_v12  ;;  %v5256_v41 = vpop.f32.mrb[17].mxu1 }
 0x88b   : > { %v5257_v11 = vadd.f32 %v5256_v41, %v5183_v12 }
 0x88d   : > { %v5261_v46 = vcombine.low %v5255_v34, %v5257_v11 }
 0x88f   : > { %5263 = vst [vmem:[%s424_s26] sm:$0x77] %v5261_v46 }
 0x890 PF: > { %s21_s21 = sadd.s32 1, %s5998_s21   ;;  %s10248_s17 = smov %s5990_s19 }
 0x891   : > { %p18_p7 = scmp.ge.s32.totalorder %s21_s21, 10   ;;  %s10249_s18 = smov %s5994_s20 }
 0x892   : > { %s10250_s19 = smov %s10253_s22  ;;  %s10251_s20 = smov %s10257_s23 }
 0x893   :  { %20 = sbr.rel (!%p18_p7) target bundleno = 3 (0x3), region = 94 }

</bundles_post_ra>
